<compile_context>
chip_gen: v7x
topology: tpu7x:2x2x1
jax: 0.10.0
libtpu: 0.0.40
codegen_flags: <defaults>
</compile_context>

<pallas_src>
import functools

import jax
import jax.numpy as jnp
import numpy as np
from jax.experimental import pallas as pl
from jax.experimental.pallas import tpu as pltpu


def _simple_voxel_radius_kernel(feat_ref, inv_ref, out_ref, *,
                                num_points, num_channels, num_input_features):
    """feat_ref: (tn, T*C); inv_ref: (tn, 1) f32 = 1/num_voxels; out_ref: (tn, NIF-1)."""
    x = feat_ref[...].astype(jnp.float32)           # (tn, T*C)
    inv = inv_ref[...]                               # (tn, 1) f32

    t, c = num_points, num_channels
    # Per-channel sum over the point axis (exact f32 adds, fully unrolled).
    if t & (t - 1) == 0:
        # Balanced halving tree over wide lane slices: log2(T) relayouts + adds.
        width = t * c
        while width > c:
            half = width // 2
            x = x[:, :half] + x[:, half:width]
            width = half
        psum = x                                     # (tn, C)
    else:
        psum = x[:, 0:c]
        for i in range(1, t):
            psum = psum + x[:, i * c:(i + 1) * c]    # (tn, C)

    # Mean via multiply with the precomputed reciprocal (no divide in-kernel).
    pmean = psum[:, :num_input_features] * inv       # (tn, NIF)

    m0 = pmean[:, 0:1]
    m1 = pmean[:, 1:2]
    radius = jnp.sqrt(m0 * m0 + m1 * m1)             # (tn, 1)

    # Direct slice stores -- no narrow concatenated temporary.
    out_ref[:, 0:1] = radius.astype(out_ref.dtype)
    if num_input_features > 2:
        out_ref[:, 1:] = pmean[:, 2:num_input_features].astype(out_ref.dtype)


def simple_voxel_radius(features, num_voxels, coors=None, *,
                        num_input_features=4, tn=8192,
                        vmem_limit_bytes=32 * 1024 * 1024):
    """features: (N, T, C) float; num_voxels: (N,) int; returns (N, num_input_features-1)."""
    del coors  # unused by the reference forward
    n, t, c = features.shape
    assert 2 <= num_input_features <= c
    assert tn % 8 == 0, "tn must be a multiple of 8 (sublane alignment)"
    out_dim = num_input_features - 1

    # Clamp the tile to the (sublane-rounded) problem size; the last grid block may be
    # ragged -- Pallas masks the partial writeback, so no padding copy is needed.
    tn_eff = max(8, min(tn, ((n + 7) // 8) * 8))
    num_tiles = pl.cdiv(n, tn_eff)

    f2d = features.reshape(n, t * c)                         # metadata-only reshape
    inv_nv = (1.0 / num_voxels.astype(jnp.float32)).reshape(n, 1)

    kernel = functools.partial(
        _simple_voxel_radius_kernel,
        num_points=t, num_channels=c, num_input_features=num_input_features)

    itemsize = jnp.dtype(features.dtype).itemsize
    cost = pl.CostEstimate(
        flops=n * (t * c + num_input_features + 4),
        transcendentals=n,                                   # one sqrt per voxel
        bytes_accessed=n * (t * c * itemsize + 4 + out_dim * itemsize))

    out = pl.pallas_call(
        kernel,
        out_shape=jax.ShapeDtypeStruct((n, out_dim), features.dtype),
        grid_spec=pltpu.PrefetchScalarGridSpec(
            num_scalar_prefetch=0,
            grid=(num_tiles,),
            in_specs=[
                pl.BlockSpec((tn_eff, t * c), lambda i: (i, 0)),
                pl.BlockSpec((tn_eff, 1), lambda i: (i, 0)),
            ],
            out_specs=pl.BlockSpec((tn_eff, out_dim), lambda i: (i, 0)),
        ),
        compiler_params=pltpu.CompilerParams(
            # On v7x, switching this grid axis to pltpu.CORE_PARALLEL can engage both
            # TensorCores; "parallel" is kept as the generation-safe default.
            dimension_semantics=("parallel",),
            vmem_limit_bytes=vmem_limit_bytes),
        cost_estimate=cost,
    )(f2d, inv_nv)
    return out


def reference_forward(features, num_voxels, num_input_features=4):
    """Pure-JAX mirror of SimpleVoxelRadius.forward."""
    pm = (jnp.sum(features[:, :, :num_input_features], axis=1)
          / num_voxels.astype(features.dtype).reshape(-1, 1))
    r = jnp.sqrt(jnp.sum(pm[:, :2] * pm[:, :2], axis=1, keepdims=True))
    return jnp.concatenate([r, pm[:, 2:num_input_features]], axis=1)


if __name__ == "__main__":
    key = jax.random.PRNGKey(0)
    k_feat, k_nv = jax.random.split(key, 2)

    # Small demo shapes consistent with the voxel encoder: N voxels, T points, C feats.
    N, T, C = 1000, 8, 4
    num_voxels = jax.random.randint(k_nv, (N,), minval=1, maxval=T + 1, dtype=jnp.int32)
    raw = jax.random.normal(k_feat, (N, T, C), jnp.float32)
    # Zero out padded point slots, as the voxelizer would.
    valid = (jnp.arange(T)[None, :, None] < num_voxels[:, None, None]).astype(jnp.float32)
    features = raw * valid

    ref = reference_forward(features, num_voxels)

    # Default (large-tile) config: single block covering all voxels.
    out = jax.block_until_ready(simple_voxel_radius(features, num_voxels))
    np.testing.assert_allclose(np.asarray(out), np.asarray(ref), rtol=1e-5, atol=1e-5)

    # Small-tile config: exercises the multi-step grid and the ragged last block
    # (1000 = 512 + 488) with no wrapper-side padding copy.
    out_small = jax.block_until_ready(simple_voxel_radius(features, num_voxels, tn=512))
    np.testing.assert_allclose(np.asarray(out_small), np.asarray(ref), rtol=1e-5, atol=1e-5)

    print("KERNEL_OK")
</pallas_src>

<mosaic_0001>
module attributes {stable_mosaic.version = 11 : i64} {
  func.func @_simple_voxel_radius_kernel(%arg0: i32, %arg1: memref<1000x32xf32, #tpu.memory_space<vmem>>, %arg2: memref<1000x1xf32, #tpu.memory_space<vmem>>, %arg3: memref<1000x3xf32, #tpu.memory_space<vmem>>) attributes {dimension_semantics = [#tpu.dimension_semantics<parallel>], iteration_bounds = array<i64: 1>, scalar_prefetch = 0 : i64, scratch_operands = 0 : i64, tpu.core_type = #tpu.core_type<tc>, window_params = [{transform_indices = @transform_0, window_bounds = array<i64: 1000, 32>}, {transform_indices = @transform_1, window_bounds = array<i64: 1000, 1>}, {transform_indices = @transform_2, window_bounds = array<i64: 1000, 3>}]} {
    %c0 = arith.constant 0 : index
    %c0_0 = arith.constant 0 : index
    %0 = vector.load %arg1[%c0, %c0_0] : memref<1000x32xf32, #tpu.memory_space<vmem>>, vector<1000x32xf32>
    %c0_1 = arith.constant 0 : index
    %c0_2 = arith.constant 0 : index
    %1 = vector.load %arg2[%c0_1, %c0_2] : memref<1000x1xf32, #tpu.memory_space<vmem>>, vector<1000x1xf32>
    %2 = vector.extract_strided_slice %0 {offsets = [0, 0], sizes = [1000, 16], strides = [1, 1]} : vector<1000x32xf32> to vector<1000x16xf32>
    %3 = vector.extract_strided_slice %0 {offsets = [0, 16], sizes = [1000, 16], strides = [1, 1]} : vector<1000x32xf32> to vector<1000x16xf32>
    %4 = arith.addf %2, %3 : vector<1000x16xf32>
    %5 = vector.extract_strided_slice %4 {offsets = [0, 0], sizes = [1000, 8], strides = [1, 1]} : vector<1000x16xf32> to vector<1000x8xf32>
    %6 = vector.extract_strided_slice %4 {offsets = [0, 8], sizes = [1000, 8], strides = [1, 1]} : vector<1000x16xf32> to vector<1000x8xf32>
    %7 = arith.addf %5, %6 : vector<1000x8xf32>
    %8 = vector.extract_strided_slice %7 {offsets = [0, 0], sizes = [1000, 4], strides = [1, 1]} : vector<1000x8xf32> to vector<1000x4xf32>
    %9 = vector.extract_strided_slice %7 {offsets = [0, 4], sizes = [1000, 4], strides = [1, 1]} : vector<1000x8xf32> to vector<1000x4xf32>
    %10 = arith.addf %8, %9 : vector<1000x4xf32>
    %11 = vector.broadcast %1 : vector<1000x1xf32> to vector<1000x4xf32>
    %12 = arith.mulf %10, %11 : vector<1000x4xf32>
    %13 = vector.extract_strided_slice %12 {offsets = [0, 0], sizes = [1000, 1], strides = [1, 1]} : vector<1000x4xf32> to vector<1000x1xf32>
    %14 = vector.extract_strided_slice %12 {offsets = [0, 1], sizes = [1000, 1], strides = [1, 1]} : vector<1000x4xf32> to vector<1000x1xf32>
    %15 = arith.mulf %13, %13 : vector<1000x1xf32>
    %16 = arith.mulf %14, %14 : vector<1000x1xf32>
    %17 = arith.addf %15, %16 : vector<1000x1xf32>
    %18 = math.sqrt %17 : vector<1000x1xf32>
    %c0_3 = arith.constant 0 : index
    %c0_4 = arith.constant 0 : index
    %19 = vector.load %arg3[%c0_3, %c0_4] : memref<1000x3xf32, #tpu.memory_space<vmem>>, vector<1000x1xf32>
    tpu.vector_store %arg3[%c0_3, %c0_4], %18 {strides = array<i32>} : memref<1000x3xf32, #tpu.memory_space<vmem>>, vector<1000x1xf32>,
    %20 = vector.extract_strided_slice %12 {offsets = [0, 2], sizes = [1000, 2], strides = [1, 1]} : vector<1000x4xf32> to vector<1000x2xf32>
    %c0_5 = arith.constant 0 : index
    %c1 = arith.constant 1 : index
    %21 = vector.load %arg3[%c0_5, %c1] : memref<1000x3xf32, #tpu.memory_space<vmem>>, vector<1000x2xf32>
    tpu.vector_store %arg3[%c0_5, %c1], %20 {strides = array<i32>} : memref<1000x3xf32, #tpu.memory_space<vmem>>, vector<1000x2xf32>,
    return
  }
  func.func @transform_0(%arg0: i32) -> (i32, i32) {
    %c0_i32 = arith.constant 0 : i32
    %c0_i32_0 = arith.constant 0 : i32
    return %arg0, %c0_i32 : i32, i32
  }
  func.func @transform_1(%arg0: i32) -> (i32, i32) {
    %c0_i32 = arith.constant 0 : i32
    %c0_i32_0 = arith.constant 0 : i32
    return %arg0, %c0_i32 : i32, i32
  }
  func.func @transform_2(%arg0: i32) -> (i32, i32) {
    %c0_i32 = arith.constant 0 : i32
    %c0_i32_0 = arith.constant 0 : i32
    return %arg0, %c0_i32 : i32, i32
  }
}

</mosaic_0001>

<bundles_post_ra>
// kernel: tpu_custom_call.1
= control target key start
LH: loop header
LB: loop body
LE: loop exit
PB: predicated region body
PF: predicated region fallthrough
CT: control target
= control target key end

     0   :  { %s5524_s13 = smov 112   ;;  %s5525_s17 = smov 120   ;;  %vm4511_vm0 = vcmask 7168   ;;  %s13402_s0 = inlined_call_operand.vmem [shape: f32[1000,32], index: 0, kind: input, shape index: {}]   ;;  %s13403_s1 = inlined_call_operand.vmem [shape: f32[1000,1], index: 1, kind: input, shape index: {}]   ;;  %s13404_s2 = inlined_call_operand.vmem [shape: f32[1000,3], index: 2, kind: output, shape index: {}]  }
   0x1   :  { %v5547_v0 = vld [vmem:[%s13402_s0 + $0x10] sm:$0xff]  ;;  %v5552_v1 = vld [vmem:[%s13402_s0] sm:$0xff]  ;;  %v5561_v2 = vld [vmem:[%s13402_s0 + $0x18] sm:$0xff] }
   0x2   :  { %390 = vrot.lane.b32.xlu1 %v5547_v0, %s5524_s13  ;;  %386 = vrot.lane.b32.xlu0 %v5552_v1, %s5524_s13  ;;  %v5566_v3 = vld [vmem:[%s13402_s0 + $0x8] sm:$0xff]  ;;  %v5580_v5 = vld [vmem:[%s13402_s0 + $0x20] sm:$0xff] }
   0x3   :  { %v5575_v4 = vld [vmem:[%s13402_s0 + $0x28] sm:$0xff]  ;;  %v5589_v6 = vld [vmem:[%s13402_s0 + $0x38] sm:$0xff]  ;;  %v5594_v7 = vld [vmem:[%s13402_s0 + $0x30] sm:$0xff] }
   0x4   :  { %v5603_v8 = vld [vmem:[%s13402_s0 + $0x48] sm:$0xff]  ;;  %v5608_v9 = vld [vmem:[%s13402_s0 + $0x40] sm:$0xff]  ;;  %v5617_v10 = vld [vmem:[%s13402_s0 + $0x58] sm:$0xff] }
   0x5   :  { %v5622_v11 = vld [vmem:[%s13402_s0 + $0x50] sm:$0xff]  ;;  %v5631_v12 = vld [vmem:[%s13402_s0 + $0x68] sm:$0xff]  ;;  %v5636_v13 = vld [vmem:[%s13402_s0 + $0x60] sm:$0xff] }
   0x6   :  { %392 = vrot.lane.b32.xlu1 %v5561_v2, %s5524_s13  ;;  %388 = vrot.lane.b32.xlu0 %v5566_v3, %s5524_s13  ;;  %v5645_v14 = vld [vmem:[%s13402_s0 + $0x78] sm:$0xff]  ;;  %v5650_v15 = vld [vmem:[%s13402_s0 + $0x70] sm:$0xff] }
   0x7   :  { %v5659_v16 = vld [vmem:[%s13402_s0 + $0x88] sm:$0xff]  ;;  %v5664_v17 = vld [vmem:[%s13402_s0 + $0x80] sm:$0xff]  ;;  %v5673_v18 = vld [vmem:[%s13402_s0 + $0x98] sm:$0xff] }
   0x8   :  { %v5678_v19 = vld [vmem:[%s13402_s0 + $0x90] sm:$0xff]  ;;  %v5687_v20 = vld [vmem:[%s13402_s0 + $0xa8] sm:$0xff]  ;;  %v5692_v21 = vld [vmem:[%s13402_s0 + $0xa0] sm:$0xff] }
   0x9   :  { %v5701_v22 = vld [vmem:[%s13402_s0 + $0xb8] sm:$0xff]  ;;  %v5706_v23 = vld [vmem:[%s13402_s0 + $0xb0] sm:$0xff]  ;;  %v5715_v24 = vld [vmem:[%s13402_s0 + $0xc8] sm:$0xff] }
   0xa   :  { %396 = vrot.lane.b32.xlu1 %v5575_v4, %s5524_s13  ;;  %394 = vrot.lane.b32.xlu0 %v5580_v5, %s5524_s13  ;;  %v5720_v25 = vld [vmem:[%s13402_s0 + $0xc0] sm:$0xff]  ;;  %v5729_v26 = vld [vmem:[%s13402_s0 + $0xd8] sm:$0xff] }
   0xb   :  { %v5734_v27 = vld [vmem:[%s13402_s0 + $0xd0] sm:$0xff]  ;;  %v5743_v28 = vld [vmem:[%s13402_s0 + $0xe8] sm:$0xff]  ;;  %v5748_v29 = vld [vmem:[%s13402_s0 + $0xe0] sm:$0xff] }
   0xc   :  { %13964 = vst [vmem:[#allocation2_spill] sm:$0xff] %v5743_v28  ;;  %v5757_v30 = vld [vmem:[%s13402_s0 + $0xf8] sm:$0xff]  ;;  %v5762_v31 = vld [vmem:[%s13402_s0 + $0xf0] sm:$0xff]  ;;  %v5771_v32 = vld [vmem:[%s13402_s0 + $0x108] sm:$0xff] }
   0xd   :  { %13965 = vst [vmem:[#allocation3_spill] sm:$0xff] %v5757_v30  ;;  %13966 = vst [vmem:[#allocation4_spill] sm:$0xff] %v5762_v31  ;;  %v5776_v33 = vld [vmem:[%s13402_s0 + $0x100] sm:$0xff]  ;;  %v5785_v34 = vld [vmem:[%s13402_s0 + $0x118] sm:$0xff] }
   0xe   :  { %400 = vrot.lane.b32.xlu1 %v5589_v6, %s5524_s13  ;;  %398 = vrot.lane.b32.xlu0 %v5594_v7, %s5524_s13  ;;  %13967 = vst [vmem:[#allocation5_spill] sm:$0xff] %v5771_v32  ;;  %13968 = vst [vmem:[#allocation6_spill] sm:$0xff] %v5776_v33  ;;  %v5790_v35 = vld [vmem:[%s13402_s0 + $0x110] sm:$0xff]  ;;  %v5799_v36 = vld [vmem:[%s13402_s0 + $0x128] sm:$0xff] }
   0xf   :  { %13969 = vst [vmem:[#allocation7_spill] sm:$0xff] %v5785_v34  ;;  %13970 = vst [vmem:[#allocation8_spill] sm:$0xff] %v5790_v35  ;;  %v5804_v37 = vld [vmem:[%s13402_s0 + $0x120] sm:$0xff]  ;;  %v5813_v38 = vld [vmem:[%s13402_s0 + $0x138] sm:$0xff] }
  0x10   :  { %13971 = vst [vmem:[#allocation9_spill] sm:$0xff] %v5799_v36  ;;  %13972 = vst [vmem:[#allocation10_spill] sm:$0xff] %v5804_v37  ;;  %v5818_v39 = vld [vmem:[%s13402_s0 + $0x130] sm:$0xff]  ;;  %v5827_v40 = vld [vmem:[%s13402_s0 + $0x148] sm:$0xff] }
  0x11   :  { %13973 = vst [vmem:[#allocation11_spill] sm:$0xff] %v5813_v38  ;;  %13974 = vst [vmem:[#allocation12_spill] sm:$0xff] %v5818_v39  ;;  %v5832_v41 = vld [vmem:[%s13402_s0 + $0x140] sm:$0xff]  ;;  %v5841_v42 = vld [vmem:[%s13402_s0 + $0x158] sm:$0xff] }
  0x12   :  { %404 = vrot.lane.b32.xlu1 %v5603_v8, %s5524_s13  ;;  %402 = vrot.lane.b32.xlu0 %v5608_v9, %s5524_s13  ;;  %13975 = vst [vmem:[#allocation13_spill] sm:$0xff] %v5827_v40  ;;  %13976 = vst [vmem:[#allocation14_spill] sm:$0xff] %v5832_v41  ;;  %v5846_v43 = vld [vmem:[%s13402_s0 + $0x150] sm:$0xff]  ;;  %v5855_v44 = vld [vmem:[%s13402_s0 + $0x168] sm:$0xff] }
  0x13   :  { %13977 = vst [vmem:[#allocation15_spill] sm:$0xff] %v5841_v42  ;;  %13978 = vst [vmem:[#allocation16_spill] sm:$0xff] %v5846_v43  ;;  %v5860_v45 = vld [vmem:[%s13402_s0 + $0x160] sm:$0xff]  ;;  %v5869_v46 = vld [vmem:[%s13402_s0 + $0x178] sm:$0xff] }
  0x14   :  { %13979 = vst [vmem:[#allocation17_spill] sm:$0xff] %v5855_v44  ;;  %13980 = vst [vmem:[#allocation18_spill] sm:$0xff] %v5860_v45  ;;  %v5874_v47 = vld [vmem:[%s13402_s0 + $0x170] sm:$0xff]  ;;  %v5883_v48 = vld [vmem:[%s13402_s0 + $0x188] sm:$0xff] }
  0x15   :  { %13981 = vst [vmem:[#allocation19_spill] sm:$0xff] %v5869_v46  ;;  %13982 = vst [vmem:[#allocation20_spill] sm:$0xff] %v5874_v47  ;;  %v5888_v49 = vld [vmem:[%s13402_s0 + $0x180] sm:$0xff]  ;;  %v5897_v50 = vld [vmem:[%s13402_s0 + $0x198] sm:$0xff] }
  0x16   :  { %408 = vrot.lane.b32.xlu1 %v5617_v10, %s5524_s13  ;;  %406 = vrot.lane.b32.xlu0 %v5622_v11, %s5524_s13  ;;  %13983 = vst [vmem:[#allocation21_spill] sm:$0xff] %v5883_v48  ;;  %13984 = vst [vmem:[#allocation22_spill] sm:$0xff] %v5888_v49  ;;  %v5902_v51 = vld [vmem:[%s13402_s0 + $0x190] sm:$0xff]  ;;  %v5911_v52 = vld [vmem:[%s13402_s0 + $0x1a8] sm:$0xff] }
  0x17   :  { %13985 = vst [vmem:[#allocation23_spill] sm:$0xff] %v5897_v50  ;;  %13986 = vst [vmem:[#allocation24_spill] sm:$0xff] %v5902_v51  ;;  %v5916_v53 = vld [vmem:[%s13402_s0 + $0x1a0] sm:$0xff]  ;;  %v5925_v54 = vld [vmem:[%s13402_s0 + $0x1b8] sm:$0xff] }
  0x18   :  { %13987 = vst [vmem:[#allocation25_spill] sm:$0xff] %v5911_v52  ;;  %13988 = vst [vmem:[#allocation26_spill] sm:$0xff] %v5916_v53  ;;  %v5930_v55 = vld [vmem:[%s13402_s0 + $0x1b0] sm:$0xff]  ;;  %v5939_v56 = vld [vmem:[%s13402_s0 + $0x1c8] sm:$0xff] }
  0x19   :  { %13989 = vst [vmem:[#allocation27_spill] sm:$0xff] %v5925_v54  ;;  %13990 = vst [vmem:[#allocation28_spill] sm:$0xff] %v5930_v55  ;;  %v5944_v57 = vld [vmem:[%s13402_s0 + $0x1c0] sm:$0xff]  ;;  %v5953_v58 = vld [vmem:[%s13402_s0 + $0x1d8] sm:$0xff] }
  0x1a   :  { %412 = vrot.lane.b32.xlu1 %v5631_v12, %s5524_s13  ;;  %410 = vrot.lane.b32.xlu0 %v5636_v13, %s5524_s13  ;;  %13991 = vst [vmem:[#allocation29_spill] sm:$0xff] %v5939_v56  ;;  %13992 = vst [vmem:[#allocation30_spill] sm:$0xff] %v5944_v57  ;;  %v5958_v59 = vld [vmem:[%s13402_s0 + $0x1d0] sm:$0xff]  ;;  %v5971_v62 = vld [vmem:[%s13402_s0 + $0x1e8] sm:$0xff] }
  0x1b   :  { %13993 = vst [vmem:[#allocation31_spill] sm:$0xff] %v5953_v58  ;;  %13994 = vst [vmem:[#allocation32_spill] sm:$0xff] %v5958_v59  ;;  %v5976_v63 = vld [vmem:[%s13402_s0 + $0x1e0] sm:$0xff] }
  0x1c   :  { %13995 = vst [vmem:[#allocation33_spill] sm:$0xff] %v5971_v62  ;;  %13996 = vst [vmem:[#allocation34_spill] sm:$0xff] %v5976_v63 }
  0x1e   :  { %416 = vrot.lane.b32.xlu1 %v5645_v14, %s5524_s13  ;;  %414 = vrot.lane.b32.xlu0 %v5650_v15, %s5524_s13 }
  0x22   :  { %420 = vrot.lane.b32.xlu1 %v5659_v16, %s5524_s13  ;;  %418 = vrot.lane.b32.xlu0 %v5664_v17, %s5524_s13 }
  0x26   :  { %424 = vrot.lane.b32.xlu1 %v5673_v18, %s5524_s13  ;;  %422 = vrot.lane.b32.xlu0 %v5678_v19, %s5524_s13 }
  0x2a   :  { %428 = vrot.lane.b32.xlu1 %v5687_v20, %s5524_s13  ;;  %426 = vrot.lane.b32.xlu0 %v5692_v21, %s5524_s13 }
  0x2e   :  { %432 = vrot.lane.b32.xlu1 %v5701_v22, %s5524_s13  ;;  %430 = vrot.lane.b32.xlu0 %v5706_v23, %s5524_s13 }
  0x32   :  { %436 = vrot.lane.b32.xlu1 %v5715_v24, %s5524_s13  ;;  %434 = vrot.lane.b32.xlu0 %v5720_v25, %s5524_s13 }
  0x36   :  { %440 = vrot.lane.b32.xlu1 %v5729_v26, %s5524_s13  ;;  %438 = vrot.lane.b32.xlu0 %v5734_v27, %s5524_s13 }
  0x3a   :  { %444 = vrot.lane.b32.xlu1 %v5743_v28, %s5524_s13  ;;  %442 = vrot.lane.b32.xlu0 %v5748_v29, %s5524_s13 }
  0x3e   :  { %448 = vrot.lane.b32.xlu1 %v5757_v30, %s5524_s13  ;;  %446 = vrot.lane.b32.xlu0 %v5762_v31, %s5524_s13 }
  0x42   :  { %452 = vrot.lane.b32.xlu1 %v5771_v32, %s5524_s13  ;;  %450 = vrot.lane.b32.xlu0 %v5776_v33, %s5524_s13 }
  0x46   :  { %456 = vrot.lane.b32.xlu1 %v5785_v34, %s5524_s13  ;;  %454 = vrot.lane.b32.xlu0 %v5790_v35, %s5524_s13 }
  0x4a   :  { %460 = vrot.lane.b32.xlu1 %v5799_v36, %s5524_s13  ;;  %458 = vrot.lane.b32.xlu0 %v5804_v37, %s5524_s13 }
  0x4e   :  { %464 = vrot.lane.b32.xlu1 %v5813_v38, %s5524_s13  ;;  %462 = vrot.lane.b32.xlu0 %v5818_v39, %s5524_s13 }
  0x52   :  { %468 = vrot.lane.b32.xlu1 %v5827_v40, %s5524_s13  ;;  %466 = vrot.lane.b32.xlu0 %v5832_v41, %s5524_s13 }
  0x56   :  { %472 = vrot.lane.b32.xlu1 %v5841_v42, %s5524_s13  ;;  %470 = vrot.lane.b32.xlu0 %v5846_v43, %s5524_s13 }
  0x5a   :  { %476 = vrot.lane.b32.xlu1 %v5855_v44, %s5524_s13  ;;  %474 = vrot.lane.b32.xlu0 %v5860_v45, %s5524_s13 }
  0x5e   :  { %480 = vrot.lane.b32.xlu1 %v5869_v46, %s5524_s13  ;;  %478 = vrot.lane.b32.xlu0 %v5874_v47, %s5524_s13 }
  0x62   :  { %484 = vrot.lane.b32.xlu1 %v5883_v48, %s5524_s13  ;;  %482 = vrot.lane.b32.xlu0 %v5888_v49, %s5524_s13 }
  0x66   :  { %488 = vrot.lane.b32.xlu1 %v5897_v50, %s5524_s13  ;;  %486 = vrot.lane.b32.xlu0 %v5902_v51, %s5524_s13 }
  0x6a   :  { %492 = vrot.lane.b32.xlu1 %v5911_v52, %s5524_s13  ;;  %490 = vrot.lane.b32.xlu0 %v5916_v53, %s5524_s13 }
  0x6e   :  { %496 = vrot.lane.b32.xlu1 %v5925_v54, %s5524_s13  ;;  %494 = vrot.lane.b32.xlu0 %v5930_v55, %s5524_s13 }
  0x72   :  { %500 = vrot.lane.b32.xlu1 %v5939_v56, %s5524_s13  ;;  %498 = vrot.lane.b32.xlu0 %v5944_v57, %s5524_s13 }
  0x74   :  { %v5960_v60 = vpop.permute.xlu1 %390  ;;  %v5962_v61 = vpop.permute.xlu0 %386 }
  0x76   :  { %504 = vrot.lane.b32.xlu1 %v5953_v58, %s5524_s13  ;;  %502 = vrot.lane.b32.xlu0 %v5958_v59, %s5524_s13  ;;  %v5989_v58 = vld [vmem:[%s13402_s0 + $0x1f8] sm:$0xff]  ;;  %v5994_v59 = vld [vmem:[%s13402_s0 + $0x1f0] sm:$0xff] }
  0x77   :  { %13997 = vst [vmem:[#allocation35_spill] sm:$0xff] %v5989_v58  ;;  %13998 = vst [vmem:[#allocation36_spill] sm:$0xff] %v5994_v59 }
  0x78   :  { %v5978_v56 = vpop.permute.xlu1 %392  ;;  %v5980_v57 = vpop.permute.xlu0 %388 }
  0x7a   :  { %508 = vrot.lane.b32.xlu1 %v5971_v62, %s5524_s13  ;;  %506 = vrot.lane.b32.xlu0 %v5976_v63, %s5524_s13  ;;  %v6007_v62 = vld [vmem:[%s13402_s0 + $0x208] sm:$0xff]  ;;  %v6012_v63 = vld [vmem:[%s13402_s0 + $0x200] sm:$0xff] }
  0x7b   :  { %13999 = vst [vmem:[#allocation37_spill] sm:$0xff] %v6007_v62  ;;  %14000 = vst [vmem:[#allocation38_spill] sm:$0xff] %v6012_v63 }
  0x7c   :  { %v5996_v54 = vpop.permute.xlu1 %396  ;;  %v5998_v55 = vpop.permute.xlu0 %394 }
  0x7e   :  { %512 = vrot.lane.b32.xlu1 %v5989_v58, %s5524_s13  ;;  %510 = vrot.lane.b32.xlu0 %v5994_v59, %s5524_s13  ;;  %v6025_v58 = vld [vmem:[%s13402_s0 + $0x218] sm:$0xff]  ;;  %v6030_v59 = vld [vmem:[%s13402_s0 + $0x210] sm:$0xff] }
  0x7f   :  { %14001 = vst [vmem:[#allocation39_spill] sm:$0xff] %v6025_v58  ;;  %14002 = vst [vmem:[#allocation40_spill] sm:$0xff] %v6030_v59 }
  0x80   :  { %v6014_v52 = vpop.permute.xlu1 %400  ;;  %v6016_v53 = vpop.permute.xlu0 %398 }
  0x82   :  { %516 = vrot.lane.b32.xlu1 %v6007_v62, %s5524_s13  ;;  %514 = vrot.lane.b32.xlu0 %v6012_v63, %s5524_s13  ;;  %v6043_v62 = vld [vmem:[%s13402_s0 + $0x228] sm:$0xff]  ;;  %v6048_v63 = vld [vmem:[%s13402_s0 + $0x220] sm:$0xff] }
  0x83   :  { %14003 = vst [vmem:[#allocation41_spill] sm:$0xff] %v6043_v62  ;;  %14004 = vst [vmem:[#allocation42_spill] sm:$0xff] %v6048_v63 }
  0x84   :  { %v6032_v50 = vpop.permute.xlu1 %404  ;;  %v6034_v51 = vpop.permute.xlu0 %402 }
  0x86   :  { %520 = vrot.lane.b32.xlu1 %v6025_v58, %s5524_s13  ;;  %518 = vrot.lane.b32.xlu0 %v6030_v59, %s5524_s13  ;;  %v6061_v58 = vld [vmem:[%s13402_s0 + $0x238] sm:$0xff]  ;;  %v6066_v59 = vld [vmem:[%s13402_s0 + $0x230] sm:$0xff] }
  0x87   :  { %14005 = vst [vmem:[#allocation43_spill] sm:$0xff] %v6061_v58  ;;  %14006 = vst [vmem:[#allocation44_spill] sm:$0xff] %v6066_v59 }
  0x88   :  { %v6050_v48 = vpop.permute.xlu1 %408  ;;  %v6052_v49 = vpop.permute.xlu0 %406 }
  0x8a   :  { %524 = vrot.lane.b32.xlu1 %v6043_v62, %s5524_s13  ;;  %522 = vrot.lane.b32.xlu0 %v6048_v63, %s5524_s13  ;;  %v6079_v62 = vld [vmem:[%s13402_s0 + $0x248] sm:$0xff]  ;;  %v6084_v63 = vld [vmem:[%s13402_s0 + $0x240] sm:$0xff] }
  0x8b   :  { %14007 = vst [vmem:[#allocation45_spill] sm:$0xff] %v6079_v62  ;;  %14008 = vst [vmem:[#allocation46_spill] sm:$0xff] %v6084_v63 }
  0x8c   :  { %v6068_v46 = vpop.permute.xlu1 %412  ;;  %v6070_v47 = vpop.permute.xlu0 %410 }
  0x8e   :  { %528 = vrot.lane.b32.xlu1 %v6061_v58, %s5524_s13  ;;  %526 = vrot.lane.b32.xlu0 %v6066_v59, %s5524_s13  ;;  %v6097_v58 = vld [vmem:[%s13402_s0 + $0x258] sm:$0xff]  ;;  %v6102_v59 = vld [vmem:[%s13402_s0 + $0x250] sm:$0xff] }
  0x8f   :  { %14009 = vst [vmem:[#allocation47_spill] sm:$0xff] %v6097_v58  ;;  %14010 = vst [vmem:[#allocation48_spill] sm:$0xff] %v6102_v59 }
  0x90   :  { %v6086_v44 = vpop.permute.xlu1 %416  ;;  %v6088_v45 = vpop.permute.xlu0 %414 }
  0x92   :  { %532 = vrot.lane.b32.xlu1 %v6079_v62, %s5524_s13  ;;  %530 = vrot.lane.b32.xlu0 %v6084_v63, %s5524_s13  ;;  %v6115_v62 = vld [vmem:[%s13402_s0 + $0x268] sm:$0xff]  ;;  %v6120_v63 = vld [vmem:[%s13402_s0 + $0x260] sm:$0xff] }
  0x93   :  { %14011 = vst [vmem:[#allocation49_spill] sm:$0xff] %v6115_v62  ;;  %14012 = vst [vmem:[#allocation50_spill] sm:$0xff] %v6120_v63 }
  0x94   :  { %v6104_v42 = vpop.permute.xlu1 %420  ;;  %v6106_v43 = vpop.permute.xlu0 %418 }
  0x96   :  { %536 = vrot.lane.b32.xlu1 %v6097_v58, %s5524_s13  ;;  %534 = vrot.lane.b32.xlu0 %v6102_v59, %s5524_s13  ;;  %v6133_v58 = vld [vmem:[%s13402_s0 + $0x278] sm:$0xff]  ;;  %v6138_v59 = vld [vmem:[%s13402_s0 + $0x270] sm:$0xff] }
  0x97   :  { %14013 = vst [vmem:[#allocation51_spill] sm:$0xff] %v6133_v58  ;;  %14014 = vst [vmem:[#allocation52_spill] sm:$0xff] %v6138_v59 }
  0x98   :  { %v6122_v40 = vpop.permute.xlu1 %424  ;;  %v6124_v41 = vpop.permute.xlu0 %422 }
  0x9a   :  { %540 = vrot.lane.b32.xlu1 %v6115_v62, %s5524_s13  ;;  %538 = vrot.lane.b32.xlu0 %v6120_v63, %s5524_s13  ;;  %v6151_v62 = vld [vmem:[%s13402_s0 + $0x288] sm:$0xff]  ;;  %v6156_v63 = vld [vmem:[%s13402_s0 + $0x280] sm:$0xff] }
  0x9b   :  { %14015 = vst [vmem:[#allocation53_spill] sm:$0xff] %v6151_v62  ;;  %14016 = vst [vmem:[#allocation54_spill] sm:$0xff] %v6156_v63 }
  0x9c   :  { %v6140_v38 = vpop.permute.xlu1 %428  ;;  %v6142_v39 = vpop.permute.xlu0 %426 }
  0x9e   :  { %544 = vrot.lane.b32.xlu1 %v6133_v58, %s5524_s13  ;;  %542 = vrot.lane.b32.xlu0 %v6138_v59, %s5524_s13  ;;  %v6169_v58 = vld [vmem:[%s13402_s0 + $0x298] sm:$0xff]  ;;  %v6174_v59 = vld [vmem:[%s13402_s0 + $0x290] sm:$0xff] }
  0x9f   :  { %14017 = vst [vmem:[#allocation55_spill] sm:$0xff] %v6169_v58  ;;  %14018 = vst [vmem:[#allocation56_spill] sm:$0xff] %v6174_v59 }
  0xa0   :  { %v6158_v36 = vpop.permute.xlu1 %432  ;;  %v6160_v37 = vpop.permute.xlu0 %430 }
  0xa2   :  { %548 = vrot.lane.b32.xlu1 %v6151_v62, %s5524_s13  ;;  %546 = vrot.lane.b32.xlu0 %v6156_v63, %s5524_s13  ;;  %v6187_v62 = vld [vmem:[%s13402_s0 + $0x2a8] sm:$0xff]  ;;  %v6192_v63 = vld [vmem:[%s13402_s0 + $0x2a0] sm:$0xff] }
  0xa3   :  { %14019 = vst [vmem:[#allocation57_spill] sm:$0xff] %v6187_v62  ;;  %14020 = vst [vmem:[#allocation58_spill] sm:$0xff] %v6192_v63 }
  0xa4   :  { %v6176_v34 = vpop.permute.xlu1 %436  ;;  %v6178_v35 = vpop.permute.xlu0 %434 }
  0xa6   :  { %552 = vrot.lane.b32.xlu1 %v6169_v58, %s5524_s13  ;;  %550 = vrot.lane.b32.xlu0 %v6174_v59, %s5524_s13  ;;  %v6205_v58 = vld [vmem:[%s13402_s0 + $0x2b8] sm:$0xff]  ;;  %v6210_v59 = vld [vmem:[%s13402_s0 + $0x2b0] sm:$0xff] }
  0xa7   :  { %14021 = vst [vmem:[#allocation59_spill] sm:$0xff] %v6205_v58  ;;  %14022 = vst [vmem:[#allocation60_spill] sm:$0xff] %v6210_v59 }
  0xa8   :  { %v6194_v32 = vpop.permute.xlu1 %440  ;;  %v6196_v33 = vpop.permute.xlu0 %438 }
  0xaa   :  { %556 = vrot.lane.b32.xlu1 %v6187_v62, %s5524_s13  ;;  %554 = vrot.lane.b32.xlu0 %v6192_v63, %s5524_s13  ;;  %v6223_v62 = vld [vmem:[%s13402_s0 + $0x2c8] sm:$0xff]  ;;  %v6228_v63 = vld [vmem:[%s13402_s0 + $0x2c0] sm:$0xff] }
  0xab   :  { %14025 = vst [vmem:[#allocation63_spill] sm:$0xff] %v6223_v62  ;;  %14026 = vst [vmem:[#allocation64_spill] sm:$0xff] %v6228_v63 }
  0xac   :  { %v6212_v30 = vpop.permute.xlu1 %444  ;;  %v6214_v31 = vpop.permute.xlu0 %442 }
  0xad   :  { %14023 = vst [vmem:[#allocation61_spill] sm:$0xff] %v6212_v30  ;;  %14024 = vst [vmem:[#allocation62_spill] sm:$0xff] %v6214_v31 }
  0xae   :  { %560 = vrot.lane.b32.xlu1 %v6205_v58, %s5524_s13  ;;  %558 = vrot.lane.b32.xlu0 %v6210_v59, %s5524_s13  ;;  %v6241_v58 = vld [vmem:[%s13402_s0 + $0x2d8] sm:$0xff]  ;;  %v6246_v59 = vld [vmem:[%s13402_s0 + $0x2d0] sm:$0xff] }
  0xaf   :  { %14029 = vst [vmem:[#allocation67_spill] sm:$0xff] %v6241_v58  ;;  %14030 = vst [vmem:[#allocation68_spill] sm:$0xff] %v6246_v59 }
  0xb0   :  { %v6230_v28 = vpop.permute.xlu1 %448  ;;  %v6232_v30 = vpop.permute.xlu0 %446 }
  0xb1   :  { %14027 = vst [vmem:[#allocation65_spill] sm:$0xff] %v6230_v28  ;;  %14028 = vst [vmem:[#allocation66_spill] sm:$0xff] %v6232_v30 }
  0xb2   :  { %564 = vrot.lane.b32.xlu1 %v6223_v62, %s5524_s13  ;;  %562 = vrot.lane.b32.xlu0 %v6228_v63, %s5524_s13  ;;  %v6259_v62 = vld [vmem:[%s13402_s0 + $0x2e8] sm:$0xff]  ;;  %v6264_v63 = vld [vmem:[%s13402_s0 + $0x2e0] sm:$0xff] }
  0xb3   :  { %14033 = vst [vmem:[#allocation71_spill] sm:$0xff] %v6259_v62  ;;  %14034 = vst [vmem:[#allocation72_spill] sm:$0xff] %v6264_v63 }
  0xb4   :  { %v6248_v31 = vpop.permute.xlu1 %452  ;;  %v6250_v28 = vpop.permute.xlu0 %450 }
  0xb5   :  { %14031 = vst [vmem:[#allocation69_spill] sm:$0xff] %v6248_v31  ;;  %14032 = vst [vmem:[#allocation70_spill] sm:$0xff] %v6250_v28 }
  0xb6   :  { %568 = vrot.lane.b32.xlu1 %v6241_v58, %s5524_s13  ;;  %566 = vrot.lane.b32.xlu0 %v6246_v59, %s5524_s13  ;;  %v6277_v58 = vld [vmem:[%s13402_s0 + $0x2f8] sm:$0xff]  ;;  %v6282_v59 = vld [vmem:[%s13402_s0 + $0x2f0] sm:$0xff] }
  0xb7   :  { %14037 = vst [vmem:[#allocation75_spill] sm:$0xff] %v6277_v58  ;;  %14038 = vst [vmem:[#allocation76_spill] sm:$0xff] %v6282_v59 }
  0xb8   :  { %v6266_v30 = vpop.permute.xlu1 %456  ;;  %v6268_v31 = vpop.permute.xlu0 %454 }
  0xb9   :  { %14035 = vst [vmem:[#allocation73_spill] sm:$0xff] %v6266_v30  ;;  %14036 = vst [vmem:[#allocation74_spill] sm:$0xff] %v6268_v31 }
  0xba   :  { %572 = vrot.lane.b32.xlu1 %v6259_v62, %s5524_s13  ;;  %570 = vrot.lane.b32.xlu0 %v6264_v63, %s5524_s13  ;;  %v6295_v62 = vld [vmem:[%s13402_s0 + $0x308] sm:$0xff]  ;;  %v6300_v63 = vld [vmem:[%s13402_s0 + $0x300] sm:$0xff] }
  0xbb   :  { %14041 = vst [vmem:[#allocation79_spill] sm:$0xff] %v6295_v62  ;;  %14042 = vst [vmem:[#allocation80_spill] sm:$0xff] %v6300_v63 }
  0xbc   :  { %v6284_v28 = vpop.permute.xlu1 %460  ;;  %v6286_v30 = vpop.permute.xlu0 %458 }
  0xbd   :  { %14039 = vst [vmem:[#allocation77_spill] sm:$0xff] %v6284_v28  ;;  %14040 = vst [vmem:[#allocation78_spill] sm:$0xff] %v6286_v30 }
  0xbe   :  { %576 = vrot.lane.b32.xlu1 %v6277_v58, %s5524_s13  ;;  %574 = vrot.lane.b32.xlu0 %v6282_v59, %s5524_s13  ;;  %v6313_v58 = vld [vmem:[%s13402_s0 + $0x318] sm:$0xff]  ;;  %v6318_v59 = vld [vmem:[%s13402_s0 + $0x310] sm:$0xff] }
  0xbf   :  { %14045 = vst [vmem:[#allocation83_spill] sm:$0xff] %v6313_v58  ;;  %14046 = vst [vmem:[#allocation84_spill] sm:$0xff] %v6318_v59 }
  0xc0   :  { %v6302_v31 = vpop.permute.xlu1 %464  ;;  %v6304_v28 = vpop.permute.xlu0 %462 }
  0xc1   :  { %14043 = vst [vmem:[#allocation81_spill] sm:$0xff] %v6302_v31  ;;  %14044 = vst [vmem:[#allocation82_spill] sm:$0xff] %v6304_v28 }
  0xc2   :  { %580 = vrot.lane.b32.xlu1 %v6295_v62, %s5524_s13  ;;  %578 = vrot.lane.b32.xlu0 %v6300_v63, %s5524_s13  ;;  %v6331_v62 = vld [vmem:[%s13402_s0 + $0x328] sm:$0xff]  ;;  %v6336_v63 = vld [vmem:[%s13402_s0 + $0x320] sm:$0xff] }
  0xc3   :  { %14049 = vst [vmem:[#allocation87_spill] sm:$0xff] %v6331_v62  ;;  %14050 = vst [vmem:[#allocation88_spill] sm:$0xff] %v6336_v63 }
  0xc4   :  { %v6320_v30 = vpop.permute.xlu1 %468  ;;  %v6322_v31 = vpop.permute.xlu0 %466 }
  0xc5   :  { %14047 = vst [vmem:[#allocation85_spill] sm:$0xff] %v6320_v30  ;;  %14048 = vst [vmem:[#allocation86_spill] sm:$0xff] %v6322_v31 }
  0xc6   :  { %584 = vrot.lane.b32.xlu1 %v6313_v58, %s5524_s13  ;;  %582 = vrot.lane.b32.xlu0 %v6318_v59, %s5524_s13  ;;  %v6349_v58 = vld [vmem:[%s13402_s0 + $0x338] sm:$0xff]  ;;  %v6354_v59 = vld [vmem:[%s13402_s0 + $0x330] sm:$0xff] }
  0xc7   :  { %14053 = vst [vmem:[#allocation91_spill] sm:$0xff] %v6349_v58  ;;  %14054 = vst [vmem:[#allocation92_spill] sm:$0xff] %v6354_v59 }
  0xc8   :  { %v6338_v28 = vpop.permute.xlu1 %472  ;;  %v6340_v30 = vpop.permute.xlu0 %470 }
  0xc9   :  { %14051 = vst [vmem:[#allocation89_spill] sm:$0xff] %v6338_v28  ;;  %14052 = vst [vmem:[#allocation90_spill] sm:$0xff] %v6340_v30 }
  0xca   :  { %588 = vrot.lane.b32.xlu1 %v6331_v62, %s5524_s13  ;;  %586 = vrot.lane.b32.xlu0 %v6336_v63, %s5524_s13  ;;  %v6367_v62 = vld [vmem:[%s13402_s0 + $0x348] sm:$0xff]  ;;  %v6372_v63 = vld [vmem:[%s13402_s0 + $0x340] sm:$0xff] }
  0xcb   :  { %14057 = vst [vmem:[#allocation95_spill] sm:$0xff] %v6367_v62  ;;  %14058 = vst [vmem:[#allocation96_spill] sm:$0xff] %v6372_v63 }
  0xcc   :  { %v6356_v31 = vpop.permute.xlu1 %476  ;;  %v6358_v28 = vpop.permute.xlu0 %474 }
  0xcd   :  { %14055 = vst [vmem:[#allocation93_spill] sm:$0xff] %v6356_v31  ;;  %14056 = vst [vmem:[#allocation94_spill] sm:$0xff] %v6358_v28 }
  0xce   :  { %592 = vrot.lane.b32.xlu1 %v6349_v58, %s5524_s13  ;;  %590 = vrot.lane.b32.xlu0 %v6354_v59, %s5524_s13  ;;  %v6385_v58 = vld [vmem:[%s13402_s0 + $0x358] sm:$0xff]  ;;  %v6390_v59 = vld [vmem:[%s13402_s0 + $0x350] sm:$0xff] }
  0xcf   :  { %14061 = vst [vmem:[#allocation99_spill] sm:$0xff] %v6385_v58  ;;  %14062 = vst [vmem:[#allocation100_spill] sm:$0xff] %v6390_v59 }
  0xd0   :  { %v6374_v30 = vpop.permute.xlu1 %480  ;;  %v6376_v31 = vpop.permute.xlu0 %478 }
  0xd1   :  { %14059 = vst [vmem:[#allocation97_spill] sm:$0xff] %v6374_v30  ;;  %14060 = vst [vmem:[#allocation98_spill] sm:$0xff] %v6376_v31 }
  0xd2   :  { %596 = vrot.lane.b32.xlu1 %v6367_v62, %s5524_s13  ;;  %594 = vrot.lane.b32.xlu0 %v6372_v63, %s5524_s13  ;;  %v6403_v62 = vld [vmem:[%s13402_s0 + $0x368] sm:$0xff]  ;;  %v6408_v63 = vld [vmem:[%s13402_s0 + $0x360] sm:$0xff] }
  0xd3   :  { %14065 = vst [vmem:[#allocation103_spill] sm:$0xff] %v6403_v62  ;;  %14066 = vst [vmem:[#allocation104_spill] sm:$0xff] %v6408_v63 }
  0xd4   :  { %v6392_v28 = vpop.permute.xlu1 %484  ;;  %v6394_v30 = vpop.permute.xlu0 %482 }
  0xd5   :  { %14063 = vst [vmem:[#allocation101_spill] sm:$0xff] %v6392_v28  ;;  %14064 = vst [vmem:[#allocation102_spill] sm:$0xff] %v6394_v30 }
  0xd6   :  { %600 = vrot.lane.b32.xlu1 %v6385_v58, %s5524_s13  ;;  %598 = vrot.lane.b32.xlu0 %v6390_v59, %s5524_s13  ;;  %v6421_v58 = vld [vmem:[%s13402_s0 + $0x378] sm:$0xff]  ;;  %v6426_v59 = vld [vmem:[%s13402_s0 + $0x370] sm:$0xff] }
  0xd7   :  { %14069 = vst [vmem:[#allocation107_spill] sm:$0xff] %v6421_v58  ;;  %14070 = vst [vmem:[#allocation108_spill] sm:$0xff] %v6426_v59 }
  0xd8   :  { %v6410_v31 = vpop.permute.xlu1 %488  ;;  %v6412_v28 = vpop.permute.xlu0 %486 }
  0xd9   :  { %14067 = vst [vmem:[#allocation105_spill] sm:$0xff] %v6410_v31  ;;  %14068 = vst [vmem:[#allocation106_spill] sm:$0xff] %v6412_v28 }
  0xda   :  { %604 = vrot.lane.b32.xlu1 %v6403_v62, %s5524_s13  ;;  %602 = vrot.lane.b32.xlu0 %v6408_v63, %s5524_s13  ;;  %v6439_v62 = vld [vmem:[%s13402_s0 + $0x388] sm:$0xff]  ;;  %v6444_v63 = vld [vmem:[%s13402_s0 + $0x380] sm:$0xff] }
  0xdb   :  { %14073 = vst [vmem:[#allocation111_spill] sm:$0xff] %v6439_v62  ;;  %14074 = vst [vmem:[#allocation112_spill] sm:$0xff] %v6444_v63 }
  0xdc   :  { %v6428_v30 = vpop.permute.xlu1 %492  ;;  %v6430_v31 = vpop.permute.xlu0 %490 }
  0xdd   :  { %14071 = vst [vmem:[#allocation109_spill] sm:$0xff] %v6428_v30  ;;  %14072 = vst [vmem:[#allocation110_spill] sm:$0xff] %v6430_v31 }
  0xde   :  { %608 = vrot.lane.b32.xlu1 %v6421_v58, %s5524_s13  ;;  %606 = vrot.lane.b32.xlu0 %v6426_v59, %s5524_s13  ;;  %v6457_v58 = vld [vmem:[%s13402_s0 + $0x398] sm:$0xff]  ;;  %v6462_v59 = vld [vmem:[%s13402_s0 + $0x390] sm:$0xff] }
  0xdf   :  { %14077 = vst [vmem:[#allocation115_spill] sm:$0xff] %v6457_v58  ;;  %14078 = vst [vmem:[#allocation116_spill] sm:$0xff] %v6462_v59 }
  0xe0   :  { %v6446_v28 = vpop.permute.xlu1 %496  ;;  %v6448_v30 = vpop.permute.xlu0 %494 }
  0xe1   :  { %14075 = vst [vmem:[#allocation113_spill] sm:$0xff] %v6446_v28  ;;  %14076 = vst [vmem:[#allocation114_spill] sm:$0xff] %v6448_v30 }
  0xe2   :  { %612 = vrot.lane.b32.xlu1 %v6439_v62, %s5524_s13  ;;  %610 = vrot.lane.b32.xlu0 %v6444_v63, %s5524_s13  ;;  %v6475_v62 = vld [vmem:[%s13402_s0 + $0x3a8] sm:$0xff]  ;;  %v6480_v63 = vld [vmem:[%s13402_s0 + $0x3a0] sm:$0xff] }
  0xe3   :  { %14081 = vst [vmem:[#allocation119_spill] sm:$0xff] %v6475_v62  ;;  %14082 = vst [vmem:[#allocation120_spill] sm:$0xff] %v6480_v63 }
  0xe4   :  { %v6464_v31 = vpop.permute.xlu1 %500  ;;  %v6466_v28 = vpop.permute.xlu0 %498 }
  0xe5   :  { %14079 = vst [vmem:[#allocation117_spill] sm:$0xff] %v6464_v31  ;;  %14080 = vst [vmem:[#allocation118_spill] sm:$0xff] %v6466_v28 }
  0xe6   :  { %616 = vrot.lane.b32.xlu1 %v6457_v58, %s5524_s13  ;;  %614 = vrot.lane.b32.xlu0 %v6462_v59, %s5524_s13  ;;  %v6493_v58 = vld [vmem:[%s13402_s0 + $0x3b8] sm:$0xff]  ;;  %v6498_v59 = vld [vmem:[%s13402_s0 + $0x3b0] sm:$0xff] }
  0xe7   :  { %14085 = vst [vmem:[#allocation123_spill] sm:$0xff] %v6493_v58  ;;  %14086 = vst [vmem:[#allocation124_spill] sm:$0xff] %v6498_v59 }
  0xe8   :  { %v6482_v30 = vpop.permute.xlu1 %504  ;;  %v6484_v31 = vpop.permute.xlu0 %502 }
  0xe9   :  { %14083 = vst [vmem:[#allocation121_spill] sm:$0xff] %v6482_v30  ;;  %14084 = vst [vmem:[#allocation122_spill] sm:$0xff] %v6484_v31 }
  0xea   :  { %620 = vrot.lane.b32.xlu1 %v6475_v62, %s5524_s13  ;;  %618 = vrot.lane.b32.xlu0 %v6480_v63, %s5524_s13  ;;  %v6511_v62 = vld [vmem:[%s13402_s0 + $0x3c8] sm:$0xff]  ;;  %v6516_v63 = vld [vmem:[%s13402_s0 + $0x3c0] sm:$0xff] }
  0xeb   :  { %14089 = vst [vmem:[#allocation127_spill] sm:$0xff] %v6511_v62  ;;  %14090 = vst [vmem:[#allocation128_spill] sm:$0xff] %v6516_v63 }
  0xec   :  { %v6500_v28 = vpop.permute.xlu1 %508  ;;  %v6502_v30 = vpop.permute.xlu0 %506 }
  0xed   :  { %14087 = vst [vmem:[#allocation125_spill] sm:$0xff] %v6500_v28  ;;  %14088 = vst [vmem:[#allocation126_spill] sm:$0xff] %v6502_v30 }
  0xee   :  { %624 = vrot.lane.b32.xlu1 %v6493_v58, %s5524_s13  ;;  %622 = vrot.lane.b32.xlu0 %v6498_v59, %s5524_s13  ;;  %v6529_v58 = vld [vmem:[%s13402_s0 + $0x3d8] sm:$0xff]  ;;  %v6534_v59 = vld [vmem:[%s13402_s0 + $0x3d0] sm:$0xff] }
  0xef   :  { %14093 = vst [vmem:[#allocation131_spill] sm:$0xff] %v6529_v58  ;;  %14094 = vst [vmem:[#allocation132_spill] sm:$0xff] %v6534_v59 }
  0xf0   :  { %v6518_v31 = vpop.permute.xlu1 %512  ;;  %v6520_v28 = vpop.permute.xlu0 %510 }
  0xf1   :  { %14091 = vst [vmem:[#allocation129_spill] sm:$0xff] %v6518_v31  ;;  %14092 = vst [vmem:[#allocation130_spill] sm:$0xff] %v6520_v28 }
  0xf2   :  { %628 = vrot.lane.b32.xlu1 %v6511_v62, %s5524_s13  ;;  %626 = vrot.lane.b32.xlu0 %v6516_v63, %s5524_s13  ;;  %v6547_v62 = vld [vmem:[%s13402_s0 + $0x3e0] sm:$0xff]  ;;  %v6551_v63 = vadd.f32 %v5962_v61, %v5552_v1  ;;  %s5526_s0 = smov 124  }
  0xf3   :  { %14096 = vst [vmem:[#allocation134_spill] sm:$0xff] %v6547_v62 }
  0xf4   :  { %v6536_v30 = vpop.permute.xlu1 %516  ;;  %v6538_v31 = vpop.permute.xlu0 %514  ;;  %14097 = vst [vmem:[#allocation135_spill] sm:$0xff] %v6551_v63 }
  0xf5   :  { %14095 = vst [vmem:[#allocation133_spill] sm:$0xff] %v6536_v30 }
  0xf6   :  { %632 = vrot.lane.b32.xlu1 %v6529_v58, %s5524_s13  ;;  %630 = vrot.lane.b32.xlu0 %v6534_v59, %s5524_s13  ;;  %v6563_v58 = vadd.f32 %v5960_v60, %v5547_v0  ;;  %v6567_v59 = vadd.f32 %v5980_v57, %v5566_v3  ;;  %v6583_v0 = vadd.f32 %v5998_v55, %v5580_v5 }
  0xf7   :  { %v6595_v60 = vadd.f32 %v5996_v54, %v5575_v4  ;;  %v6615_v4 = vadd.f32 %v6034_v51, %v5608_v9  ;;  %v6627_v54 = vadd.f32 %v6032_v50, %v5603_v8  ;;  %v6647_v8 = vadd.f32 %v6070_v47, %v5636_v13 }
  0xf8   :  { %v6553_v28 = vpop.permute.xlu1 %520  ;;  %v6555_v30 = vpop.permute.xlu0 %518  ;;  %14098 = vst [vmem:[#allocation136_spill] sm:$0xff] %v6563_v58  ;;  %14099 = vst [vmem:[#allocation137_spill] sm:$0xff] %v6567_v59  ;;  %v6659_v50 = vadd.f32 %v6068_v46, %v5631_v12  ;;  %v6679_v12 = vadd.f32 %v6106_v43, %v5664_v17  ;;  %v6691_v46 = vadd.f32 %v6104_v42, %v5659_v16 }
  0xf9   :  { %14101 = vst [vmem:[#allocation139_spill] sm:$0xff] %v6583_v0  ;;  %14102 = vst [vmem:[#allocation140_spill] sm:$0xff] %v6595_v60  ;;  %v6711_v16 = vadd.f32 %v6142_v39, %v5692_v21  ;;  %v6723_v42 = vadd.f32 %v6140_v38, %v5687_v20  ;;  %v6743_v20 = vadd.f32 %v6178_v35, %v5720_v25 }
  0xfa   :  { %1011 = vrot.lane.b32.xlu1 %v6551_v63, %s5525_s17  ;;  %634 = vrot.lane.b32.xlu0 %v6547_v62, %s5524_s13  ;;  %v6579_v63 = vadd.f32 %v5978_v56, %v5561_v2  ;;  %v6599_v2 = vadd.f32 %v6016_v53, %v5594_v7  ;;  %v6611_v56 = vadd.f32 %v6014_v52, %v5589_v6 }
  0xfb   :  { %14105 = vst [vmem:[#allocation143_spill] sm:$0xff] %v6615_v4  ;;  %14106 = vst [vmem:[#allocation144_spill] sm:$0xff] %v6627_v54  ;;  %v6631_v6 = vadd.f32 %v6052_v49, %v5622_v11  ;;  %v6643_v52 = vadd.f32 %v6050_v48, %v5617_v10  ;;  %v6663_v10 = vadd.f32 %v6088_v45, %v5650_v15 }
  0xfc   :  { %v6569_v1 = vpop.permute.xlu1 %524  ;;  %v6571_v61 = vpop.permute.xlu0 %522  ;;  %14100 = vst [vmem:[#allocation138_spill] sm:$0xff] %v6579_v63  ;;  %14103 = vst [vmem:[#allocation141_spill] sm:$0xff] %v6599_v2  ;;  %v6675_v48 = vadd.f32 %v6086_v44, %v5645_v14  ;;  %v6695_v14 = vadd.f32 %v6124_v41, %v5678_v19  ;;  %v6707_v44 = vadd.f32 %v6122_v40, %v5673_v18 }
  0xfd   :  { %14104 = vst [vmem:[#allocation142_spill] sm:$0xff] %v6611_v56  ;;  %14107 = vst [vmem:[#allocation145_spill] sm:$0xff] %v6631_v6  ;;  %v6727_v18 = vadd.f32 %v6160_v37, %v5706_v23  ;;  %v6739_v40 = vadd.f32 %v6158_v36, %v5701_v22  ;;  %v6755_v38 = vadd.f32 %v6176_v34, %v5715_v24  ;;  %v14125_v24 = vld [vmem:[#allocation62_spill] sm:$0xff] }
  0xfe   :  { %1015 = vrot.lane.b32.xlu1 %v6563_v58, %s5525_s17  ;;  %1013 = vrot.lane.b32.xlu0 %v6567_v59, %s5525_s17  ;;  %14108 = vst [vmem:[#allocation146_spill] sm:$0xff] %v6643_v52  ;;  %14109 = vst [vmem:[#allocation147_spill] sm:$0xff] %v6647_v8  ;;  %v6759_v22 = vadd.f32 %v6196_v33, %v5734_v27  ;;  %v6771_v36 = vadd.f32 %v6194_v32, %v5729_v26  ;;  %v14130_v26 = vld [vmem:[#allocation4_spill] sm:$0xff]  ;;  %v14131_v32 = vld [vmem:[#allocation66_spill] sm:$0xff] }
  0xff   :  { %14110 = vst [vmem:[#allocation148_spill] sm:$0xff] %v6659_v50  ;;  %14111 = vst [vmem:[#allocation149_spill] sm:$0xff] %v6663_v10  ;;  %v6775_v34 = vadd.f32 %v14125_v24, %v5748_v29 }
 0x100   :  { %v6585_v3 = vpop.permute.xlu1 %528  ;;  %v6587_v57 = vpop.permute.xlu0 %526  ;;  %14112 = vst [vmem:[#allocation150_spill] sm:$0xff] %v6675_v48  ;;  %14113 = vst [vmem:[#allocation151_spill] sm:$0xff] %v6679_v12 }
 0x101   :  { %14114 = vst [vmem:[#allocation152_spill] sm:$0xff] %v6691_v46  ;;  %14115 = vst [vmem:[#allocation153_spill] sm:$0xff] %v6695_v14 }
 0x102   :  { %1019 = vrot.lane.b32.xlu1 %v6583_v0, %s5525_s17  ;;  %1017 = vrot.lane.b32.xlu0 %v6579_v63, %s5525_s17  ;;  %14116 = vst [vmem:[#allocation154_spill] sm:$0xff] %v6707_v44  ;;  %14117 = vst [vmem:[#allocation155_spill] sm:$0xff] %v6711_v16 }
 0x103   :  { %14118 = vst [vmem:[#allocation156_spill] sm:$0xff] %v6723_v42  ;;  %14119 = vst [vmem:[#allocation157_spill] sm:$0xff] %v6727_v18 }
 0x104   :  { %v6601_v5 = vpop.permute.xlu1 %532  ;;  %v6603_v55 = vpop.permute.xlu0 %530  ;;  %14120 = vst [vmem:[#allocation158_spill] sm:$0xff] %v6739_v40  ;;  %14121 = vst [vmem:[#allocation159_spill] sm:$0xff] %v6743_v20 }
 0x105   :  { %14122 = vst [vmem:[#allocation160_spill] sm:$0xff] %v6755_v38  ;;  %14123 = vst [vmem:[#allocation161_spill] sm:$0xff] %v6759_v22 }
 0x106   :  { %1023 = vrot.lane.b32.xlu1 %v6599_v2, %s5525_s17  ;;  %1021 = vrot.lane.b32.xlu0 %v6595_v60, %s5525_s17  ;;  %14124 = vst [vmem:[#allocation162_spill] sm:$0xff] %v6771_v36  ;;  %14126 = vst [vmem:[#allocation62_spill] sm:$0xff] %v6775_v34 }
 0x108   :  { %v6617_v7 = vpop.permute.xlu1 %536  ;;  %v6619_v53 = vpop.permute.xlu0 %534 }
 0x10a   :  { %1027 = vrot.lane.b32.xlu1 %v6615_v4, %s5525_s17  ;;  %1025 = vrot.lane.b32.xlu0 %v6611_v56, %s5525_s17 }
 0x10c   :  { %v6633_v9 = vpop.permute.xlu1 %540  ;;  %v6635_v51 = vpop.permute.xlu0 %538 }
 0x10e   :  { %1031 = vrot.lane.b32.xlu1 %v6631_v6, %s5525_s17  ;;  %1029 = vrot.lane.b32.xlu0 %v6627_v54, %s5525_s17 }
 0x110   :  { %v6649_v11 = vpop.permute.xlu1 %544  ;;  %v6651_v49 = vpop.permute.xlu0 %542 }
 0x112   :  { %1035 = vrot.lane.b32.xlu1 %v6647_v8, %s5525_s17  ;;  %1033 = vrot.lane.b32.xlu0 %v6643_v52, %s5525_s17 }
 0x114   :  { %v6665_v13 = vpop.permute.xlu1 %548  ;;  %v6667_v47 = vpop.permute.xlu0 %546 }
 0x116   :  { %1039 = vrot.lane.b32.xlu1 %v6663_v10, %s5525_s17  ;;  %1037 = vrot.lane.b32.xlu0 %v6659_v50, %s5525_s17 }
 0x118   :  { %v6681_v15 = vpop.permute.xlu1 %552  ;;  %v6683_v45 = vpop.permute.xlu0 %550 }
 0x11a   :  { %1043 = vrot.lane.b32.xlu1 %v6679_v12, %s5525_s17  ;;  %1041 = vrot.lane.b32.xlu0 %v6675_v48, %s5525_s17 }
 0x11c   :  { %v6697_v17 = vpop.permute.xlu1 %556  ;;  %v6699_v43 = vpop.permute.xlu0 %554 }
 0x11e   :  { %1047 = vrot.lane.b32.xlu1 %v6695_v14, %s5525_s17  ;;  %1045 = vrot.lane.b32.xlu0 %v6691_v46, %s5525_s17 }
 0x120   :  { %v6713_v19 = vpop.permute.xlu1 %560  ;;  %v6715_v41 = vpop.permute.xlu0 %558 }
 0x122   :  { %1051 = vrot.lane.b32.xlu1 %v6711_v16, %s5525_s17  ;;  %1049 = vrot.lane.b32.xlu0 %v6707_v44, %s5525_s17 }
 0x124   :  { %v6729_v21 = vpop.permute.xlu1 %564  ;;  %v6731_v39 = vpop.permute.xlu0 %562 }
 0x126   :  { %1055 = vrot.lane.b32.xlu1 %v6727_v18, %s5525_s17  ;;  %1053 = vrot.lane.b32.xlu0 %v6723_v42, %s5525_s17 }
 0x128   :  { %v6745_v23 = vpop.permute.xlu1 %568  ;;  %v6747_v37 = vpop.permute.xlu0 %566 }
 0x12a   :  { %1059 = vrot.lane.b32.xlu1 %v6743_v20, %s5525_s17  ;;  %1057 = vrot.lane.b32.xlu0 %v6739_v40, %s5525_s17  ;;  %v6791_v40 = vadd.f32 %v14131_v32, %v14130_v26 }
 0x12c   :  { %v6761_v25 = vpop.permute.xlu1 %572  ;;  %v6763_v35 = vpop.permute.xlu0 %570 }
 0x12e   :  { %1063 = vrot.lane.b32.xlu1 %v6759_v22, %s5525_s17  ;;  %1061 = vrot.lane.b32.xlu0 %v6755_v38, %s5525_s17  ;;  %v14127_v22 = vld [vmem:[#allocation2_spill] sm:$0xff]  ;;  %v14128_v38 = vld [vmem:[#allocation61_spill] sm:$0xff] }
 0x12f   :  { %v6787_v20 = vadd.f32 %v14128_v38, %v14127_v22  ;;  %14132 = vst [vmem:[#allocation61_spill] sm:$0xff] %v6791_v40  ;;  %v14136_v38 = vld [vmem:[#allocation6_spill] sm:$0xff] }
 0x130   :  { %v6777_v27 = vpop.permute.xlu1 %576  ;;  %v6779_v33 = vpop.permute.xlu0 %574  ;;  %v14137_v22 = vld [vmem:[#allocation70_spill] sm:$0xff] }
 0x131   :  { %14129 = vst [vmem:[#allocation2_spill] sm:$0xff] %v6787_v20  ;;  %v6807_v42 = vadd.f32 %v14137_v22, %v14136_v38 }
 0x132   :  { %1067 = vrot.lane.b32.xlu1 %v6775_v34, %s5525_s17  ;;  %1065 = vrot.lane.b32.xlu0 %v6771_v36, %s5525_s17  ;;  %v14133_v34 = vld [vmem:[#allocation3_spill] sm:$0xff]  ;;  %v14134_v36 = vld [vmem:[#allocation65_spill] sm:$0xff] }
 0x133   :  { %v6803_v18 = vadd.f32 %v14134_v36, %v14133_v34  ;;  %14138 = vst [vmem:[#allocation66_spill] sm:$0xff] %v6807_v42  ;;  %v14142_v36 = vld [vmem:[#allocation8_spill] sm:$0xff]  ;;  %v14143_v34 = vld [vmem:[#allocation74_spill] sm:$0xff] }
 0x134   :  { %v6793_v29 = vpop.permute.xlu1 %580  ;;  %v6795_v24 = vpop.permute.xlu0 %578  ;;  %v6823_v44 = vadd.f32 %v14143_v34, %v14142_v36 }
 0x135   :  { %14135 = vst [vmem:[#allocation4_spill] sm:$0xff] %v6803_v18 }
 0x136   :  { %1071 = vrot.lane.b32.xlu1 %v6791_v40, %s5525_s17  ;;  %1069 = vrot.lane.b32.xlu0 %v6787_v20, %s5525_s17  ;;  %v14139_v40 = vld [vmem:[#allocation5_spill] sm:$0xff]  ;;  %14144 = vst [vmem:[#allocation65_spill] sm:$0xff] %v6823_v44 }
 0x137   :  { %v14140_v20 = vld [vmem:[#allocation69_spill] sm:$0xff] }
 0x138   :  { %v6809_v26 = vpop.permute.xlu1 %584  ;;  %v6811_v32 = vpop.permute.xlu0 %582  ;;  %v6819_v16 = vadd.f32 %v14140_v20, %v14139_v40  ;;  %v14148_v40 = vld [vmem:[#allocation10_spill] sm:$0xff] }
 0x139   :  { %v14149_v20 = vld [vmem:[#allocation78_spill] sm:$0xff] }
 0x13a   :  { %1075 = vrot.lane.b32.xlu1 %v6807_v42, %s5525_s17  ;;  %1073 = vrot.lane.b32.xlu0 %v6803_v18, %s5525_s17  ;;  %14141 = vst [vmem:[#allocation3_spill] sm:$0xff] %v6819_v16  ;;  %v14145_v42 = vld [vmem:[#allocation7_spill] sm:$0xff]  ;;  %v14146_v18 = vld [vmem:[#allocation73_spill] sm:$0xff]  ;;  %v6839_v46 = vadd.f32 %v14149_v20, %v14148_v40 }
 0x13b   :  { %v6835_v14 = vadd.f32 %v14146_v18, %v14145_v42  ;;  %v14154_v42 = vld [vmem:[#allocation12_spill] sm:$0xff]  ;;  %v14155_v18 = vld [vmem:[#allocation82_spill] sm:$0xff] }
 0x13c   :  { %v6825_v38 = vpop.permute.xlu1 %588  ;;  %v6827_v22 = vpop.permute.xlu0 %586  ;;  %14150 = vst [vmem:[#allocation70_spill] sm:$0xff] %v6839_v46  ;;  %v6855_v48 = vadd.f32 %v14155_v18, %v14154_v42 }
 0x13d   :  { %14147 = vst [vmem:[#allocation6_spill] sm:$0xff] %v6835_v14 }
 0x13e   :  { %1079 = vrot.lane.b32.xlu1 %v6823_v44, %s5525_s17  ;;  %1077 = vrot.lane.b32.xlu0 %v6819_v16, %s5525_s17  ;;  %v14151_v44 = vld [vmem:[#allocation9_spill] sm:$0xff]  ;;  %14156 = vst [vmem:[#allocation69_spill] sm:$0xff] %v6855_v48 }
 0x13f   :  { %v14152_v16 = vld [vmem:[#allocation77_spill] sm:$0xff] }
 0x140   :  { %v6841_v36 = vpop.permute.xlu1 %592  ;;  %v6843_v34 = vpop.permute.xlu0 %590  ;;  %v6851_v12 = vadd.f32 %v14152_v16, %v14151_v44  ;;  %v14160_v44 = vld [vmem:[#allocation14_spill] sm:$0xff] }
 0x141   :  { %v14161_v16 = vld [vmem:[#allocation86_spill] sm:$0xff] }
 0x142   :  { %1083 = vrot.lane.b32.xlu1 %v6839_v46, %s5525_s17  ;;  %1081 = vrot.lane.b32.xlu0 %v6835_v14, %s5525_s17  ;;  %14153 = vst [vmem:[#allocation5_spill] sm:$0xff] %v6851_v12  ;;  %v14157_v46 = vld [vmem:[#allocation11_spill] sm:$0xff]  ;;  %v14158_v14 = vld [vmem:[#allocation81_spill] sm:$0xff]  ;;  %v6871_v50 = vadd.f32 %v14161_v16, %v14160_v44 }
 0x143   :  { %v6867_v10 = vadd.f32 %v14158_v14, %v14157_v46  ;;  %v14166_v46 = vld [vmem:[#allocation16_spill] sm:$0xff]  ;;  %v14167_v14 = vld [vmem:[#allocation90_spill] sm:$0xff] }
 0x144   :  { %v6857_v40 = vpop.permute.xlu1 %596  ;;  %v6859_v20 = vpop.permute.xlu0 %594  ;;  %14162 = vst [vmem:[#allocation74_spill] sm:$0xff] %v6871_v50  ;;  %v6887_v52 = vadd.f32 %v14167_v14, %v14166_v46 }
 0x145   :  { %14159 = vst [vmem:[#allocation8_spill] sm:$0xff] %v6867_v10 }
 0x146   :  { %1087 = vrot.lane.b32.xlu1 %v6855_v48, %s5525_s17  ;;  %1085 = vrot.lane.b32.xlu0 %v6851_v12, %s5525_s17  ;;  %v14163_v48 = vld [vmem:[#allocation13_spill] sm:$0xff]  ;;  %14168 = vst [vmem:[#allocation73_spill] sm:$0xff] %v6887_v52 }
 0x147   :  { %v14164_v12 = vld [vmem:[#allocation85_spill] sm:$0xff] }
 0x148   :  { %v6873_v42 = vpop.permute.xlu1 %600  ;;  %v6875_v18 = vpop.permute.xlu0 %598  ;;  %v6883_v8 = vadd.f32 %v14164_v12, %v14163_v48  ;;  %v14172_v48 = vld [vmem:[#allocation18_spill] sm:$0xff] }
 0x149   :  { %v14173_v12 = vld [vmem:[#allocation94_spill] sm:$0xff] }
 0x14a   :  { %1091 = vrot.lane.b32.xlu1 %v6871_v50, %s5525_s17  ;;  %1089 = vrot.lane.b32.xlu0 %v6867_v10, %s5525_s17  ;;  %14165 = vst [vmem:[#allocation7_spill] sm:$0xff] %v6883_v8  ;;  %v14169_v50 = vld [vmem:[#allocation15_spill] sm:$0xff]  ;;  %v14170_v10 = vld [vmem:[#allocation89_spill] sm:$0xff]  ;;  %v6903_v54 = vadd.f32 %v14173_v12, %v14172_v48 }
 0x14b   :  { %v6899_v6 = vadd.f32 %v14170_v10, %v14169_v50  ;;  %v14178_v50 = vld [vmem:[#allocation20_spill] sm:$0xff]  ;;  %v14179_v10 = vld [vmem:[#allocation98_spill] sm:$0xff] }
 0x14c   :  { %v6889_v44 = vpop.permute.xlu1 %604  ;;  %v6891_v16 = vpop.permute.xlu0 %602  ;;  %14174 = vst [vmem:[#allocation78_spill] sm:$0xff] %v6903_v54  ;;  %v6919_v56 = vadd.f32 %v14179_v10, %v14178_v50 }
 0x14d   :  { %14171 = vst [vmem:[#allocation10_spill] sm:$0xff] %v6899_v6 }
 0x14e   :  { %1095 = vrot.lane.b32.xlu1 %v6887_v52, %s5525_s17  ;;  %1093 = vrot.lane.b32.xlu0 %v6883_v8, %s5525_s17  ;;  %v14175_v52 = vld [vmem:[#allocation17_spill] sm:$0xff]  ;;  %14180 = vst [vmem:[#allocation77_spill] sm:$0xff] %v6919_v56 }
 0x14f   :  { %v14176_v8 = vld [vmem:[#allocation93_spill] sm:$0xff] }
 0x150   :  { %v6905_v46 = vpop.permute.xlu1 %608  ;;  %v6907_v14 = vpop.permute.xlu0 %606  ;;  %v6915_v4 = vadd.f32 %v14176_v8, %v14175_v52  ;;  %v14184_v52 = vld [vmem:[#allocation22_spill] sm:$0xff] }
 0x151   :  { %v14185_v8 = vld [vmem:[#allocation102_spill] sm:$0xff] }
 0x152   :  { %1099 = vrot.lane.b32.xlu1 %v6903_v54, %s5525_s17  ;;  %1097 = vrot.lane.b32.xlu0 %v6899_v6, %s5525_s17  ;;  %14177 = vst [vmem:[#allocation9_spill] sm:$0xff] %v6915_v4  ;;  %v14181_v54 = vld [vmem:[#allocation19_spill] sm:$0xff]  ;;  %v14182_v6 = vld [vmem:[#allocation97_spill] sm:$0xff]  ;;  %v6935_v60 = vadd.f32 %v14185_v8, %v14184_v52 }
 0x153   :  { %v6931_v2 = vadd.f32 %v14182_v6, %v14181_v54  ;;  %v14190_v54 = vld [vmem:[#allocation24_spill] sm:$0xff]  ;;  %v14191_v6 = vld [vmem:[#allocation106_spill] sm:$0xff] }
 0x154   :  { %v6921_v48 = vpop.permute.xlu1 %612  ;;  %v6923_v12 = vpop.permute.xlu0 %610  ;;  %14186 = vst [vmem:[#allocation82_spill] sm:$0xff] %v6935_v60  ;;  %v6951_v63 = vadd.f32 %v14191_v6, %v14190_v54 }
 0x155   :  { %14183 = vst [vmem:[#allocation12_spill] sm:$0xff] %v6931_v2 }
 0x156   :  { %1103 = vrot.lane.b32.xlu1 %v6919_v56, %s5525_s17  ;;  %1101 = vrot.lane.b32.xlu0 %v6915_v4, %s5525_s17  ;;  %v14187_v56 = vld [vmem:[#allocation21_spill] sm:$0xff]  ;;  %14192 = vst [vmem:[#allocation81_spill] sm:$0xff] %v6951_v63 }
 0x157   :  { %v14188_v4 = vld [vmem:[#allocation101_spill] sm:$0xff] }
 0x158   :  { %v6937_v50 = vpop.permute.xlu1 %616  ;;  %v6939_v10 = vpop.permute.xlu0 %614  ;;  %v6947_v0 = vadd.f32 %v14188_v4, %v14187_v56  ;;  %v14197_v56 = vld [vmem:[#allocation26_spill] sm:$0xff] }
 0x159   :  { %v14198_v4 = vld [vmem:[#allocation110_spill] sm:$0xff] }
 0x15a   :  { %1107 = vrot.lane.b32.xlu1 %v6935_v60, %s5525_s17  ;;  %1105 = vrot.lane.b32.xlu0 %v6931_v2, %s5525_s17  ;;  %14189 = vst [vmem:[#allocation11_spill] sm:$0xff] %v6947_v0  ;;  %v14194_v60 = vld [vmem:[#allocation23_spill] sm:$0xff]  ;;  %v14195_v2 = vld [vmem:[#allocation105_spill] sm:$0xff]  ;;  %v6967_v59 = vadd.f32 %v14198_v4, %v14197_v56 }
 0x15b   :  { %v6963_v58 = vadd.f32 %v14195_v2, %v14194_v60  ;;  %v14205_v60 = vld [vmem:[#allocation28_spill] sm:$0xff]  ;;  %v14206_v2 = vld [vmem:[#allocation114_spill] sm:$0xff] }
 0x15c   :  { %v6953_v52 = vpop.permute.xlu1 %620  ;;  %v6955_v8 = vpop.permute.xlu0 %618  ;;  %14199 = vst [vmem:[#allocation13_spill] sm:$0xff] %v6967_v59 }
 0x15d   :  { %14193 = vst [vmem:[#allocation14_spill] sm:$0xff] %v6953_v52  ;;  %14196 = vst [vmem:[#allocation86_spill] sm:$0xff] %v6963_v58  ;;  %v6983_v52 = vadd.f32 %v14206_v2, %v14205_v60 }
 0x15e   :  { %1111 = vrot.lane.b32.xlu1 %v6951_v63, %s5525_s17  ;;  %1109 = vrot.lane.b32.xlu0 %v6947_v0, %s5525_s17  ;;  %v14202_v63 = vld [vmem:[#allocation25_spill] sm:$0xff] }
 0x15f   :  { %v14203_v0 = vld [vmem:[#allocation109_spill] sm:$0xff]  ;;  %14207 = vst [vmem:[#allocation15_spill] sm:$0xff] %v6983_v52 }
 0x160   :  { %v6969_v54 = vpop.permute.xlu1 %624  ;;  %v6971_v6 = vpop.permute.xlu0 %622  ;;  %v6979_v62 = vadd.f32 %v14203_v0, %v14202_v63  ;;  %v14213_v63 = vld [vmem:[#allocation30_spill] sm:$0xff] }
 0x161   :  { %14200 = vst [vmem:[#allocation85_spill] sm:$0xff] %v6969_v54  ;;  %14201 = vst [vmem:[#allocation16_spill] sm:$0xff] %v6971_v6  ;;  %v14214_v0 = vld [vmem:[#allocation118_spill] sm:$0xff] }
 0x162   :  { %1115 = vrot.lane.b32.xlu1 %v6967_v59, %s5525_s17  ;;  %1113 = vrot.lane.b32.xlu0 %v6963_v58, %s5525_s17  ;;  %14204 = vst [vmem:[#allocation90_spill] sm:$0xff] %v6979_v62  ;;  %v14210_v59 = vld [vmem:[#allocation27_spill] sm:$0xff]  ;;  %v14211_v58 = vld [vmem:[#allocation113_spill] sm:$0xff]  ;;  %v6999_v6 = vadd.f32 %v14214_v0, %v14213_v63 }
 0x163   :  { %v6995_v54 = vadd.f32 %v14211_v58, %v14210_v59  ;;  %v14221_v58 = vld [vmem:[#allocation32_spill] sm:$0xff]  ;;  %v14222_v59 = vld [vmem:[#allocation122_spill] sm:$0xff] }
 0x164   :  { %v6985_v56 = vpop.permute.xlu1 %628  ;;  %v6987_v4 = vpop.permute.xlu0 %626  ;;  %14215 = vst [vmem:[#allocation17_spill] sm:$0xff] %v6999_v6 }
 0x165   :  { %14208 = vst [vmem:[#allocation89_spill] sm:$0xff] %v6985_v56  ;;  %14209 = vst [vmem:[#allocation18_spill] sm:$0xff] %v6987_v4  ;;  %v7015_v4 = vadd.f32 %v14222_v59, %v14221_v58 }
 0x166   :  { %1119 = vrot.lane.b32.xlu1 %v6983_v52, %s5525_s17  ;;  %1117 = vrot.lane.b32.xlu0 %v6979_v62, %s5525_s17  ;;  %14212 = vst [vmem:[#allocation94_spill] sm:$0xff] %v6995_v54  ;;  %v14218_v52 = vld [vmem:[#allocation29_spill] sm:$0xff] }
 0x167   :  { %v14219_v62 = vld [vmem:[#allocation117_spill] sm:$0xff]  ;;  %14223 = vst [vmem:[#allocation19_spill] sm:$0xff] %v7015_v4 }
 0x168   :  { %v7001_v60 = vpop.permute.xlu1 %632  ;;  %v7003_v2 = vpop.permute.xlu0 %630  ;;  %v7011_v56 = vadd.f32 %v14219_v62, %v14218_v52  ;;  %v14229_v62 = vld [vmem:[#allocation34_spill] sm:$0xff] }
 0x169   :  { %14216 = vst [vmem:[#allocation93_spill] sm:$0xff] %v7001_v60  ;;  %14217 = vst [vmem:[#allocation20_spill] sm:$0xff] %v7003_v2  ;;  %v14230_v52 = vld [vmem:[#allocation126_spill] sm:$0xff] }
 0x16a   :  { %1123 = vrot.lane.b32.xlu1 %v6999_v6, %s5525_s17  ;;  %1121 = vrot.lane.b32.xlu0 %v6995_v54, %s5525_s17  ;;  %14220 = vst [vmem:[#allocation98_spill] sm:$0xff] %v7011_v56  ;;  %v14226_v6 = vld [vmem:[#allocation31_spill] sm:$0xff]  ;;  %v14227_v54 = vld [vmem:[#allocation121_spill] sm:$0xff]  ;;  %v7031_v2 = vadd.f32 %v14230_v52, %v14229_v62 }
 0x16b   :  { %v7027_v60 = vadd.f32 %v14227_v54, %v14226_v6  ;;  %v14236_v54 = vld [vmem:[#allocation36_spill] sm:$0xff]  ;;  %v14237_v6 = vld [vmem:[#allocation130_spill] sm:$0xff] }
 0x16c   :  { %v7017_v63 = vpop.permute.xlu1 %1011  ;;  %v7019_v0 = vpop.permute.xlu0 %634  ;;  %14231 = vst [vmem:[#allocation21_spill] sm:$0xff] %v7031_v2 }
 0x16d   :  { %14224 = vst [vmem:[#allocation97_spill] sm:$0xff] %v7017_v63  ;;  %14225 = vst [vmem:[#allocation22_spill] sm:$0xff] %v7019_v0  ;;  %v7047_v0 = vadd.f32 %v14237_v6, %v14236_v54 }
 0x16e   :  { %1127 = vrot.lane.b32.xlu1 %v7015_v4, %s5525_s17  ;;  %1125 = vrot.lane.b32.xlu0 %v7011_v56, %s5525_s17  ;;  %14228 = vst [vmem:[#allocation102_spill] sm:$0xff] %v7027_v60  ;;  %v14233_v4 = vld [vmem:[#allocation33_spill] sm:$0xff] }
 0x16f   :  { %v14234_v56 = vld [vmem:[#allocation125_spill] sm:$0xff]  ;;  %14238 = vst [vmem:[#allocation106_spill] sm:$0xff] %v7047_v0 }
 0x170   :  { %v7033_v58 = vpop.permute.xlu1 %1015  ;;  %v7035_v59 = vpop.permute.xlu0 %1013  ;;  %v7043_v63 = vadd.f32 %v14234_v56, %v14233_v4  ;;  %v14243_v56 = vld [vmem:[#allocation38_spill] sm:$0xff] }
 0x171   :  { %14232 = vst [vmem:[#allocation101_spill] sm:$0xff] %v7033_v58  ;;  %v7063_v4 = vadd.f32 %v6538_v31, %v14243_v56 }
 0x172   :  { %1131 = vrot.lane.b32.xlu1 %v7031_v2, %s5525_s17  ;;  %1129 = vrot.lane.b32.xlu0 %v7027_v60, %s5525_s17  ;;  %14235 = vst [vmem:[#allocation24_spill] sm:$0xff] %v7043_v63  ;;  %v14240_v2 = vld [vmem:[#allocation35_spill] sm:$0xff]  ;;  %v14241_v60 = vld [vmem:[#allocation129_spill] sm:$0xff] }
 0x173   :  { %v7059_v58 = vadd.f32 %v14241_v60, %v14240_v2  ;;  %14244 = vst [vmem:[#allocation26_spill] sm:$0xff] %v7063_v4  ;;  %v14248_v60 = vld [vmem:[#allocation40_spill] sm:$0xff] }
 0x174   :  { %v7049_v62 = vpop.permute.xlu1 %1019  ;;  %v7051_v52 = vpop.permute.xlu0 %1017  ;;  %v7079_v2 = vadd.f32 %v6555_v30, %v14248_v60 }
 0x175   :  { %14239 = vst [vmem:[#allocation23_spill] sm:$0xff] %v7049_v62  ;;  %14242 = vst [vmem:[#allocation105_spill] sm:$0xff] %v7059_v58 }
 0x176   :  { %1135 = vrot.lane.b32.xlu1 %v7047_v0, %s5525_s17  ;;  %1133 = vrot.lane.b32.xlu0 %v7043_v63, %s5525_s17  ;;  %v14245_v0 = vld [vmem:[#allocation37_spill] sm:$0xff]  ;;  %14249 = vst [vmem:[#allocation25_spill] sm:$0xff] %v7079_v2 }
 0x177   :  { %v14246_v63 = vld [vmem:[#allocation133_spill] sm:$0xff] }
 0x178   :  { %v7065_v54 = vpop.permute.xlu1 %1023  ;;  %v7067_v6 = vpop.permute.xlu0 %1021  ;;  %v7075_v62 = vadd.f32 %v14246_v63, %v14245_v0  ;;  %v14252_v63 = vld [vmem:[#allocation42_spill] sm:$0xff] }
 0x179   :  { %v7095_v0 = vadd.f32 %v6571_v61, %v14252_v63 }
 0x17a   :  { %1139 = vrot.lane.b32.xlu1 %v7063_v4, %s5525_s17  ;;  %1137 = vrot.lane.b32.xlu0 %v7059_v58, %s5525_s17  ;;  %14247 = vst [vmem:[#allocation110_spill] sm:$0xff] %v7075_v62  ;;  %v14250_v4 = vld [vmem:[#allocation39_spill] sm:$0xff] }
 0x17b   :  { %v7091_v58 = vadd.f32 %v6553_v28, %v14250_v4  ;;  %14253 = vst [vmem:[#allocation28_spill] sm:$0xff] %v7095_v0  ;;  %v14256_v28 = vld [vmem:[#allocation44_spill] sm:$0xff] }
 0x17c   :  { %v7081_v31 = vpop.permute.xlu1 %1027  ;;  %v7083_v56 = vpop.permute.xlu0 %1025  ;;  %v7111_v4 = vadd.f32 %v6587_v57, %v14256_v28 }
 0x17d   :  { %14251 = vst [vmem:[#allocation109_spill] sm:$0xff] %v7091_v58 }
 0x17e   :  { %1143 = vrot.lane.b32.xlu1 %v7079_v2, %s5525_s17  ;;  %1141 = vrot.lane.b32.xlu0 %v7075_v62, %s5525_s17  ;;  %v14254_v2 = vld [vmem:[#allocation41_spill] sm:$0xff]  ;;  %14257 = vst [vmem:[#allocation27_spill] sm:$0xff] %v7111_v4 }
 0x17f   :  { %v7107_v62 = vadd.f32 %v6569_v1, %v14254_v2  ;;  %v14260_v1 = vld [vmem:[#allocation46_spill] sm:$0xff] }
 0x180   :  { %v7097_v30 = vpop.permute.xlu1 %1031  ;;  %v7099_v60 = vpop.permute.xlu0 %1029  ;;  %v7127_v2 = vadd.f32 %v6603_v55, %v14260_v1 }
 0x181   :  { %14255 = vst [vmem:[#allocation114_spill] sm:$0xff] %v7107_v62 }
 0x182   :  { %1147 = vrot.lane.b32.xlu1 %v7095_v0, %s5525_s17  ;;  %1145 = vrot.lane.b32.xlu0 %v7091_v58, %s5525_s17  ;;  %v14258_v0 = vld [vmem:[#allocation43_spill] sm:$0xff]  ;;  %14261 = vst [vmem:[#allocation30_spill] sm:$0xff] %v7127_v2 }
 0x183   :  { %v7123_v58 = vadd.f32 %v6585_v3, %v14258_v0  ;;  %v14264_v3 = vld [vmem:[#allocation48_spill] sm:$0xff] }
 0x184   :  { %v7113_v61 = vpop.permute.xlu1 %1035  ;;  %v7115_v63 = vpop.permute.xlu0 %1033  ;;  %v7143_v0 = vadd.f32 %v6619_v53, %v14264_v3 }
 0x185   :  { %14259 = vst [vmem:[#allocation113_spill] sm:$0xff] %v7123_v58 }
 0x186   :  { %1151 = vrot.lane.b32.xlu1 %v7111_v4, %s5525_s17  ;;  %1149 = vrot.lane.b32.xlu0 %v7107_v62, %s5525_s17  ;;  %v14262_v4 = vld [vmem:[#allocation45_spill] sm:$0xff]  ;;  %14265 = vst [vmem:[#allocation29_spill] sm:$0xff] %v7143_v0 }
 0x187   :  { %v7139_v62 = vadd.f32 %v6601_v5, %v14262_v4  ;;  %v14268_v5 = vld [vmem:[#allocation50_spill] sm:$0xff] }
 0x188   :  { %v7129_v57 = vpop.permute.xlu1 %1039  ;;  %v7131_v28 = vpop.permute.xlu0 %1037  ;;  %v7159_v4 = vadd.f32 %v6635_v51, %v14268_v5 }
 0x189   :  { %14263 = vst [vmem:[#allocation118_spill] sm:$0xff] %v7139_v62 }
 0x18a   :  { %1155 = vrot.lane.b32.xlu1 %v7127_v2, %s5525_s17  ;;  %1153 = vrot.lane.b32.xlu0 %v7123_v58, %s5525_s17  ;;  %v14266_v2 = vld [vmem:[#allocation47_spill] sm:$0xff]  ;;  %14269 = vst [vmem:[#allocation32_spill] sm:$0xff] %v7159_v4 }
 0x18b   :  { %v7155_v58 = vadd.f32 %v6617_v7, %v14266_v2  ;;  %v14272_v7 = vld [vmem:[#allocation52_spill] sm:$0xff] }
 0x18c   :  { %v7145_v55 = vpop.permute.xlu1 %1043  ;;  %v7147_v1 = vpop.permute.xlu0 %1041  ;;  %v7175_v2 = vadd.f32 %v6651_v49, %v14272_v7 }
 0x18d   :  { %14267 = vst [vmem:[#allocation117_spill] sm:$0xff] %v7155_v58 }
 0x18e   :  { %1159 = vrot.lane.b32.xlu1 %v7143_v0, %s5525_s17  ;;  %1157 = vrot.lane.b32.xlu0 %v7139_v62, %s5525_s17  ;;  %v14270_v0 = vld [vmem:[#allocation49_spill] sm:$0xff]  ;;  %14273 = vst [vmem:[#allocation31_spill] sm:$0xff] %v7175_v2 }
 0x18f   :  { %v7171_v62 = vadd.f32 %v6633_v9, %v14270_v0  ;;  %v14276_v9 = vld [vmem:[#allocation54_spill] sm:$0xff] }
 0x190   :  { %v7161_v53 = vpop.permute.xlu1 %1047  ;;  %v7163_v3 = vpop.permute.xlu0 %1045  ;;  %v7191_v0 = vadd.f32 %v6667_v47, %v14276_v9 }
 0x191   :  { %14271 = vst [vmem:[#allocation122_spill] sm:$0xff] %v7171_v62 }
 0x192   :  { %1163 = vrot.lane.b32.xlu1 %v7159_v4, %s5525_s17  ;;  %1161 = vrot.lane.b32.xlu0 %v7155_v58, %s5525_s17  ;;  %v14274_v4 = vld [vmem:[#allocation51_spill] sm:$0xff]  ;;  %14277 = vst [vmem:[#allocation34_spill] sm:$0xff] %v7191_v0 }
 0x193   :  { %v7187_v58 = vadd.f32 %v6649_v11, %v14274_v4  ;;  %v14280_v11 = vld [vmem:[#allocation56_spill] sm:$0xff] }
 0x194   :  { %v7177_v51 = vpop.permute.xlu1 %1051  ;;  %v7179_v5 = vpop.permute.xlu0 %1049  ;;  %v7207_v4 = vadd.f32 %v6683_v45, %v14280_v11 }
 0x195   :  { %14275 = vst [vmem:[#allocation121_spill] sm:$0xff] %v7187_v58 }
 0x196   :  { %1167 = vrot.lane.b32.xlu1 %v7175_v2, %s5525_s17  ;;  %1165 = vrot.lane.b32.xlu0 %v7171_v62, %s5525_s17  ;;  %v14278_v2 = vld [vmem:[#allocation53_spill] sm:$0xff]  ;;  %14281 = vst [vmem:[#allocation33_spill] sm:$0xff] %v7207_v4 }
 0x197   :  { %v7203_v62 = vadd.f32 %v6665_v13, %v14278_v2  ;;  %v14284_v13 = vld [vmem:[#allocation58_spill] sm:$0xff] }
 0x198   :  { %v7193_v49 = vpop.permute.xlu1 %1055  ;;  %v7195_v7 = vpop.permute.xlu0 %1053  ;;  %v7223_v2 = vadd.f32 %v6699_v43, %v14284_v13 }
 0x199   :  { %14279 = vst [vmem:[#allocation126_spill] sm:$0xff] %v7203_v62 }
 0x19a   :  { %1171 = vrot.lane.b32.xlu1 %v7191_v0, %s5525_s17  ;;  %1169 = vrot.lane.b32.xlu0 %v7187_v58, %s5525_s17  ;;  %v14282_v0 = vld [vmem:[#allocation55_spill] sm:$0xff]  ;;  %14285 = vst [vmem:[#allocation36_spill] sm:$0xff] %v7223_v2 }
 0x19b   :  { %v7219_v58 = vadd.f32 %v6681_v15, %v14282_v0  ;;  %v14288_v15 = vld [vmem:[#allocation60_spill] sm:$0xff] }
 0x19c   :  { %v7209_v47 = vpop.permute.xlu1 %1059  ;;  %v7211_v9 = vpop.permute.xlu0 %1057  ;;  %v7239_v0 = vadd.f32 %v6715_v41, %v14288_v15 }
 0x19d   :  { %14283 = vst [vmem:[#allocation125_spill] sm:$0xff] %v7219_v58 }
 0x19e   :  { %1175 = vrot.lane.b32.xlu1 %v7207_v4, %s5525_s17  ;;  %1173 = vrot.lane.b32.xlu0 %v7203_v62, %s5525_s17  ;;  %v14286_v4 = vld [vmem:[#allocation57_spill] sm:$0xff]  ;;  %14289 = vst [vmem:[#allocation35_spill] sm:$0xff] %v7239_v0 }
 0x19f   :  { %v7235_v62 = vadd.f32 %v6697_v17, %v14286_v4  ;;  %v14292_v17 = vld [vmem:[#allocation64_spill] sm:$0xff] }
 0x1a0   :  { %v7225_v45 = vpop.permute.xlu1 %1063  ;;  %v7227_v11 = vpop.permute.xlu0 %1061  ;;  %v7255_v4 = vadd.f32 %v6731_v39, %v14292_v17 }
 0x1a1   :  { %14287 = vst [vmem:[#allocation130_spill] sm:$0xff] %v7235_v62 }
 0x1a2   :  { %1179 = vrot.lane.b32.xlu1 %v7223_v2, %s5525_s17  ;;  %1177 = vrot.lane.b32.xlu0 %v7219_v58, %s5525_s17  ;;  %v14290_v2 = vld [vmem:[#allocation59_spill] sm:$0xff]  ;;  %14293 = vst [vmem:[#allocation38_spill] sm:$0xff] %v7255_v4 }
 0x1a3   :  { %v7251_v58 = vadd.f32 %v6713_v19, %v14290_v2  ;;  %v14296_v19 = vld [vmem:[#allocation68_spill] sm:$0xff] }
 0x1a4   :  { %v7241_v43 = vpop.permute.xlu1 %1067  ;;  %v7243_v13 = vpop.permute.xlu0 %1065  ;;  %v7271_v2 = vadd.f32 %v6747_v37, %v14296_v19 }
 0x1a5   :  { %14291 = vst [vmem:[#allocation129_spill] sm:$0xff] %v7251_v58 }
 0x1a6   :  { %1183 = vrot.lane.b32.xlu1 %v7239_v0, %s5525_s17  ;;  %1181 = vrot.lane.b32.xlu0 %v7235_v62, %s5525_s17  ;;  %v14294_v0 = vld [vmem:[#allocation63_spill] sm:$0xff]  ;;  %14297 = vst [vmem:[#allocation133_spill] sm:$0xff] %v7271_v2 }
 0x1a7   :  { %v7267_v62 = vadd.f32 %v6729_v21, %v14294_v0  ;;  %v14300_v21 = vld [vmem:[#allocation72_spill] sm:$0xff] }
 0x1a8   :  { %v7257_v41 = vpop.permute.xlu1 %1071  ;;  %v7259_v15 = vpop.permute.xlu0 %1069  ;;  %v7287_v0 = vadd.f32 %v6763_v35, %v14300_v21 }
 0x1a9   :  { %14295 = vst [vmem:[#allocation37_spill] sm:$0xff] %v7267_v62 }
 0x1aa   :  { %1187 = vrot.lane.b32.xlu1 %v7255_v4, %s5525_s17  ;;  %1185 = vrot.lane.b32.xlu0 %v7251_v58, %s5525_s17  ;;  %v14298_v4 = vld [vmem:[#allocation67_spill] sm:$0xff]  ;;  %14301 = vst [vmem:[#allocation39_spill] sm:$0xff] %v7287_v0 }
 0x1ab   :  { %v7283_v58 = vadd.f32 %v6745_v23, %v14298_v4  ;;  %v14304_v23 = vld [vmem:[#allocation76_spill] sm:$0xff] }
 0x1ac   :  { %v7273_v39 = vpop.permute.xlu1 %1075  ;;  %v7275_v17 = vpop.permute.xlu0 %1073  ;;  %v7303_v4 = vadd.f32 %v6779_v33, %v14304_v23 }
 0x1ad   :  { %14299 = vst [vmem:[#allocation40_spill] sm:$0xff] %v7283_v58 }
 0x1ae   :  { %1191 = vrot.lane.b32.xlu1 %v7271_v2, %s5525_s17  ;;  %1189 = vrot.lane.b32.xlu0 %v7267_v62, %s5525_s17  ;;  %v14302_v2 = vld [vmem:[#allocation71_spill] sm:$0xff]  ;;  %14305 = vst [vmem:[#allocation41_spill] sm:$0xff] %v7303_v4 }
 0x1af   :  { %v7299_v62 = vadd.f32 %v6761_v25, %v14302_v2  ;;  %v14308_v25 = vld [vmem:[#allocation80_spill] sm:$0xff] }
 0x1b0   :  { %v7289_v37 = vpop.permute.xlu1 %1079  ;;  %v7291_v19 = vpop.permute.xlu0 %1077  ;;  %v7319_v2 = vadd.f32 %v6795_v24, %v14308_v25 }
 0x1b1   :  { %14303 = vst [vmem:[#allocation42_spill] sm:$0xff] %v7299_v62 }
 0x1b2   :  { %1195 = vrot.lane.b32.xlu1 %v7287_v0, %s5525_s17  ;;  %1193 = vrot.lane.b32.xlu0 %v7283_v58, %s5525_s17  ;;  %v14306_v0 = vld [vmem:[#allocation75_spill] sm:$0xff]  ;;  %14309 = vst [vmem:[#allocation43_spill] sm:$0xff] %v7319_v2 }
 0x1b3   :  { %v7315_v58 = vadd.f32 %v6777_v27, %v14306_v0  ;;  %v14312_v27 = vld [vmem:[#allocation84_spill] sm:$0xff] }
 0x1b4   :  { %v7305_v35 = vpop.permute.xlu1 %1083  ;;  %v7307_v21 = vpop.permute.xlu0 %1081  ;;  %v7335_v0 = vadd.f32 %v6811_v32, %v14312_v27 }
 0x1b5   :  { %14307 = vst [vmem:[#allocation44_spill] sm:$0xff] %v7315_v58 }
 0x1b6   :  { %1199 = vrot.lane.b32.xlu1 %v7303_v4, %s5525_s17  ;;  %1197 = vrot.lane.b32.xlu0 %v7299_v62, %s5525_s17  ;;  %v14310_v4 = vld [vmem:[#allocation79_spill] sm:$0xff]  ;;  %14313 = vst [vmem:[#allocation45_spill] sm:$0xff] %v7335_v0 }
 0x1b7   :  { %v7331_v62 = vadd.f32 %v6793_v29, %v14310_v4  ;;  %v14316_v29 = vld [vmem:[#allocation88_spill] sm:$0xff] }
 0x1b8   :  { %v7321_v33 = vpop.permute.xlu1 %1087  ;;  %v7323_v23 = vpop.permute.xlu0 %1085  ;;  %v7351_v4 = vadd.f32 %v6827_v22, %v14316_v29 }
 0x1b9   :  { %14311 = vst [vmem:[#allocation46_spill] sm:$0xff] %v7331_v62 }
 0x1ba   :  { %1203 = vrot.lane.b32.xlu1 %v7319_v2, %s5525_s17  ;;  %1201 = vrot.lane.b32.xlu0 %v7315_v58, %s5525_s17  ;;  %v14314_v2 = vld [vmem:[#allocation83_spill] sm:$0xff]  ;;  %14317 = vst [vmem:[#allocation47_spill] sm:$0xff] %v7351_v4 }
 0x1bb   :  { %v7347_v58 = vadd.f32 %v6809_v26, %v14314_v2  ;;  %v14320_v26 = vld [vmem:[#allocation92_spill] sm:$0xff] }
 0x1bc   :  { %v7337_v24 = vpop.permute.xlu1 %1091  ;;  %v7339_v25 = vpop.permute.xlu0 %1089  ;;  %v7367_v2 = vadd.f32 %v6843_v34, %v14320_v26 }
 0x1bd   :  { %14315 = vst [vmem:[#allocation48_spill] sm:$0xff] %v7347_v58 }
 0x1be   :  { %1207 = vrot.lane.b32.xlu1 %v7335_v0, %s5525_s17  ;;  %1205 = vrot.lane.b32.xlu0 %v7331_v62, %s5525_s17  ;;  %v14318_v0 = vld [vmem:[#allocation87_spill] sm:$0xff]  ;;  %14321 = vst [vmem:[#allocation49_spill] sm:$0xff] %v7367_v2 }
 0x1bf   :  { %v7363_v62 = vadd.f32 %v6825_v38, %v14318_v0  ;;  %v14324_v38 = vld [vmem:[#allocation96_spill] sm:$0xff] }
 0x1c0   :  { %v7353_v32 = vpop.permute.xlu1 %1095  ;;  %v7355_v27 = vpop.permute.xlu0 %1093  ;;  %v7383_v0 = vadd.f32 %v6859_v20, %v14324_v38 }
 0x1c1   :  { %14319 = vst [vmem:[#allocation50_spill] sm:$0xff] %v7363_v62 }
 0x1c2   :  { %1211 = vrot.lane.b32.xlu1 %v7351_v4, %s5525_s17  ;;  %1209 = vrot.lane.b32.xlu0 %v7347_v58, %s5525_s17  ;;  %v14322_v4 = vld [vmem:[#allocation91_spill] sm:$0xff]  ;;  %14325 = vst [vmem:[#allocation51_spill] sm:$0xff] %v7383_v0 }
 0x1c3   :  { %v7379_v58 = vadd.f32 %v6841_v36, %v14322_v4  ;;  %v14328_v36 = vld [vmem:[#allocation100_spill] sm:$0xff] }
 0x1c4   :  { %v7369_v22 = vpop.permute.xlu1 %1099  ;;  %v7371_v29 = vpop.permute.xlu0 %1097  ;;  %v7399_v4 = vadd.f32 %v6875_v18, %v14328_v36 }
 0x1c5   :  { %14323 = vst [vmem:[#allocation52_spill] sm:$0xff] %v7379_v58 }
 0x1c6   :  { %1215 = vrot.lane.b32.xlu1 %v7367_v2, %s5525_s17  ;;  %1213 = vrot.lane.b32.xlu0 %v7363_v62, %s5525_s17  ;;  %v14326_v2 = vld [vmem:[#allocation95_spill] sm:$0xff]  ;;  %14329 = vst [vmem:[#allocation53_spill] sm:$0xff] %v7399_v4 }
 0x1c7   :  { %v7395_v62 = vadd.f32 %v6857_v40, %v14326_v2  ;;  %v14332_v40 = vld [vmem:[#allocation104_spill] sm:$0xff] }
 0x1c8   :  { %v7385_v34 = vpop.permute.xlu1 %1103  ;;  %v7387_v26 = vpop.permute.xlu0 %1101  ;;  %v7415_v2 = vadd.f32 %v6891_v16, %v14332_v40 }
 0x1c9   :  { %14327 = vst [vmem:[#allocation54_spill] sm:$0xff] %v7395_v62 }
 0x1ca   :  { %1219 = vrot.lane.b32.xlu1 %v7383_v0, %s5525_s17  ;;  %1217 = vrot.lane.b32.xlu0 %v7379_v58, %s5525_s17  ;;  %v14330_v0 = vld [vmem:[#allocation99_spill] sm:$0xff]  ;;  %14333 = vst [vmem:[#allocation55_spill] sm:$0xff] %v7415_v2 }
 0x1cb   :  { %v7411_v58 = vadd.f32 %v6873_v42, %v14330_v0  ;;  %v14336_v42 = vld [vmem:[#allocation108_spill] sm:$0xff] }
 0x1cc   :  { %v7401_v20 = vpop.permute.xlu1 %1107  ;;  %v7403_v38 = vpop.permute.xlu0 %1105  ;;  %v7431_v0 = vadd.f32 %v6907_v14, %v14336_v42 }
 0x1cd   :  { %14331 = vst [vmem:[#allocation56_spill] sm:$0xff] %v7411_v58 }
 0x1ce   :  { %1223 = vrot.lane.b32.xlu1 %v7399_v4, %s5525_s17  ;;  %1221 = vrot.lane.b32.xlu0 %v7395_v62, %s5525_s17  ;;  %v14334_v4 = vld [vmem:[#allocation103_spill] sm:$0xff]  ;;  %14337 = vst [vmem:[#allocation57_spill] sm:$0xff] %v7431_v0 }
 0x1cf   :  { %v7427_v62 = vadd.f32 %v6889_v44, %v14334_v4  ;;  %v14340_v44 = vld [vmem:[#allocation112_spill] sm:$0xff] }
 0x1d0   :  { %v7417_v18 = vpop.permute.xlu1 %1111  ;;  %v7419_v36 = vpop.permute.xlu0 %1109  ;;  %v7447_v4 = vadd.f32 %v6923_v12, %v14340_v44 }
 0x1d1   :  { %14335 = vst [vmem:[#allocation58_spill] sm:$0xff] %v7427_v62 }
 0x1d2   :  { %1227 = vrot.lane.b32.xlu1 %v7415_v2, %s5525_s17  ;;  %1225 = vrot.lane.b32.xlu0 %v7411_v58, %s5525_s17  ;;  %v14338_v2 = vld [vmem:[#allocation107_spill] sm:$0xff]  ;;  %14341 = vst [vmem:[#allocation59_spill] sm:$0xff] %v7447_v4 }
 0x1d3   :  { %v7443_v58 = vadd.f32 %v6905_v46, %v14338_v2  ;;  %v14344_v46 = vld [vmem:[#allocation116_spill] sm:$0xff] }
 0x1d4   :  { %v7433_v16 = vpop.permute.xlu1 %1115  ;;  %v7435_v40 = vpop.permute.xlu0 %1113  ;;  %v7463_v2 = vadd.f32 %v6939_v10, %v14344_v46 }
 0x1d5   :  { %14339 = vst [vmem:[#allocation60_spill] sm:$0xff] %v7443_v58 }
 0x1d6   :  { %1231 = vrot.lane.b32.xlu1 %v7431_v0, %s5525_s17  ;;  %1229 = vrot.lane.b32.xlu0 %v7427_v62, %s5525_s17  ;;  %v14342_v0 = vld [vmem:[#allocation111_spill] sm:$0xff]  ;;  %14345 = vst [vmem:[#allocation63_spill] sm:$0xff] %v7463_v2 }
 0x1d7   :  { %v7459_v62 = vadd.f32 %v6921_v48, %v14342_v0  ;;  %v14350_v48 = vld [vmem:[#allocation120_spill] sm:$0xff] }
 0x1d8   :  { %v7449_v14 = vpop.permute.xlu1 %1119  ;;  %v7451_v42 = vpop.permute.xlu0 %1117  ;;  %v7479_v0 = vadd.f32 %v6955_v8, %v14350_v48 }
 0x1d9   :  { %14343 = vst [vmem:[#allocation64_spill] sm:$0xff] %v7459_v62 }
 0x1da   :  { %1235 = vrot.lane.b32.xlu1 %v7447_v4, %s5525_s17  ;;  %1233 = vrot.lane.b32.xlu0 %v7443_v58, %s5525_s17  ;;  %v14348_v4 = vld [vmem:[#allocation115_spill] sm:$0xff]  ;;  %14351 = vst [vmem:[#allocation71_spill] sm:$0xff] %v7479_v0 }
 0x1db   :  { %v7475_v58 = vadd.f32 %v6937_v50, %v14348_v4  ;;  %v14357_v50 = vld [vmem:[#allocation124_spill] sm:$0xff] }
 0x1dc   :  { %v7465_v12 = vpop.permute.xlu1 %1123  ;;  %v7467_v44 = vpop.permute.xlu0 %1121  ;;  %v14358_v4 = vld [vmem:[#allocation16_spill] sm:$0xff] }
 0x1dd   :  { %14346 = vst [vmem:[#allocation68_spill] sm:$0xff] %v7465_v12  ;;  %14347 = vst [vmem:[#allocation67_spill] sm:$0xff] %v7467_v44  ;;  %v7495_v44 = vadd.f32 %v14358_v4, %v14357_v50 }
 0x1de   :  { %1239 = vrot.lane.b32.xlu1 %v7463_v2, %s5525_s17  ;;  %1237 = vrot.lane.b32.xlu0 %v7459_v62, %s5525_s17  ;;  %14349 = vst [vmem:[#allocation72_spill] sm:$0xff] %v7475_v58  ;;  %v14354_v2 = vld [vmem:[#allocation119_spill] sm:$0xff]  ;;  %v14355_v62 = vld [vmem:[#allocation14_spill] sm:$0xff] }
 0x1df   :  { %v7491_v12 = vadd.f32 %v14355_v62, %v14354_v2  ;;  %14359 = vst [vmem:[#allocation79_spill] sm:$0xff] %v7495_v44  ;;  %v14365_v62 = vld [vmem:[#allocation128_spill] sm:$0xff]  ;;  %v14366_v2 = vld [vmem:[#allocation18_spill] sm:$0xff] }
 0x1e0   :  { %v7481_v10 = vpop.permute.xlu1 %1127  ;;  %v7483_v46 = vpop.permute.xlu0 %1125 }
 0x1e1   :  { %14352 = vst [vmem:[#allocation76_spill] sm:$0xff] %v7481_v10  ;;  %14353 = vst [vmem:[#allocation75_spill] sm:$0xff] %v7483_v46  ;;  %v7511_v46 = vadd.f32 %v14366_v2, %v14365_v62 }
 0x1e2   :  { %1243 = vrot.lane.b32.xlu1 %v7479_v0, %s5525_s17  ;;  %1241 = vrot.lane.b32.xlu0 %v7475_v58, %s5525_s17  ;;  %14356 = vst [vmem:[#allocation80_spill] sm:$0xff] %v7491_v12  ;;  %v14362_v0 = vld [vmem:[#allocation123_spill] sm:$0xff]  ;;  %v14363_v58 = vld [vmem:[#allocation85_spill] sm:$0xff] }
 0x1e3   :  { %v7507_v10 = vadd.f32 %v14363_v58, %v14362_v0  ;;  %14367 = vst [vmem:[#allocation87_spill] sm:$0xff] %v7511_v46  ;;  %v14373_v58 = vld [vmem:[#allocation132_spill] sm:$0xff] }
 0x1e4   :  { %v7497_v8 = vpop.permute.xlu1 %1131  ;;  %v7499_v48 = vpop.permute.xlu0 %1129  ;;  %v14374_v0 = vld [vmem:[#allocation20_spill] sm:$0xff] }
 0x1e5   :  { %14360 = vst [vmem:[#allocation84_spill] sm:$0xff] %v7497_v8  ;;  %14361 = vst [vmem:[#allocation83_spill] sm:$0xff] %v7499_v48  ;;  %v7527_v48 = vadd.f32 %v14374_v0, %v14373_v58 }
 0x1e6   :  { %1247 = vrot.lane.b32.xlu1 %v7495_v44, %s5525_s17  ;;  %1245 = vrot.lane.b32.xlu0 %v7491_v12, %s5525_s17  ;;  %14364 = vst [vmem:[#allocation88_spill] sm:$0xff] %v7507_v10  ;;  %v14370_v44 = vld [vmem:[#allocation127_spill] sm:$0xff]  ;;  %v14371_v12 = vld [vmem:[#allocation89_spill] sm:$0xff] }
 0x1e7   :  { %v7523_v8 = vadd.f32 %v14371_v12, %v14370_v44  ;;  %14375 = vst [vmem:[#allocation95_spill] sm:$0xff] %v7527_v48  ;;  %v14380_v12 = vld [vmem:[#allocation134_spill] sm:$0xff] }
 0x1e8   :  { %v7513_v50 = vpop.permute.xlu1 %1135  ;;  %v7515_v4 = vpop.permute.xlu0 %1133  ;;  %v14381_v44 = vld [vmem:[#allocation22_spill] sm:$0xff] }
 0x1e9   :  { %14368 = vst [vmem:[#allocation92_spill] sm:$0xff] %v7513_v50  ;;  %14369 = vst [vmem:[#allocation91_spill] sm:$0xff] %v7515_v4  ;;  %v7543_v4 = vadd.f32 %v14381_v44, %v14380_v12 }
 0x1ea   :  { %1251 = vrot.lane.b32.xlu1 %v7511_v46, %s5525_s17  ;;  %1249 = vrot.lane.b32.xlu0 %v7507_v10, %s5525_s17  ;;  %14372 = vst [vmem:[#allocation96_spill] sm:$0xff] %v7523_v8  ;;  %v14377_v46 = vld [vmem:[#allocation131_spill] sm:$0xff]  ;;  %v14378_v10 = vld [vmem:[#allocation93_spill] sm:$0xff] }
 0x1eb   :  { %v7539_v50 = vadd.f32 %v14378_v10, %v14377_v46  ;;  %14382 = vst [vmem:[#allocation104_spill] sm:$0xff] %v7543_v4  ;;  %v14387_v10 = vld [vmem:[#allocation137_spill] sm:$0xff] }
 0x1ec   :  { %v7529_v62 = vpop.permute.xlu1 %1139  ;;  %v7531_v2 = vpop.permute.xlu0 %1137  ;;  %v7559_v46 = vadd.f32 %v7035_v59, %v14387_v10 }
 0x1ed   :  { %14376 = vst [vmem:[#allocation100_spill] sm:$0xff] %v7529_v62  ;;  %14379 = vst [vmem:[#allocation99_spill] sm:$0xff] %v7539_v50 }
 0x1ee   :  { %1255 = vrot.lane.b32.xlu1 %v7527_v48, %s5525_s17  ;;  %1253 = vrot.lane.b32.xlu0 %v7523_v8, %s5525_s17  ;;  %v14384_v48 = vld [vmem:[#allocation135_spill] sm:$0xff]  ;;  %v14385_v8 = vld [vmem:[#allocation97_spill] sm:$0xff]  ;;  %14388 = vst [vmem:[#allocation107_spill] sm:$0xff] %v7559_v46 }
 0x1ef   :  { %v7555_v62 = vadd.f32 %v14385_v8, %v14384_v48  ;;  %v14393_v8 = vld [vmem:[#allocation138_spill] sm:$0xff] }
 0x1f0   :  { %v7545_v58 = vpop.permute.xlu1 %1143  ;;  %v7547_v0 = vpop.permute.xlu0 %1141  ;;  %v7575_v48 = vadd.f32 %v7051_v52, %v14393_v8 }
 0x1f1   :  { %14383 = vst [vmem:[#allocation103_spill] sm:$0xff] %v7545_v58  ;;  %14386 = vst [vmem:[#allocation108_spill] sm:$0xff] %v7555_v62 }
 0x1f2   :  { %1259 = vrot.lane.b32.xlu1 %v7543_v4, %s5525_s17  ;;  %1257 = vrot.lane.b32.xlu0 %v7539_v50, %s5525_s17  ;;  %v14390_v4 = vld [vmem:[#allocation136_spill] sm:$0xff]  ;;  %v14391_v50 = vld [vmem:[#allocation101_spill] sm:$0xff]  ;;  %14394 = vst [vmem:[#allocation116_spill] sm:$0xff] %v7575_v48 }
 0x1f3   :  { %v7571_v58 = vadd.f32 %v14391_v50, %v14390_v4  ;;  %v14398_v50 = vld [vmem:[#allocation140_spill] sm:$0xff] }
 0x1f4   :  { %v7561_v12 = vpop.permute.xlu1 %1147  ;;  %v7563_v44 = vpop.permute.xlu0 %1145  ;;  %v7591_v4 = vadd.f32 %v7067_v6, %v14398_v50 }
 0x1f5   :  { %14389 = vst [vmem:[#allocation112_spill] sm:$0xff] %v7561_v12  ;;  %14392 = vst [vmem:[#allocation111_spill] sm:$0xff] %v7571_v58 }
 0x1f6   :  { %1638 = vrot.lane.b32.xlu1 %v7559_v46, %s5526_s0  ;;  %1636 = vrot.lane.b32.xlu0 %v7555_v62, %s5526_s0  ;;  %v14395_v46 = vld [vmem:[#allocation139_spill] sm:$0xff]  ;;  %14399 = vst [vmem:[#allocation120_spill] sm:$0xff] %v7591_v4 }
 0x1f7   :  { %v14396_v62 = vld [vmem:[#allocation23_spill] sm:$0xff] }
 0x1f8   :  { %v7577_v59 = vpop.permute.xlu1 %1151  ;;  %v7579_v10 = vpop.permute.xlu0 %1149  ;;  %v7587_v12 = vadd.f32 %v14396_v62, %v14395_v46  ;;  %v14402_v62 = vld [vmem:[#allocation142_spill] sm:$0xff] }
 0x1f9   :  { %v7607_v46 = vadd.f32 %v7083_v56, %v14402_v62 }
 0x1fa   :  { %1642 = vrot.lane.b32.xlu1 %v7575_v48, %s5526_s0  ;;  %1640 = vrot.lane.b32.xlu0 %v7571_v58, %s5526_s0  ;;  %14397 = vst [vmem:[#allocation115_spill] sm:$0xff] %v7587_v12  ;;  %v14400_v48 = vld [vmem:[#allocation141_spill] sm:$0xff] }
 0x1fb   :  { %v7603_v58 = vadd.f32 %v7065_v54, %v14400_v48  ;;  %14403 = vst [vmem:[#allocation14_spill] sm:$0xff] %v7607_v46  ;;  %v14406_v54 = vld [vmem:[#allocation144_spill] sm:$0xff] }
 0x1fc   :  { %v7593_v52 = vpop.permute.xlu1 %1155  ;;  %v7595_v8 = vpop.permute.xlu0 %1153  ;;  %v7623_v48 = vadd.f32 %v7099_v60, %v14406_v54 }
 0x1fd   :  { %14401 = vst [vmem:[#allocation119_spill] sm:$0xff] %v7603_v58 }
 0x1fe   :  { %1646 = vrot.lane.b32.xlu1 %v7591_v4, %s5526_s0  ;;  %1644 = vrot.lane.b32.xlu0 %v7587_v12, %s5526_s0  ;;  %v14404_v4 = vld [vmem:[#allocation143_spill] sm:$0xff]  ;;  %14407 = vst [vmem:[#allocation16_spill] sm:$0xff] %v7623_v48 }
 0x1ff   :  { %v7619_v12 = vadd.f32 %v7081_v31, %v14404_v4  ;;  %v14410_v31 = vld [vmem:[#allocation146_spill] sm:$0xff] }
 0x200   :  { %v7609_v6 = vpop.permute.xlu1 %1159  ;;  %v7611_v50 = vpop.permute.xlu0 %1157  ;;  %v7639_v4 = vadd.f32 %v7115_v63, %v14410_v31 }
 0x201   :  { %14405 = vst [vmem:[#allocation124_spill] sm:$0xff] %v7619_v12 }
 0x202   :  { %1650 = vrot.lane.b32.xlu1 %v7607_v46, %s5526_s0  ;;  %1648 = vrot.lane.b32.xlu0 %v7603_v58, %s5526_s0  ;;  %v14408_v46 = vld [vmem:[#allocation145_spill] sm:$0xff]  ;;  %14411 = vst [vmem:[#allocation85_spill] sm:$0xff] %v7639_v4 }
 0x203   :  { %v7635_v58 = vadd.f32 %v7097_v30, %v14408_v46  ;;  %v14414_v30 = vld [vmem:[#allocation148_spill] sm:$0xff] }
 0x204   :  { %v7625_v56 = vpop.permute.xlu1 %1163  ;;  %v7627_v62 = vpop.permute.xlu0 %1161  ;;  %v7655_v46 = vadd.f32 %v7131_v28, %v14414_v30 }
 0x205   :  { %14409 = vst [vmem:[#allocation123_spill] sm:$0xff] %v7635_v58 }
 0x206   :  { %1654 = vrot.lane.b32.xlu1 %v7623_v48, %s5526_s0  ;;  %1652 = vrot.lane.b32.xlu0 %v7619_v12, %s5526_s0  ;;  %v14412_v48 = vld [vmem:[#allocation147_spill] sm:$0xff]  ;;  %14415 = vst [vmem:[#allocation18_spill] sm:$0xff] %v7655_v46 }
 0x207   :  { %v7651_v12 = vadd.f32 %v7113_v61, %v14412_v48  ;;  %v14418_v61 = vld [vmem:[#allocation150_spill] sm:$0xff] }
 0x208   :  { %v7641_v60 = vpop.permute.xlu1 %1167  ;;  %v7643_v54 = vpop.permute.xlu0 %1165  ;;  %v7671_v48 = vadd.f32 %v7147_v1, %v14418_v61 }
 0x209   :  { %14413 = vst [vmem:[#allocation128_spill] sm:$0xff] %v7651_v12 }
 0x20a   :  { %1658 = vrot.lane.b32.xlu1 %v7639_v4, %s5526_s0  ;;  %1656 = vrot.lane.b32.xlu0 %v7635_v58, %s5526_s0  ;;  %v14416_v4 = vld [vmem:[#allocation149_spill] sm:$0xff]  ;;  %14419 = vst [vmem:[#allocation89_spill] sm:$0xff] %v7671_v48 }
 0x20b   :  { %v7667_v58 = vadd.f32 %v7129_v57, %v14416_v4  ;;  %v14422_v57 = vld [vmem:[#allocation152_spill] sm:$0xff] }
 0x20c   :  { %v7657_v63 = vpop.permute.xlu1 %1171  ;;  %v7659_v31 = vpop.permute.xlu0 %1169  ;;  %v7687_v4 = vadd.f32 %v7163_v3, %v14422_v57 }
 0x20d   :  { %14417 = vst [vmem:[#allocation127_spill] sm:$0xff] %v7667_v58 }
 0x20e   :  { %1662 = vrot.lane.b32.xlu1 %v7655_v46, %s5526_s0  ;;  %1660 = vrot.lane.b32.xlu0 %v7651_v12, %s5526_s0  ;;  %v14420_v46 = vld [vmem:[#allocation151_spill] sm:$0xff]  ;;  %14423 = vst [vmem:[#allocation20_spill] sm:$0xff] %v7687_v4 }
 0x20f   :  { %v7683_v12 = vadd.f32 %v7145_v55, %v14420_v46  ;;  %v14426_v55 = vld [vmem:[#allocation154_spill] sm:$0xff] }
 0x210   :  { %v7673_v28 = vpop.permute.xlu1 %1175  ;;  %v7675_v30 = vpop.permute.xlu0 %1173  ;;  %v7703_v46 = vadd.f32 %v7179_v5, %v14426_v55 }
 0x211   :  { %14421 = vst [vmem:[#allocation132_spill] sm:$0xff] %v7683_v12 }
 0x212   :  { %1666 = vrot.lane.b32.xlu1 %v7671_v48, %s5526_s0  ;;  %1664 = vrot.lane.b32.xlu0 %v7667_v58, %s5526_s0  ;;  %v14424_v48 = vld [vmem:[#allocation153_spill] sm:$0xff]  ;;  %14427 = vst [vmem:[#allocation93_spill] sm:$0xff] %v7703_v46 }
 0x213   :  { %v7699_v58 = vadd.f32 %v7161_v53, %v14424_v48  ;;  %v14430_v53 = vld [vmem:[#allocation156_spill] sm:$0xff] }
 0x214   :  { %v7689_v1 = vpop.permute.xlu1 %1179  ;;  %v7691_v61 = vpop.permute.xlu0 %1177  ;;  %v7719_v48 = vadd.f32 %v7195_v7, %v14430_v53 }
 0x215   :  { %14425 = vst [vmem:[#allocation131_spill] sm:$0xff] %v7699_v58 }
 0x216   :  { %1670 = vrot.lane.b32.xlu1 %v7687_v4, %s5526_s0  ;;  %1668 = vrot.lane.b32.xlu0 %v7683_v12, %s5526_s0  ;;  %v14428_v4 = vld [vmem:[#allocation155_spill] sm:$0xff]  ;;  %14431 = vst [vmem:[#allocation22_spill] sm:$0xff] %v7719_v48 }
 0x217   :  { %v7715_v12 = vadd.f32 %v7177_v51, %v14428_v4  ;;  %v14434_v51 = vld [vmem:[#allocation158_spill] sm:$0xff] }
 0x218   :  { %v7705_v3 = vpop.permute.xlu1 %1183  ;;  %v7707_v57 = vpop.permute.xlu0 %1181  ;;  %v7735_v4 = vadd.f32 %v7211_v9, %v14434_v51 }
 0x219   :  { %14429 = vst [vmem:[#allocation134_spill] sm:$0xff] %v7715_v12 }
 0x21a   :  { %1674 = vrot.lane.b32.xlu1 %v7703_v46, %s5526_s0  ;;  %1672 = vrot.lane.b32.xlu0 %v7699_v58, %s5526_s0  ;;  %v14432_v46 = vld [vmem:[#allocation157_spill] sm:$0xff]  ;;  %14435 = vst [vmem:[#allocation97_spill] sm:$0xff] %v7735_v4 }
 0x21b   :  { %v7731_v58 = vadd.f32 %v7193_v49, %v14432_v46  ;;  %v14438_v49 = vld [vmem:[#allocation160_spill] sm:$0xff] }
 0x21c   :  { %v7721_v5 = vpop.permute.xlu1 %1187  ;;  %v7723_v55 = vpop.permute.xlu0 %1185  ;;  %v7751_v46 = vadd.f32 %v7227_v11, %v14438_v49 }
 0x21d   :  { %14433 = vst [vmem:[#allocation135_spill] sm:$0xff] %v7731_v58 }
 0x21e   :  { %1678 = vrot.lane.b32.xlu1 %v7719_v48, %s5526_s0  ;;  %1676 = vrot.lane.b32.xlu0 %v7715_v12, %s5526_s0  ;;  %v14436_v48 = vld [vmem:[#allocation159_spill] sm:$0xff]  ;;  %14439 = vst [vmem:[#allocation136_spill] sm:$0xff] %v7751_v46 }
 0x21f   :  { %v7747_v12 = vadd.f32 %v7209_v47, %v14436_v48  ;;  %v14442_v47 = vld [vmem:[#allocation162_spill] sm:$0xff] }
 0x220   :  { %v7737_v7 = vpop.permute.xlu1 %1191  ;;  %v7739_v53 = vpop.permute.xlu0 %1189  ;;  %v7767_v48 = vadd.f32 %v7243_v13, %v14442_v47 }
 0x221   :  { %14437 = vst [vmem:[#allocation137_spill] sm:$0xff] %v7747_v12 }
 0x222   :  { %1682 = vrot.lane.b32.xlu1 %v7735_v4, %s5526_s0  ;;  %1680 = vrot.lane.b32.xlu0 %v7731_v58, %s5526_s0  ;;  %v14440_v4 = vld [vmem:[#allocation161_spill] sm:$0xff]  ;;  %14443 = vst [vmem:[#allocation138_spill] sm:$0xff] %v7767_v48 }
 0x223   :  { %v7763_v58 = vadd.f32 %v7225_v45, %v14440_v4  ;;  %v14446_v45 = vld [vmem:[#allocation2_spill] sm:$0xff] }
 0x224   :  { %v7753_v9 = vpop.permute.xlu1 %1195  ;;  %v7755_v51 = vpop.permute.xlu0 %1193  ;;  %v7783_v4 = vadd.f32 %v7259_v15, %v14446_v45 }
 0x225   :  { %14441 = vst [vmem:[#allocation101_spill] sm:$0xff] %v7763_v58 }
 0x226   :  { %1686 = vrot.lane.b32.xlu1 %v7751_v46, %s5526_s0  ;;  %1684 = vrot.lane.b32.xlu0 %v7747_v12, %s5526_s0  ;;  %v14444_v46 = vld [vmem:[#allocation62_spill] sm:$0xff]  ;;  %14447 = vst [vmem:[#allocation23_spill] sm:$0xff] %v7783_v4 }
 0x227   :  { %v7779_v12 = vadd.f32 %v7241_v43, %v14444_v46  ;;  %v14450_v43 = vld [vmem:[#allocation4_spill] sm:$0xff] }
 0x228   :  { %v7769_v11 = vpop.permute.xlu1 %1199  ;;  %v7771_v49 = vpop.permute.xlu0 %1197  ;;  %v7799_v46 = vadd.f32 %v7275_v17, %v14450_v43 }
 0x229   :  { %14445 = vst [vmem:[#allocation139_spill] sm:$0xff] %v7779_v12 }
 0x22a   :  { %1690 = vrot.lane.b32.xlu1 %v7767_v48, %s5526_s0  ;;  %1688 = vrot.lane.b32.xlu0 %v7763_v58, %s5526_s0  ;;  %v14448_v48 = vld [vmem:[#allocation61_spill] sm:$0xff]  ;;  %14451 = vst [vmem:[#allocation141_spill] sm:$0xff] %v7799_v46 }
 0x22b   :  { %v7795_v58 = vadd.f32 %v7257_v41, %v14448_v48  ;;  %v14454_v41 = vld [vmem:[#allocation3_spill] sm:$0xff] }
 0x22c   :  { %v7785_v13 = vpop.permute.xlu1 %1203  ;;  %v7787_v47 = vpop.permute.xlu0 %1201  ;;  %v7815_v48 = vadd.f32 %v7291_v19, %v14454_v41 }
 0x22d   :  { %14449 = vst [vmem:[#allocation140_spill] sm:$0xff] %v7795_v58 }
 0x22e   :  { %1694 = vrot.lane.b32.xlu1 %v7783_v4, %s5526_s0  ;;  %1692 = vrot.lane.b32.xlu0 %v7779_v12, %s5526_s0  ;;  %v14452_v4 = vld [vmem:[#allocation66_spill] sm:$0xff]  ;;  %14455 = vst [vmem:[#allocation143_spill] sm:$0xff] %v7815_v48 }
 0x22f   :  { %v7811_v12 = vadd.f32 %v7273_v39, %v14452_v4  ;;  %v14458_v39 = vld [vmem:[#allocation6_spill] sm:$0xff] }
 0x230   :  { %v7801_v15 = vpop.permute.xlu1 %1207  ;;  %v7803_v45 = vpop.permute.xlu0 %1205  ;;  %v7831_v4 = vadd.f32 %v7307_v21, %v14458_v39 }
 0x231   :  { %14453 = vst [vmem:[#allocation142_spill] sm:$0xff] %v7811_v12 }
 0x232   :  { %1698 = vrot.lane.b32.xlu1 %v7799_v46, %s5526_s0  ;;  %1696 = vrot.lane.b32.xlu0 %v7795_v58, %s5526_s0  ;;  %v14456_v46 = vld [vmem:[#allocation65_spill] sm:$0xff]  ;;  %14459 = vst [vmem:[#allocation145_spill] sm:$0xff] %v7831_v4 }
 0x233   :  { %v7827_v58 = vadd.f32 %v7289_v37, %v14456_v46  ;;  %v14462_v37 = vld [vmem:[#allocation5_spill] sm:$0xff] }
 0x234   :  { %v7817_v17 = vpop.permute.xlu1 %1211  ;;  %v7819_v43 = vpop.permute.xlu0 %1209  ;;  %v7847_v46 = vadd.f32 %v7323_v23, %v14462_v37 }
 0x235   :  { %14457 = vst [vmem:[#allocation144_spill] sm:$0xff] %v7827_v58 }
 0x236   :  { %1702 = vrot.lane.b32.xlu1 %v7815_v48, %s5526_s0  ;;  %1700 = vrot.lane.b32.xlu0 %v7811_v12, %s5526_s0  ;;  %v14460_v48 = vld [vmem:[#allocation70_spill] sm:$0xff]  ;;  %14463 = vst [vmem:[#allocation147_spill] sm:$0xff] %v7847_v46 }
 0x237   :  { %v7843_v12 = vadd.f32 %v7305_v35, %v14460_v48  ;;  %v14466_v35 = vld [vmem:[#allocation8_spill] sm:$0xff] }
 0x238   :  { %v7833_v19 = vpop.permute.xlu1 %1215  ;;  %v7835_v41 = vpop.permute.xlu0 %1213  ;;  %v7863_v48 = vadd.f32 %v7339_v25, %v14466_v35 }
 0x239   :  { %14461 = vst [vmem:[#allocation146_spill] sm:$0xff] %v7843_v12 }
 0x23a   :  { %1706 = vrot.lane.b32.xlu1 %v7831_v4, %s5526_s0  ;;  %1704 = vrot.lane.b32.xlu0 %v7827_v58, %s5526_s0  ;;  %v14464_v4 = vld [vmem:[#allocation69_spill] sm:$0xff]  ;;  %14467 = vst [vmem:[#allocation149_spill] sm:$0xff] %v7863_v48 }
 0x23b   :  { %v7859_v58 = vadd.f32 %v7321_v33, %v14464_v4  ;;  %v14470_v33 = vld [vmem:[#allocation7_spill] sm:$0xff] }
 0x23c   :  { %v7849_v21 = vpop.permute.xlu1 %1219  ;;  %v7851_v39 = vpop.permute.xlu0 %1217  ;;  %v7879_v4 = vadd.f32 %v7355_v27, %v14470_v33 }
 0x23d   :  { %14465 = vst [vmem:[#allocation148_spill] sm:$0xff] %v7859_v58 }
 0x23e   :  { %1710 = vrot.lane.b32.xlu1 %v7847_v46, %s5526_s0  ;;  %1708 = vrot.lane.b32.xlu0 %v7843_v12, %s5526_s0  ;;  %v14468_v46 = vld [vmem:[#allocation74_spill] sm:$0xff]  ;;  %14471 = vst [vmem:[#allocation151_spill] sm:$0xff] %v7879_v4 }
 0x23f   :  { %v7875_v12 = vadd.f32 %v7337_v24, %v14468_v46  ;;  %v14474_v24 = vld [vmem:[#allocation10_spill] sm:$0xff] }
 0x240   :  { %v7865_v23 = vpop.permute.xlu1 %1223  ;;  %v7867_v37 = vpop.permute.xlu0 %1221  ;;  %v7895_v46 = vadd.f32 %v7371_v29, %v14474_v24 }
 0x241   :  { %14469 = vst [vmem:[#allocation150_spill] sm:$0xff] %v7875_v12 }
 0x242   :  { %1714 = vrot.lane.b32.xlu1 %v7863_v48, %s5526_s0  ;;  %1712 = vrot.lane.b32.xlu0 %v7859_v58, %s5526_s0  ;;  %v14472_v48 = vld [vmem:[#allocation73_spill] sm:$0xff]  ;;  %14475 = vst [vmem:[#allocation153_spill] sm:$0xff] %v7895_v46 }
 0x243   :  { %v7891_v58 = vadd.f32 %v7353_v32, %v14472_v48  ;;  %v14478_v32 = vld [vmem:[#allocation9_spill] sm:$0xff] }
 0x244   :  { %v7881_v25 = vpop.permute.xlu1 %1227  ;;  %v7883_v35 = vpop.permute.xlu0 %1225  ;;  %v7911_v48 = vadd.f32 %v7387_v26, %v14478_v32 }
 0x245   :  { %14473 = vst [vmem:[#allocation152_spill] sm:$0xff] %v7891_v58 }
 0x246   :  { %1718 = vrot.lane.b32.xlu1 %v7879_v4, %s5526_s0  ;;  %1716 = vrot.lane.b32.xlu0 %v7875_v12, %s5526_s0  ;;  %v14476_v4 = vld [vmem:[#allocation78_spill] sm:$0xff]  ;;  %14479 = vst [vmem:[#allocation155_spill] sm:$0xff] %v7911_v48 }
 0x247   :  { %v7907_v12 = vadd.f32 %v7369_v22, %v14476_v4  ;;  %v14482_v22 = vld [vmem:[#allocation12_spill] sm:$0xff] }
 0x248   :  { %v7897_v27 = vpop.permute.xlu1 %1231  ;;  %v7899_v33 = vpop.permute.xlu0 %1229  ;;  %v7927_v4 = vadd.f32 %v7403_v38, %v14482_v22 }
 0x249   :  { %14477 = vst [vmem:[#allocation154_spill] sm:$0xff] %v7907_v12 }
 0x24a   :  { %1722 = vrot.lane.b32.xlu1 %v7895_v46, %s5526_s0  ;;  %1720 = vrot.lane.b32.xlu0 %v7891_v58, %s5526_s0  ;;  %v14480_v46 = vld [vmem:[#allocation77_spill] sm:$0xff]  ;;  %14483 = vst [vmem:[#allocation157_spill] sm:$0xff] %v7927_v4 }
 0x24b   :  { %v7923_v58 = vadd.f32 %v7385_v34, %v14480_v46  ;;  %v14486_v34 = vld [vmem:[#allocation11_spill] sm:$0xff] }
 0x24c   :  { %v7913_v29 = vpop.permute.xlu1 %1235  ;;  %v7915_v24 = vpop.permute.xlu0 %1233  ;;  %v7943_v46 = vadd.f32 %v7419_v36, %v14486_v34 }
 0x24d   :  { %14481 = vst [vmem:[#allocation156_spill] sm:$0xff] %v7923_v58 }
 0x24e   :  { %1726 = vrot.lane.b32.xlu1 %v7911_v48, %s5526_s0  ;;  %1724 = vrot.lane.b32.xlu0 %v7907_v12, %s5526_s0  ;;  %v14484_v48 = vld [vmem:[#allocation82_spill] sm:$0xff]  ;;  %14487 = vst [vmem:[#allocation159_spill] sm:$0xff] %v7943_v46 }
 0x24f   :  { %v7939_v12 = vadd.f32 %v7401_v20, %v14484_v48  ;;  %v14490_v20 = vld [vmem:[#allocation86_spill] sm:$0xff] }
 0x250   :  { %v7929_v26 = vpop.permute.xlu1 %1239  ;;  %v7931_v32 = vpop.permute.xlu0 %1237  ;;  %v7959_v48 = vadd.f32 %v7435_v40, %v14490_v20 }
 0x251   :  { %14485 = vst [vmem:[#allocation158_spill] sm:$0xff] %v7939_v12 }
 0x252   :  { %1730 = vrot.lane.b32.xlu1 %v7927_v4, %s5526_s0  ;;  %1728 = vrot.lane.b32.xlu0 %v7923_v58, %s5526_s0  ;;  %v14488_v4 = vld [vmem:[#allocation81_spill] sm:$0xff]  ;;  %14491 = vst [vmem:[#allocation161_spill] sm:$0xff] %v7959_v48 }
 0x253   :  { %v7955_v58 = vadd.f32 %v7417_v18, %v14488_v4  ;;  %v14495_v18 = vld [vmem:[#allocation90_spill] sm:$0xff] }
 0x254   :  { %v7945_v38 = vpop.permute.xlu1 %1243  ;;  %v7947_v22 = vpop.permute.xlu0 %1241  ;;  %v7975_v4 = vadd.f32 %v7451_v42, %v14495_v18 }
 0x255   :  { %14489 = vst [vmem:[#allocation160_spill] sm:$0xff] %v7955_v58 }
 0x256   :  { %1734 = vrot.lane.b32.xlu1 %v7943_v46, %s5526_s0  ;;  %1732 = vrot.lane.b32.xlu0 %v7939_v12, %s5526_s0  ;;  %v14493_v46 = vld [vmem:[#allocation13_spill] sm:$0xff]  ;;  %14496 = vst [vmem:[#allocation2_spill] sm:$0xff] %v7975_v4 }
 0x257   :  { %v7971_v12 = vadd.f32 %v7433_v16, %v14493_v46  ;;  %v14501_v16 = vld [vmem:[#allocation94_spill] sm:$0xff]  ;;  %v14502_v46 = vld [vmem:[#allocation67_spill] sm:$0xff] }
 0x258   :  { %v7961_v36 = vpop.permute.xlu1 %1247  ;;  %v7963_v34 = vpop.permute.xlu0 %1245 }
 0x259   :  { %14492 = vst [vmem:[#allocation162_spill] sm:$0xff] %v7961_v36  ;;  %14494 = vst [vmem:[#allocation62_spill] sm:$0xff] %v7971_v12  ;;  %v7991_v36 = vadd.f32 %v14502_v46, %v14501_v16 }
 0x25a   :  { %1738 = vrot.lane.b32.xlu1 %v7959_v48, %s5526_s0  ;;  %1736 = vrot.lane.b32.xlu0 %v7955_v58, %s5526_s0  ;;  %v14499_v48 = vld [vmem:[#allocation15_spill] sm:$0xff] }
 0x25b   :  { %v7987_v58 = vadd.f32 %v7449_v14, %v14499_v48  ;;  %14503 = vst [vmem:[#allocation3_spill] sm:$0xff] %v7991_v36  ;;  %v14509_v14 = vld [vmem:[#allocation98_spill] sm:$0xff]  ;;  %v14510_v48 = vld [vmem:[#allocation75_spill] sm:$0xff] }
 0x25c   :  { %v7977_v40 = vpop.permute.xlu1 %1251  ;;  %v7979_v20 = vpop.permute.xlu0 %1249 }
 0x25d   :  { %14497 = vst [vmem:[#allocation61_spill] sm:$0xff] %v7977_v40  ;;  %14498 = vst [vmem:[#allocation4_spill] sm:$0xff] %v7979_v20  ;;  %v8007_v20 = vadd.f32 %v14510_v48, %v14509_v14 }
 0x25e   :  { %1742 = vrot.lane.b32.xlu1 %v7975_v4, %s5526_s0  ;;  %1740 = vrot.lane.b32.xlu0 %v7971_v12, %s5526_s0  ;;  %14500 = vst [vmem:[#allocation66_spill] sm:$0xff] %v7987_v58  ;;  %v14506_v4 = vld [vmem:[#allocation17_spill] sm:$0xff]  ;;  %v14507_v12 = vld [vmem:[#allocation68_spill] sm:$0xff] }
 0x25f   :  { %v8003_v40 = vadd.f32 %v14507_v12, %v14506_v4  ;;  %14511 = vst [vmem:[#allocation5_spill] sm:$0xff] %v8007_v20  ;;  %v14517_v12 = vld [vmem:[#allocation102_spill] sm:$0xff]  ;;  %v14518_v4 = vld [vmem:[#allocation83_spill] sm:$0xff] }
 0x260   :  { %v7993_v42 = vpop.permute.xlu1 %1255  ;;  %v7995_v18 = vpop.permute.xlu0 %1253 }
 0x261   :  { %14504 = vst [vmem:[#allocation65_spill] sm:$0xff] %v7993_v42  ;;  %14505 = vst [vmem:[#allocation6_spill] sm:$0xff] %v7995_v18  ;;  %v8023_v18 = vadd.f32 %v14518_v4, %v14517_v12 }
 0x262   :  { %1746 = vrot.lane.b32.xlu1 %v7991_v36, %s5526_s0  ;;  %1744 = vrot.lane.b32.xlu0 %v7987_v58, %s5526_s0  ;;  %14508 = vst [vmem:[#allocation70_spill] sm:$0xff] %v8003_v40  ;;  %v14514_v36 = vld [vmem:[#allocation19_spill] sm:$0xff]  ;;  %v14515_v58 = vld [vmem:[#allocation76_spill] sm:$0xff] }
 0x263   :  { %v8019_v42 = vadd.f32 %v14515_v58, %v14514_v36  ;;  %14519 = vst [vmem:[#allocation7_spill] sm:$0xff] %v8023_v18  ;;  %v14524_v58 = vld [vmem:[#allocation24_spill] sm:$0xff]  ;;  %v14525_v36 = vld [vmem:[#allocation91_spill] sm:$0xff] }
 0x264   :  { %v8009_v16 = vpop.permute.xlu1 %1259  ;;  %v8011_v46 = vpop.permute.xlu0 %1257 }
 0x265   :  { %14512 = vst [vmem:[#allocation69_spill] sm:$0xff] %v8009_v16  ;;  %14513 = vst [vmem:[#allocation8_spill] sm:$0xff] %v8011_v46  ;;  %v8039_v46 = vadd.f32 %v14525_v36, %v14524_v58 }
 0x266   :  { %1750 = vrot.lane.b32.xlu1 %v8007_v20, %s5526_s0  ;;  %1748 = vrot.lane.b32.xlu0 %v8003_v40, %s5526_s0  ;;  %14516 = vst [vmem:[#allocation74_spill] sm:$0xff] %v8019_v42  ;;  %v14521_v20 = vld [vmem:[#allocation21_spill] sm:$0xff]  ;;  %v14522_v40 = vld [vmem:[#allocation84_spill] sm:$0xff] }
 0x267   :  { %v8035_v16 = vadd.f32 %v14522_v40, %v14521_v20  ;;  %14526 = vst [vmem:[#allocation78_spill] sm:$0xff] %v8039_v46  ;;  %v14529_v40 = vld [vmem:[#allocation92_spill] sm:$0xff] }
 0x268   :  { %v8025_v14 = vpop.permute.xlu1 %1638  ;;  %v8027_v48 = vpop.permute.xlu0 %1636 }
 0x269   :  { %14520 = vst [vmem:[#allocation73_spill] sm:$0xff] %v8025_v14  ;;  %14523 = vst [vmem:[#allocation10_spill] sm:$0xff] %v8035_v16  ;;  %v5527_v14 = vmov 0  }
 0x26a   :  { %1754 = vrot.lane.b32.xlu1 %v8023_v18, %s5526_s0  ;;  %1752 = vrot.lane.b32.xlu0 %v8019_v42, %s5526_s0  ;;  %v14528_v42 = vld [vmem:[#allocation106_spill] sm:$0xff]  ;;  %v14531_v18 = vld [vmem:[#allocation105_spill] sm:$0xff] }
 0x26b   :  { %5272 = vset.pattern.permute.xlu1 %v5527_v14  ;;  %5273 = vset.pattern.permute.xlu0 %v5527_v14  ;;  %v8051_v20 = vadd.f32 %v14529_v40, %v14528_v42  ;;  %v8055_v58 = vadd.f32 %v7531_v2, %v14531_v18  ;;  %v14534_v14 = vld [vmem:[#allocation26_spill] sm:$0xff] }
 0x26c   :  { %v8041_v12 = vpop.permute.xlu1 %1642  ;;  %v8043_v4 = vpop.permute.xlu0 %1640  ;;  %v14537_v42 = vld [vmem:[#allocation110_spill] sm:$0xff] }
 0x26d   :  { %14527 = vst [vmem:[#allocation9_spill] sm:$0xff] %v8043_v4  ;;  %14530 = vst [vmem:[#allocation77_spill] sm:$0xff] %v8051_v20  ;;  %v8071_v40 = vadd.f32 %v7547_v0, %v14537_v42 }
 0x26e   :  { %1758 = vrot.lane.b32.xlu1 %v8039_v46, %s5526_s0  ;;  %1756 = vrot.lane.b32.xlu0 %v8035_v16, %s5526_s0  ;;  %14532 = vst [vmem:[#allocation12_spill] sm:$0xff] %v8055_v58  ;;  %v14535_v16 = vld [vmem:[#allocation100_spill] sm:$0xff] }
 0x26f   :  { %v8067_v46 = vadd.f32 %v14535_v16, %v14534_v14  ;;  %14538 = vst [vmem:[#allocation81_spill] sm:$0xff] %v8071_v40  ;;  %v14543_v16 = vld [vmem:[#allocation109_spill] sm:$0xff] }
 0x270   :  { %v8057_v36 = vpop.permute.xlu1 %1646  ;;  %v8059_v4 = vpop.permute.xlu0 %1644  ;;  %v8087_v14 = vadd.f32 %v7563_v44, %v14543_v16 }
 0x271   :  { %14533 = vst [vmem:[#allocation82_spill] sm:$0xff] %v8059_v4  ;;  %14536 = vst [vmem:[#allocation11_spill] sm:$0xff] %v8067_v46 }
 0x272   :  { %1762 = vrot.lane.b32.xlu1 %v8055_v58, %s5526_s0  ;;  %1760 = vrot.lane.b32.xlu0 %v8051_v20, %s5526_s0  ;;  %v14540_v58 = vld [vmem:[#allocation25_spill] sm:$0xff]  ;;  %v14541_v20 = vld [vmem:[#allocation103_spill] sm:$0xff]  ;;  %14544 = vst [vmem:[#allocation90_spill] sm:$0xff] %v8087_v14 }
 0x273   :  { %v8083_v4 = vadd.f32 %v14541_v20, %v14540_v58  ;;  %v14548_v20 = vld [vmem:[#allocation114_spill] sm:$0xff] }
 0x274   :  { %v8073_v2 = vpop.permute.xlu1 %1650  ;;  %v8075_v18 = vpop.permute.xlu0 %1648  ;;  %v8103_v58 = vadd.f32 %v7579_v10, %v14548_v20 }
 0x275   :  { %14539 = vst [vmem:[#allocation86_spill] sm:$0xff] %v8075_v18  ;;  %14542 = vst [vmem:[#allocation13_spill] sm:$0xff] %v8083_v4 }
 0x276   :  { %1766 = vrot.lane.b32.xlu1 %v8071_v40, %s5526_s0  ;;  %1764 = vrot.lane.b32.xlu0 %v8067_v46, %s5526_s0  ;;  %v14545_v40 = vld [vmem:[#allocation28_spill] sm:$0xff]  ;;  %14549 = vst [vmem:[#allocation94_spill] sm:$0xff] %v8103_v58 }
 0x277   :  { %v14546_v46 = vld [vmem:[#allocation112_spill] sm:$0xff] }
 0x278   :  { %v8089_v0 = vpop.permute.xlu1 %1654  ;;  %v8091_v42 = vpop.permute.xlu0 %1652  ;;  %v8099_v18 = vadd.f32 %v14546_v46, %v14545_v40  ;;  %v14552_v46 = vld [vmem:[#allocation113_spill] sm:$0xff] }
 0x279   :  { %v8119_v40 = vadd.f32 %v7595_v8, %v14552_v46 }
 0x27a   :  { %1770 = vrot.lane.b32.xlu1 %v8087_v14, %s5526_s0  ;;  %1768 = vrot.lane.b32.xlu0 %v8083_v4, %s5526_s0  ;;  %14547 = vst [vmem:[#allocation15_spill] sm:$0xff] %v8099_v18  ;;  %v14550_v14 = vld [vmem:[#allocation27_spill] sm:$0xff] }
 0x27b   :  { %v8115_v4 = vadd.f32 %v7577_v59, %v14550_v14  ;;  %14553 = vst [vmem:[#allocation17_spill] sm:$0xff] %v8119_v40  ;;  %v14556_v59 = vld [vmem:[#allocation118_spill] sm:$0xff] }
 0x27c   :  { %v8105_v44 = vpop.permute.xlu1 %1658  ;;  %v8107_v16 = vpop.permute.xlu0 %1656  ;;  %v8135_v14 = vadd.f32 %v7611_v50, %v14556_v59 }
 0x27d   :  { %14551 = vst [vmem:[#allocation67_spill] sm:$0xff] %v8115_v4 }
 0x27e   :  { %1774 = vrot.lane.b32.xlu1 %v8103_v58, %s5526_s0  ;;  %1772 = vrot.lane.b32.xlu0 %v8099_v18, %s5526_s0  ;;  %v14554_v58 = vld [vmem:[#allocation30_spill] sm:$0xff]  ;;  %14557 = vst [vmem:[#allocation98_spill] sm:$0xff] %v8135_v14 }
 0x27f   :  { %v8131_v18 = vadd.f32 %v7593_v52, %v14554_v58  ;;  %v14560_v52 = vld [vmem:[#allocation117_spill] sm:$0xff] }
 0x280   :  { %v8121_v10 = vpop.permute.xlu1 %1662  ;;  %v8123_v20 = vpop.permute.xlu0 %1660  ;;  %v8151_v58 = vadd.f32 %v7627_v62, %v14560_v52 }
 0x281   :  { %14555 = vst [vmem:[#allocation68_spill] sm:$0xff] %v8131_v18 }
 0x282   :  { %1778 = vrot.lane.b32.xlu1 %v8119_v40, %s5526_s0  ;;  %1776 = vrot.lane.b32.xlu0 %v8115_v4, %s5526_s0  ;;  %v14558_v40 = vld [vmem:[#allocation29_spill] sm:$0xff]  ;;  %14561 = vst [vmem:[#allocation19_spill] sm:$0xff] %v8151_v58 }
 0x283   :  { %v8147_v4 = vadd.f32 %v7609_v6, %v14558_v40  ;;  %v14564_v6 = vld [vmem:[#allocation122_spill] sm:$0xff] }
 0x284   :  { %v8137_v8 = vpop.permute.xlu1 %1666  ;;  %v8139_v46 = vpop.permute.xlu0 %1664  ;;  %v8167_v40 = vadd.f32 %v7643_v54, %v14564_v6 }
 0x285   :  { %14559 = vst [vmem:[#allocation75_spill] sm:$0xff] %v8147_v4 }
 0x286   :  { %1782 = vrot.lane.b32.xlu1 %v8135_v14, %s5526_s0  ;;  %1780 = vrot.lane.b32.xlu0 %v8131_v18, %s5526_s0  ;;  %v14562_v14 = vld [vmem:[#allocation32_spill] sm:$0xff]  ;;  %14565 = vst [vmem:[#allocation102_spill] sm:$0xff] %v8167_v40 }
 0x287   :  { %v8163_v18 = vadd.f32 %v7625_v56, %v14562_v14  ;;  %v14568_v56 = vld [vmem:[#allocation121_spill] sm:$0xff] }
 0x288   :  { %v8153_v50 = vpop.permute.xlu1 %1670  ;;  %v8155_v59 = vpop.permute.xlu0 %1668  ;;  %v8183_v14 = vadd.f32 %v7659_v31, %v14568_v56 }
 0x289   :  { %14563 = vst [vmem:[#allocation76_spill] sm:$0xff] %v8163_v18 }
 0x28a   :  { %1786 = vrot.lane.b32.xlu1 %v8151_v58, %s5526_s0  ;;  %1784 = vrot.lane.b32.xlu0 %v8147_v4, %s5526_s0  ;;  %v14566_v58 = vld [vmem:[#allocation31_spill] sm:$0xff]  ;;  %14569 = vst [vmem:[#allocation21_spill] sm:$0xff] %v8183_v14 }
 0x28b   :  { %v8179_v4 = vadd.f32 %v7641_v60, %v14566_v58  ;;  %v14572_v60 = vld [vmem:[#allocation126_spill] sm:$0xff] }
 0x28c   :  { %v8169_v62 = vpop.permute.xlu1 %1674  ;;  %v8171_v52 = vpop.permute.xlu0 %1672  ;;  %v8199_v58 = vadd.f32 %v7675_v30, %v14572_v60 }
 0x28d   :  { %14567 = vst [vmem:[#allocation83_spill] sm:$0xff] %v8179_v4 }
 0x28e   :  { %1790 = vrot.lane.b32.xlu1 %v8167_v40, %s5526_s0  ;;  %1788 = vrot.lane.b32.xlu0 %v8163_v18, %s5526_s0  ;;  %v14570_v40 = vld [vmem:[#allocation34_spill] sm:$0xff]  ;;  %14573 = vst [vmem:[#allocation24_spill] sm:$0xff] %v8199_v58 }
 0x28f   :  { %v8195_v18 = vadd.f32 %v7657_v63, %v14570_v40  ;;  %v14576_v63 = vld [vmem:[#allocation125_spill] sm:$0xff] }
 0x290   :  { %v8185_v54 = vpop.permute.xlu1 %1678  ;;  %v8187_v6 = vpop.permute.xlu0 %1676  ;;  %v8215_v40 = vadd.f32 %v7691_v61, %v14576_v63 }
 0x291   :  { %14571 = vst [vmem:[#allocation84_spill] sm:$0xff] %v8195_v18 }
 0x292   :  { %1794 = vrot.lane.b32.xlu1 %v8183_v14, %s5526_s0  ;;  %1792 = vrot.lane.b32.xlu0 %v8179_v4, %s5526_s0  ;;  %v14574_v14 = vld [vmem:[#allocation33_spill] sm:$0xff]  ;;  %14577 = vst [vmem:[#allocation106_spill] sm:$0xff] %v8215_v40 }
 0x293   :  { %v8211_v4 = vadd.f32 %v7673_v28, %v14574_v14  ;;  %v14580_v28 = vld [vmem:[#allocation130_spill] sm:$0xff] }
 0x294   :  { %v8201_v31 = vpop.permute.xlu1 %1682  ;;  %v8203_v56 = vpop.permute.xlu0 %1680  ;;  %v8231_v14 = vadd.f32 %v7707_v57, %v14580_v28 }
 0x295   :  { %14575 = vst [vmem:[#allocation91_spill] sm:$0xff] %v8211_v4 }
 0x296   :  { %1798 = vrot.lane.b32.xlu1 %v8199_v58, %s5526_s0  ;;  %1796 = vrot.lane.b32.xlu0 %v8195_v18, %s5526_s0  ;;  %v14578_v58 = vld [vmem:[#allocation36_spill] sm:$0xff]  ;;  %14581 = vst [vmem:[#allocation105_spill] sm:$0xff] %v8231_v14 }
 0x297   :  { %v8227_v18 = vadd.f32 %v7689_v1, %v14578_v58  ;;  %v14584_v1 = vld [vmem:[#allocation129_spill] sm:$0xff] }
 0x298   :  { %v8217_v30 = vpop.permute.xlu1 %1686  ;;  %v8219_v60 = vpop.permute.xlu0 %1684  ;;  %v8247_v58 = vadd.f32 %v7723_v55, %v14584_v1 }
 0x299   :  { %14579 = vst [vmem:[#allocation92_spill] sm:$0xff] %v8227_v18 }
 0x29a   :  { %1802 = vrot.lane.b32.xlu1 %v8215_v40, %s5526_s0  ;;  %1800 = vrot.lane.b32.xlu0 %v8211_v4, %s5526_s0  ;;  %v14582_v40 = vld [vmem:[#allocation35_spill] sm:$0xff]  ;;  %14585 = vst [vmem:[#allocation100_spill] sm:$0xff] %v8247_v58 }
 0x29b   :  { %v8243_v4 = vadd.f32 %v7705_v3, %v14582_v40  ;;  %v14590_v3 = vld [vmem:[#allocation37_spill] sm:$0xff] }
 0x29c   :  { %v8233_v61 = vpop.permute.xlu1 %1690  ;;  %v8235_v63 = vpop.permute.xlu0 %1688  ;;  %v8263_v40 = vadd.f32 %v7739_v53, %v14590_v3 }
 0x29d   :  { %14583 = vst [vmem:[#allocation26_spill] sm:$0xff] %v8243_v4 }
 0x29e   :  { %1806 = vrot.lane.b32.xlu1 %v8231_v14, %s5526_s0  ;;  %1804 = vrot.lane.b32.xlu0 %v8227_v18, %s5526_s0  ;;  %v14588_v14 = vld [vmem:[#allocation38_spill] sm:$0xff]  ;;  %14591 = vst [vmem:[#allocation109_spill] sm:$0xff] %v8263_v40 }
 0x29f   :  { %v8259_v18 = vadd.f32 %v7721_v5, %v14588_v14  ;;  %v14596_v5 = vld [vmem:[#allocation40_spill] sm:$0xff] }
 0x2a0   :  { %v8249_v57 = vpop.permute.xlu1 %1694  ;;  %v8251_v28 = vpop.permute.xlu0 %1692  ;;  %v8279_v14 = vadd.f32 %v7755_v51, %v14596_v5 }
 0x2a1   :  { %14586 = vst [vmem:[#allocation110_spill] sm:$0xff] %v8249_v57  ;;  %14587 = vst [vmem:[#allocation25_spill] sm:$0xff] %v8251_v28 }
 0x2a2   :  { %1810 = vrot.lane.b32.xlu1 %v8247_v58, %s5526_s0  ;;  %1808 = vrot.lane.b32.xlu0 %v8243_v4, %s5526_s0  ;;  %14589 = vst [vmem:[#allocation103_spill] sm:$0xff] %v8259_v18  ;;  %v14594_v58 = vld [vmem:[#allocation133_spill] sm:$0xff]  ;;  %14597 = vst [vmem:[#allocation27_spill] sm:$0xff] %v8279_v14 }
 0x2a3   :  { %v8275_v4 = vadd.f32 %v7737_v7, %v14594_v58  ;;  %v14602_v7 = vld [vmem:[#allocation42_spill] sm:$0xff] }
 0x2a4   :  { %v8265_v55 = vpop.permute.xlu1 %1698  ;;  %v8267_v1 = vpop.permute.xlu0 %1696  ;;  %v8295_v58 = vadd.f32 %v7771_v49, %v14602_v7 }
 0x2a5   :  { %14592 = vst [vmem:[#allocation28_spill] sm:$0xff] %v8265_v55  ;;  %14593 = vst [vmem:[#allocation112_spill] sm:$0xff] %v8267_v1 }
 0x2a6   :  { %1814 = vrot.lane.b32.xlu1 %v8263_v40, %s5526_s0  ;;  %1812 = vrot.lane.b32.xlu0 %v8259_v18, %s5526_s0  ;;  %14595 = vst [vmem:[#allocation114_spill] sm:$0xff] %v8275_v4  ;;  %v14600_v40 = vld [vmem:[#allocation39_spill] sm:$0xff]  ;;  %14603 = vst [vmem:[#allocation29_spill] sm:$0xff] %v8295_v58 }
 0x2a7   :  { %v8291_v18 = vadd.f32 %v7753_v9, %v14600_v40  ;;  %v14608_v9 = vld [vmem:[#allocation44_spill] sm:$0xff] }
 0x2a8   :  { %v8281_v53 = vpop.permute.xlu1 %1702  ;;  %v8283_v3 = vpop.permute.xlu0 %1700  ;;  %v8311_v40 = vadd.f32 %v7787_v47, %v14608_v9 }
 0x2a9   :  { %14598 = vst [vmem:[#allocation113_spill] sm:$0xff] %v8281_v53  ;;  %14599 = vst [vmem:[#allocation30_spill] sm:$0xff] %v8283_v3  ;;  %v231_v53 = vld [vmem:[%s13403_s1 + $0x2f8] sm:$0xff] }
 0x2aa   :  { %1818 = vrot.lane.b32.xlu1 %v8279_v14, %s5526_s0  ;;  %1816 = vrot.lane.b32.xlu0 %v8275_v4, %s5526_s0  ;;  %14601 = vst [vmem:[#allocation118_spill] sm:$0xff] %v8291_v18  ;;  %v14606_v14 = vld [vmem:[#allocation41_spill] sm:$0xff]  ;;  %14609 = vst [vmem:[#allocation31_spill] sm:$0xff] %v8311_v40 }
 0x2ab   :  { %v8307_v4 = vadd.f32 %v7769_v11, %v14606_v14  ;;  %v14614_v11 = vld [vmem:[#allocation46_spill] sm:$0xff] }
 0x2ac   :  { %v8297_v51 = vpop.permute.xlu1 %1706  ;;  %v8299_v5 = vpop.permute.xlu0 %1704  ;;  %v8327_v14 = vadd.f32 %v7803_v45, %v14614_v11 }
 0x2ad   :  { %14604 = vst [vmem:[#allocation117_spill] sm:$0xff] %v8297_v51  ;;  %14605 = vst [vmem:[#allocation32_spill] sm:$0xff] %v8299_v5  ;;  %v229_v51 = vld [vmem:[%s13403_s1 + $0x2e8] sm:$0xff] }
 0x2ae   :  { %1822 = vrot.lane.b32.xlu1 %v8295_v58, %s5526_s0  ;;  %1820 = vrot.lane.b32.xlu0 %v8291_v18, %s5526_s0  ;;  %14607 = vst [vmem:[#allocation122_spill] sm:$0xff] %v8307_v4  ;;  %v14612_v58 = vld [vmem:[#allocation43_spill] sm:$0xff]  ;;  %14615 = vst [vmem:[#allocation33_spill] sm:$0xff] %v8327_v14 }
 0x2af   :  { %v8323_v18 = vadd.f32 %v7785_v13, %v14612_v58  ;;  %v14620_v13 = vld [vmem:[#allocation48_spill] sm:$0xff] }
 0x2b0   :  { %v8313_v49 = vpop.permute.xlu1 %1710  ;;  %v8315_v7 = vpop.permute.xlu0 %1708  ;;  %v8343_v58 = vadd.f32 %v7819_v43, %v14620_v13 }
 0x2b1   :  { %14610 = vst [vmem:[#allocation121_spill] sm:$0xff] %v8313_v49  ;;  %14611 = vst [vmem:[#allocation34_spill] sm:$0xff] %v8315_v7  ;;  %v227_v49 = vld [vmem:[%s13403_s1 + $0x2d8] sm:$0xff] }
 0x2b2   :  { %1826 = vrot.lane.b32.xlu1 %v8311_v40, %s5526_s0  ;;  %1824 = vrot.lane.b32.xlu0 %v8307_v4, %s5526_s0  ;;  %14613 = vst [vmem:[#allocation126_spill] sm:$0xff] %v8323_v18  ;;  %v14618_v40 = vld [vmem:[#allocation45_spill] sm:$0xff]  ;;  %14621 = vst [vmem:[#allocation35_spill] sm:$0xff] %v8343_v58 }
 0x2b3   :  { %v8339_v4 = vadd.f32 %v7801_v15, %v14618_v40  ;;  %v14626_v15 = vld [vmem:[#allocation50_spill] sm:$0xff] }
 0x2b4   :  { %v8329_v47 = vpop.permute.xlu1 %1714  ;;  %v8331_v9 = vpop.permute.xlu0 %1712  ;;  %v8359_v40 = vadd.f32 %v7835_v41, %v14626_v15 }
 0x2b5   :  { %14616 = vst [vmem:[#allocation125_spill] sm:$0xff] %v8329_v47  ;;  %14617 = vst [vmem:[#allocation36_spill] sm:$0xff] %v8331_v9  ;;  %v225_v47 = vld [vmem:[%s13403_s1 + $0x2c8] sm:$0xff] }
 0x2b6   :  { %1830 = vrot.lane.b32.xlu1 %v8327_v14, %s5526_s0  ;;  %1828 = vrot.lane.b32.xlu0 %v8323_v18, %s5526_s0  ;;  %14619 = vst [vmem:[#allocation130_spill] sm:$0xff] %v8339_v4  ;;  %v14624_v14 = vld [vmem:[#allocation47_spill] sm:$0xff]  ;;  %14627 = vst [vmem:[#allocation133_spill] sm:$0xff] %v8359_v40 }
 0x2b7   :  { %v8355_v18 = vadd.f32 %v7817_v17, %v14624_v14  ;;  %v14632_v17 = vld [vmem:[#allocation52_spill] sm:$0xff] }
 0x2b8   :  { %v8345_v45 = vpop.permute.xlu1 %1718  ;;  %v8347_v11 = vpop.permute.xlu0 %1716  ;;  %v8375_v14 = vadd.f32 %v7851_v39, %v14632_v17 }
 0x2b9   :  { %14622 = vst [vmem:[#allocation129_spill] sm:$0xff] %v8345_v45  ;;  %14623 = vst [vmem:[#allocation38_spill] sm:$0xff] %v8347_v11  ;;  %v223_v45 = vld [vmem:[%s13403_s1 + $0x2b8] sm:$0xff] }
 0x2ba   :  { %1834 = vrot.lane.b32.xlu1 %v8343_v58, %s5526_s0  ;;  %1832 = vrot.lane.b32.xlu0 %v8339_v4, %s5526_s0  ;;  %14625 = vst [vmem:[#allocation37_spill] sm:$0xff] %v8355_v18  ;;  %v14630_v58 = vld [vmem:[#allocation49_spill] sm:$0xff]  ;;  %14633 = vst [vmem:[#allocation41_spill] sm:$0xff] %v8375_v14 }
 0x2bb   :  { %v8371_v4 = vadd.f32 %v7833_v19, %v14630_v58  ;;  %v14638_v19 = vld [vmem:[#allocation54_spill] sm:$0xff] }
 0x2bc   :  { %v8361_v43 = vpop.permute.xlu1 %1722  ;;  %v8363_v13 = vpop.permute.xlu0 %1720  ;;  %v8391_v58 = vadd.f32 %v7867_v37, %v14638_v19 }
 0x2bd   :  { %14628 = vst [vmem:[#allocation40_spill] sm:$0xff] %v8361_v43  ;;  %14629 = vst [vmem:[#allocation39_spill] sm:$0xff] %v8363_v13  ;;  %v221_v43 = vld [vmem:[%s13403_s1 + $0x2a8] sm:$0xff] }
 0x2be   :  { %1838 = vrot.lane.b32.xlu1 %v8359_v40, %s5526_s0  ;;  %1836 = vrot.lane.b32.xlu0 %v8355_v18, %s5526_s0  ;;  %14631 = vst [vmem:[#allocation42_spill] sm:$0xff] %v8371_v4  ;;  %v14636_v40 = vld [vmem:[#allocation51_spill] sm:$0xff]  ;;  %14639 = vst [vmem:[#allocation45_spill] sm:$0xff] %v8391_v58 }
 0x2bf   :  { %v8387_v18 = vadd.f32 %v7849_v21, %v14636_v40  ;;  %v14644_v21 = vld [vmem:[#allocation56_spill] sm:$0xff] }
 0x2c0   :  { %v8377_v41 = vpop.permute.xlu1 %1726  ;;  %v8379_v15 = vpop.permute.xlu0 %1724  ;;  %v8407_v40 = vadd.f32 %v7883_v35, %v14644_v21 }
 0x2c1   :  { %14634 = vst [vmem:[#allocation44_spill] sm:$0xff] %v8377_v41  ;;  %14635 = vst [vmem:[#allocation43_spill] sm:$0xff] %v8379_v15  ;;  %v219_v41 = vld [vmem:[%s13403_s1 + $0x298] sm:$0xff] }
 0x2c2   :  { %1842 = vrot.lane.b32.xlu1 %v8375_v14, %s5526_s0  ;;  %1840 = vrot.lane.b32.xlu0 %v8371_v4, %s5526_s0  ;;  %14637 = vst [vmem:[#allocation46_spill] sm:$0xff] %v8387_v18  ;;  %v14642_v14 = vld [vmem:[#allocation53_spill] sm:$0xff]  ;;  %14645 = vst [vmem:[#allocation49_spill] sm:$0xff] %v8407_v40 }
 0x2c3   :  { %v8403_v4 = vadd.f32 %v7865_v23, %v14642_v14  ;;  %v14650_v23 = vld [vmem:[#allocation58_spill] sm:$0xff] }
 0x2c4   :  { %v8393_v39 = vpop.permute.xlu1 %1730  ;;  %v8395_v17 = vpop.permute.xlu0 %1728  ;;  %v8423_v14 = vadd.f32 %v7899_v33, %v14650_v23 }
 0x2c5   :  { %14640 = vst [vmem:[#allocation48_spill] sm:$0xff] %v8393_v39  ;;  %14641 = vst [vmem:[#allocation47_spill] sm:$0xff] %v8395_v17  ;;  %v217_v39 = vld [vmem:[%s13403_s1 + $0x288] sm:$0xff] }
 0x2c6   :  { %1846 = vrot.lane.b32.xlu1 %v8391_v58, %s5526_s0  ;;  %1844 = vrot.lane.b32.xlu0 %v8387_v18, %s5526_s0  ;;  %14643 = vst [vmem:[#allocation50_spill] sm:$0xff] %v8403_v4  ;;  %v14648_v58 = vld [vmem:[#allocation55_spill] sm:$0xff]  ;;  %14651 = vst [vmem:[#allocation53_spill] sm:$0xff] %v8423_v14 }
 0x2c7   :  { %v8419_v18 = vadd.f32 %v7881_v25, %v14648_v58  ;;  %v14656_v25 = vld [vmem:[#allocation60_spill] sm:$0xff] }
 0x2c8   :  { %v8409_v37 = vpop.permute.xlu1 %1734  ;;  %v8411_v19 = vpop.permute.xlu0 %1732  ;;  %v8439_v58 = vadd.f32 %v7915_v24, %v14656_v25 }
 0x2c9   :  { %14646 = vst [vmem:[#allocation52_spill] sm:$0xff] %v8409_v37  ;;  %14647 = vst [vmem:[#allocation51_spill] sm:$0xff] %v8411_v19  ;;  %v215_v37 = vld [vmem:[%s13403_s1 + $0x278] sm:$0xff] }
 0x2ca   :  { %1850 = vrot.lane.b32.xlu1 %v8407_v40, %s5526_s0  ;;  %1848 = vrot.lane.b32.xlu0 %v8403_v4, %s5526_s0  ;;  %14649 = vst [vmem:[#allocation54_spill] sm:$0xff] %v8419_v18  ;;  %v14654_v40 = vld [vmem:[#allocation57_spill] sm:$0xff] }
 0x2cb   :  { %v8435_v4 = vadd.f32 %v7897_v27, %v14654_v40  ;;  %14657 = vst [vmem:[#allocation57_spill] sm:$0xff] %v8439_v58  ;;  %v14662_v27 = vld [vmem:[#allocation64_spill] sm:$0xff] }
 0x2cc   :  { %v8425_v35 = vpop.permute.xlu1 %1738  ;;  %v8427_v21 = vpop.permute.xlu0 %1736  ;;  %v8455_v40 = vadd.f32 %v7931_v32, %v14662_v27 }
 0x2cd   :  { %14652 = vst [vmem:[#allocation56_spill] sm:$0xff] %v8425_v35  ;;  %14653 = vst [vmem:[#allocation55_spill] sm:$0xff] %v8427_v21  ;;  %v213_v35 = vld [vmem:[%s13403_s1 + $0x268] sm:$0xff] }
 0x2ce   :  { %1854 = vrot.lane.b32.xlu1 %v8423_v14, %s5526_s0  ;;  %1852 = vrot.lane.b32.xlu0 %v8419_v18, %s5526_s0  ;;  %14655 = vst [vmem:[#allocation58_spill] sm:$0xff] %v8435_v4  ;;  %v14660_v14 = vld [vmem:[#allocation59_spill] sm:$0xff]  ;;  %14663 = vst [vmem:[#allocation64_spill] sm:$0xff] %v8455_v40 }
 0x2cf   :  { %v8451_v18 = vadd.f32 %v7913_v29, %v14660_v14  ;;  %v14668_v29 = vld [vmem:[#allocation72_spill] sm:$0xff] }
 0x2d0   :  { %v8441_v33 = vpop.permute.xlu1 %1742  ;;  %v8443_v23 = vpop.permute.xlu0 %1740  ;;  %v8471_v14 = vadd.f32 %v7947_v22, %v14668_v29 }
 0x2d1   :  { %14658 = vst [vmem:[#allocation60_spill] sm:$0xff] %v8441_v33  ;;  %14659 = vst [vmem:[#allocation163_spill] sm:$0xff] %v8443_v23  ;;  %v211_v33 = vld [vmem:[%s13403_s1 + $0x258] sm:$0xff] }
 0x2d2   :  { %1858 = vrot.lane.b32.xlu1 %v8439_v58, %s5526_s0  ;;  %1856 = vrot.lane.b32.xlu0 %v8435_v4, %s5526_s0  ;;  %14661 = vst [vmem:[#allocation59_spill] sm:$0xff] %v8451_v18  ;;  %v14666_v58 = vld [vmem:[#allocation63_spill] sm:$0xff]  ;;  %14669 = vst [vmem:[#allocation72_spill] sm:$0xff] %v8471_v14 }
 0x2d3   :  { %v8467_v4 = vadd.f32 %v7929_v26, %v14666_v58  ;;  %v14674_v26 = vld [vmem:[#allocation80_spill] sm:$0xff] }
 0x2d4   :  { %v8457_v24 = vpop.permute.xlu1 %1746  ;;  %v8459_v25 = vpop.permute.xlu0 %1744  ;;  %v8487_v58 = vadd.f32 %v7963_v34, %v14674_v26 }
 0x2d5   :  { %14664 = vst [vmem:[#allocation164_spill] sm:$0xff] %v8457_v24  ;;  %14665 = vst [vmem:[#allocation165_spill] sm:$0xff] %v8459_v25  ;;  %v209_v24 = vld [vmem:[%s13403_s1 + $0x248] sm:$0xff] }
 0x2d6   :  { %1862 = vrot.lane.b32.xlu1 %v8455_v40, %s5526_s0  ;;  %1860 = vrot.lane.b32.xlu0 %v8451_v18, %s5526_s0  ;;  %14667 = vst [vmem:[#allocation63_spill] sm:$0xff] %v8467_v4  ;;  %v14672_v40 = vld [vmem:[#allocation71_spill] sm:$0xff]  ;;  %14675 = vst [vmem:[#allocation80_spill] sm:$0xff] %v8487_v58 }
 0x2d7   :  { %v8483_v18 = vadd.f32 %v7945_v38, %v14672_v40  ;;  %v14681_v38 = vld [vmem:[#allocation88_spill] sm:$0xff] }
 0x2d8   :  { %v8473_v32 = vpop.permute.xlu1 %1750  ;;  %v8475_v27 = vpop.permute.xlu0 %1748  ;;  %v14682_v40 = vld [vmem:[#allocation4_spill] sm:$0xff] }
 0x2d9   :  { %14670 = vst [vmem:[#allocation166_spill] sm:$0xff] %v8473_v32  ;;  %14671 = vst [vmem:[#allocation167_spill] sm:$0xff] %v8475_v27  ;;  %v8503_v32 = vadd.f32 %v14682_v40, %v14681_v38 }
 0x2da   :  { %1866 = vrot.lane.b32.xlu1 %v8471_v14, %s5526_s0  ;;  %1864 = vrot.lane.b32.xlu0 %v8467_v4, %s5526_s0  ;;  %14673 = vst [vmem:[#allocation71_spill] sm:$0xff] %v8483_v18  ;;  %v14678_v14 = vld [vmem:[#allocation79_spill] sm:$0xff]  ;;  %v14679_v4 = vld [vmem:[#allocation162_spill] sm:$0xff] }
 0x2db   :  { %v8499_v27 = vadd.f32 %v14679_v4, %v14678_v14  ;;  %14683 = vst [vmem:[#allocation162_spill] sm:$0xff] %v8503_v32  ;;  %v14689_v4 = vld [vmem:[#allocation96_spill] sm:$0xff]  ;;  %v14690_v14 = vld [vmem:[#allocation6_spill] sm:$0xff] }
 0x2dc   :  { %v8489_v22 = vpop.permute.xlu1 %1754  ;;  %v8491_v29 = vpop.permute.xlu0 %1752 }
 0x2dd   :  { %14676 = vst [vmem:[#allocation168_spill] sm:$0xff] %v8489_v22  ;;  %14677 = vst [vmem:[#allocation169_spill] sm:$0xff] %v8491_v29  ;;  %v8519_v22 = vadd.f32 %v14690_v14, %v14689_v4 }
 0x2de   :  { %1870 = vrot.lane.b32.xlu1 %v8487_v58, %s5526_s0  ;;  %1868 = vrot.lane.b32.xlu0 %v8483_v18, %s5526_s0  ;;  %14680 = vst [vmem:[#allocation79_spill] sm:$0xff] %v8499_v27  ;;  %v14686_v58 = vld [vmem:[#allocation87_spill] sm:$0xff]  ;;  %v14687_v18 = vld [vmem:[#allocation61_spill] sm:$0xff] }
 0x2df   :  { %v8515_v29 = vadd.f32 %v14687_v18, %v14686_v58  ;;  %14691 = vst [vmem:[#allocation61_spill] sm:$0xff] %v8519_v22  ;;  %v14697_v18 = vld [vmem:[#allocation99_spill] sm:$0xff]  ;;  %v14698_v58 = vld [vmem:[#allocation8_spill] sm:$0xff] }
 0x2e0   :  { %v8505_v34 = vpop.permute.xlu1 %1758  ;;  %v8507_v26 = vpop.permute.xlu0 %1756 }
 0x2e1   :  { %14684 = vst [vmem:[#allocation88_spill] sm:$0xff] %v8505_v34  ;;  %14685 = vst [vmem:[#allocation4_spill] sm:$0xff] %v8507_v26  ;;  %v8535_v34 = vadd.f32 %v14698_v58, %v14697_v18 }
 0x2e2   :  { %1874 = vrot.lane.b32.xlu1 %v8503_v32, %s5526_s0  ;;  %1872 = vrot.lane.b32.xlu0 %v8499_v27, %s5526_s0  ;;  %14688 = vst [vmem:[#allocation87_spill] sm:$0xff] %v8515_v29  ;;  %v14694_v32 = vld [vmem:[#allocation95_spill] sm:$0xff]  ;;  %v14695_v27 = vld [vmem:[#allocation65_spill] sm:$0xff] }
 0x2e3   :  { %v8531_v26 = vadd.f32 %v14695_v27, %v14694_v32  ;;  %14699 = vst [vmem:[#allocation65_spill] sm:$0xff] %v8535_v34  ;;  %v14702_v32 = vld [vmem:[#allocation104_spill] sm:$0xff]  ;;  %v14703_v27 = vld [vmem:[#allocation69_spill] sm:$0xff] }
 0x2e4   :  { %v8521_v38 = vpop.permute.xlu1 %1762  ;;  %v8523_v40 = vpop.permute.xlu0 %1760 }
 0x2e5   :  { %14692 = vst [vmem:[#allocation96_spill] sm:$0xff] %v8521_v38  ;;  %14693 = vst [vmem:[#allocation6_spill] sm:$0xff] %v8523_v40  ;;  %v207_v38 = vld [vmem:[%s13403_s1 + $0x238] sm:$0xff] }
 0x2e6   :  { %1878 = vrot.lane.b32.xlu1 %v8519_v22, %s5526_s0  ;;  %1876 = vrot.lane.b32.xlu0 %v8515_v29, %s5526_s0  ;;  %14696 = vst [vmem:[#allocation95_spill] sm:$0xff] %v8531_v26  ;;  %v136_v29 = vld [vmem:[%s13403_s1] sm:$0xff]  ;;  %v8550_v22 = vadd.f32 %v14703_v27, %v14702_v32 }
 0x2e7   :  { %v140_v27 = vld [vmem:[%s13403_s1 + $0x20] sm:$0xff] }
 0x2e8   :  { %v8537_v4 = vpop.permute.xlu1 %1766  ;;  %v8539_v14 = vpop.permute.xlu0 %1764  ;;  %14704 = vst [vmem:[#allocation104_spill] sm:$0xff] %v8550_v22 }
 0x2e9   :  { %14700 = vst [vmem:[#allocation99_spill] sm:$0xff] %v8537_v4  ;;  %14701 = vst [vmem:[#allocation8_spill] sm:$0xff] %v8539_v14  ;;  %v205_v4 = vld [vmem:[%s13403_s1 + $0x228] sm:$0xff] }
 0x2ea   :  { %1882 = vrot.lane.b32.xlu1 %v8535_v34, %s5526_s0  ;;  %1880 = vrot.lane.b32.xlu0 %v8531_v26, %s5526_s0  ;;  %v138_v26 = vld [vmem:[%s13403_s1 + $0x10] sm:$0xff]  ;;  %v137_v34 = vld [vmem:[%s13403_s1 + $0x8] sm:$0xff] }
 0x2ec   :  { %v8552_v18 = vpop.permute.xlu1 %1770  ;;  %v8554_v58 = vpop.permute.xlu0 %1768 }
 0x2ed   :  { %14705 = vst [vmem:[#allocation69_spill] sm:$0xff] %v8552_v18  ;;  %14706 = vst [vmem:[#allocation170_spill] sm:$0xff] %v8554_v58 }
 0x2ee   :  { %2138 = vperm.xlu1 %5272, %v136_v29   ;;  %1884 = vrot.lane.b32.xlu0 %v8550_v22, %s5526_s0  ;;  %v139_v29 = vld [vmem:[%s13403_s1 + $0x18] sm:$0xff] }
 0x2f0   :  { %v8564_v14 = vpop.permute.xlu1 %1774  ;;  %v8566_v32 = vpop.permute.xlu0 %1772 }
 0x2f1   :  { %14707 = vst [vmem:[#allocation171_spill] sm:$0xff] %v8564_v14  ;;  %14708 = vst [vmem:[#allocation172_spill] sm:$0xff] %v8566_v32  ;;  %v141_v32 = vld [vmem:[%s13403_s1 + $0x28] sm:$0xff] }
 0x2f2   :  { %2148 = vperm.xlu1 %5272, %v138_v26   ;;  %2143 = vperm.xlu0 %5273, %v137_v34   ;;  %v142_v34 = vld [vmem:[%s13403_s1 + $0x30] sm:$0xff] }
 0x2f4   :  { %v8574_v22 = vpop.permute.xlu1 %1778  ;;  %v8576_v58 = vpop.permute.xlu0 %1776 }
 0x2f5   :  { %14709 = vst [vmem:[#allocation173_spill] sm:$0xff] %v8574_v22  ;;  %14710 = vst [vmem:[#allocation174_spill] sm:$0xff] %v8576_v58  ;;  %v143_v58 = vld [vmem:[%s13403_s1 + $0x38] sm:$0xff] }
 0x2f6   :  { %2153 = vperm.xlu1 %5272, %v139_v29   ;;  %2158 = vperm.xlu0 %5273, %v140_v27   ;;  %v144_v29 = vld [vmem:[%s13403_s1 + $0x40] sm:$0xff] }
 0x2f8   :  { %v8584_v26 = vpop.permute.xlu1 %1782  ;;  %v8586_v14 = vpop.permute.xlu0 %1780 }
 0x2f9   :  { %14711 = vst [vmem:[#allocation175_spill] sm:$0xff] %v8584_v26  ;;  %14712 = vst [vmem:[#allocation176_spill] sm:$0xff] %v8586_v14  ;;  %v145_v14 = vld [vmem:[%s13403_s1 + $0x48] sm:$0xff] }
 0x2fa   :  { %2163 = vperm.xlu1 %5272, %v141_v32   ;;  %2168 = vperm.xlu0 %5273, %v142_v34   ;;  %v146_v32 = vld [vmem:[%s13403_s1 + $0x50] sm:$0xff] }
 0x2fc   :  { %v8594_v27 = vpop.permute.xlu1 %1786  ;;  %v8596_v22 = vpop.permute.xlu0 %1784 }
 0x2fd   :  { %14713 = vst [vmem:[#allocation177_spill] sm:$0xff] %v8594_v27  ;;  %14714 = vst [vmem:[#allocation178_spill] sm:$0xff] %v8596_v22  ;;  %v147_v22 = vld [vmem:[%s13403_s1 + $0x58] sm:$0xff] }
 0x2fe   :  { %2173 = vperm.xlu1 %5272, %v143_v58   ;;  %2178 = vperm.xlu0 %5273, %v144_v29   ;;  %v148_v58 = vld [vmem:[%s13403_s1 + $0x60] sm:$0xff] }
 0x300   :  { %v8604_v34 = vpop.permute.xlu1 %1790  ;;  %v8606_v26 = vpop.permute.xlu0 %1788 }
 0x301   :  { %14715 = vst [vmem:[#allocation179_spill] sm:$0xff] %v8604_v34  ;;  %14716 = vst [vmem:[#allocation180_spill] sm:$0xff] %v8606_v26  ;;  %v149_v26 = vld [vmem:[%s13403_s1 + $0x68] sm:$0xff] }
 0x302   :  { %2183 = vperm.xlu1 %5272, %v145_v14   ;;  %2188 = vperm.xlu0 %5273, %v146_v32   ;;  %v150_v14 = vld [vmem:[%s13403_s1 + $0x70] sm:$0xff] }
 0x304   :  { %v8614_v29 = vpop.permute.xlu1 %1794  ;;  %v8616_v27 = vpop.permute.xlu0 %1792 }
 0x305   :  { %14717 = vst [vmem:[#allocation181_spill] sm:$0xff] %v8614_v29  ;;  %14718 = vst [vmem:[#allocation182_spill] sm:$0xff] %v8616_v27  ;;  %v151_v27 = vld [vmem:[%s13403_s1 + $0x78] sm:$0xff] }
 0x306   :  { %2193 = vperm.xlu1 %5272, %v147_v22   ;;  %2198 = vperm.xlu0 %5273, %v148_v58   ;;  %v152_v22 = vld [vmem:[%s13403_s1 + $0x80] sm:$0xff] }
 0x308   :  { %v8624_v32 = vpop.permute.xlu1 %1798  ;;  %v8626_v34 = vpop.permute.xlu0 %1796 }
 0x309   :  { %14719 = vst [vmem:[#allocation183_spill] sm:$0xff] %v8624_v32  ;;  %14720 = vst [vmem:[#allocation184_spill] sm:$0xff] %v8626_v34  ;;  %v153_v34 = vld [vmem:[%s13403_s1 + $0x88] sm:$0xff] }
 0x30a   :  { %2203 = vperm.xlu1 %5272, %v149_v26   ;;  %2208 = vperm.xlu0 %5273, %v150_v14   ;;  %v154_v26 = vld [vmem:[%s13403_s1 + $0x90] sm:$0xff] }
 0x30c   :  { %v8634_v58 = vpop.permute.xlu1 %1802  ;;  %v8636_v29 = vpop.permute.xlu0 %1800 }
 0x30d   :  { %14721 = vst [vmem:[#allocation185_spill] sm:$0xff] %v8634_v58  ;;  %14722 = vst [vmem:[#allocation186_spill] sm:$0xff] %v8636_v29  ;;  %v155_v29 = vld [vmem:[%s13403_s1 + $0x98] sm:$0xff] }
 0x30e   :  { %2213 = vperm.xlu1 %5272, %v151_v27   ;;  %2218 = vperm.xlu0 %5273, %v152_v22   ;;  %v156_v27 = vld [vmem:[%s13403_s1 + $0xa0] sm:$0xff] }
 0x310   :  { %v8644_v14 = vpop.permute.xlu1 %1806  ;;  %v8646_v32 = vpop.permute.xlu0 %1804 }
 0x311   :  { %14723 = vst [vmem:[#allocation187_spill] sm:$0xff] %v8644_v14  ;;  %14724 = vst [vmem:[#allocation188_spill] sm:$0xff] %v8646_v32  ;;  %v157_v32 = vld [vmem:[%s13403_s1 + $0xa8] sm:$0xff] }
 0x312   :  { %2223 = vperm.xlu1 %5272, %v153_v34   ;;  %2228 = vperm.xlu0 %5273, %v154_v26   ;;  %v158_v34 = vld [vmem:[%s13403_s1 + $0xb0] sm:$0xff] }
 0x314   :  { %v8654_v22 = vpop.permute.xlu1 %1810  ;;  %v8656_v58 = vpop.permute.xlu0 %1808 }
 0x315   :  { %14725 = vst [vmem:[#allocation189_spill] sm:$0xff] %v8654_v22  ;;  %14726 = vst [vmem:[#allocation190_spill] sm:$0xff] %v8656_v58  ;;  %v159_v58 = vld [vmem:[%s13403_s1 + $0xb8] sm:$0xff] }
 0x316   :  { %2233 = vperm.xlu1 %5272, %v155_v29   ;;  %2238 = vperm.xlu0 %5273, %v156_v27   ;;  %v160_v29 = vld [vmem:[%s13403_s1 + $0xc0] sm:$0xff] }
 0x318   :  { %v8664_v26 = vpop.permute.xlu1 %1814  ;;  %v8666_v14 = vpop.permute.xlu0 %1812 }
 0x319   :  { %14727 = vst [vmem:[#allocation191_spill] sm:$0xff] %v8664_v26  ;;  %14728 = vst [vmem:[#allocation192_spill] sm:$0xff] %v8666_v14  ;;  %v161_v14 = vld [vmem:[%s13403_s1 + $0xc8] sm:$0xff] }
 0x31a   :  { %2243 = vperm.xlu1 %5272, %v157_v32   ;;  %2248 = vperm.xlu0 %5273, %v158_v34   ;;  %v162_v32 = vld [vmem:[%s13403_s1 + $0xd0] sm:$0xff] }
 0x31c   :  { %v8674_v27 = vpop.permute.xlu1 %1818  ;;  %v8676_v22 = vpop.permute.xlu0 %1816 }
 0x31d   :  { %14729 = vst [vmem:[#allocation193_spill] sm:$0xff] %v8674_v27  ;;  %14730 = vst [vmem:[#allocation194_spill] sm:$0xff] %v8676_v22  ;;  %v163_v22 = vld [vmem:[%s13403_s1 + $0xd8] sm:$0xff] }
 0x31e   :  { %2253 = vperm.xlu1 %5272, %v159_v58   ;;  %2258 = vperm.xlu0 %5273, %v160_v29   ;;  %v164_v58 = vld [vmem:[%s13403_s1 + $0xe0] sm:$0xff] }
 0x320   :  { %v8684_v34 = vpop.permute.xlu1 %1822  ;;  %v8686_v26 = vpop.permute.xlu0 %1820 }
 0x321   :  { %14731 = vst [vmem:[#allocation195_spill] sm:$0xff] %v8684_v34  ;;  %14732 = vst [vmem:[#allocation196_spill] sm:$0xff] %v8686_v26  ;;  %v165_v26 = vld [vmem:[%s13403_s1 + $0xe8] sm:$0xff] }
 0x322   :  { %2263 = vperm.xlu1 %5272, %v161_v14   ;;  %2268 = vperm.xlu0 %5273, %v162_v32   ;;  %v166_v14 = vld [vmem:[%s13403_s1 + $0xf0] sm:$0xff] }
 0x324   :  { %v8694_v29 = vpop.permute.xlu1 %1826  ;;  %v8696_v27 = vpop.permute.xlu0 %1824 }
 0x325   :  { %14733 = vst [vmem:[#allocation197_spill] sm:$0xff] %v8694_v29  ;;  %14734 = vst [vmem:[#allocation198_spill] sm:$0xff] %v8696_v27  ;;  %v167_v27 = vld [vmem:[%s13403_s1 + $0xf8] sm:$0xff] }
 0x326   :  { %2273 = vperm.xlu1 %5272, %v163_v22   ;;  %2278 = vperm.xlu0 %5273, %v164_v58   ;;  %v168_v22 = vld [vmem:[%s13403_s1 + $0x100] sm:$0xff] }
 0x328   :  { %v8704_v32 = vpop.permute.xlu1 %1830  ;;  %v8706_v34 = vpop.permute.xlu0 %1828 }
 0x329   :  { %14735 = vst [vmem:[#allocation199_spill] sm:$0xff] %v8704_v32  ;;  %14736 = vst [vmem:[#allocation200_spill] sm:$0xff] %v8706_v34  ;;  %v169_v34 = vld [vmem:[%s13403_s1 + $0x108] sm:$0xff] }
 0x32a   :  { %2283 = vperm.xlu1 %5272, %v165_v26   ;;  %2288 = vperm.xlu0 %5273, %v166_v14   ;;  %v170_v26 = vld [vmem:[%s13403_s1 + $0x110] sm:$0xff] }
 0x32c   :  { %v8714_v58 = vpop.permute.xlu1 %1834  ;;  %v8716_v29 = vpop.permute.xlu0 %1832 }
 0x32d   :  { %14737 = vst [vmem:[#allocation201_spill] sm:$0xff] %v8714_v58  ;;  %14738 = vst [vmem:[#allocation202_spill] sm:$0xff] %v8716_v29  ;;  %v171_v29 = vld [vmem:[%s13403_s1 + $0x118] sm:$0xff] }
 0x32e   :  { %2293 = vperm.xlu1 %5272, %v167_v27   ;;  %2298 = vperm.xlu0 %5273, %v168_v22   ;;  %v172_v27 = vld [vmem:[%s13403_s1 + $0x120] sm:$0xff] }
 0x330   :  { %v8724_v14 = vpop.permute.xlu1 %1838  ;;  %v8726_v32 = vpop.permute.xlu0 %1836 }
 0x331   :  { %14739 = vst [vmem:[#allocation203_spill] sm:$0xff] %v8724_v14  ;;  %14740 = vst [vmem:[#allocation204_spill] sm:$0xff] %v8726_v32  ;;  %v173_v32 = vld [vmem:[%s13403_s1 + $0x128] sm:$0xff] }
 0x332   :  { %2303 = vperm.xlu1 %5272, %v169_v34   ;;  %2308 = vperm.xlu0 %5273, %v170_v26   ;;  %v174_v34 = vld [vmem:[%s13403_s1 + $0x130] sm:$0xff] }
 0x334   :  { %v8734_v22 = vpop.permute.xlu1 %1842  ;;  %v8736_v58 = vpop.permute.xlu0 %1840 }
 0x335   :  { %14741 = vst [vmem:[#allocation205_spill] sm:$0xff] %v8734_v22  ;;  %14742 = vst [vmem:[#allocation206_spill] sm:$0xff] %v8736_v58  ;;  %v175_v58 = vld [vmem:[%s13403_s1 + $0x138] sm:$0xff] }
 0x336   :  { %2313 = vperm.xlu1 %5272, %v171_v29   ;;  %2318 = vperm.xlu0 %5273, %v172_v27   ;;  %v176_v29 = vld [vmem:[%s13403_s1 + $0x140] sm:$0xff] }
 0x338   :  { %v8744_v26 = vpop.permute.xlu1 %1846  ;;  %v8746_v14 = vpop.permute.xlu0 %1844 }
 0x339   :  { %14743 = vst [vmem:[#allocation207_spill] sm:$0xff] %v8744_v26  ;;  %14744 = vst [vmem:[#allocation208_spill] sm:$0xff] %v8746_v14  ;;  %v177_v14 = vld [vmem:[%s13403_s1 + $0x148] sm:$0xff] }
 0x33a   :  { %2323 = vperm.xlu1 %5272, %v173_v32   ;;  %2328 = vperm.xlu0 %5273, %v174_v34   ;;  %v178_v32 = vld [vmem:[%s13403_s1 + $0x150] sm:$0xff] }
 0x33c   :  { %v8754_v27 = vpop.permute.xlu1 %1850  ;;  %v8756_v22 = vpop.permute.xlu0 %1848 }
 0x33d   :  { %14745 = vst [vmem:[#allocation209_spill] sm:$0xff] %v8754_v27  ;;  %14746 = vst [vmem:[#allocation210_spill] sm:$0xff] %v8756_v22  ;;  %v179_v22 = vld [vmem:[%s13403_s1 + $0x158] sm:$0xff] }
 0x33e   :  { %2333 = vperm.xlu1 %5272, %v175_v58   ;;  %2338 = vperm.xlu0 %5273, %v176_v29   ;;  %v180_v58 = vld [vmem:[%s13403_s1 + $0x160] sm:$0xff] }
 0x340   :  { %v8764_v34 = vpop.permute.xlu1 %1854  ;;  %v8766_v26 = vpop.permute.xlu0 %1852 }
 0x341   :  { %14747 = vst [vmem:[#allocation211_spill] sm:$0xff] %v8764_v34  ;;  %14748 = vst [vmem:[#allocation212_spill] sm:$0xff] %v8766_v26  ;;  %v181_v26 = vld [vmem:[%s13403_s1 + $0x168] sm:$0xff] }
 0x342   :  { %2343 = vperm.xlu1 %5272, %v177_v14   ;;  %2348 = vperm.xlu0 %5273, %v178_v32   ;;  %v182_v14 = vld [vmem:[%s13403_s1 + $0x170] sm:$0xff] }
 0x344   :  { %v8774_v29 = vpop.permute.xlu0 %1856  ;;  %v8776_v27 = vpop.permute.xlu1 %1858 }
 0x345   :  { %14749 = vst [vmem:[#allocation213_spill] sm:$0xff] %v8774_v29  ;;  %14750 = vst [vmem:[#allocation214_spill] sm:$0xff] %v8776_v27  ;;  %v183_v29 = vld [vmem:[%s13403_s1 + $0x178] sm:$0xff] }
 0x346   :  { %2353 = vperm.xlu1 %5272, %v179_v22   ;;  %2358 = vperm.xlu0 %5273, %v180_v58   ;;  %v184_v22 = vld [vmem:[%s13403_s1 + $0x180] sm:$0xff] }
 0x348   :  { %v8784_v32 = vpop.permute.xlu0 %1860  ;;  %v8786_v34 = vpop.permute.xlu1 %1862 }
 0x349   :  { %14751 = vst [vmem:[#allocation215_spill] sm:$0xff] %v8784_v32  ;;  %14752 = vst [vmem:[#allocation216_spill] sm:$0xff] %v8786_v34  ;;  %v185_v32 = vld [vmem:[%s13403_s1 + $0x188] sm:$0xff]  ;;  %v187_v34 = vld [vmem:[%s13403_s1 + $0x198] sm:$0xff] }
 0x34a   :  { %2363 = vperm.xlu1 %5272, %v181_v26   ;;  %2368 = vperm.xlu0 %5273, %v182_v14   ;;  %v186_v26 = vld [vmem:[%s13403_s1 + $0x190] sm:$0xff] }
 0x34c   :  { %v8794_v58 = vpop.permute.xlu0 %1864  ;;  %v8802_v14 = vpop.permute.xlu1 %1866 }
 0x34d   :  { %14753 = vst [vmem:[#allocation217_spill] sm:$0xff] %v8794_v58  ;;  %14754 = vst [vmem:[#allocation218_spill] sm:$0xff] %v8802_v14  ;;  %v189_v14 = vld [vmem:[%s13403_s1 + $0x1a8] sm:$0xff] }
 0x34e   :  { %2373 = vperm.xlu1 %5272, %v183_v29   ;;  %2378 = vperm.xlu0 %5273, %v184_v22   ;;  %v188_v29 = vld [vmem:[%s13403_s1 + $0x1a0] sm:$0xff] }
 0x350   :  { %v8810_v22 = vpop.permute.xlu0 %1868  ;;  %v8812_v58 = vpop.permute.xlu1 %1870 }
 0x351   :  { %14755 = vst [vmem:[#allocation219_spill] sm:$0xff] %v8810_v22  ;;  %14756 = vst [vmem:[#allocation220_spill] sm:$0xff] %v8812_v58  ;;  %v191_v22 = vld [vmem:[%s13403_s1 + $0x1b8] sm:$0xff]  ;;  %v193_v58 = vld [vmem:[%s13403_s1 + $0x1c8] sm:$0xff] }
 0x352   :  { %2383 = vperm.xlu1 %5272, %v185_v32   ;;  %2388 = vperm.xlu0 %5273, %v186_v26   ;;  %v190_v32 = vld [vmem:[%s13403_s1 + $0x1b0] sm:$0xff] }
 0x354   :  { %v8820_v26 = vpop.permute.xlu0 %1872 }
 0x355   :  { %14757 = vst [vmem:[#allocation221_spill] sm:$0xff] %v8820_v26 }
 0x356   :  { %2393 = vperm.xlu1 %5272, %v187_v34   ;;  %2398 = vperm.xlu0 %5273, %v188_v29   ;;  %v192_v34 = vld [vmem:[%s13403_s1 + $0x1c0] sm:$0xff]  ;;  %v8828_v29 = vpop.permute.xlu1 %1874 }
 0x357   :  { %14758 = vst [vmem:[#allocation222_spill] sm:$0xff] %v8828_v29  ;;  %v195_v29 = vld [vmem:[%s13403_s1 + $0x1d8] sm:$0xff] }
 0x35a   :  { %2403 = vperm.xlu1 %5272, %v189_v14   ;;  %2408 = vperm.xlu0 %5273, %v190_v32   ;;  %v194_v14 = vld [vmem:[%s13403_s1 + $0x1d0] sm:$0xff]  ;;  %v8836_v32 = vpop.permute.xlu0 %1876  ;;  %v8838_v26 = vpop.permute.xlu1 %1878 }
 0x35b   :  { %14759 = vst [vmem:[#allocation223_spill] sm:$0xff] %v8836_v32  ;;  %14760 = vst [vmem:[#allocation224_spill] sm:$0xff] %v8838_v26  ;;  %v197_v32 = vld [vmem:[%s13403_s1 + $0x1e8] sm:$0xff]  ;;  %v199_v26 = vld [vmem:[%s13403_s1 + $0x1f8] sm:$0xff] }
 0x35e   :  { %2413 = vperm.xlu1 %5272, %v191_v22   ;;  %2418 = vperm.xlu0 %5273, %v192_v34   ;;  %v196_v22 = vld [vmem:[%s13403_s1 + $0x1e0] sm:$0xff]  ;;  %v8846_v34 = vpop.permute.xlu0 %1880 }
 0x35f   :  { %14761 = vst [vmem:[#allocation225_spill] sm:$0xff] %v8846_v34 }
 0x362   :  { %2423 = vperm.xlu1 %5272, %v193_v58   ;;  %2428 = vperm.xlu0 %5273, %v194_v14   ;;  %v198_v58 = vld [vmem:[%s13403_s1 + $0x1f0] sm:$0xff]  ;;  %v8854_v14 = vpop.permute.xlu1 %1882 }
 0x363   :  { %14762 = vst [vmem:[#allocation226_spill] sm:$0xff] %v8854_v14  ;;  %v201_v14 = vld [vmem:[%s13403_s1 + $0x208] sm:$0xff] }
 0x366   :  { %2433 = vperm.xlu1 %5272, %v195_v29   ;;  %2438 = vperm.xlu0 %5273, %v196_v22   ;;  %v200_v29 = vld [vmem:[%s13403_s1 + $0x200] sm:$0xff]  ;;  %v8862_v22 = vpop.permute.xlu0 %1884 }
 0x367   :  { %14763 = vst [vmem:[#allocation227_spill] sm:$0xff] %v8862_v22  ;;  %v203_v22 = vld [vmem:[%s13403_s1 + $0x218] sm:$0xff] }
 0x36a   :  { %2443 = vperm.xlu1 %5272, %v197_v32   ;;  %2448 = vperm.xlu0 %5273, %v198_v58   ;;  %v202_v32 = vld [vmem:[%s13403_s1 + $0x210] sm:$0xff] }
 0x36d   :  { %v8864_v34 = vpop.permute.xlu1 %2138 }
 0x36e   :  { %2453 = vperm.xlu1 %5272, %v199_v26   ;;  %2458 = vperm.xlu0 %5273, %v200_v29   ;;  %v204_v26 = vld [vmem:[%s13403_s1 + $0x220] sm:$0xff] }
 0x371   :  { %v8872_v58 = vpop.permute.xlu1 %2148  ;;  %v8874_v27 = vpop.permute.xlu0 %2143 }
 0x372   :  { %2463 = vperm.xlu1 %5272, %v201_v14   ;;  %2468 = vperm.xlu0 %5273, %v202_v32   ;;  %v206_v14 = vld [vmem:[%s13403_s1 + $0x230] sm:$0xff] }
 0x375   :  { %v8882_v29 = vpop.permute.xlu1 %2153  ;;  %v8884_v18 = vpop.permute.xlu0 %2158 }
 0x376   :  { %2473 = vperm.xlu1 %5272, %v203_v22   ;;  %2478 = vperm.xlu0 %5273, %v204_v26   ;;  %v208_v22 = vld [vmem:[%s13403_s1 + $0x240] sm:$0xff] }
 0x379   :  { %v8892_v32 = vpop.permute.xlu1 %2163  ;;  %v8894_v40 = vpop.permute.xlu0 %2168 }
 0x37a   :  { %2483 = vperm.xlu1 %5272, %v205_v4   ;;  %2488 = vperm.xlu0 %5273, %v206_v14   ;;  %v210_v4 = vld [vmem:[%s13403_s1 + $0x250] sm:$0xff] }
 0x37d   :  { %v8902_v26 = vpop.permute.xlu1 %2173  ;;  %v8904_v25 = vpop.permute.xlu0 %2178 }
 0x37e   :  { %2493 = vperm.xlu1 %5272, %v207_v38   ;;  %2498 = vperm.xlu0 %5273, %v208_v22   ;;  %v212_v38 = vld [vmem:[%s13403_s1 + $0x260] sm:$0xff] }
 0x381   :  { %v8912_v14 = vpop.permute.xlu1 %2183  ;;  %v8914_v23 = vpop.permute.xlu0 %2188 }
 0x382   :  { %2503 = vperm.xlu1 %5272, %v209_v24   ;;  %2508 = vperm.xlu0 %5273, %v210_v4   ;;  %v214_v24 = vld [vmem:[%s13403_s1 + $0x270] sm:$0xff] }
 0x385   :  { %v8922_v22 = vpop.permute.xlu1 %2193  ;;  %v8924_v21 = vpop.permute.xlu0 %2198 }
 0x386   :  { %2513 = vperm.xlu1 %5272, %v211_v33   ;;  %2518 = vperm.xlu0 %5273, %v212_v38   ;;  %v216_v33 = vld [vmem:[%s13403_s1 + $0x280] sm:$0xff] }
 0x389   :  { %v8932_v4 = vpop.permute.xlu1 %2203  ;;  %v8934_v19 = vpop.permute.xlu0 %2208 }
 0x38a   :  { %2523 = vperm.xlu1 %5272, %v213_v35   ;;  %2528 = vperm.xlu0 %5273, %v214_v24   ;;  %v218_v35 = vld [vmem:[%s13403_s1 + $0x290] sm:$0xff] }
 0x38d   :  { %v8942_v38 = vpop.permute.xlu1 %2213  ;;  %v8944_v17 = vpop.permute.xlu0 %2218 }
 0x38e   :  { %2533 = vperm.xlu1 %5272, %v215_v37   ;;  %2538 = vperm.xlu0 %5273, %v216_v33   ;;  %v220_v37 = vld [vmem:[%s13403_s1 + $0x2a0] sm:$0xff] }
 0x391   :  { %v8952_v24 = vpop.permute.xlu1 %2223  ;;  %v8954_v15 = vpop.permute.xlu0 %2228 }
 0x392   :  { %2543 = vperm.xlu1 %5272, %v217_v39   ;;  %2548 = vperm.xlu0 %5273, %v218_v35   ;;  %v222_v39 = vld [vmem:[%s13403_s1 + $0x2b0] sm:$0xff] }
 0x395   :  { %v8962_v33 = vpop.permute.xlu1 %2233  ;;  %v8964_v13 = vpop.permute.xlu0 %2238 }
 0x396   :  { %2553 = vperm.xlu1 %5272, %v219_v41   ;;  %2558 = vperm.xlu0 %5273, %v220_v37   ;;  %v224_v41 = vld [vmem:[%s13403_s1 + $0x2c0] sm:$0xff] }
 0x399   :  { %v8972_v35 = vpop.permute.xlu1 %2243  ;;  %v8974_v11 = vpop.permute.xlu0 %2248 }
 0x39a   :  { %2563 = vperm.xlu1 %5272, %v221_v43   ;;  %2568 = vperm.xlu0 %5273, %v222_v39   ;;  %v226_v43 = vld [vmem:[%s13403_s1 + $0x2d0] sm:$0xff] }
 0x39d   :  { %v8982_v37 = vpop.permute.xlu1 %2253  ;;  %v8984_v9 = vpop.permute.xlu0 %2258 }
 0x39e   :  { %2573 = vperm.xlu1 %5272, %v223_v45   ;;  %2578 = vperm.xlu0 %5273, %v224_v41   ;;  %v228_v45 = vld [vmem:[%s13403_s1 + $0x2e0] sm:$0xff] }
 0x3a1   :  { %v8992_v39 = vpop.permute.xlu1 %2263  ;;  %v8994_v7 = vpop.permute.xlu0 %2268 }
 0x3a2   :  { %2583 = vperm.xlu1 %5272, %v225_v47   ;;  %2588 = vperm.xlu0 %5273, %v226_v43   ;;  %v230_v47 = vld [vmem:[%s13403_s1 + $0x2f0] sm:$0xff] }
 0x3a5   :  { %v9002_v41 = vpop.permute.xlu1 %2273  ;;  %v9004_v5 = vpop.permute.xlu0 %2278 }
 0x3a6   :  { %14764 = vst [vmem:[#allocation228_spill] sm:$0xff] %v9002_v41  ;;  %14765 = vst [vmem:[#allocation229_spill] sm:$0xff] %v9004_v5  ;;  %2593 = vperm.xlu1 %5272, %v227_v49   ;;  %2598 = vperm.xlu0 %5273, %v228_v45   ;;  %v232_v49 = vld [vmem:[%s13403_s1 + $0x300] sm:$0xff]  ;;  %v14797_v5 = vld [vmem:[#allocation73_spill] sm:$0xff] }
 0x3a9   :  { %v9012_v43 = vpop.permute.xlu1 %2283  ;;  %v9014_v3 = vpop.permute.xlu0 %2288 }
 0x3aa   :  { %14766 = vst [vmem:[#allocation230_spill] sm:$0xff] %v9012_v43  ;;  %14767 = vst [vmem:[#allocation231_spill] sm:$0xff] %v9014_v3  ;;  %2603 = vperm.xlu1 %5272, %v229_v51   ;;  %2608 = vperm.xlu0 %5273, %v230_v47   ;;  %v233_v3 = vld [vmem:[%s13403_s1 + $0x308] sm:$0xff]  ;;  %v234_v51 = vld [vmem:[%s13403_s1 + $0x310] sm:$0xff] }
 0x3ab   :  { %v14796_v43 = vld [vmem:[#allocation107_spill] sm:$0xff] }
 0x3ac   :  { %v2012_v28 = vadd.f32 %v14797_v5, %v14796_v43 }
 0x3ad   :  { %v9022_v45 = vpop.permute.xlu1 %2293  ;;  %v9024_v1 = vpop.permute.xlu0 %2298 }
 0x3ae   :  { %14768 = vst [vmem:[#allocation232_spill] sm:$0xff] %v9022_v45  ;;  %14769 = vst [vmem:[#allocation233_spill] sm:$0xff] %v9024_v1  ;;  %2613 = vperm.xlu1 %5272, %v231_v53   ;;  %2618 = vperm.xlu0 %5273, %v232_v49   ;;  %v235_v1 = vld [vmem:[%s13403_s1 + $0x318] sm:$0xff]  ;;  %v236_v53 = vld [vmem:[%s13403_s1 + $0x320] sm:$0xff] }
 0x3b1   :  { %v9032_v47 = vpop.permute.xlu1 %2303  ;;  %v9034_v55 = vpop.permute.xlu0 %2308 }
 0x3b2   :  { %14770 = vst [vmem:[#allocation234_spill] sm:$0xff] %v9032_v47  ;;  %14771 = vst [vmem:[#allocation235_spill] sm:$0xff] %v9034_v55  ;;  %2623 = vperm.xlu1 %5272, %v233_v3   ;;  %2628 = vperm.xlu0 %5273, %v234_v51   ;;  %v237_v55 = vld [vmem:[%s13403_s1 + $0x328] sm:$0xff]  ;;  %v238_v3 = vld [vmem:[%s13403_s1 + $0x330] sm:$0xff] }
 0x3b5   :  { %v9042_v49 = vpop.permute.xlu1 %2313  ;;  %v9044_v45 = vpop.permute.xlu0 %2318 }
 0x3b6   :  { %14772 = vst [vmem:[#allocation236_spill] sm:$0xff] %v9042_v49  ;;  %14773 = vst [vmem:[#allocation237_spill] sm:$0xff] %v9044_v45  ;;  %2633 = vperm.xlu1 %5272, %v235_v1   ;;  %2638 = vperm.xlu0 %5273, %v236_v53   ;;  %v239_v45 = vld [vmem:[%s13403_s1 + $0x338] sm:$0xff]  ;;  %v240_v1 = vld [vmem:[%s13403_s1 + $0x340] sm:$0xff] }
 0x3b9   :  { %v9052_v51 = vpop.permute.xlu1 %2323  ;;  %v9054_v47 = vpop.permute.xlu0 %2328 }
 0x3ba   :  { %14774 = vst [vmem:[#allocation238_spill] sm:$0xff] %v9052_v51  ;;  %14775 = vst [vmem:[#allocation239_spill] sm:$0xff] %v9054_v47  ;;  %2643 = vperm.xlu1 %5272, %v237_v55   ;;  %2648 = vperm.xlu0 %5273, %v238_v3   ;;  %v241_v47 = vld [vmem:[%s13403_s1 + $0x348] sm:$0xff]  ;;  %v242_v55 = vld [vmem:[%s13403_s1 + $0x350] sm:$0xff] }
 0x3bd   :  { %v9062_v53 = vpop.permute.xlu1 %2333  ;;  %v9064_v49 = vpop.permute.xlu0 %2338 }
 0x3be   :  { %14776 = vst [vmem:[#allocation240_spill] sm:$0xff] %v9062_v53  ;;  %14777 = vst [vmem:[#allocation241_spill] sm:$0xff] %v9064_v49  ;;  %2653 = vperm.xlu1 %5272, %v239_v45   ;;  %2658 = vperm.xlu0 %5273, %v240_v1   ;;  %v243_v49 = vld [vmem:[%s13403_s1 + $0x358] sm:$0xff]  ;;  %v244_v45 = vld [vmem:[%s13403_s1 + $0x360] sm:$0xff] }
 0x3c1   :  { %v9072_v3 = vpop.permute.xlu1 %2343  ;;  %v9074_v51 = vpop.permute.xlu0 %2348 }
 0x3c2   :  { %14778 = vst [vmem:[#allocation242_spill] sm:$0xff] %v9072_v3  ;;  %14779 = vst [vmem:[#allocation243_spill] sm:$0xff] %v9074_v51  ;;  %2663 = vperm.xlu1 %5272, %v241_v47   ;;  %2668 = vperm.xlu0 %5273, %v242_v55   ;;  %v245_v51 = vld [vmem:[%s13403_s1 + $0x368] sm:$0xff]  ;;  %v246_v47 = vld [vmem:[%s13403_s1 + $0x370] sm:$0xff] }
 0x3c5   :  { %v9082_v1 = vpop.permute.xlu1 %2353  ;;  %v9084_v53 = vpop.permute.xlu0 %2358 }
 0x3c6   :  { %14780 = vst [vmem:[#allocation244_spill] sm:$0xff] %v9082_v1  ;;  %14781 = vst [vmem:[#allocation245_spill] sm:$0xff] %v9084_v53  ;;  %2673 = vperm.xlu1 %5272, %v243_v49   ;;  %2678 = vperm.xlu0 %5273, %v244_v45   ;;  %v247_v53 = vld [vmem:[%s13403_s1 + $0x378] sm:$0xff]  ;;  %v248_v49 = vld [vmem:[%s13403_s1 + $0x380] sm:$0xff] }
 0x3c9   :  { %v9092_v55 = vpop.permute.xlu1 %2363  ;;  %v9094_v3 = vpop.permute.xlu0 %2368 }
 0x3ca   :  { %14782 = vst [vmem:[#allocation246_spill] sm:$0xff] %v9092_v55  ;;  %14783 = vst [vmem:[#allocation247_spill] sm:$0xff] %v9094_v3  ;;  %2683 = vperm.xlu1 %5272, %v245_v51   ;;  %2688 = vperm.xlu0 %5273, %v246_v47   ;;  %v249_v3 = vld [vmem:[%s13403_s1 + $0x388] sm:$0xff]  ;;  %v250_v51 = vld [vmem:[%s13403_s1 + $0x390] sm:$0xff] }
 0x3cd   :  { %v9102_v45 = vpop.permute.xlu1 %2373  ;;  %v9104_v1 = vpop.permute.xlu0 %2378 }
 0x3ce   :  { %14784 = vst [vmem:[#allocation248_spill] sm:$0xff] %v9102_v45  ;;  %14785 = vst [vmem:[#allocation249_spill] sm:$0xff] %v9104_v1  ;;  %2693 = vperm.xlu1 %5272, %v247_v53   ;;  %2698 = vperm.xlu0 %5273, %v248_v49   ;;  %v251_v1 = vld [vmem:[%s13403_s1 + $0x398] sm:$0xff]  ;;  %v252_v53 = vld [vmem:[%s13403_s1 + $0x3a0] sm:$0xff] }
 0x3d1   :  { %v9112_v47 = vpop.permute.xlu1 %2383  ;;  %v9114_v55 = vpop.permute.xlu0 %2388 }
 0x3d2   :  { %14786 = vst [vmem:[#allocation250_spill] sm:$0xff] %v9112_v47  ;;  %14787 = vst [vmem:[#allocation251_spill] sm:$0xff] %v9114_v55  ;;  %2703 = vperm.xlu1 %5272, %v249_v3   ;;  %2708 = vperm.xlu0 %5273, %v250_v51   ;;  %v253_v55 = vld [vmem:[%s13403_s1 + $0x3a8] sm:$0xff]  ;;  %v254_v3 = vld [vmem:[%s13403_s1 + $0x3b0] sm:$0xff] }
 0x3d5   :  { %v9122_v49 = vpop.permute.xlu1 %2393  ;;  %v9124_v45 = vpop.permute.xlu0 %2398 }
 0x3d6   :  { %14788 = vst [vmem:[#allocation252_spill] sm:$0xff] %v9122_v49  ;;  %14789 = vst [vmem:[#allocation253_spill] sm:$0xff] %v9124_v45  ;;  %2713 = vperm.xlu1 %5272, %v251_v1   ;;  %2718 = vperm.xlu0 %5273, %v252_v53   ;;  %v255_v45 = vld [vmem:[%s13403_s1 + $0x3b8] sm:$0xff]  ;;  %v256_v1 = vld [vmem:[%s13403_s1 + $0x3c0] sm:$0xff] }
 0x3d9   :  { %v9132_v51 = vpop.permute.xlu1 %2403  ;;  %v9134_v47 = vpop.permute.xlu0 %2408 }
 0x3da   :  { %14790 = vst [vmem:[#allocation254_spill] sm:$0xff] %v9132_v51  ;;  %14791 = vst [vmem:[#allocation255_spill] sm:$0xff] %v9134_v47  ;;  %2723 = vperm.xlu1 %5272, %v253_v55   ;;  %2728 = vperm.xlu0 %5273, %v254_v3   ;;  %v257_v47 = vld [vmem:[%s13403_s1 + $0x3c8] sm:$0xff]  ;;  %v258_v55 = vld [vmem:[%s13403_s1 + $0x3d0] sm:$0xff] }
 0x3dd   :  { %v9142_v53 = vpop.permute.xlu1 %2413  ;;  %v9144_v49 = vpop.permute.xlu0 %2418 }
 0x3de   :  { %14792 = vst [vmem:[#allocation256_spill] sm:$0xff] %v9142_v53  ;;  %14793 = vst [vmem:[#allocation257_spill] sm:$0xff] %v9144_v49  ;;  %2733 = vperm.xlu1 %5272, %v255_v45   ;;  %2738 = vperm.xlu0 %5273, %v256_v1   ;;  %v14798_v53 = vld [vmem:[#allocation108_spill] sm:$0xff]  ;;  %v259_v45 = vld [vmem:[%s13403_s1 + $0x3d8] sm:$0xff] }
 0x3df   :  { %v2011_v49 = vadd.f32 %v8027_v48, %v14798_v53  ;;  %v260_v1 = vld [vmem:[%s13403_s1 + $0x3e0] sm:$0xff]  ;;  %v14801_v48 = vld [vmem:[#allocation116_spill] sm:$0xff]  ;;  %v14802_v53 = vld [vmem:[#allocation111_spill] sm:$0xff]  ;;  %s5528_s1 = smov 127  }
 0x3e1   :  { %v9152_v3 = vpop.permute.xlu1 %2423  ;;  %v9154_v51 = vpop.permute.xlu0 %2428 }
 0x3e2   :  { %14794 = vst [vmem:[#allocation258_spill] sm:$0xff] %v9152_v3  ;;  %14795 = vst [vmem:[#allocation259_spill] sm:$0xff] %v9154_v51  ;;  %2743 = vperm.xlu1 %5272, %v257_v47   ;;  %2748 = vperm.xlu0 %5273, %v258_v55   ;;  %v9167_v3 = vmul.f32 %v8864_v34, %v2011_v49  ;;  %v9170_v51 = vmul.f32 %v8874_v27, %v2012_v28  ;;  %v14803_v55 = vld [vmem:[#allocation9_spill] sm:$0xff] }
 0x3e3   :  { %v2014_v47 = vadd.f32 %v8041_v12, %v14801_v48  ;;  %v2013_v57 = vadd.f32 %v14803_v55, %v14802_v53  ;;  %v14809_v48 = vld [vmem:[#allocation115_spill] sm:$0xff]  ;;  %v14810_v53 = vld [vmem:[#allocation82_spill] sm:$0xff] }
 0x3e4   :  { %14799 = vst [vmem:[#allocation107_spill] sm:$0xff] %v9167_v3  ;;  %14800 = vst [vmem:[#allocation73_spill] sm:$0xff] %v9170_v51  ;;  %v9182_v41 = vmul.f32 %v9167_v3, %v9167_v3  ;;  %v9189_v28 = vmul.f32 %v9170_v51, %v9170_v51  ;;  %v2015_v55 = vadd.f32 %v14810_v53, %v14809_v48  ;;  %v14815_v48 = vld [vmem:[#allocation14_spill] sm:$0xff]  ;;  %v14816_v51 = vld [vmem:[#allocation119_spill] sm:$0xff] }
 0x3e5   :  { %v9172_v5 = vpop.permute.xlu1 %2433  ;;  %v9174_v43 = vpop.permute.xlu0 %2438  ;;  %v9185_v34 = vmul.f32 %v8872_v58, %v2013_v57  ;;  %v9192_v27 = vmul.f32 %v8882_v29, %v2014_v47  ;;  %v2018_v53 = vadd.f32 %v8073_v2, %v14815_v48 }
 0x3e6   :  { %2753 = vperm.xlu1 %5272, %v259_v45   ;;  %2758 = vperm.xlu0 %5273, %v260_v1   ;;  %14804 = vst [vmem:[#allocation108_spill] sm:$0xff] %v9182_v41  ;;  %14806 = vst [vmem:[#allocation111_spill] sm:$0xff] %v9189_v28  ;;  %v14808_v45 = vld [vmem:[#allocation120_spill] sm:$0xff] }
 0x3e7   :  { %14805 = vst [vmem:[#allocation116_spill] sm:$0xff] %v9185_v34  ;;  %14807 = vst [vmem:[#allocation9_spill] sm:$0xff] %v9192_v27  ;;  %v2016_v1 = vadd.f32 %v8057_v36, %v14808_v45  ;;  %v9208_v57 = vmul.f32 %v9185_v34, %v9185_v34  ;;  %v9212_v58 = vmul.f32 %v9192_v27, %v9192_v27  ;;  %v14817_v34 = vld [vmem:[#allocation86_spill] sm:$0xff]  ;;  %v14823_v27 = vld [vmem:[#allocation124_spill] sm:$0xff] }
 0x3e8   :  { %v9215_v36 = vmul.f32 %v8884_v18, %v2015_v55  ;;  %v2017_v3 = vadd.f32 %v14817_v34, %v14816_v51  ;;  %v9244_v2 = vmul.f32 %v8902_v26, %v2018_v53  ;;  %v14822_v55 = vld [vmem:[#allocation16_spill] sm:$0xff]  ;;  %v14828_v53 = vld [vmem:[#allocation85_spill] sm:$0xff] }
 0x3e9   :  { %v9194_v12 = vpop.permute.xlu1 %2443  ;;  %v9196_v49 = vpop.permute.xlu0 %2448  ;;  %14811 = vst [vmem:[#allocation120_spill] sm:$0xff] %v9208_v57  ;;  %14812 = vst [vmem:[#allocation115_spill] sm:$0xff] %v9212_v58  ;;  %v9218_v29 = vmul.f32 %v8892_v32, %v2016_v1  ;;  %v2020_v48 = vadd.f32 %v8089_v0, %v14822_v55  ;;  %v2022_v55 = vadd.f32 %v8105_v44, %v14828_v53 }
 0x3ea   :  { %3136 = vrot.lane.b32.xlu1 %v9182_v41, %s5528_s1  ;;  %3138 = vrot.lane.b32.xlu0 %v9189_v28, %s5528_s1  ;;  %14813 = vst [vmem:[#allocation82_spill] sm:$0xff] %v9215_v36  ;;  %v9234_v18 = vmul.f32 %v9215_v36, %v9215_v36  ;;  %v9241_v1 = vmul.f32 %v8894_v40, %v2017_v3  ;;  %14821 = vst [vmem:[#allocation261_spill] sm:$0xff] %v9244_v2  ;;  %v14987_v41 = vld [vmem:[#allocation56_spill] sm:$0xff] }
 0x3eb   :  { %14814 = vst [vmem:[#allocation260_spill] sm:$0xff] %v9218_v29  ;;  %v9238_v32 = vmul.f32 %v9218_v29, %v9218_v29  ;;  %v2019_v36 = vadd.f32 %v8091_v42, %v14823_v27  ;;  %v9264_v26 = vmul.f32 %v9244_v2, %v9244_v2  ;;  %v9270_v0 = vmul.f32 %v8912_v14, %v2020_v48  ;;  %v14829_v29 = vld [vmem:[#allocation123_spill] sm:$0xff]  ;;  %v14834_v48 = vld [vmem:[#allocation18_spill] sm:$0xff]  ;;  %v14835_v2 = vld [vmem:[#allocation128_spill] sm:$0xff] }
 0x3ec   :  { %14818 = vst [vmem:[#allocation14_spill] sm:$0xff] %v9234_v18  ;;  %14820 = vst [vmem:[#allocation86_spill] sm:$0xff] %v9241_v1  ;;  %v9260_v40 = vmul.f32 %v9241_v1, %v9241_v1  ;;  %v2021_v1 = vadd.f32 %v8107_v16, %v14829_v29  ;;  %v9296_v44 = vmul.f32 %v8922_v22, %v2022_v55  ;;  %v14840_v55 = vld [vmem:[#allocation89_spill] sm:$0xff] }
 0x3ed   :  { %v9220_v47 = vpop.permute.xlu1 %2453  ;;  %v9222_v45 = vpop.permute.xlu0 %2458  ;;  %14819 = vst [vmem:[#allocation119_spill] sm:$0xff] %v9238_v32  ;;  %14825 = vst [vmem:[#allocation124_spill] sm:$0xff] %v9264_v26  ;;  %v9267_v3 = vmul.f32 %v8904_v25, %v2019_v36  ;;  %v9290_v14 = vmul.f32 %v9270_v0, %v9270_v0  ;;  %v2024_v53 = vadd.f32 %v8121_v10, %v14834_v48 }
 0x3ee   :  { %3140 = vrot.lane.b32.xlu1 %v9208_v57, %s5528_s1  ;;  %3142 = vrot.lane.b32.xlu0 %v9212_v58, %s5528_s1  ;;  %14824 = vst [vmem:[#allocation16_spill] sm:$0xff] %v9260_v40  ;;  %14827 = vst [vmem:[#allocation263_spill] sm:$0xff] %v9270_v0  ;;  %v9293_v36 = vmul.f32 %v8914_v23, %v2021_v1  ;;  %v9316_v22 = vmul.f32 %v9296_v44, %v9296_v44  ;;  %v14841_v0 = vld [vmem:[#allocation127_spill] sm:$0xff] }
 0x3ef   :  { %14826 = vst [vmem:[#allocation262_spill] sm:$0xff] %v9267_v3  ;;  %v9286_v25 = vmul.f32 %v9267_v3, %v9267_v3  ;;  %14831 = vst [vmem:[#allocation123_spill] sm:$0xff] %v9290_v14  ;;  %v2023_v3 = vadd.f32 %v8123_v20, %v14835_v2  ;;  %v9322_v10 = vmul.f32 %v8932_v4, %v2024_v53  ;;  %v14847_v53 = vld [vmem:[#allocation20_spill] sm:$0xff]  ;;  %v14985_v57 = vld [vmem:[#allocation51_spill] sm:$0xff] }
 0x3f0   :  { %14832 = vst [vmem:[#allocation264_spill] sm:$0xff] %v9293_v36  ;;  %14833 = vst [vmem:[#allocation265_spill] sm:$0xff] %v9296_v44  ;;  %v9312_v23 = vmul.f32 %v9293_v36, %v9293_v36  ;;  %v2026_v48 = vadd.f32 %v8137_v8, %v14840_v55  ;;  %v2025_v36 = vadd.f32 %v8139_v46, %v14841_v0  ;;  %v14848_v44 = vld [vmem:[#allocation132_spill] sm:$0xff] }
 0x3f1   :  { %v9246_v51 = vpop.permute.xlu1 %2463  ;;  %v9248_v34 = vpop.permute.xlu0 %2468  ;;  %14830 = vst [vmem:[#allocation85_spill] sm:$0xff] %v9286_v25  ;;  %14837 = vst [vmem:[#allocation128_spill] sm:$0xff] %v9316_v22  ;;  %v9319_v1 = vmul.f32 %v8924_v21, %v2023_v3  ;;  %v9342_v4 = vmul.f32 %v9322_v10, %v9322_v10  ;;  %v2028_v55 = vadd.f32 %v8153_v50, %v14847_v53 }
 0x3f2   :  { %3144 = vrot.lane.b32.xlu1 %v9234_v18, %s5528_s1  ;;  %3146 = vrot.lane.b32.xlu0 %v9238_v32, %s5528_s1  ;;  %14836 = vst [vmem:[#allocation18_spill] sm:$0xff] %v9312_v23  ;;  %14839 = vst [vmem:[#allocation267_spill] sm:$0xff] %v9322_v10  ;;  %v9345_v3 = vmul.f32 %v8934_v19, %v2025_v36  ;;  %v9348_v8 = vmul.f32 %v8942_v38, %v2026_v48  ;;  %v14855_v48 = vld [vmem:[#allocation93_spill] sm:$0xff]  ;;  %v14856_v10 = vld [vmem:[#allocation131_spill] sm:$0xff] }
 0x3f3   :  { %14838 = vst [vmem:[#allocation266_spill] sm:$0xff] %v9319_v1  ;;  %v9338_v21 = vmul.f32 %v9319_v1, %v9319_v1  ;;  %14843 = vst [vmem:[#allocation127_spill] sm:$0xff] %v9342_v4  ;;  %v2027_v1 = vadd.f32 %v8155_v59, %v14848_v44  ;;  %v9374_v50 = vmul.f32 %v8952_v24, %v2028_v55  ;;  %v14863_v55 = vld [vmem:[#allocation22_spill] sm:$0xff] }
 0x3f4   :  { %14844 = vst [vmem:[#allocation268_spill] sm:$0xff] %v9345_v3  ;;  %14845 = vst [vmem:[#allocation269_spill] sm:$0xff] %v9348_v8  ;;  %v9364_v19 = vmul.f32 %v9345_v3, %v9345_v3  ;;  %v9368_v38 = vmul.f32 %v9348_v8, %v9348_v8  ;;  %v2030_v53 = vadd.f32 %v8169_v62, %v14855_v48  ;;  %v14864_v8 = vld [vmem:[#allocation134_spill] sm:$0xff] }
 0x3f5   :  { %v9272_v42 = vpop.permute.xlu1 %2473  ;;  %v9274_v27 = vpop.permute.xlu0 %2478  ;;  %14842 = vst [vmem:[#allocation89_spill] sm:$0xff] %v9338_v21  ;;  %v9371_v36 = vmul.f32 %v8944_v17, %v2027_v1  ;;  %14852 = vst [vmem:[#allocation272_spill] sm:$0xff] %v9374_v50  ;;  %v2029_v3 = vadd.f32 %v8171_v52, %v14856_v10  ;;  %v9394_v24 = vmul.f32 %v9374_v50, %v9374_v50  ;;  %v14872_v50 = vld [vmem:[#allocation135_spill] sm:$0xff] }
 0x3f6   :  { %3148 = vrot.lane.b32.xlu1 %v9260_v40, %s5528_s1  ;;  %3150 = vrot.lane.b32.xlu0 %v9264_v26, %s5528_s1  ;;  %14849 = vst [vmem:[#allocation20_spill] sm:$0xff] %v9364_v19  ;;  %14850 = vst [vmem:[#allocation132_spill] sm:$0xff] %v9368_v38  ;;  %v9400_v62 = vmul.f32 %v8962_v33, %v2030_v53  ;;  %v2032_v48 = vadd.f32 %v8185_v54, %v14863_v55  ;;  %v14871_v53 = vld [vmem:[#allocation97_spill] sm:$0xff]  ;;  %v14963_v26 = vld [vmem:[#allocation38_spill] sm:$0xff] }
 0x3f7   :  { %14851 = vst [vmem:[#allocation271_spill] sm:$0xff] %v9371_v36  ;;  %v9390_v17 = vmul.f32 %v9371_v36, %v9371_v36  ;;  %14858 = vst [vmem:[#allocation131_spill] sm:$0xff] %v9394_v24  ;;  %v9397_v1 = vmul.f32 %v8954_v15, %v2029_v3  ;;  %v2031_v36 = vadd.f32 %v8187_v6, %v14864_v8  ;;  %v14965_v40 = vld [vmem:[#allocation40_spill] sm:$0xff] }
 0x3f8   :  { %14860 = vst [vmem:[#allocation276_spill] sm:$0xff] %v9400_v62  ;;  %v9420_v33 = vmul.f32 %v9400_v62, %v9400_v62  ;;  %v9426_v54 = vmul.f32 %v8972_v35, %v2032_v48  ;;  %v2034_v55 = vadd.f32 %v8201_v31, %v14871_v53  ;;  %v14879_v48 = vld [vmem:[#allocation136_spill] sm:$0xff]  ;;  %v14880_v62 = vld [vmem:[#allocation137_spill] sm:$0xff] }
 0x3f9   :  { %v9298_v16 = vpop.permute.xlu1 %2483  ;;  %v9300_v29 = vpop.permute.xlu0 %2488  ;;  %14857 = vst [vmem:[#allocation93_spill] sm:$0xff] %v9390_v17  ;;  %14859 = vst [vmem:[#allocation275_spill] sm:$0xff] %v9397_v1  ;;  %v9416_v15 = vmul.f32 %v9397_v1, %v9397_v1  ;;  %v9423_v3 = vmul.f32 %v8964_v13, %v2031_v36  ;;  %v2033_v1 = vadd.f32 %v8203_v56, %v14872_v50 }
 0x3fa   :  { %3152 = vrot.lane.b32.xlu1 %v9286_v25, %s5528_s1  ;;  %3154 = vrot.lane.b32.xlu0 %v9290_v14, %s5528_s1  ;;  %14866 = vst [vmem:[#allocation134_spill] sm:$0xff] %v9420_v33  ;;  %14868 = vst [vmem:[#allocation280_spill] sm:$0xff] %v9426_v54  ;;  %v9446_v35 = vmul.f32 %v9426_v54, %v9426_v54  ;;  %v9452_v31 = vmul.f32 %v8982_v37, %v2034_v55  ;;  %v14887_v55 = vld [vmem:[#allocation138_spill] sm:$0xff]  ;;  %v14888_v54 = vld [vmem:[#allocation101_spill] sm:$0xff] }
 0x3fb   :  { %14865 = vst [vmem:[#allocation22_spill] sm:$0xff] %v9416_v15  ;;  %14867 = vst [vmem:[#allocation279_spill] sm:$0xff] %v9423_v3  ;;  %v9442_v13 = vmul.f32 %v9423_v3, %v9423_v3  ;;  %v9449_v36 = vmul.f32 %v8974_v11, %v2033_v1  ;;  %v2036_v53 = vadd.f32 %v8217_v30, %v14879_v48  ;;  %v14961_v14 = vld [vmem:[#allocation129_spill] sm:$0xff]  ;;  %v14962_v25 = vld [vmem:[#allocation150_spill] sm:$0xff] }
 0x3fc   :  { %14874 = vst [vmem:[#allocation135_spill] sm:$0xff] %v9446_v35  ;;  %14876 = vst [vmem:[#allocation284_spill] sm:$0xff] %v9452_v31  ;;  %v2035_v3 = vadd.f32 %v8219_v60, %v14880_v62  ;;  %v9472_v37 = vmul.f32 %v9452_v31, %v9452_v31  ;;  %v2038_v48 = vadd.f32 %v8233_v61, %v14887_v55  ;;  %v14892_v61 = vld [vmem:[#allocation228_spill] sm:$0xff]  ;;  %v14896_v55 = vld [vmem:[#allocation23_spill] sm:$0xff] }
 0x3fd   :  { %v9324_v20 = vpop.permute.xlu1 %2493  ;;  %v9326_v2 = vpop.permute.xlu0 %2498  ;;  %14873 = vst [vmem:[#allocation97_spill] sm:$0xff] %v9442_v13  ;;  %14875 = vst [vmem:[#allocation283_spill] sm:$0xff] %v9449_v36  ;;  %v9468_v11 = vmul.f32 %v9449_v36, %v9449_v36  ;;  %v9478_v30 = vmul.f32 %v8992_v39, %v2036_v53  ;;  %v2037_v36 = vadd.f32 %v8235_v63, %v14888_v54  ;;  %v14897_v31 = vld [vmem:[#allocation110_spill] sm:$0xff] }
 0x3fe   :  { %3156 = vrot.lane.b32.xlu1 %v9312_v23, %s5528_s1  ;;  %3158 = vrot.lane.b32.xlu0 %v9316_v22, %s5528_s1  ;;  %14882 = vst [vmem:[#allocation137_spill] sm:$0xff] %v9472_v37  ;;  %v9475_v1 = vmul.f32 %v8984_v9, %v2035_v3  ;;  %v9504_v53 = vmul.f32 %v14892_v61, %v2038_v48  ;;  %v14902_v48 = vld [vmem:[#allocation229_spill] sm:$0xff]  ;;  %v14960_v23 = vld [vmem:[#allocation151_spill] sm:$0xff] }
 0x3ff   :  { %14881 = vst [vmem:[#allocation136_spill] sm:$0xff] %v9468_v11  ;;  %14884 = vst [vmem:[#allocation288_spill] sm:$0xff] %v9478_v30  ;;  %v9498_v39 = vmul.f32 %v9478_v30, %v9478_v30  ;;  %v9501_v3 = vmul.f32 %v8994_v7, %v2037_v36  ;;  %v14908_v30 = vld [vmem:[#allocation141_spill] sm:$0xff] }
 0x400   :  { %14883 = vst [vmem:[#allocation287_spill] sm:$0xff] %v9475_v1  ;;  %v9494_v9 = vmul.f32 %v9475_v1, %v9475_v1  ;;  %14893 = vst [vmem:[#allocation228_spill] sm:$0xff] %v9504_v53  ;;  %v14899_v1 = vld [vmem:[#allocation25_spill] sm:$0xff]  ;;  %v9524_v36 = vmul.f32 %v9504_v53, %v9504_v53  ;;  %v14920_v53 = vld [vmem:[#allocation143_spill] sm:$0xff] }
 0x401   :  { %v9350_v46 = vpop.permute.xlu1 %2503  ;;  %v9352_v0 = vpop.permute.xlu0 %2508  ;;  %14890 = vst [vmem:[#allocation101_spill] sm:$0xff] %v9498_v39  ;;  %14891 = vst [vmem:[#allocation291_spill] sm:$0xff] %v9501_v3  ;;  %v9520_v7 = vmul.f32 %v9501_v3, %v9501_v3  ;;  %v14911_v3 = vld [vmem:[#allocation112_spill] sm:$0xff] }
 0x402   :  { %14846 = vst [vmem:[#allocation270_spill] sm:$0xff] %v9352_v0  ;;  %3160 = vrot.lane.b32.xlu1 %v9338_v21, %s5528_s1  ;;  %3162 = vrot.lane.b32.xlu0 %v9342_v4, %s5528_s1  ;;  %14889 = vst [vmem:[#allocation138_spill] sm:$0xff] %v9494_v9  ;;  %v14957_v21 = vld [vmem:[#allocation36_spill] sm:$0xff]  ;;  %v15088_v0 = vld [vmem:[#allocation187_spill] sm:$0xff] }
 0x403   :  { %14900 = vst [vmem:[#allocation23_spill] sm:$0xff] %v9520_v7  ;;  %14901 = vst [vmem:[#allocation110_spill] sm:$0xff] %v9524_v36 }
 0x405   :  { %v9376_v59 = vpop.permute.xlu1 %2513  ;;  %v9378_v44 = vpop.permute.xlu0 %2518 }
 0x406   :  { %14853 = vst [vmem:[#allocation273_spill] sm:$0xff] %v9376_v59  ;;  %14854 = vst [vmem:[#allocation274_spill] sm:$0xff] %v9378_v44  ;;  %3164 = vrot.lane.b32.xlu1 %v9364_v19, %s5528_s1  ;;  %3166 = vrot.lane.b32.xlu0 %v9368_v38, %s5528_s1  ;;  %v14946_v19 = vld [vmem:[#allocation146_spill] sm:$0xff] }
 0x407   :  { %v15056_v44 = vld [vmem:[#allocation178_spill] sm:$0xff] }
 0x409   :  { %v9402_v52 = vpop.permute.xlu1 %2523  ;;  %v9404_v10 = vpop.permute.xlu0 %2528 }
 0x40a   :  { %14861 = vst [vmem:[#allocation277_spill] sm:$0xff] %v9402_v52  ;;  %14862 = vst [vmem:[#allocation278_spill] sm:$0xff] %v9404_v10  ;;  %3168 = vrot.lane.b32.xlu1 %v9390_v17, %s5528_s1  ;;  %3170 = vrot.lane.b32.xlu0 %v9394_v24, %s5528_s1  ;;  %v14934_v17 = vld [vmem:[#allocation144_spill] sm:$0xff]  ;;  %v15053_v52 = vld [vmem:[#allocation177_spill] sm:$0xff] }
 0x40d   :  { %v9428_v6 = vpop.permute.xlu1 %2533  ;;  %v9430_v8 = vpop.permute.xlu0 %2538 }
 0x40e   :  { %14869 = vst [vmem:[#allocation281_spill] sm:$0xff] %v9428_v6  ;;  %14870 = vst [vmem:[#allocation282_spill] sm:$0xff] %v9430_v8  ;;  %3172 = vrot.lane.b32.xlu1 %v9416_v15, %s5528_s1  ;;  %3174 = vrot.lane.b32.xlu0 %v9420_v33, %s5528_s1  ;;  %v14922_v15 = vld [vmem:[#allocation142_spill] sm:$0xff]  ;;  %v15047_v6 = vld [vmem:[#allocation175_spill] sm:$0xff] }
 0x411   :  { %v9454_v56 = vpop.permute.xlu1 %2543  ;;  %v9456_v50 = vpop.permute.xlu0 %2548 }
 0x412   :  { %14877 = vst [vmem:[#allocation285_spill] sm:$0xff] %v9454_v56  ;;  %14878 = vst [vmem:[#allocation286_spill] sm:$0xff] %v9456_v50  ;;  %3176 = vrot.lane.b32.xlu1 %v9442_v13, %s5528_s1  ;;  %3178 = vrot.lane.b32.xlu0 %v9446_v35, %s5528_s1  ;;  %v14910_v13 = vld [vmem:[#allocation140_spill] sm:$0xff]  ;;  %v15045_v56 = vld [vmem:[#allocation174_spill] sm:$0xff] }
 0x413   :  { %v2041_v33 = vadd.f32 %v14911_v3, %v14910_v13 }
 0x415   :  { %v9480_v60 = vpop.permute.xlu1 %2553  ;;  %v9482_v62 = vpop.permute.xlu0 %2558 }
 0x416   :  { %14885 = vst [vmem:[#allocation289_spill] sm:$0xff] %v9480_v60  ;;  %14886 = vst [vmem:[#allocation290_spill] sm:$0xff] %v9482_v62  ;;  %3180 = vrot.lane.b32.xlu1 %v9468_v11, %s5528_s1  ;;  %3182 = vrot.lane.b32.xlu0 %v9472_v37, %s5528_s1  ;;  %v2040_v37 = vadd.f32 %v14897_v31, %v14896_v55  ;;  %v14898_v11 = vld [vmem:[#allocation139_spill] sm:$0xff]  ;;  %v14904_v31 = vld [vmem:[#allocation230_spill] sm:$0xff] }
 0x417   :  { %v2039_v35 = vadd.f32 %v14899_v1, %v14898_v11 }
 0x418   :  { %v9530_v55 = vmul.f32 %v14904_v31, %v2040_v37 }
 0x419   :  { %v9506_v63 = vpop.permute.xlu1 %2563  ;;  %v9508_v54 = vpop.permute.xlu0 %2568  ;;  %v9527_v61 = vmul.f32 %v14902_v48, %v2039_v35  ;;  %v14914_v48 = vld [vmem:[#allocation231_spill] sm:$0xff] }
 0x41a   :  { %14894 = vst [vmem:[#allocation292_spill] sm:$0xff] %v9506_v63  ;;  %14895 = vst [vmem:[#allocation293_spill] sm:$0xff] %v9508_v54  ;;  %3184 = vrot.lane.b32.xlu1 %v9494_v9, %s5528_s1  ;;  %3186 = vrot.lane.b32.xlu0 %v9498_v39, %s5528_s1  ;;  %v14909_v39 = vld [vmem:[#allocation28_spill] sm:$0xff]  ;;  %v9550_v37 = vmul.f32 %v9530_v55, %v9530_v55  ;;  %v9553_v31 = vmul.f32 %v14914_v48, %v2041_v33  ;;  %v14926_v48 = vld [vmem:[#allocation233_spill] sm:$0xff] }
 0x41b   :  { %14903 = vst [vmem:[#allocation139_spill] sm:$0xff] %v9527_v61  ;;  %14905 = vst [vmem:[#allocation25_spill] sm:$0xff] %v9530_v55  ;;  %v2042_v9 = vadd.f32 %v14909_v39, %v14908_v30  ;;  %v9546_v35 = vmul.f32 %v9527_v61, %v9527_v61  ;;  %v14916_v30 = vld [vmem:[#allocation232_spill] sm:$0xff]  ;;  %v14923_v61 = vld [vmem:[#allocation30_spill] sm:$0xff] }
 0x41c   :  { %14913 = vst [vmem:[#allocation28_spill] sm:$0xff] %v9550_v37  ;;  %14915 = vst [vmem:[#allocation140_spill] sm:$0xff] %v9553_v31  ;;  %v2043_v24 = vadd.f32 %v14923_v61, %v14922_v15  ;;  %v9572_v33 = vmul.f32 %v9553_v31, %v9553_v31  ;;  %v14932_v55 = vld [vmem:[#allocation145_spill] sm:$0xff]  ;;  %v14935_v31 = vld [vmem:[#allocation32_spill] sm:$0xff] }
 0x41d   :  { %v9532_v11 = vpop.permute.xlu1 %2573  ;;  %v9534_v1 = vpop.permute.xlu0 %2578  ;;  %14912 = vst [vmem:[#allocation141_spill] sm:$0xff] %v9546_v35  ;;  %v9556_v39 = vmul.f32 %v14916_v30, %v2042_v9  ;;  %v2045_v38 = vadd.f32 %v14935_v31, %v14934_v17  ;;  %v15023_v54 = vld [vmem:[#allocation6_spill] sm:$0xff]  ;;  %v15025_v63 = vld [vmem:[#allocation99_spill] sm:$0xff] }
 0x41e   :  { %14906 = vst [vmem:[#allocation229_spill] sm:$0xff] %v9532_v11  ;;  %14907 = vst [vmem:[#allocation230_spill] sm:$0xff] %v9534_v1  ;;  %3188 = vrot.lane.b32.xlu1 %v9520_v7, %s5528_s1  ;;  %3190 = vrot.lane.b32.xlu0 %v9524_v36, %s5528_s1  ;;  %v14921_v36 = vld [vmem:[#allocation113_spill] sm:$0xff]  ;;  %v9579_v30 = vmul.f32 %v14926_v48, %v2043_v24  ;;  %v14938_v48 = vld [vmem:[#allocation235_spill] sm:$0xff] }
 0x41f   :  { %14917 = vst [vmem:[#allocation112_spill] sm:$0xff] %v9556_v39  ;;  %v2044_v7 = vadd.f32 %v14921_v36, %v14920_v53  ;;  %14924 = vst [vmem:[#allocation143_spill] sm:$0xff] %v9572_v33  ;;  %v9576_v9 = vmul.f32 %v9556_v39, %v9556_v39  ;;  %v14928_v53 = vld [vmem:[#allocation234_spill] sm:$0xff]  ;;  %v14944_v39 = vld [vmem:[#allocation147_spill] sm:$0xff] }
 0x420   :  { %14927 = vst [vmem:[#allocation142_spill] sm:$0xff] %v9579_v30  ;;  %v9598_v24 = vmul.f32 %v9579_v30, %v9579_v30  ;;  %v14947_v30 = vld [vmem:[#allocation34_spill] sm:$0xff]  ;;  %v15017_v1 = vld [vmem:[#allocation4_spill] sm:$0xff] }
 0x421   :  { %v9558_v13 = vpop.permute.xlu1 %2583  ;;  %v9560_v3 = vpop.permute.xlu0 %2588  ;;  %14925 = vst [vmem:[#allocation113_spill] sm:$0xff] %v9576_v9  ;;  %v9582_v36 = vmul.f32 %v14928_v53, %v2044_v7  ;;  %v9605_v53 = vmul.f32 %v14938_v48, %v2045_v38  ;;  %v2047_v4 = vadd.f32 %v14947_v30, %v14946_v19  ;;  %v14950_v48 = vld [vmem:[#allocation237_spill] sm:$0xff] }
 0x422   :  { %14918 = vst [vmem:[#allocation231_spill] sm:$0xff] %v9558_v13  ;;  %14919 = vst [vmem:[#allocation232_spill] sm:$0xff] %v9560_v3  ;;  %3192 = vrot.lane.b32.xlu1 %v9546_v35, %s5528_s1  ;;  %3194 = vrot.lane.b32.xlu0 %v9550_v37, %s5528_s1  ;;  %v14933_v37 = vld [vmem:[#allocation117_spill] sm:$0xff]  ;;  %v15015_v3 = vld [vmem:[#allocation88_spill] sm:$0xff] }
 0x423   :  { %14929 = vst [vmem:[#allocation30_spill] sm:$0xff] %v9582_v36  ;;  %v2046_v35 = vadd.f32 %v14933_v37, %v14932_v55  ;;  %14936 = vst [vmem:[#allocation145_spill] sm:$0xff] %v9598_v24  ;;  %v9602_v7 = vmul.f32 %v9582_v36, %v9582_v36  ;;  %v14940_v55 = vld [vmem:[#allocation236_spill] sm:$0xff]  ;;  %v9624_v38 = vmul.f32 %v9605_v53, %v9605_v53  ;;  %v14954_v19 = vld [vmem:[#allocation149_spill] sm:$0xff] }
 0x424   :  { %14939 = vst [vmem:[#allocation144_spill] sm:$0xff] %v9605_v53  ;;  %v14955_v30 = vld [vmem:[#allocation125_spill] sm:$0xff] }
 0x425   :  { %v9584_v15 = vpop.permute.xlu1 %2593  ;;  %v9586_v61 = vpop.permute.xlu0 %2598  ;;  %14937 = vst [vmem:[#allocation117_spill] sm:$0xff] %v9602_v7  ;;  %v9608_v37 = vmul.f32 %v14940_v55, %v2046_v35  ;;  %14948 = vst [vmem:[#allocation147_spill] sm:$0xff] %v9624_v38  ;;  %v9631_v55 = vmul.f32 %v14950_v48, %v2047_v4  ;;  %v2050_v36 = vadd.f32 %v14955_v30, %v14954_v19  ;;  %v14964_v48 = vld [vmem:[#allocation153_spill] sm:$0xff]  ;;  %v14968_v19 = vld [vmem:[#allocation155_spill] sm:$0xff] }
 0x426   :  { %14930 = vst [vmem:[#allocation233_spill] sm:$0xff] %v9584_v15  ;;  %14931 = vst [vmem:[#allocation234_spill] sm:$0xff] %v9586_v61  ;;  %3196 = vrot.lane.b32.xlu1 %v9572_v33, %s5528_s1  ;;  %3198 = vrot.lane.b32.xlu0 %v9576_v9, %s5528_s1  ;;  %v14945_v9 = vld [vmem:[#allocation121_spill] sm:$0xff]  ;;  %v2051_v4 = vadd.f32 %v14963_v26, %v14962_v25  ;;  %v14969_v30 = vld [vmem:[#allocation44_spill] sm:$0xff] }
 0x427   :  { %14941 = vst [vmem:[#allocation32_spill] sm:$0xff] %v9608_v37  ;;  %v2048_v33 = vadd.f32 %v14945_v9, %v14944_v39  ;;  %v9628_v35 = vmul.f32 %v9608_v37, %v9608_v37  ;;  %14951 = vst [vmem:[#allocation146_spill] sm:$0xff] %v9631_v55  ;;  %v14952_v39 = vld [vmem:[#allocation238_spill] sm:$0xff]  ;;  %v2052_v37 = vadd.f32 %v14961_v14, %v14960_v23  ;;  %v14971_v23 = vld [vmem:[#allocation43_spill] sm:$0xff] }
 0x428   :  { %v9658_v32 = vadd.f32 %v14969_v30, %v14968_v19  ;;  %v14970_v14 = vld [vmem:[#allocation154_spill] sm:$0xff]  ;;  %v14972_v26 = vld [vmem:[#allocation157_spill] sm:$0xff]  ;;  %v14973_v25 = vld [vmem:[#allocation48_spill] sm:$0xff] }
 0x429   :  { %v9610_v17 = vpop.permute.xlu1 %2603  ;;  %v9612_v31 = vpop.permute.xlu0 %2608  ;;  %14949 = vst [vmem:[#allocation121_spill] sm:$0xff] %v9628_v35  ;;  %v9634_v9 = vmul.f32 %v14952_v39, %v2048_v33  ;;  %v2054_v33 = vadd.f32 %v14965_v40, %v14964_v48  ;;  %v2055_v18 = vadd.f32 %v14971_v23, %v14970_v14  ;;  %v9664_v58 = vadd.f32 %v14973_v25, %v14972_v26  ;;  %v14978_v19 = vld [vmem:[#allocation240_spill] sm:$0xff]  ;;  %v14981_v14 = vld [vmem:[#allocation47_spill] sm:$0xff] }
 0x42a   :  { %14942 = vst [vmem:[#allocation235_spill] sm:$0xff] %v9610_v17  ;;  %14943 = vst [vmem:[#allocation236_spill] sm:$0xff] %v9612_v31  ;;  %3200 = vrot.lane.b32.xlu1 %v9598_v24, %s5528_s1  ;;  %3202 = vrot.lane.b32.xlu0 %v9602_v7, %s5528_s1  ;;  %v14956_v24 = vld [vmem:[#allocation148_spill] sm:$0xff]  ;;  %v9668_v40 = vmul.f32 %v9631_v55, %v9631_v55  ;;  %v9678_v30 = vmul.f32 %v14978_v19, %v2050_v36  ;;  %v14982_v26 = vld [vmem:[#allocation159_spill] sm:$0xff] }
 0x42b   :  { %14953 = vst [vmem:[#allocation34_spill] sm:$0xff] %v9634_v9  ;;  %v2049_v7 = vadd.f32 %v14957_v21, %v14956_v24  ;;  %v14966_v21 = vld [vmem:[#allocation152_spill] sm:$0xff]  ;;  %v14967_v24 = vld [vmem:[#allocation39_spill] sm:$0xff]  ;;  %v9672_v48 = vmul.f32 %v9634_v9, %v9634_v9  ;;  %v14984_v55 = vld [vmem:[#allocation158_spill] sm:$0xff] }
 0x42c   :  { %v2053_v39 = vadd.f32 %v14967_v24, %v14966_v21  ;;  %14974 = vst [vmem:[#allocation149_spill] sm:$0xff] %v9668_v40  ;;  %v14976_v21 = vld [vmem:[#allocation239_spill] sm:$0xff]  ;;  %14979 = vst [vmem:[#allocation36_spill] sm:$0xff] %v9678_v30  ;;  %v14983_v25 = vld [vmem:[#allocation52_spill] sm:$0xff]  ;;  %v9690_v28 = vadd.f32 %v14985_v57, %v14984_v55 }
 0x42d   :  { %v9640_v22 = vpop.permute.xlu1 %2613  ;;  %v9642_v53 = vpop.permute.xlu0 %2618  ;;  %14975 = vst [vmem:[#allocation125_spill] sm:$0xff] %v9672_v48  ;;  %v9675_v24 = vmul.f32 %v14976_v21, %v2049_v7  ;;  %v14986_v9 = vld [vmem:[#allocation161_spill] sm:$0xff]  ;;  %v14990_v21 = vld [vmem:[#allocation160_spill] sm:$0xff]  ;;  %v14991_v19 = vld [vmem:[#allocation55_spill] sm:$0xff] }
 0x42e   :  { %14958 = vst [vmem:[#allocation237_spill] sm:$0xff] %v9640_v22  ;;  %14959 = vst [vmem:[#allocation238_spill] sm:$0xff] %v9642_v53  ;;  %3204 = vrot.lane.b32.xlu1 %v9624_v38, %s5528_s1  ;;  %3206 = vrot.lane.b32.xlu0 %v9628_v35, %s5528_s1  ;;  %v14980_v35 = vld [vmem:[#allocation156_spill] sm:$0xff]  ;;  %v9686_v38 = vadd.f32 %v14983_v25, %v14982_v26  ;;  %v9694_v53 = vadd.f32 %v14987_v41, %v14986_v9  ;;  %v14994_v25 = vld [vmem:[#allocation62_spill] sm:$0xff] }
 0x42f   :  { %14977 = vst [vmem:[#allocation148_spill] sm:$0xff] %v9675_v24  ;;  %v9682_v23 = vadd.f32 %v14981_v14, %v14980_v35  ;;  %v9702_v35 = vadd.f32 %v14991_v19, %v14990_v21  ;;  %v14992_v14 = vld [vmem:[#allocation2_spill] sm:$0xff]  ;;  %v14993_v22 = vld [vmem:[#allocation60_spill] sm:$0xff]  ;;  %v14995_v31 = vld [vmem:[#allocation163_spill] sm:$0xff] }
 0x430   :  { %v9706_v26 = vadd.f32 %v14993_v22, %v14992_v14  ;;  %v9710_v57 = vadd.f32 %v14995_v31, %v14994_v25  ;;  %v14996_v41 = vld [vmem:[#allocation3_spill] sm:$0xff]  ;;  %v14997_v55 = vld [vmem:[#allocation164_spill] sm:$0xff]  ;;  %v14998_v21 = vld [vmem:[#allocation66_spill] sm:$0xff] }
 0x431   :  { %v9696_v7 = vpop.permute.xlu1 %2623  ;;  %v9698_v36 = vpop.permute.xlu0 %2628  ;;  %v9718_v9 = vadd.f32 %v14997_v55, %v14996_v41  ;;  %v14999_v19 = vld [vmem:[#allocation165_spill] sm:$0xff]  ;;  %v15001_v14 = vld [vmem:[#allocation166_spill] sm:$0xff]  ;;  %v15003_v25 = vld [vmem:[#allocation167_spill] sm:$0xff]  ;;  %v9738_v41 = vmul.f32 %v9678_v30, %v9678_v30 }
 0x432   :  { %14988 = vst [vmem:[#allocation151_spill] sm:$0xff] %v9696_v7  ;;  %14989 = vst [vmem:[#allocation129_spill] sm:$0xff] %v9698_v36  ;;  %3208 = vrot.lane.b32.xlu1 %v9668_v40, %s5528_s1  ;;  %3210 = vrot.lane.b32.xlu0 %v9672_v48, %s5528_s1  ;;  %v9722_v36 = vadd.f32 %v14999_v19, %v14998_v21  ;;  %v15000_v22 = vld [vmem:[#allocation5_spill] sm:$0xff]  ;;  %v15002_v31 = vld [vmem:[#allocation70_spill] sm:$0xff]  ;;  %v9734_v40 = vmul.f32 %v9675_v24, %v9675_v24 }
 0x433   :  { %v9726_v7 = vadd.f32 %v15001_v14, %v15000_v22  ;;  %v9730_v17 = vadd.f32 %v15003_v25, %v15002_v31  ;;  %15005 = vst [vmem:[#allocation38_spill] sm:$0xff] %v9738_v41  ;;  %v15006_v55 = vld [vmem:[#allocation241_spill] sm:$0xff]  ;;  %v15008_v21 = vld [vmem:[#allocation242_spill] sm:$0xff]  ;;  %v15010_v22 = vld [vmem:[#allocation7_spill] sm:$0xff] }
 0x434   :  { %15004 = vst [vmem:[#allocation150_spill] sm:$0xff] %v9734_v40  ;;  %v9741_v48 = vmul.f32 %v15006_v55, %v2051_v4  ;;  %v9744_v19 = vmul.f32 %v15008_v21, %v2052_v37  ;;  %v15011_v14 = vld [vmem:[#allocation168_spill] sm:$0xff]  ;;  %v15012_v31 = vld [vmem:[#allocation74_spill] sm:$0xff]  ;;  %v15013_v25 = vld [vmem:[#allocation169_spill] sm:$0xff] }
 0x435   :  { %v9748_v61 = vadd.f32 %v15011_v14, %v15010_v22  ;;  %v9752_v15 = vadd.f32 %v15013_v25, %v15012_v31  ;;  %v15014_v24 = vld [vmem:[#allocation78_spill] sm:$0xff]  ;;  %v9762_v4 = vpop.permute.xlu1 %2633  ;;  %v9764_v37 = vpop.permute.xlu0 %2638  ;;  %v15020_v55 = vld [vmem:[#allocation12_spill] sm:$0xff]  ;;  %v15022_v14 = vld [vmem:[#allocation77_spill] sm:$0xff] }
 0x436   :  { %15007 = vst [vmem:[#allocation153_spill] sm:$0xff] %v9741_v48  ;;  %15009 = vst [vmem:[#allocation40_spill] sm:$0xff] %v9744_v19  ;;  %v9756_v13 = vadd.f32 %v15015_v3, %v15014_v24  ;;  %v15016_v30 = vld [vmem:[#allocation10_spill] sm:$0xff]  ;;  %v15021_v21 = vld [vmem:[#allocation96_spill] sm:$0xff]  ;;  %v9772_v31 = vadd.f32 %v15023_v54, %v15022_v14  ;;  %3212 = vrot.lane.b32.xlu1 %v9734_v40, %s5528_s1  ;;  %3214 = vrot.lane.b32.xlu0 %v9738_v41, %s5528_s1 }
 0x437   :  { %v9760_v11 = vadd.f32 %v15017_v1, %v15016_v30  ;;  %15018 = vst [vmem:[#allocation152_spill] sm:$0xff] %v9762_v4  ;;  %15019 = vst [vmem:[#allocation39_spill] sm:$0xff] %v9764_v37  ;;  %v9768_v22 = vadd.f32 %v15021_v21, %v15020_v55  ;;  %v15024_v25 = vld [vmem:[#allocation81_spill] sm:$0xff]  ;;  %v15026_v1 = vld [vmem:[#allocation11_spill] sm:$0xff]  ;;  %v9800_v40 = vmul.f32 %v9741_v48, %v9741_v48 }
 0x438   :  { %v9776_v3 = vadd.f32 %v15025_v63, %v15024_v25  ;;  %v15027_v24 = vld [vmem:[#allocation8_spill] sm:$0xff]  ;;  %v15028_v55 = vld [vmem:[#allocation90_spill] sm:$0xff]  ;;  %v15029_v21 = vld [vmem:[#allocation69_spill] sm:$0xff] }
 0x439   :  { %v9784_v30 = vadd.f32 %v15027_v24, %v15026_v1  ;;  %v9788_v37 = vadd.f32 %v15029_v21, %v15028_v55  ;;  %v15030_v54 = vld [vmem:[#allocation13_spill] sm:$0xff]  ;;  %v15031_v14 = vld [vmem:[#allocation170_spill] sm:$0xff]  ;;  %v15033_v25 = vld [vmem:[#allocation171_spill] sm:$0xff]  ;;  %15034 = vst [vmem:[#allocation155_spill] sm:$0xff] %v9800_v40  ;;  %v9804_v1 = vmul.f32 %v9744_v19, %v9744_v19 }
 0x43a   :  { %v9792_v4 = vadd.f32 %v15031_v14, %v15030_v54  ;;  %v15032_v63 = vld [vmem:[#allocation94_spill] sm:$0xff]  ;;  %v15036_v24 = vld [vmem:[#allocation243_spill] sm:$0xff]  ;;  %v15038_v55 = vld [vmem:[#allocation244_spill] sm:$0xff]  ;;  %3216 = vrot.lane.b32.xlu1 %v9800_v40, %s5528_s1 }
 0x43b   :  { %v9796_v62 = vadd.f32 %v15033_v25, %v15032_v63  ;;  %15035 = vst [vmem:[#allocation44_spill] sm:$0xff] %v9804_v1  ;;  %v9807_v41 = vmul.f32 %v15036_v24, %v2053_v39  ;;  %v9810_v21 = vmul.f32 %v15038_v55, %v2054_v33  ;;  %v15040_v54 = vld [vmem:[#allocation15_spill] sm:$0xff]  ;;  %v15041_v14 = vld [vmem:[#allocation172_spill] sm:$0xff]  ;;  %v15042_v63 = vld [vmem:[#allocation17_spill] sm:$0xff]  ;;  %v9828_v39 = vpop.permute.xlu1 %2643  ;;  %v9830_v33 = vpop.permute.xlu0 %2648  ;;  %3218 = vrot.lane.b32.xlu0 %v9804_v1, %s5528_s1 }
 0x43c   :  { %v9814_v60 = vadd.f32 %v15041_v14, %v15040_v54  ;;  %v15043_v25 = vld [vmem:[#allocation173_spill] sm:$0xff]  ;;  %v15044_v48 = vld [vmem:[#allocation67_spill] sm:$0xff]  ;;  %v15046_v19 = vld [vmem:[#allocation98_spill] sm:$0xff]  ;;  %15048 = vst [vmem:[#allocation157_spill] sm:$0xff] %v9828_v39 }
 0x43d   :  { %15037 = vst [vmem:[#allocation154_spill] sm:$0xff] %v9807_v41  ;;  %15039 = vst [vmem:[#allocation43_spill] sm:$0xff] %v9810_v21  ;;  %v9818_v50 = vadd.f32 %v15043_v25, %v15042_v63  ;;  %v9822_v8 = vadd.f32 %v15045_v56, %v15044_v48  ;;  %v9826_v10 = vadd.f32 %v15047_v6, %v15046_v19  ;;  %v15050_v24 = vld [vmem:[#allocation68_spill] sm:$0xff]  ;;  %v15052_v14 = vld [vmem:[#allocation19_spill] sm:$0xff] }
 0x43e   :  { %15049 = vst [vmem:[#allocation48_spill] sm:$0xff] %v9830_v33  ;;  %v15051_v55 = vld [vmem:[#allocation176_spill] sm:$0xff]  ;;  %v9838_v63 = vadd.f32 %v15053_v52, %v15052_v14  ;;  %v15055_v25 = vld [vmem:[#allocation75_spill] sm:$0xff]  ;;  %v15057_v6 = vld [vmem:[#allocation102_spill] sm:$0xff]  ;;  %v9866_v40 = vmul.f32 %v9807_v41, %v9807_v41 }
 0x43f   :  { %v9834_v54 = vadd.f32 %v15051_v55, %v15050_v24  ;;  %v9842_v56 = vadd.f32 %v15056_v44, %v15055_v25  ;;  %v15058_v48 = vld [vmem:[#allocation179_spill] sm:$0xff]  ;;  %v15060_v24 = vld [vmem:[#allocation76_spill] sm:$0xff]  ;;  %v15063_v52 = vld [vmem:[#allocation21_spill] sm:$0xff] }
 0x440   :  { %15054 = vst [vmem:[#allocation239_spill] sm:$0xff] %v9838_v63  ;;  %v9850_v19 = vadd.f32 %v15058_v48, %v15057_v6  ;;  %v15061_v55 = vld [vmem:[#allocation180_spill] sm:$0xff]  ;;  %v15064_v14 = vld [vmem:[#allocation181_spill] sm:$0xff]  ;;  %v15066_v44 = vld [vmem:[#allocation83_spill] sm:$0xff]  ;;  %v9870_v6 = vmul.f32 %v9810_v21, %v9810_v21  ;;  %3220 = vrot.lane.b32.xlu1 %v9866_v40, %s5528_s1 }
 0x441   :  { %v9854_v33 = vadd.f32 %v15061_v55, %v15060_v24  ;;  %v9858_v39 = vadd.f32 %v15064_v14, %v15063_v52  ;;  %v15067_v25 = vld [vmem:[#allocation182_spill] sm:$0xff]  ;;  %15069 = vst [vmem:[#allocation52_spill] sm:$0xff] %v9866_v40  ;;  %v15071_v48 = vld [vmem:[#allocation245_spill] sm:$0xff]  ;;  %v15075_v52 = vld [vmem:[#allocation24_spill] sm:$0xff] }
 0x442   :  { %15059 = vst [vmem:[#allocation240_spill] sm:$0xff] %v9850_v19  ;;  %v9862_v59 = vadd.f32 %v15067_v25, %v15066_v44  ;;  %15070 = vst [vmem:[#allocation158_spill] sm:$0xff] %v9870_v6  ;;  %v9873_v1 = vmul.f32 %v15071_v48, %v2055_v18  ;;  %v15073_v24 = vld [vmem:[#allocation246_spill] sm:$0xff]  ;;  %v15076_v14 = vld [vmem:[#allocation183_spill] sm:$0xff]  ;;  %v9895_v48 = vpop.permute.xlu1 %2653  ;;  %3222 = vrot.lane.b32.xlu0 %v9870_v6, %s5528_s1 }
 0x443   :  { %15062 = vst [vmem:[#allocation156_spill] sm:$0xff] %v9854_v33  ;;  %15065 = vst [vmem:[#allocation47_spill] sm:$0xff] %v9858_v39  ;;  %v9877_v55 = vmul.f32 %v15073_v24, %v9658_v32  ;;  %v9881_v39 = vadd.f32 %v15076_v14, %v15075_v52  ;;  %v15078_v44 = vld [vmem:[#allocation84_spill] sm:$0xff]  ;;  %v15081_v41 = vld [vmem:[#allocation106_spill] sm:$0xff]  ;;  %v9897_v32 = vpop.permute.xlu0 %2658 }
 0x444   :  { %15068 = vst [vmem:[#allocation159_spill] sm:$0xff] %v9862_v59  ;;  %15072 = vst [vmem:[#allocation51_spill] sm:$0xff] %v9873_v1  ;;  %v15079_v25 = vld [vmem:[#allocation184_spill] sm:$0xff]  ;;  %v15082_v19 = vld [vmem:[#allocation185_spill] sm:$0xff]  ;;  %v9933_v40 = vmul.f32 %v9873_v1, %v9873_v1 }
 0x445   :  { %15074 = vst [vmem:[#allocation161_spill] sm:$0xff] %v9877_v55  ;;  %15077 = vst [vmem:[#allocation56_spill] sm:$0xff] %v9881_v39  ;;  %v9885_v59 = vadd.f32 %v15079_v25, %v15078_v44  ;;  %v9889_v33 = vadd.f32 %v15082_v19, %v15081_v41  ;;  %v15083_v21 = vld [vmem:[#allocation91_spill] sm:$0xff]  ;;  %v15084_v63 = vld [vmem:[#allocation186_spill] sm:$0xff] }
 0x446   :  { %v9893_v18 = vadd.f32 %v15084_v63, %v15083_v21  ;;  %15085 = vst [vmem:[#allocation55_spill] sm:$0xff] %v9895_v48  ;;  %15086 = vst [vmem:[#allocation2_spill] sm:$0xff] %v9897_v32  ;;  %v15087_v24 = vld [vmem:[#allocation105_spill] sm:$0xff]  ;;  %v15090_v14 = vld [vmem:[#allocation92_spill] sm:$0xff]  ;;  %3224 = vrot.lane.b32.xlu1 %v9933_v40, %s5528_s1 }
 0x447   :  { %15080 = vst [vmem:[#allocation160_spill] sm:$0xff] %v9885_v59  ;;  %v9901_v52 = vadd.f32 %v15088_v0, %v15087_v24  ;;  %v15091_v39 = vld [vmem:[#allocation188_spill] sm:$0xff]  ;;  %v15094_v59 = vld [vmem:[#allocation189_spill] sm:$0xff]  ;;  %v15096_v21 = vld [vmem:[#allocation26_spill] sm:$0xff] }
 0x448   :  { %v9905_v44 = vadd.f32 %v15091_v39, %v15090_v14  ;;  %v15093_v25 = vld [vmem:[#allocation100_spill] sm:$0xff]  ;;  %v15097_v63 = vld [vmem:[#allocation190_spill] sm:$0xff]  ;;  %v15099_v0 = vld [vmem:[#allocation109_spill] sm:$0xff]  ;;  %15108 = vst [vmem:[#allocation5_spill] sm:$0xff] %v9933_v40 }
 0x449   :  { %15089 = vst [vmem:[#allocation60_spill] sm:$0xff] %v9901_v52  ;;  %v9909_v41 = vadd.f32 %v15094_v59, %v15093_v25  ;;  %v9917_v19 = vadd.f32 %v15097_v63, %v15096_v21  ;;  %v15100_v24 = vld [vmem:[#allocation191_spill] sm:$0xff]  ;;  %v15103_v14 = vld [vmem:[#allocation192_spill] sm:$0xff]  ;;  %v15106_v25 = vld [vmem:[#allocation193_spill] sm:$0xff]  ;;  %v9937_v21 = vmul.f32 %v9877_v55, %v9877_v55 }
 0x44a   :  { %15092 = vst [vmem:[#allocation62_spill] sm:$0xff] %v9905_v44  ;;  %v9921_v32 = vadd.f32 %v15100_v24, %v15099_v0  ;;  %v15102_v39 = vld [vmem:[#allocation103_spill] sm:$0xff]  ;;  %v15112_v24 = vld [vmem:[#allocation248_spill] sm:$0xff]  ;;  %v15115_v6 = vld [vmem:[#allocation194_spill] sm:$0xff] }
 0x44b   :  { %15095 = vst [vmem:[#allocation163_spill] sm:$0xff] %v9909_v41  ;;  %15098 = vst [vmem:[#allocation3_spill] sm:$0xff] %v9917_v19  ;;  %v9925_v48 = vadd.f32 %v15103_v14, %v15102_v39  ;;  %v15105_v59 = vld [vmem:[#allocation27_spill] sm:$0xff]  ;;  %v9945_v39 = vmul.f32 %v15112_v24, %v9664_v58  ;;  %v15114_v14 = vld [vmem:[#allocation114_spill] sm:$0xff]  ;;  %v9965_v58 = vpop.permute.xlu0 %2668  ;;  %3226 = vrot.lane.b32.xlu0 %v9937_v21, %s5528_s1 }
 0x44c   :  { %15101 = vst [vmem:[#allocation164_spill] sm:$0xff] %v9921_v32  ;;  %v9929_v41 = vadd.f32 %v15106_v25, %v15105_v59  ;;  %15109 = vst [vmem:[#allocation166_spill] sm:$0xff] %v9937_v21  ;;  %v15110_v63 = vld [vmem:[#allocation247_spill] sm:$0xff]  ;;  %v9949_v59 = vadd.f32 %v15115_v6, %v15114_v14  ;;  %v15117_v25 = vld [vmem:[#allocation29_spill] sm:$0xff] }
 0x44d   :  { %15104 = vst [vmem:[#allocation66_spill] sm:$0xff] %v9925_v48  ;;  %v9941_v0 = vmul.f32 %v15110_v63, %v9682_v23  ;;  %15113 = vst [vmem:[#allocation167_spill] sm:$0xff] %v9945_v39  ;;  %v15120_v32 = vld [vmem:[#allocation118_spill] sm:$0xff]  ;;  %v15121_v48 = vld [vmem:[#allocation196_spill] sm:$0xff]  ;;  %v9963_v63 = vpop.permute.xlu1 %2663 }
 0x44e   :  { %15107 = vst [vmem:[#allocation165_spill] sm:$0xff] %v9929_v41  ;;  %15116 = vst [vmem:[#allocation241_spill] sm:$0xff] %v9949_v59  ;;  %v15118_v41 = vld [vmem:[#allocation195_spill] sm:$0xff]  ;;  %v9957_v55 = vadd.f32 %v15121_v48, %v15120_v32  ;;  %v15123_v52 = vld [vmem:[#allocation197_spill] sm:$0xff] }
 0x44f   :  { %15111 = vst [vmem:[#allocation70_spill] sm:$0xff] %v9941_v0  ;;  %v9953_v1 = vadd.f32 %v15118_v41, %v15117_v25  ;;  %v15122_v19 = vld [vmem:[#allocation31_spill] sm:$0xff]  ;;  %15125 = vst [vmem:[#allocation168_spill] sm:$0xff] %v9963_v63  ;;  %v15127_v24 = vld [vmem:[#allocation122_spill] sm:$0xff]  ;;  %v10001_v40 = vmul.f32 %v9941_v0, %v9941_v0 }
 0x450   :  { %v9961_v23 = vadd.f32 %v15123_v52, %v15122_v19  ;;  %15126 = vst [vmem:[#allocation74_spill] sm:$0xff] %v9965_v58  ;;  %v15128_v44 = vld [vmem:[#allocation198_spill] sm:$0xff]  ;;  %v15129_v14 = vld [vmem:[#allocation33_spill] sm:$0xff]  ;;  %v15130_v59 = vld [vmem:[#allocation199_spill] sm:$0xff] }
 0x451   :  { %15119 = vst [vmem:[#allocation242_spill] sm:$0xff] %v9953_v1  ;;  %v9969_v6 = vadd.f32 %v15128_v44, %v15127_v24  ;;  %v9973_v41 = vadd.f32 %v15130_v59, %v15129_v14  ;;  %v15132_v25 = vld [vmem:[#allocation126_spill] sm:$0xff]  ;;  %v15133_v1 = vld [vmem:[#allocation200_spill] sm:$0xff]  ;;  %v15135_v32 = vld [vmem:[#allocation35_spill] sm:$0xff]  ;;  %3228 = vrot.lane.b32.xlu1 %v10001_v40, %s5528_s1 }
 0x452   :  { %15124 = vst [vmem:[#allocation7_spill] sm:$0xff] %v9961_v23  ;;  %v9977_v48 = vadd.f32 %v15133_v1, %v15132_v25  ;;  %v15136_v52 = vld [vmem:[#allocation201_spill] sm:$0xff]  ;;  %v15138_v44 = vld [vmem:[#allocation130_spill] sm:$0xff]  ;;  %v15142_v14 = vld [vmem:[#allocation203_spill] sm:$0xff] }
 0x453   :  { %15131 = vst [vmem:[#allocation169_spill] sm:$0xff] %v9973_v41  ;;  %v9985_v19 = vadd.f32 %v15136_v52, %v15135_v32  ;;  %v15139_v24 = vld [vmem:[#allocation202_spill] sm:$0xff]  ;;  %v15141_v59 = vld [vmem:[#allocation133_spill] sm:$0xff]  ;;  %v15145_v25 = vld [vmem:[#allocation204_spill] sm:$0xff]  ;;  %v10005_v32 = vmul.f32 %v9945_v39, %v9945_v39 }
 0x454   :  { %15134 = vst [vmem:[#allocation78_spill] sm:$0xff] %v9977_v48  ;;  %v9989_v58 = vadd.f32 %v15139_v24, %v15138_v44  ;;  %v9993_v63 = vadd.f32 %v15142_v14, %v15141_v59  ;;  %v15144_v1 = vld [vmem:[#allocation37_spill] sm:$0xff]  ;;  %15147 = vst [vmem:[#allocation96_spill] sm:$0xff] %v10001_v40  ;;  %v15151_v24 = vld [vmem:[#allocation250_spill] sm:$0xff] }
 0x455   :  { %15137 = vst [vmem:[#allocation88_spill] sm:$0xff] %v9985_v19  ;;  %v9997_v41 = vadd.f32 %v15145_v25, %v15144_v1  ;;  %15148 = vst [vmem:[#allocation77_spill] sm:$0xff] %v10005_v32  ;;  %v15149_v52 = vld [vmem:[#allocation249_spill] sm:$0xff]  ;;  %v10013_v59 = vmul.f32 %v15151_v24, %v9686_v38  ;;  %v15156_v25 = vld [vmem:[#allocation42_spill] sm:$0xff]  ;;  %v10033_v38 = vpop.permute.xlu0 %2678  ;;  %3230 = vrot.lane.b32.xlu0 %v10005_v32, %s5528_s1 }
 0x456   :  { %15140 = vst [vmem:[#allocation10_spill] sm:$0xff] %v9989_v58  ;;  %15143 = vst [vmem:[#allocation4_spill] sm:$0xff] %v9993_v63  ;;  %v10009_v44 = vmul.f32 %v15149_v52, %v9690_v28  ;;  %v15153_v14 = vld [vmem:[#allocation41_spill] sm:$0xff]  ;;  %v15157_v63 = vld [vmem:[#allocation206_spill] sm:$0xff]  ;;  %v10031_v52 = vpop.permute.xlu1 %2673 }
 0x457   :  { %15146 = vst [vmem:[#allocation12_spill] sm:$0xff] %v9997_v41  ;;  %15152 = vst [vmem:[#allocation81_spill] sm:$0xff] %v10013_v59  ;;  %v15154_v21 = vld [vmem:[#allocation205_spill] sm:$0xff]  ;;  %v10021_v0 = vadd.f32 %v15157_v63, %v15156_v25  ;;  %v15160_v19 = vld [vmem:[#allocation207_spill] sm:$0xff] }
 0x458   :  { %15150 = vst [vmem:[#allocation6_spill] sm:$0xff] %v10009_v44  ;;  %v10017_v1 = vadd.f32 %v15154_v21, %v15153_v14  ;;  %v15159_v41 = vld [vmem:[#allocation45_spill] sm:$0xff]  ;;  %v15161_v58 = vld [vmem:[#allocation46_spill] sm:$0xff]  ;;  %v15162_v48 = vld [vmem:[#allocation208_spill] sm:$0xff]  ;;  %v10069_v40 = vmul.f32 %v10009_v44, %v10009_v44 }
 0x459   :  { %15158 = vst [vmem:[#allocation11_spill] sm:$0xff] %v10021_v0  ;;  %v10025_v39 = vadd.f32 %v15160_v19, %v15159_v41  ;;  %v10029_v28 = vadd.f32 %v15162_v48, %v15161_v58  ;;  %15163 = vst [vmem:[#allocation8_spill] sm:$0xff] %v10031_v52  ;;  %v15165_v24 = vld [vmem:[#allocation49_spill] sm:$0xff]  ;;  %v15168_v14 = vld [vmem:[#allocation50_spill] sm:$0xff] }
 0x45a   :  { %15155 = vst [vmem:[#allocation99_spill] sm:$0xff] %v10017_v1  ;;  %15164 = vst [vmem:[#allocation90_spill] sm:$0xff] %v10033_v38  ;;  %v15166_v23 = vld [vmem:[#allocation209_spill] sm:$0xff]  ;;  %v15169_v1 = vld [vmem:[#allocation210_spill] sm:$0xff]  ;;  %3232 = vrot.lane.b32.xlu1 %v10069_v40, %s5528_s1 }
 0x45b   :  { %v10037_v21 = vadd.f32 %v15166_v23, %v15165_v24  ;;  %v10041_v63 = vadd.f32 %v15169_v1, %v15168_v14  ;;  %v15171_v25 = vld [vmem:[#allocation53_spill] sm:$0xff]  ;;  %v15172_v0 = vld [vmem:[#allocation211_spill] sm:$0xff]  ;;  %v15174_v58 = vld [vmem:[#allocation54_spill] sm:$0xff]  ;;  %15186 = vst [vmem:[#allocation15_spill] sm:$0xff] %v10069_v40 }
 0x45c   :  { %v10045_v41 = vadd.f32 %v15172_v0, %v15171_v25  ;;  %v15175_v48 = vld [vmem:[#allocation212_spill] sm:$0xff]  ;;  %v15177_v23 = vld [vmem:[#allocation57_spill] sm:$0xff]  ;;  %v15178_v24 = vld [vmem:[#allocation214_spill] sm:$0xff] }
 0x45d   :  { %15167 = vst [vmem:[#allocation69_spill] sm:$0xff] %v10037_v21  ;;  %15170 = vst [vmem:[#allocation13_spill] sm:$0xff] %v10041_v63  ;;  %v10053_v19 = vadd.f32 %v15175_v48, %v15174_v58  ;;  %v10057_v38 = vadd.f32 %v15178_v24, %v15177_v23  ;;  %v15180_v1 = vld [vmem:[#allocation58_spill] sm:$0xff]  ;;  %v15181_v14 = vld [vmem:[#allocation213_spill] sm:$0xff]  ;;  %v10073_v58 = vmul.f32 %v10013_v59, %v10013_v59 }
 0x45e   :  { %15173 = vst [vmem:[#allocation170_spill] sm:$0xff] %v10045_v41  ;;  %v10061_v52 = vadd.f32 %v15181_v14, %v15180_v1  ;;  %v15183_v0 = vld [vmem:[#allocation64_spill] sm:$0xff]  ;;  %v15188_v48 = vld [vmem:[#allocation251_spill] sm:$0xff]  ;;  %v15220_v40 = vld [vmem:[#allocation61_spill] sm:$0xff] }
 0x45f   :  { %15176 = vst [vmem:[#allocation94_spill] sm:$0xff] %v10053_v19  ;;  %15179 = vst [vmem:[#allocation171_spill] sm:$0xff] %v10057_v38  ;;  %v15184_v25 = vld [vmem:[#allocation216_spill] sm:$0xff]  ;;  %v10077_v23 = vmul.f32 %v15188_v48, %v9702_v35  ;;  %v15192_v14 = vld [vmem:[#allocation59_spill] sm:$0xff]  ;;  %v10099_v48 = vpop.permute.xlu1 %2683  ;;  %3234 = vrot.lane.b32.xlu0 %v10073_v58, %s5528_s1 }
 0x460   :  { %15182 = vst [vmem:[#allocation243_spill] sm:$0xff] %v10061_v52  ;;  %v10065_v41 = vadd.f32 %v15184_v25, %v15183_v0  ;;  %15187 = vst [vmem:[#allocation172_spill] sm:$0xff] %v10073_v58  ;;  %v15190_v24 = vld [vmem:[#allocation252_spill] sm:$0xff]  ;;  %v15193_v32 = vld [vmem:[#allocation215_spill] sm:$0xff] }
 0x461   :  { %15189 = vst [vmem:[#allocation17_spill] sm:$0xff] %v10077_v23  ;;  %v10081_v1 = vmul.f32 %v15190_v24, %v9694_v53  ;;  %v10085_v0 = vadd.f32 %v15193_v32, %v15192_v14  ;;  %v15194_v25 = vld [vmem:[#allocation72_spill] sm:$0xff]  ;;  %v15197_v38 = vld [vmem:[#allocation63_spill] sm:$0xff]  ;;  %v15198_v52 = vld [vmem:[#allocation217_spill] sm:$0xff]  ;;  %v10101_v53 = vpop.permute.xlu0 %2688 }
 0x462   :  { %15185 = vst [vmem:[#allocation244_spill] sm:$0xff] %v10065_v41  ;;  %v15195_v41 = vld [vmem:[#allocation218_spill] sm:$0xff]  ;;  %v10093_v59 = vadd.f32 %v15198_v52, %v15197_v38  ;;  %v15200_v19 = vld [vmem:[#allocation80_spill] sm:$0xff]  ;;  %v15203_v24 = vld [vmem:[#allocation71_spill] sm:$0xff] }
 0x463   :  { %15191 = vst [vmem:[#allocation173_spill] sm:$0xff] %v10081_v1  ;;  %v10089_v44 = vadd.f32 %v15195_v41, %v15194_v25  ;;  %v15201_v21 = vld [vmem:[#allocation220_spill] sm:$0xff]  ;;  %v15204_v63 = vld [vmem:[#allocation219_spill] sm:$0xff]  ;;  %v15206_v14 = vld [vmem:[#allocation253_spill] sm:$0xff] }
 0x464   :  { %15199 = vst [vmem:[#allocation174_spill] sm:$0xff] %v10093_v59  ;;  %v10097_v35 = vadd.f32 %v15201_v21, %v15200_v19  ;;  %v10105_v32 = vadd.f32 %v15204_v63, %v15203_v24  ;;  %v10109_v41 = vmul.f32 %v15206_v14, %v9710_v57  ;;  %v15208_v25 = vld [vmem:[#allocation254_spill] sm:$0xff]  ;;  %v15213_v63 = vld [vmem:[#allocation79_spill] sm:$0xff]  ;;  %v15214_v24 = vld [vmem:[#allocation221_spill] sm:$0xff] }
 0x465   :  { %15196 = vst [vmem:[#allocation67_spill] sm:$0xff] %v10089_v44  ;;  %v10113_v52 = vmul.f32 %v15208_v25, %v9706_v26  ;;  %v15210_v38 = vld [vmem:[#allocation162_spill] sm:$0xff]  ;;  %v15216_v57 = vld [vmem:[#allocation255_spill] sm:$0xff]  ;;  %v15218_v26 = vld [vmem:[#allocation256_spill] sm:$0xff] }
 0x466   :  { %15202 = vst [vmem:[#allocation98_spill] sm:$0xff] %v10097_v35  ;;  %15205 = vst [vmem:[#allocation175_spill] sm:$0xff] %v10105_v32  ;;  %v15211_v21 = vld [vmem:[#allocation222_spill] sm:$0xff]  ;;  %v10125_v35 = vadd.f32 %v15214_v24, %v15213_v63  ;;  %v10129_v14 = vmul.f32 %v15216_v57, %v9722_v36  ;;  %v10133_v25 = vmul.f32 %v15218_v26, %v9718_v9  ;;  %v15221_v32 = vld [vmem:[#allocation224_spill] sm:$0xff] }
 0x467   :  { %15207 = vst [vmem:[#allocation68_spill] sm:$0xff] %v10109_v41  ;;  %15209 = vst [vmem:[#allocation176_spill] sm:$0xff] %v10113_v52  ;;  %v10121_v19 = vadd.f32 %v15211_v21, %v15210_v38  ;;  %v10137_v44 = vadd.f32 %v15221_v32, %v15220_v40  ;;  %v10141_v38 = vmul.f32 %v10077_v23, %v10077_v23  ;;  %v15225_v63 = vld [vmem:[#allocation257_spill] sm:$0xff]  ;;  %v15227_v24 = vld [vmem:[#allocation87_spill] sm:$0xff] }
 0x468   :  { %15215 = vst [vmem:[#allocation177_spill] sm:$0xff] %v10125_v35  ;;  %15217 = vst [vmem:[#allocation75_spill] sm:$0xff] %v10129_v14  ;;  %v10145_v21 = vmul.f32 %v10081_v1, %v10081_v1  ;;  %v10149_v36 = vmul.f32 %v15225_v63, %v9730_v17  ;;  %v15228_v57 = vld [vmem:[#allocation223_spill] sm:$0xff]  ;;  %v15229_v26 = vld [vmem:[#allocation65_spill] sm:$0xff]  ;;  %v10167_v35 = vpop.permute.xlu1 %2693  ;;  %v10169_v17 = vpop.permute.xlu0 %2698 }
 0x469   :  { %15212 = vst [vmem:[#allocation19_spill] sm:$0xff] %v10121_v19  ;;  %15219 = vst [vmem:[#allocation178_spill] sm:$0xff] %v10133_v25  ;;  %v10153_v9 = vadd.f32 %v15228_v57, %v15227_v24  ;;  %v15230_v58 = vld [vmem:[#allocation226_spill] sm:$0xff]  ;;  %v15231_v32 = vld [vmem:[#allocation95_spill] sm:$0xff]  ;;  %3236 = vrot.lane.b32.xlu1 %v10141_v38, %s5528_s1 }
 0x46a   :  { %15222 = vst [vmem:[#allocation102_spill] sm:$0xff] %v10137_v44  ;;  %15223 = vst [vmem:[#allocation179_spill] sm:$0xff] %v10141_v38  ;;  %v10157_v40 = vadd.f32 %v15230_v58, %v15229_v26  ;;  %v15232_v44 = vld [vmem:[#allocation225_spill] sm:$0xff]  ;;  %v15233_v19 = vld [vmem:[#allocation258_spill] sm:$0xff]  ;;  %v10177_v58 = vmul.f32 %v10109_v41, %v10109_v41  ;;  %3238 = vrot.lane.b32.xlu0 %v10145_v21, %s5528_s1  ;;  %v10201_v26 = vmul.f32 %v9172_v5, %v9748_v61 }
 0x46b   :  { %15224 = vst [vmem:[#allocation76_spill] sm:$0xff] %v10145_v21  ;;  %15226 = vst [vmem:[#allocation180_spill] sm:$0xff] %v10149_v36  ;;  %v10161_v23 = vadd.f32 %v15232_v44, %v15231_v32  ;;  %v10165_v1 = vmul.f32 %v15233_v19, %v9726_v7  ;;  %v15235_v63 = vld [vmem:[#allocation104_spill] sm:$0xff]  ;;  %v15236_v59 = vld [vmem:[#allocation227_spill] sm:$0xff]  ;;  %v10181_v44 = vmul.f32 %v10113_v52, %v10113_v52 }
 0x46c   :  { %v10173_v24 = vadd.f32 %v15236_v59, %v15235_v63  ;;  %15237 = vst [vmem:[#allocation181_spill] sm:$0xff] %v10177_v58  ;;  %v10189_v7 = vmul.f32 %v10129_v14, %v10129_v14  ;;  %v10193_v59 = vmul.f32 %v10133_v25, %v10133_v25  ;;  %v15241_v19 = vld [vmem:[#allocation259_spill] sm:$0xff]  ;;  %15243 = vst [vmem:[#allocation24_spill] sm:$0xff] %v10201_v26  ;;  %v15291_v14 = vld [vmem:[#allocation286_spill] sm:$0xff] }
 0x46d   :  { %15234 = vst [vmem:[#allocation21_spill] sm:$0xff] %v10165_v1  ;;  %15238 = vst [vmem:[#allocation83_spill] sm:$0xff] %v10181_v44  ;;  %v10197_v57 = vmul.f32 %v15241_v19, %v9752_v15  ;;  %v10205_v32 = vmul.f32 %v10149_v36, %v10149_v36  ;;  %v10209_v63 = vmul.f32 %v9174_v43, %v9760_v11  ;;  %v10235_v11 = vpop.permute.xlu1 %2703  ;;  %3240 = vrot.lane.b32.xlu1 %v10177_v58, %s5528_s1  ;;  %v15289_v36 = vld [vmem:[#allocation285_spill] sm:$0xff]  ;;  %v15302_v52 = vld [vmem:[#allocation3_spill] sm:$0xff] }
 0x46e   :  { %15239 = vst [vmem:[#allocation182_spill] sm:$0xff] %v10189_v7  ;;  %15240 = vst [vmem:[#allocation245_spill] sm:$0xff] %v10193_v59  ;;  %v10213_v25 = vmul.f32 %v9194_v12, %v9756_v13  ;;  %v10217_v15 = vmul.f32 %v9196_v49, %v9772_v31  ;;  %v10221_v5 = vmul.f32 %v10165_v1, %v10165_v1  ;;  %v10237_v49 = vpop.permute.xlu0 %2708  ;;  %3242 = vrot.lane.b32.xlu0 %v10181_v44, %s5528_s1  ;;  %v15286_v1 = vld [vmem:[#allocation282_spill] sm:$0xff]  ;;  %v15303_v41 = vld [vmem:[#allocation293_spill] sm:$0xff] }
 0x46f   :  { %15242 = vst [vmem:[#allocation246_spill] sm:$0xff] %v10197_v57  ;;  %15244 = vst [vmem:[#allocation183_spill] sm:$0xff] %v10205_v32  ;;  %v10225_v61 = vmul.f32 %v9220_v47, %v9768_v22  ;;  %v10229_v43 = vmul.f32 %v9222_v45, %v9784_v30  ;;  %v10233_v12 = vmul.f32 %v9246_v51, %v9776_v3  ;;  %v15323_v44 = vld [vmem:[#allocation165_spill] sm:$0xff]  ;;  %v15326_v21 = vld [vmem:[#allocation234_spill] sm:$0xff] }
 0x470   :  { %15245 = vst [vmem:[#allocation84_spill] sm:$0xff] %v10209_v63  ;;  %15246 = vst [vmem:[#allocation184_spill] sm:$0xff] %v10213_v25  ;;  %v10241_v13 = vmul.f32 %v9248_v34, %v9792_v4  ;;  %v10245_v47 = vmul.f32 %v9272_v42, %v9788_v37  ;;  %v10249_v45 = vmul.f32 %v9274_v27, %v9814_v60  ;;  %v15324_v58 = vld [vmem:[#allocation233_spill] sm:$0xff]  ;;  %v15332_v38 = vld [vmem:[#allocation236_spill] sm:$0xff] }
 0x471   :  { %15247 = vst [vmem:[#allocation106_spill] sm:$0xff] %v10217_v15  ;;  %15248 = vst [vmem:[#allocation185_spill] sm:$0xff] %v10221_v5  ;;  %v10257_v51 = vmul.f32 %v10197_v57, %v10197_v57  ;;  %v10261_v34 = vmul.f32 %v10201_v26, %v10201_v26  ;;  %v10265_v42 = vmul.f32 %v9298_v16, %v9796_v62  ;;  %v10303_v31 = vpop.permute.xlu1 %2713  ;;  %3244 = vrot.lane.b32.xlu1 %v10189_v7, %s5528_s1  ;;  %v15282_v26 = vld [vmem:[#allocation47_spill] sm:$0xff]  ;;  %v15283_v57 = vld [vmem:[#allocation281_spill] sm:$0xff] }
 0x472   :  { %15249 = vst [vmem:[#allocation91_spill] sm:$0xff] %v10225_v61  ;;  %15250 = vst [vmem:[#allocation186_spill] sm:$0xff] %v10229_v43  ;;  %v10269_v27 = vmul.f32 %v9300_v29, %v9822_v8  ;;  %v10273_v60 = vmul.f32 %v10209_v63, %v10209_v63  ;;  %v10277_v4 = vmul.f32 %v10213_v25, %v10213_v25  ;;  %3246 = vrot.lane.b32.xlu0 %v10193_v59, %s5528_s1  ;;  %v15276_v25 = vld [vmem:[#allocation240_spill] sm:$0xff]  ;;  %v15277_v63 = vld [vmem:[#allocation277_spill] sm:$0xff] }
 0x473   :  { %15251 = vst [vmem:[#allocation105_spill] sm:$0xff] %v10233_v12  ;;  %15252 = vst [vmem:[#allocation187_spill] sm:$0xff] %v10241_v13  ;;  %v10281_v37 = vmul.f32 %v10217_v15, %v10217_v15  ;;  %v10285_v16 = vmul.f32 %v9324_v20, %v9818_v50  ;;  %v10289_v29 = vmul.f32 %v10225_v61, %v10225_v61  ;;  %v10305_v20 = vpop.permute.xlu0 %2718  ;;  %v15273_v61 = vld [vmem:[#allocation156_spill] sm:$0xff]  ;;  %v15274_v15 = vld [vmem:[#allocation274_spill] sm:$0xff] }
 0x474   :  { %15253 = vst [vmem:[#allocation92_spill] sm:$0xff] %v10245_v47  ;;  %15254 = vst [vmem:[#allocation188_spill] sm:$0xff] %v10249_v45  ;;  %v10293_v8 = vmul.f32 %v10229_v43, %v10229_v43  ;;  %v10297_v62 = vmul.f32 %v10233_v12, %v10233_v12  ;;  %v10301_v22 = vmul.f32 %v9326_v2, %v9834_v54  ;;  %v15270_v12 = vld [vmem:[#allocation239_spill] sm:$0xff]  ;;  %v15271_v43 = vld [vmem:[#allocation273_spill] sm:$0xff] }
 0x475   :  { %15255 = vst [vmem:[#allocation100_spill] sm:$0xff] %v10257_v51  ;;  %15256 = vst [vmem:[#allocation189_spill] sm:$0xff] %v10261_v34  ;;  %v10309_v50 = vmul.f32 %v10241_v13, %v10241_v13  ;;  %v10313_v3 = vmul.f32 %v10245_v47, %v10245_v47  ;;  %v10317_v30 = vmul.f32 %v10249_v45, %v10249_v45  ;;  %v15267_v45 = vld [vmem:[#allocation270_spill] sm:$0xff]  ;;  %3248 = vrot.lane.b32.xlu1 %v10205_v32, %s5528_s1  ;;  %v15317_v32 = vld [vmem:[#allocation231_spill] sm:$0xff] }
 0x476   :  { %15257 = vst [vmem:[#allocation26_spill] sm:$0xff] %v10265_v42  ;;  %15258 = vst [vmem:[#allocation190_spill] sm:$0xff] %v10269_v27  ;;  %v10325_v2 = vmul.f32 %v10265_v42, %v10265_v42  ;;  %v10329_v54 = vmul.f32 %v10269_v27, %v10269_v27  ;;  %v10333_v19 = vmul.f32 %v9350_v46, %v9826_v10  ;;  %3250 = vrot.lane.b32.xlu0 %v10221_v5, %s5528_s1  ;;  %v15321_v7 = vld [vmem:[#allocation232_spill] sm:$0xff] }
 0x477   :  { %15259 = vst [vmem:[#allocation109_spill] sm:$0xff] %v10273_v60  ;;  %15260 = vst [vmem:[#allocation191_spill] sm:$0xff] %v10277_v4  ;;  %v10337_v47 = vmul.f32 %v15267_v45, %v9842_v56  ;;  %v10341_v13 = vmul.f32 %v10285_v16, %v10285_v16  ;;  %v10345_v42 = vmul.f32 %v15271_v43, %v15270_v12  ;;  %v15279_v56 = vld [vmem:[#allocation159_spill] sm:$0xff]  ;;  %v15280_v45 = vld [vmem:[#allocation278_spill] sm:$0xff] }
 0x478   :  { %15261 = vst [vmem:[#allocation103_spill] sm:$0xff] %v10281_v37  ;;  %15262 = vst [vmem:[#allocation192_spill] sm:$0xff] %v10285_v16  ;;  %v10349_v27 = vmul.f32 %v15274_v15, %v15273_v61  ;;  %v10353_v46 = vmul.f32 %v15277_v63, %v15276_v25  ;;  %v10357_v10 = vmul.f32 %v10301_v22, %v10301_v22  ;;  %v15285_v12 = vld [vmem:[#allocation160_spill] sm:$0xff]  ;;  %v10371_v61 = vpop.permute.xlu1 %2723  ;;  %v10373_v25 = vpop.permute.xlu0 %2728 }
 0x479   :  { %15263 = vst [vmem:[#allocation27_spill] sm:$0xff] %v10289_v29  ;;  %15264 = vst [vmem:[#allocation193_spill] sm:$0xff] %v10301_v22  ;;  %v10361_v16 = vmul.f32 %v15280_v45, %v15279_v56  ;;  %v10365_v43 = vmul.f32 %v15283_v57, %v15282_v26  ;;  %v10369_v15 = vmul.f32 %v15286_v1, %v15285_v12  ;;  %v15288_v63 = vld [vmem:[#allocation56_spill] sm:$0xff]  ;;  %v15293_v45 = vld [vmem:[#allocation289_spill] sm:$0xff]  ;;  %3252 = vrot.lane.b32.xlu1 %v10257_v51, %s5528_s1 }
 0x47a   :  { %15265 = vst [vmem:[#allocation247_spill] sm:$0xff] %v10329_v54  ;;  %15266 = vst [vmem:[#allocation248_spill] sm:$0xff] %v10333_v19  ;;  %v10377_v22 = vmul.f32 %v15289_v36, %v15288_v63  ;;  %v10381_v56 = vmul.f32 %v15291_v14, %v9893_v18  ;;  %v10385_v57 = vmul.f32 %v15293_v45, %v9889_v33  ;;  %v15296_v18 = vld [vmem:[#allocation62_spill] sm:$0xff]  ;;  %v15299_v33 = vld [vmem:[#allocation60_spill] sm:$0xff]  ;;  %3254 = vrot.lane.b32.xlu0 %v10261_v34, %s5528_s1 }
 0x47b   :  { %15268 = vst [vmem:[#allocation114_spill] sm:$0xff] %v10337_v47  ;;  %15269 = vst [vmem:[#allocation194_spill] sm:$0xff] %v10341_v13  ;;  %v10393_v1 = vmul.f32 %v10333_v19, %v10333_v19  ;;  %v10397_v36 = vmul.f32 %v10337_v47, %v10337_v47  ;;  %v15297_v14 = vld [vmem:[#allocation290_spill] sm:$0xff]  ;;  %v15300_v12 = vld [vmem:[#allocation292_spill] sm:$0xff]  ;;  %v10409_v45 = vmul.f32 %v10345_v42, %v10345_v42 }
 0x47c   :  { %15272 = vst [vmem:[#allocation29_spill] sm:$0xff] %v10345_v42  ;;  %15275 = vst [vmem:[#allocation195_spill] sm:$0xff] %v10349_v27  ;;  %v10401_v26 = vmul.f32 %v15297_v14, %v15296_v18  ;;  %v10405_v63 = vmul.f32 %v15300_v12, %v15299_v33  ;;  %v10413_v19 = vmul.f32 %v10349_v27, %v10349_v27  ;;  %v15305_v27 = vld [vmem:[#allocation163_spill] sm:$0xff]  ;;  %v15306_v42 = vld [vmem:[#allocation229_spill] sm:$0xff]  ;;  %v10439_v5 = vpop.permute.xlu1 %2733 }
 0x47d   :  { %15278 = vst [vmem:[#allocation118_spill] sm:$0xff] %v10353_v46  ;;  %15281 = vst [vmem:[#allocation196_spill] sm:$0xff] %v10361_v16  ;;  %v10417_v47 = vmul.f32 %v10353_v46, %v10353_v46  ;;  %v10421_v18 = vmul.f32 %v15303_v41, %v15302_v52  ;;  %v10425_v14 = vmul.f32 %v10361_v16, %v10361_v16  ;;  %v10441_v41 = vpop.permute.xlu0 %2738  ;;  %v15320_v34 = vld [vmem:[#allocation241_spill] sm:$0xff]  ;;  %3256 = vrot.lane.b32.xlu1 %v10273_v60, %s5528_s1 }
 0x47e   :  { %15284 = vst [vmem:[#allocation31_spill] sm:$0xff] %v10365_v43  ;;  %15287 = vst [vmem:[#allocation197_spill] sm:$0xff] %v10369_v15  ;;  %v10429_v33 = vmul.f32 %v10365_v43, %v10365_v43  ;;  %v10433_v12 = vmul.f32 %v10369_v15, %v10369_v15  ;;  %v10437_v46 = vmul.f32 %v15306_v42, %v15305_v27  ;;  %3258 = vrot.lane.b32.xlu0 %v10277_v4, %s5528_s1  ;;  %v15354_v4 = vld [vmem:[#allocation4_spill] sm:$0xff]  ;;  %v15355_v60 = vld [vmem:[#allocation157_spill] sm:$0xff] }
 0x47f   :  { %15290 = vst [vmem:[#allocation122_spill] sm:$0xff] %v10377_v22  ;;  %15292 = vst [vmem:[#allocation198_spill] sm:$0xff] %v10381_v56  ;;  %v10445_v52 = vmul.f32 %v10377_v22, %v10377_v22  ;;  %v10449_v43 = vmul.f32 %v10381_v56, %v10381_v56  ;;  %v10453_v15 = vmul.f32 %v10385_v57, %v10385_v57  ;;  %v15313_v56 = vld [vmem:[#allocation66_spill] sm:$0xff] }
 0x480   :  { %15294 = vst [vmem:[#allocation33_spill] sm:$0xff] %v10385_v57  ;;  %15295 = vst [vmem:[#allocation199_spill] sm:$0xff] %v10393_v1  ;;  %v10461_v42 = vmul.f32 %v10401_v26, %v10401_v26  ;;  %v10465_v27 = vmul.f32 %v10405_v63, %v10405_v63  ;;  %v15314_v22 = vld [vmem:[#allocation230_spill] sm:$0xff]  ;;  %v15316_v57 = vld [vmem:[#allocation164_spill] sm:$0xff]  ;;  %v10477_v51 = vmul.f32 %v10421_v18, %v10421_v18 }
 0x481   :  { %15298 = vst [vmem:[#allocation126_spill] sm:$0xff] %v10401_v26  ;;  %15301 = vst [vmem:[#allocation200_spill] sm:$0xff] %v10405_v63  ;;  %v10469_v16 = vmul.f32 %v15314_v22, %v15313_v56  ;;  %v10473_v59 = vmul.f32 %v15317_v32, %v15316_v57  ;;  %v10481_v26 = vmul.f32 %v15321_v7, %v15320_v34  ;;  %v15329_v56 = vld [vmem:[#allocation242_spill] sm:$0xff]  ;;  %v15330_v57 = vld [vmem:[#allocation235_spill] sm:$0xff]  ;;  %3260 = vrot.lane.b32.xlu1 %v10281_v37, %s5528_s1 }
 0x482   :  { %15304 = vst [vmem:[#allocation35_spill] sm:$0xff] %v10421_v18  ;;  %15307 = vst [vmem:[#allocation201_spill] sm:$0xff] %v10437_v46  ;;  %v10485_v63 = vmul.f32 %v15324_v58, %v15323_v44  ;;  %v10489_v22 = vmul.f32 %v15326_v21, %v9957_v55  ;;  %v10493_v32 = vmul.f32 %v10437_v46, %v10437_v46  ;;  %v15334_v34 = vld [vmem:[#allocation7_spill] sm:$0xff]  ;;  %v10507_v44 = vpop.permute.xlu1 %2743  ;;  %v10509_v55 = vpop.permute.xlu0 %2748  ;;  %v15337_v21 = vld [vmem:[#allocation78_spill] sm:$0xff]  ;;  %3262 = vrot.lane.b32.xlu0 %v10289_v29, %s5528_s1 }
 0x483   :  { %15308 = vst [vmem:[#allocation130_spill] sm:$0xff] %v10445_v52  ;;  %15309 = vst [vmem:[#allocation202_spill] sm:$0xff] %v10449_v43  ;;  %v10497_v18 = vmul.f32 %v15330_v57, %v15329_v56  ;;  %v10501_v7 = vmul.f32 %v15332_v38, %v9969_v6  ;;  %v15343_v57 = vld [vmem:[#allocation10_spill] sm:$0xff]  ;;  %v10529_v38 = vmul.f32 %v10469_v16, %v10469_v16  ;;  %v15374_v29 = vld [vmem:[#allocation168_spill] sm:$0xff] }
 0x484   :  { %15310 = vst [vmem:[#allocation133_spill] sm:$0xff] %v10453_v15  ;;  %15311 = vst [vmem:[#allocation203_spill] sm:$0xff] %v10461_v42  ;;  %v15341_v42 = vld [vmem:[#allocation151_spill] sm:$0xff]  ;;  %v15344_v15 = vld [vmem:[#allocation129_spill] sm:$0xff] }
 0x485   :  { %15312 = vst [vmem:[#allocation37_spill] sm:$0xff] %v10465_v27  ;;  %15315 = vst [vmem:[#allocation204_spill] sm:$0xff] %v10469_v16  ;;  %v15338_v27 = vld [vmem:[#allocation238_spill] sm:$0xff]  ;;  %v10521_v6 = vmul.f32 %v15344_v15, %v15343_v57  ;;  %v15349_v15 = vld [vmem:[#allocation12_spill] sm:$0xff]  ;;  %v10545_v57 = vmul.f32 %v10481_v26, %v10481_v26  ;;  %v10549_v16 = vmul.f32 %v10485_v63, %v10485_v63  ;;  %3264 = vrot.lane.b32.xlu1 %v10293_v8, %s5528_s1 }
 0x486   :  { %15318 = vst [vmem:[#allocation249_spill] sm:$0xff] %v10473_v59  ;;  %15319 = vst [vmem:[#allocation250_spill] sm:$0xff] %v10477_v51  ;;  %v15335_v51 = vld [vmem:[#allocation237_spill] sm:$0xff]  ;;  %v10513_v46 = vmul.f32 %v15338_v27, %v15337_v21  ;;  %v15347_v27 = vld [vmem:[#allocation152_spill] sm:$0xff]  ;;  %3266 = vrot.lane.b32.xlu0 %v10297_v62, %s5528_s1 }
 0x487   :  { %15322 = vst [vmem:[#allocation41_spill] sm:$0xff] %v10481_v26  ;;  %15325 = vst [vmem:[#allocation205_spill] sm:$0xff] %v10485_v63  ;;  %v10505_v58 = vmul.f32 %v15335_v51, %v15334_v34  ;;  %v10533_v51 = vmul.f32 %v10473_v59, %v10473_v59  ;;  %v15350_v34 = vld [vmem:[#allocation39_spill] sm:$0xff]  ;;  %v10553_v59 = vmul.f32 %v10489_v22, %v10489_v22  ;;  %v15361_v26 = vld [vmem:[#allocation48_spill] sm:$0xff] }
 0x488   :  { %15327 = vst [vmem:[#allocation42_spill] sm:$0xff] %v10489_v22  ;;  %15328 = vst [vmem:[#allocation206_spill] sm:$0xff] %v10493_v32  ;;  %v15340_v32 = vld [vmem:[#allocation169_spill] sm:$0xff]  ;;  %v10541_v21 = vmul.f32 %v15350_v34, %v15349_v15  ;;  %v10565_v15 = vmul.f32 %v10501_v7, %v10501_v7  ;;  %v15360_v63 = vld [vmem:[#allocation11_spill] sm:$0xff] }
 0x489   :  { %15331 = vst [vmem:[#allocation45_spill] sm:$0xff] %v10497_v18  ;;  %15333 = vst [vmem:[#allocation207_spill] sm:$0xff] %v10501_v7  ;;  %v10517_v56 = vmul.f32 %v15341_v42, %v15340_v32  ;;  %v15346_v42 = vld [vmem:[#allocation88_spill] sm:$0xff]  ;;  %v10569_v34 = vmul.f32 %v10505_v58, %v10505_v58  ;;  %v10573_v22 = vmul.f32 %v15361_v26, %v15360_v63  ;;  %3268 = vrot.lane.b32.xlu1 %v10309_v50, %s5528_s1 }
 0x48a   :  { %15336 = vst [vmem:[#allocation46_spill] sm:$0xff] %v10505_v58  ;;  %15339 = vst [vmem:[#allocation208_spill] sm:$0xff] %v10513_v46  ;;  %v10537_v32 = vmul.f32 %v15347_v27, %v15346_v42  ;;  %v10557_v42 = vmul.f32 %v15355_v60, %v15354_v4  ;;  %v10561_v27 = vmul.f32 %v10497_v18, %v10497_v18  ;;  %v10577_v60 = vpop.permute.xlu0 %2758  ;;  %3270 = vrot.lane.b32.xlu0 %v10313_v3, %s5528_s1 }
 0x48b   :  { %15342 = vst [vmem:[#allocation49_spill] sm:$0xff] %v10517_v56  ;;  %15345 = vst [vmem:[#allocation209_spill] sm:$0xff] %v10521_v6  ;;  %v10581_v4 = vmul.f32 %v10513_v46, %v10513_v46  ;;  %v10585_v7 = vmul.f32 %v10517_v56, %v10517_v56  ;;  %v10589_v58 = vmul.f32 %v10521_v6, %v10521_v6  ;;  %v15368_v56 = vld [vmem:[#allocation99_spill] sm:$0xff]  ;;  %v15371_v6 = vld [vmem:[#allocation2_spill] sm:$0xff] }
 0x48c   :  { %15348 = vst [vmem:[#allocation50_spill] sm:$0xff] %v10537_v32  ;;  %15351 = vst [vmem:[#allocation210_spill] sm:$0xff] %v10541_v21  ;;  %v10597_v26 = vmul.f32 %v10537_v32, %v10537_v32  ;;  %v10601_v63 = vmul.f32 %v10541_v21, %v10541_v21  ;;  %v15369_v46 = vld [vmem:[#allocation55_spill] sm:$0xff]  ;;  %v10613_v37 = vmul.f32 %v10557_v42, %v10557_v42 }
 0x48d   :  { %15352 = vst [vmem:[#allocation53_spill] sm:$0xff] %v10549_v16  ;;  %15353 = vst [vmem:[#allocation211_spill] sm:$0xff] %v10553_v59  ;;  %v10575_v59 = vpop.permute.xlu1 %2753  ;;  %v10605_v18 = vmul.f32 %v15369_v46, %v15368_v56  ;;  %v10617_v32 = vmul.f32 %v15374_v29, %v10025_v39  ;;  %v15383_v56 = vld [vmem:[#allocation94_spill] sm:$0xff]  ;;  %v15388_v29 = vld [vmem:[#allocation243_spill] sm:$0xff]  ;;  %3272 = vrot.lane.b32.xlu1 %v10317_v30, %s5528_s1 }
 0x48e   :  { %15356 = vst [vmem:[#allocation54_spill] sm:$0xff] %v10557_v42  ;;  %15357 = vst [vmem:[#allocation212_spill] sm:$0xff] %v10561_v27  ;;  %3274 = vrot.lane.b32.xlu0 %v10325_v2, %s5528_s1 }
 0x48f   :  { %15358 = vst [vmem:[#allocation57_spill] sm:$0xff] %v10565_v15  ;;  %15359 = vst [vmem:[#allocation214_spill] sm:$0xff] %v10569_v34  ;;  %v3139_v34 = vpop.permute.xlu0 %3138  ;;  %v15393_v15 = vld [vmem:[#allocation111_spill] sm:$0xff] }
 0x490   :  { %15362 = vst [vmem:[#allocation58_spill] sm:$0xff] %v10573_v22  ;;  %15363 = vst [vmem:[#allocation213_spill] sm:$0xff] %v10581_v4  ;;  %v15380_v4 = vld [vmem:[#allocation8_spill] sm:$0xff] }
 0x491   :  { %15364 = vst [vmem:[#allocation64_spill] sm:$0xff] %v10585_v7  ;;  %15365 = vst [vmem:[#allocation216_spill] sm:$0xff] %v10589_v58  ;;  %v10609_v58 = vmul.f32 %v15371_v6, %v10029_v28  ;;  %v15377_v7 = vld [vmem:[#allocation74_spill] sm:$0xff]  ;;  %v10629_v28 = vmul.f32 %v10573_v22, %v10573_v22  ;;  %v15392_v22 = vld [vmem:[#allocation108_spill] sm:$0xff]  ;;  %3276 = vrot.lane.b32.xlu1 %v10329_v54, %s5528_s1 }
 0x492   :  { %15366 = vst [vmem:[#allocation251_spill] sm:$0xff] %v10597_v26  ;;  %15367 = vst [vmem:[#allocation252_spill] sm:$0xff] %v10601_v63  ;;  %v15376_v26 = vld [vmem:[#allocation13_spill] sm:$0xff]  ;;  %v15384_v6 = vld [vmem:[#allocation90_spill] sm:$0xff]  ;;  %3278 = vrot.lane.b32.xlu0 %v10341_v13, %s5528_s1 }
 0x493   :  { %15370 = vst [vmem:[#allocation59_spill] sm:$0xff] %v10605_v18  ;;  %15372 = vst [vmem:[#allocation215_spill] sm:$0xff] %v10609_v58  ;;  %v10621_v21 = vmul.f32 %v15377_v7, %v15376_v26  ;;  %v15379_v63 = vld [vmem:[#allocation69_spill] sm:$0xff]  ;;  %v10633_v42 = vmul.f32 %v15384_v6, %v15383_v56  ;;  %v10641_v7 = vmul.f32 %v10101_v53, %v15388_v29  ;;  %v3137_v26 = vpop.permute.xlu1 %3136  ;;  %v15424_v13 = vld [vmem:[#allocation123_spill] sm:$0xff] }
 0x494   :  { %15373 = vst [vmem:[#allocation72_spill] sm:$0xff] %v10613_v37  ;;  %15375 = vst [vmem:[#allocation218_spill] sm:$0xff] %v10617_v32  ;;  %v10625_v46 = vmul.f32 %v15380_v4, %v15379_v63  ;;  %v15386_v37 = vld [vmem:[#allocation170_spill] sm:$0xff]  ;;  %v15390_v4 = vld [vmem:[#allocation171_spill] sm:$0xff]  ;;  %v10651_v56 = vadd.f32 %v3139_v34, %v15393_v15  ;;  %v10667_v53 = vmul.f32 %v10169_v17, %v10085_v0 }
 0x495   :  { %15378 = vst [vmem:[#allocation63_spill] sm:$0xff] %v10621_v21  ;;  %15382 = vst [vmem:[#allocation80_spill] sm:$0xff] %v10629_v28  ;;  %v10637_v39 = vmul.f32 %v10099_v48, %v15386_v37  ;;  %v10645_v63 = vmul.f32 %v10167_v35, %v15390_v4  ;;  %v10648_v28 = vadd.f32 %v3137_v26, %v15392_v22  ;;  %v15395_v37 = vld [vmem:[#allocation244_spill] sm:$0xff]  ;;  %v3143_v26 = vpop.permute.xlu0 %3142  ;;  %3280 = vrot.lane.b32.xlu1 %v10357_v10, %s5528_s1 }
 0x496   :  { %15381 = vst [vmem:[#allocation217_spill] sm:$0xff] %v10625_v46  ;;  %15385 = vst [vmem:[#allocation220_spill] sm:$0xff] %v10633_v42  ;;  %v10659_v48 = vmul.f32 %v10605_v18, %v10605_v18  ;;  %v10663_v35 = vmul.f32 %v10609_v58, %v10609_v58  ;;  %v10671_v22 = vmul.f32 %v10235_v11, %v15395_v37  ;;  %v15397_v37 = vld [vmem:[#allocation120_spill] sm:$0xff]  ;;  %v15405_v58 = vld [vmem:[#allocation98_spill] sm:$0xff]  ;;  %vm3645_vm3 = vcmp.eq.f32.partialorder %v10651_v56, inf }
 0x497   :  { %15387 = vst [vmem:[#allocation71_spill] sm:$0xff] %v10637_v39  ;;  %15389 = vst [vmem:[#allocation219_spill] sm:$0xff] %v10641_v7  ;;  %v10675_v15 = vmul.f32 %v10617_v32, %v10617_v32  ;;  %v10679_v34 = vmul.f32 %v10621_v21, %v10621_v21  ;;  %v10683_v6 = vmul.f32 %v10625_v46, %v10625_v46  ;;  %5274 = vrsqrt.f32 %v10648_v28  ;;  %v3141_v29 = vpop.permute.xlu1 %3140  ;;  %v15407_v18 = vld [vmem:[#allocation177_spill] sm:$0xff] }
 0x498   :  { %15391 = vst [vmem:[#allocation253_spill] sm:$0xff] %v10645_v63  ;;  %15394 = vst [vmem:[#allocation254_spill] sm:$0xff] %v10667_v53  ;;  %v10688_v0 = vmul.f32 %v10633_v42, %v10633_v42  ;;  %v10692_v17 = vmul.f32 %v10637_v39, %v10637_v39  ;;  %v10696_v11 = vmul.f32 %v10641_v7, %v10641_v7  ;;  %5276 = vrsqrt.f32 %v10651_v56  ;;  %v15398_v42 = vld [vmem:[#allocation115_spill] sm:$0xff]  ;;  %v15399_v39 = vld [vmem:[#allocation174_spill] sm:$0xff] }
 0x499   :  { %15396 = vst [vmem:[#allocation162_spill] sm:$0xff] %v10671_v22  ;;  %v10701_v4 = vmul.f32 %v10645_v63, %v10645_v63  ;;  %v10704_v46 = vadd.f32 %v3141_v29, %v15397_v37  ;;  %v10707_v21 = vadd.f32 %v3143_v26, %v15398_v42  ;;  %v10715_v7 = vmul.f32 %v10667_v53, %v10667_v53  ;;  %v15401_v42 = vld [vmem:[#allocation67_spill] sm:$0xff] }
 0x49a   :  { %v10719_v63 = vmul.f32 %v10671_v22, %v10671_v22  ;;  %v10723_v29 = vmul.f32 %v10237_v49, %v15399_v39  ;;  %v10727_v26 = vmul.f32 %v10303_v31, %v15401_v42  ;;  %v15403_v37 = vld [vmem:[#allocation175_spill] sm:$0xff]  ;;  %v10735_v53 = vmul.f32 %v10371_v61, %v15405_v58  ;;  %v3147_v58 = vpop.permute.xlu0 %3146  ;;  %3282 = vrot.lane.b32.xlu0 %v10393_v1, %s5528_s1 }
 0x49b   :  { %v10731_v32 = vmul.f32 %v10305_v20, %v15403_v37  ;;  %v10739_v22 = vmul.f32 %v10373_v25, %v15407_v18  ;;  %5278 = vrsqrt.f32 %v10704_v46  ;;  %v15409_v49 = vld [vmem:[#allocation19_spill] sm:$0xff]  ;;  %v10748_v31 = vmul.f32 %v10441_v41, %v10153_v9  ;;  %v15412_v20 = vld [vmem:[#allocation102_spill] sm:$0xff]  ;;  %v3145_v61 = vpop.permute.xlu1 %3144  ;;  %3284 = vrot.lane.b32.xlu1 %v10397_v36, %s5528_s1 }
 0x49c   :  { %15400 = vst [vmem:[#allocation222_spill] sm:$0xff] %v10723_v29  ;;  %15402 = vst [vmem:[#allocation79_spill] sm:$0xff] %v10727_v26  ;;  %v10744_v39 = vmul.f32 %v10439_v5, %v15409_v49  ;;  %v10752_v42 = vmul.f32 %v10507_v44, %v15412_v20  ;;  %5280 = vrsqrt.f32 %v10707_v21  ;;  %v10757_v25 = vmul.f32 %v10509_v55, %v10161_v23  ;;  %v15415_v18 = vld [vmem:[#allocation14_spill] sm:$0xff]  ;;  %v15416_v5 = vld [vmem:[#allocation119_spill] sm:$0xff] }
 0x49d   :  { %15404 = vst [vmem:[#allocation221_spill] sm:$0xff] %v10731_v32  ;;  %15406 = vst [vmem:[#allocation255_spill] sm:$0xff] %v10735_v53  ;;  %v10760_v37 = vadd.f32 %v3145_v61, %v15415_v18  ;;  %v10763_v49 = vadd.f32 %v3147_v58, %v15416_v5  ;;  %v10771_v9 = vmul.f32 %v10723_v29, %v10723_v29  ;;  %vm3638_vm1 = vcmp.eq.f32.partialorder %v10648_v28, inf }
 0x49e   :  { %15408 = vst [vmem:[#allocation256_spill] sm:$0xff] %v10739_v22  ;;  %15410 = vst [vmem:[#allocation61_spill] sm:$0xff] %v10744_v39  ;;  %v10775_v23 = vmul.f32 %v10727_v26, %v10727_v26  ;;  %v10779_v41 = vmul.f32 %v10575_v59, %v10157_v40  ;;  %v10783_v44 = vmul.f32 %v10577_v60, %v10173_v24  ;;  %v3151_v58 = vpop.permute.xlu0 %3150  ;;  %vm3640_vm2 = vcmp.eq.f32.partialorder %v10648_v28, 0.0 }
 0x49f   :  { %15411 = vst [vmem:[#allocation224_spill] sm:$0xff] %v10748_v31  ;;  %15413 = vst [vmem:[#allocation257_spill] sm:$0xff] %v10752_v42  ;;  %v10787_v55 = vmul.f32 %v10731_v32, %v10731_v32  ;;  %v10791_v20 = vmul.f32 %v10735_v53, %v10735_v53  ;;  %v10795_v61 = vmul.f32 %v10739_v22, %v10739_v22  ;;  %5282 = vrsqrt.f32 %v10760_v37  ;;  %v3149_v60 = vpop.permute.xlu1 %3148  ;;  %v15419_v22 = vld [vmem:[#allocation16_spill] sm:$0xff] }
 0x4a0   :  { %15414 = vst [vmem:[#allocation87_spill] sm:$0xff] %v10757_v25  ;;  %15417 = vst [vmem:[#allocation223_spill] sm:$0xff] %v10779_v41  ;;  %v10800_v40 = vmul.f32 %v10744_v39, %v10744_v39  ;;  %v10804_v24 = vmul.f32 %v10748_v31, %v10748_v31  ;;  %v10808_v59 = vmul.f32 %v10752_v42, %v10752_v42  ;;  %5284 = vrsqrt.f32 %v10763_v49  ;;  %v15420_v53 = vld [vmem:[#allocation124_spill] sm:$0xff] }
 0x4a1   :  { %15418 = vst [vmem:[#allocation65_spill] sm:$0xff] %v10783_v44  ;;  %v5275_v18 = vpop.eup %5274  ;;  %v10813_v5 = vmul.f32 %v10757_v25, %v10757_v25  ;;  %v10816_v39 = vadd.f32 %v3149_v60, %v15419_v22  ;;  %v10819_v32 = vadd.f32 %v3151_v58, %v15420_v53  ;;  %v10827_v31 = vmul.f32 %v10779_v41, %v10779_v41 }
 0x4a2   :  { %v5277_v42 = vpop.eup %5276  ;;  %v10831_v25 = vmul.f32 %v10783_v44, %v10783_v44  ;;  %v3637_v22 = vmul.f32 %v5275_v18, %v10648_v28  ;;  %v3641_v53 = vand.u32 2147483648, %v10648_v28  ;;  %v3155_v41 = vpop.permute.xlu0 %3154  ;;  %vm3647_vm4 = vcmp.eq.f32.partialorder %v10651_v56, 0.0  ;;  %v15423_v44 = vld [vmem:[#allocation85_spill] sm:$0xff]  ;;  %3286 = vrot.lane.b32.xlu0 %v10409_v45, %s5528_s1  ;;  %3288 = vrot.lane.b32.xlu1 %v10413_v19, %s5528_s1 }
 0x4a3   :  { %15421 = vst [vmem:[#allocation226_spill] sm:$0xff] %v10827_v31  ;;  %5286 = vrsqrt.f32 %v10816_v39  ;;  %v3644_v60 = vmul.f32 %v5277_v42, %v10651_v56  ;;  %v3153_v58 = vpop.permute.xlu1 %3152  ;;  %v10847_v54 = vadd.f32 %v3155_v41, %v15424_v13  ;;  %vm3652_vm5 = vcmp.eq.f32.partialorder %v10704_v46, inf }
 0x4a4   :  { %15422 = vst [vmem:[#allocation95_spill] sm:$0xff] %v10831_v25  ;;  %5288 = vrsqrt.f32 %v10819_v32  ;;  %v3639_v26 = vsel %vm3638_vm1, %v10648_v28, %v3637_v22  ;;  %v10844_v29 = vadd.f32 %v3153_v58, %v15423_v44  ;;  %v3648_v28 = vand.u32 2147483648, %v10651_v56 }
 0x4a5   :  { %v5279_v18 = vpop.eup %5278  ;;  %v3642_v42 = vsel %vm3640_vm2, %v3641_v53, %v3639_v26  ;;  %v3646_v44 = vsel %vm3645_vm3, %v10651_v56, %v3644_v60  ;;  %vm3654_vm6 = vcmp.eq.f32.partialorder %v10704_v46, 0.0  ;;  %v3655_v26 = vand.u32 2147483648, %v10704_v46 }
 0x4a6   :  { %v5281_v22 = vpop.eup %5280  ;;  %4512 = vst.msk [vmem:[%s13404_s2] sm:$0xff] %vm4511_vm0, %v3642_v42  ;;  %v3651_v13 = vmul.f32 %v5279_v18, %v10704_v46  ;;  %5290 = vrsqrt.f32 %v10844_v29  ;;  %v3649_v41 = vsel %vm3647_vm4, %v3648_v28, %v3646_v44  ;;  %v3159_v1 = vpop.permute.xlu0 %3158  ;;  %vm3659_vm7 = vcmp.eq.f32.partialorder %v10707_v21, inf  ;;  %v15425_v18 = vld [vmem:[#allocation18_spill] sm:$0xff]  ;;  %v15426_v28 = vld [vmem:[#allocation128_spill] sm:$0xff]  ;;  %3290 = vrot.lane.b32.xlu0 %v10417_v47, %s5528_s1  ;;  %3292 = vrot.lane.b32.xlu1 %v10425_v14, %s5528_s1 }
 0x4a7   :  { %v3658_v53 = vmul.f32 %v5281_v22, %v10707_v21  ;;  %5292 = vrsqrt.f32 %v10847_v54  ;;  %v3157_v58 = vpop.permute.xlu1 %3156  ;;  %4513 = vst.msk [vmem:[%s13404_s2 + $0x8] sm:$0xff] %vm4511_vm0, %v3649_v41  ;;  %vm3661_vm8 = vcmp.eq.f32.partialorder %v10707_v21, 0.0  ;;  %v10877_v22 = vadd.f32 %v3159_v1, %v15426_v28 }
 0x4a8   :  { %v3653_v56 = vsel %vm3652_vm5, %v10704_v46, %v3651_v13  ;;  %v10874_v42 = vadd.f32 %v3157_v58, %v15425_v18  ;;  %v3662_v13 = vand.u32 2147483648, %v10707_v21  ;;  %vm3666_vm9 = vcmp.eq.f32.partialorder %v10760_v37, inf }
 0x4a9   :  { %v5283_v60 = vpop.eup %5282  ;;  %v3656_v44 = vsel %vm3654_vm6, %v3655_v26, %v3653_v56  ;;  %v3660_v1 = vsel %vm3659_vm7, %v10707_v21, %v3658_v53  ;;  %vm3668_vm10 = vcmp.eq.f32.partialorder %v10760_v37, 0.0  ;;  %v3669_v26 = vand.u32 2147483648, %v10760_v37 }
 0x4aa   :  { %v5285_v41 = vpop.eup %5284  ;;  %4514 = vst.msk [vmem:[%s13404_s2 + $0x10] sm:$0xff] %vm4511_vm0, %v3656_v44  ;;  %v3665_v58 = vmul.f32 %v5283_v60, %v10760_v37  ;;  %5294 = vrsqrt.f32 %v10874_v42  ;;  %v3663_v46 = vsel %vm3661_vm8, %v3662_v13, %v3660_v1  ;;  %v3163_v28 = vpop.permute.xlu0 %3162  ;;  %vm3673_vm11 = vcmp.eq.f32.partialorder %v10763_v49, inf  ;;  %v15427_v60 = vld [vmem:[#allocation89_spill] sm:$0xff]  ;;  %v15428_v13 = vld [vmem:[#allocation127_spill] sm:$0xff]  ;;  %3294 = vrot.lane.b32.xlu0 %v10429_v33, %s5528_s1  ;;  %3296 = vrot.lane.b32.xlu1 %v10433_v12, %s5528_s1 }
 0x4ab   :  { %v3672_v56 = vmul.f32 %v5285_v41, %v10763_v49  ;;  %5296 = vrsqrt.f32 %v10877_v22  ;;  %v3161_v18 = vpop.permute.xlu1 %3160  ;;  %4515 = vst.msk [vmem:[%s13404_s2 + $0x18] sm:$0xff] %vm4511_vm0, %v3663_v46  ;;  %vm3675_vm12 = vcmp.eq.f32.partialorder %v10763_v49, 0.0  ;;  %v10909_v41 = vadd.f32 %v3163_v28, %v15428_v13 }
 0x4ac   :  { %v3667_v21 = vsel %vm3666_vm9, %v10760_v37, %v3665_v58  ;;  %v10906_v44 = vadd.f32 %v3161_v18, %v15427_v60  ;;  %v3676_v58 = vand.u32 2147483648, %v10763_v49  ;;  %vm3680_vm13 = vcmp.eq.f32.partialorder %v10816_v39, inf }
 0x4ad   :  { %v5287_v53 = vpop.eup %5286  ;;  %v3670_v1 = vsel %vm3668_vm10, %v3669_v26, %v3667_v21  ;;  %v3674_v18 = vsel %vm3673_vm11, %v10763_v49, %v3672_v56  ;;  %vm3682_vm14 = vcmp.eq.f32.partialorder %v10816_v39, 0.0  ;;  %v3683_v26 = vand.u32 2147483648, %v10816_v39 }
 0x4ae   :  { %v5289_v46 = vpop.eup %5288  ;;  %4516 = vst.msk [vmem:[%s13404_s2 + $0x20] sm:$0xff] %vm4511_vm0, %v3670_v1  ;;  %v3679_v28 = vmul.f32 %v5287_v53, %v10816_v39  ;;  %5298 = vrsqrt.f32 %v10906_v44  ;;  %v3677_v37 = vsel %vm3675_vm12, %v3676_v58, %v3674_v18  ;;  %v3167_v13 = vpop.permute.xlu0 %3166  ;;  %vm3687_vm15 = vcmp.eq.f32.partialorder %v10819_v32, inf  ;;  %v15429_v53 = vld [vmem:[#allocation20_spill] sm:$0xff]  ;;  %3298 = vrot.lane.b32.xlu0 %v10445_v52, %s5528_s1  ;;  %3300 = vrot.lane.b32.xlu1 %v10449_v43, %s5528_s1 }
 0x4af   :  { %v3686_v21 = vmul.f32 %v5289_v46, %v10819_v32  ;;  %5300 = vrsqrt.f32 %v10909_v41  ;;  %v3165_v60 = vpop.permute.xlu1 %3164  ;;  %4517 = vst.msk [vmem:[%s13404_s2 + $0x28] sm:$0xff] %vm4511_vm0, %v3677_v37  ;;  %vm3689_vm1 = vcmp.eq.f32.partialorder %v10819_v32, 0.0  ;;  %v15430_v58 = vld [vmem:[#allocation132_spill] sm:$0xff]  ;;  %vm3694_vm2 = vcmp.eq.f32.partialorder %v10844_v29, inf }
 0x4b0   :  { %v3681_v49 = vsel %vm3680_vm13, %v10816_v39, %v3679_v28  ;;  %v5291_v56 = vpop.eup %5290  ;;  %v10938_v1 = vadd.f32 %v3165_v60, %v15429_v53  ;;  %v10941_v46 = vadd.f32 %v3167_v13, %v15430_v58  ;;  %v3690_v28 = vand.u32 2147483648, %v10819_v32 }
 0x4b1   :  { %v3684_v18 = vsel %vm3682_vm14, %v3683_v26, %v3681_v49  ;;  %v5293_v37 = vpop.eup %5292  ;;  %v3688_v60 = vsel %vm3687_vm15, %v10819_v32, %v3686_v21  ;;  %v3693_v13 = vmul.f32 %v5291_v56, %v10844_v29  ;;  %vm3696_vm3 = vcmp.eq.f32.partialorder %v10844_v29, 0.0  ;;  %v15431_v56 = vld [vmem:[#allocation93_spill] sm:$0xff] }
 0x4b2   :  { %4518 = vst.msk [vmem:[%s13404_s2 + $0x30] sm:$0xff] %vm4511_vm0, %v3684_v18  ;;  %5302 = vrsqrt.f32 %v10938_v1  ;;  %v3691_v39 = vsel %vm3689_vm1, %v3690_v28, %v3688_v60  ;;  %v3697_v26 = vand.u32 2147483648, %v10844_v29  ;;  %v3700_v49 = vmul.f32 %v5293_v37, %v10847_v54  ;;  %v3171_v58 = vpop.permute.xlu0 %3170  ;;  %v15432_v28 = vld [vmem:[#allocation131_spill] sm:$0xff] }
 0x4b3   :  { %5304 = vrsqrt.f32 %v10941_v46  ;;  %v3169_v53 = vpop.permute.xlu1 %3168  ;;  %4519 = vst.msk [vmem:[%s13404_s2 + $0x38] sm:$0xff] %vm4511_vm0, %v3691_v39  ;;  %v3695_v32 = vsel %vm3694_vm2, %v10844_v29, %v3693_v13  ;;  %vm3701_vm4 = vcmp.eq.f32.partialorder %v10847_v54, inf  ;;  %vm3703_vm5 = vcmp.eq.f32.partialorder %v10847_v54, 0.0 }
 0x4b4   :  { %v5295_v21 = vpop.eup %5294  ;;  %v10970_v18 = vadd.f32 %v3169_v53, %v15431_v56  ;;  %v10973_v37 = vadd.f32 %v3171_v58, %v15432_v28  ;;  %v3698_v60 = vsel %vm3696_vm3, %v3697_v26, %v3695_v32  ;;  %v3704_v13 = vand.u32 2147483648, %v10847_v54 }
 0x4b5   :  { %v5297_v39 = vpop.eup %5296  ;;  %4520 = vst.msk [vmem:[%s13404_s2 + $0x40] sm:$0xff] %vm4511_vm0, %v3698_v60  ;;  %v3702_v53 = vsel %vm3701_vm4, %v10847_v54, %v3700_v49  ;;  %v3707_v58 = vmul.f32 %v5295_v21, %v10874_v42  ;;  %vm3708_vm6 = vcmp.eq.f32.partialorder %v10874_v42, inf  ;;  %vm3710_vm7 = vcmp.eq.f32.partialorder %v10874_v42, 0.0  ;;  %v15433_v21 = vld [vmem:[#allocation22_spill] sm:$0xff] }
 0x4b6   :  { %5306 = vrsqrt.f32 %v10970_v18  ;;  %v3705_v29 = vsel %vm3703_vm5, %v3704_v13, %v3702_v53  ;;  %v3711_v26 = vand.u32 2147483648, %v10874_v42  ;;  %v3714_v32 = vmul.f32 %v5297_v39, %v10877_v22  ;;  %v3175_v28 = vpop.permute.xlu0 %3174  ;;  %v15434_v13 = vld [vmem:[#allocation134_spill] sm:$0xff]  ;;  %v15435_v53 = vld [vmem:[#allocation133_spill] sm:$0xff] }
 0x4b7   :  { %5308 = vrsqrt.f32 %v10973_v37  ;;  %v3173_v56 = vpop.permute.xlu1 %3172  ;;  %4521 = vst.msk [vmem:[%s13404_s2 + $0x48] sm:$0xff] %vm4511_vm0, %v3705_v29  ;;  %v3709_v54 = vsel %vm3708_vm6, %v10874_v42, %v3707_v58  ;;  %vm3715_vm8 = vcmp.eq.f32.partialorder %v10877_v22, inf  ;;  %vm3717_vm9 = vcmp.eq.f32.partialorder %v10877_v22, 0.0  ;;  %3302 = vrot.lane.b32.xlu0 %v15435_v53, %s5528_s1  ;;  %v15439_v53 = vld [vmem:[#allocation37_spill] sm:$0xff] }
 0x4b8   :  { %v5299_v49 = vpop.eup %5298  ;;  %v11002_v60 = vadd.f32 %v3173_v56, %v15433_v21  ;;  %v11005_v39 = vadd.f32 %v3175_v28, %v15434_v13  ;;  %v3712_v58 = vsel %vm3710_vm7, %v3711_v26, %v3709_v54  ;;  %v3718_v29 = vand.u32 2147483648, %v10877_v22 }
 0x4b9   :  { %v5301_v52 = vpop.eup %5300  ;;  %4522 = vst.msk [vmem:[%s13404_s2 + $0x50] sm:$0xff] %vm4511_vm0, %v3712_v58  ;;  %v3716_v56 = vsel %vm3715_vm8, %v10877_v22, %v3714_v32  ;;  %v3721_v28 = vmul.f32 %v5299_v49, %v10906_v44  ;;  %vm3722_vm10 = vcmp.eq.f32.partialorder %v10906_v44, inf  ;;  %vm3724_vm11 = vcmp.eq.f32.partialorder %v10906_v44, 0.0  ;;  %v15436_v49 = vld [vmem:[#allocation97_spill] sm:$0xff] }
 0x4ba   :  { %5310 = vrsqrt.f32 %v11002_v60  ;;  %v3719_v42 = vsel %vm3717_vm9, %v3718_v29, %v3716_v56  ;;  %v3725_v26 = vand.u32 2147483648, %v10906_v44  ;;  %v3728_v54 = vmul.f32 %v5301_v52, %v10909_v41  ;;  %v3179_v13 = vpop.permute.xlu0 %3178  ;;  %v15437_v52 = vld [vmem:[#allocation135_spill] sm:$0xff] }
 0x4bb   :  { %5312 = vrsqrt.f32 %v11005_v39  ;;  %v3177_v21 = vpop.permute.xlu1 %3176  ;;  %4523 = vst.msk [vmem:[%s13404_s2 + $0x58] sm:$0xff] %vm4511_vm0, %v3719_v42  ;;  %v3723_v22 = vsel %vm3722_vm10, %v10906_v44, %v3721_v28  ;;  %vm3729_vm12 = vcmp.eq.f32.partialorder %v10909_v41, inf  ;;  %vm3731_vm13 = vcmp.eq.f32.partialorder %v10909_v41, 0.0  ;;  %v15438_v56 = vld [vmem:[#allocation203_spill] sm:$0xff]  ;;  %3306 = vrot.lane.b32.xlu0 %v15439_v53, %s5528_s1  ;;  %v15443_v53 = vld [vmem:[#allocation206_spill] sm:$0xff] }
 0x4bc   :  { %v5303_v32 = vpop.eup %5302  ;;  %v11034_v58 = vadd.f32 %v3177_v21, %v15436_v49  ;;  %v11037_v29 = vadd.f32 %v3179_v13, %v15437_v52  ;;  %3304 = vrot.lane.b32.xlu1 %v15438_v56, %s5528_s1  ;;  %v3726_v28 = vsel %vm3724_vm11, %v3725_v26, %v3723_v22  ;;  %v3732_v42 = vand.u32 2147483648, %v10909_v41 }
 0x4bd   :  { %v5305_v43 = vpop.eup %5304  ;;  %4524 = vst.msk [vmem:[%s13404_s2 + $0x60] sm:$0xff] %vm4511_vm0, %v3726_v28  ;;  %v3730_v21 = vsel %vm3729_vm12, %v10909_v41, %v3728_v54  ;;  %v3735_v13 = vmul.f32 %v5303_v32, %v10938_v1  ;;  %vm3736_vm14 = vcmp.eq.f32.partialorder %v10938_v1, inf  ;;  %vm3738_vm15 = vcmp.eq.f32.partialorder %v10938_v1, 0.0  ;;  %v15440_v32 = vld [vmem:[#allocation136_spill] sm:$0xff] }
 0x4be   :  { %5314 = vrsqrt.f32 %v11034_v58  ;;  %v3733_v44 = vsel %vm3731_vm13, %v3732_v42, %v3730_v21  ;;  %v3739_v26 = vand.u32 2147483648, %v10938_v1  ;;  %v3742_v22 = vmul.f32 %v5305_v43, %v10941_v46  ;;  %v3183_v52 = vpop.permute.xlu0 %3182  ;;  %v15441_v43 = vld [vmem:[#allocation137_spill] sm:$0xff]  ;;  %v15442_v21 = vld [vmem:[#allocation250_spill] sm:$0xff] }
 0x4bf   :  { %5316 = vrsqrt.f32 %v11037_v29  ;;  %v3181_v49 = vpop.permute.xlu1 %3180  ;;  %4525 = vst.msk [vmem:[%s13404_s2 + $0x68] sm:$0xff] %vm4511_vm0, %v3733_v44  ;;  %v3737_v41 = vsel %vm3736_vm14, %v10938_v1, %v3735_v13  ;;  %vm3743_vm1 = vcmp.eq.f32.partialorder %v10941_v46, inf  ;;  %vm3745_vm2 = vcmp.eq.f32.partialorder %v10941_v46, 0.0  ;;  %3310 = vrot.lane.b32.xlu0 %v15443_v53, %s5528_s1 }
 0x4c0   :  { %v5307_v54 = vpop.eup %5306  ;;  %v11066_v28 = vadd.f32 %v3181_v49, %v15440_v32  ;;  %v11069_v42 = vadd.f32 %v3183_v52, %v15441_v43  ;;  %3308 = vrot.lane.b32.xlu1 %v15442_v21, %s5528_s1  ;;  %v3740_v13 = vsel %vm3738_vm15, %v3739_v26, %v3737_v41  ;;  %v3746_v44 = vand.u32 2147483648, %v10941_v46 }
 0x4c1   :  { %v5309_v56 = vpop.eup %5308  ;;  %4526 = vst.msk [vmem:[%s13404_s2 + $0x70] sm:$0xff] %vm4511_vm0, %v3740_v13  ;;  %v3744_v49 = vsel %vm3743_vm1, %v10941_v46, %v3742_v22  ;;  %v3749_v52 = vmul.f32 %v5307_v54, %v10970_v18  ;;  %vm3750_vm3 = vcmp.eq.f32.partialorder %v10970_v18, inf  ;;  %vm3752_vm4 = vcmp.eq.f32.partialorder %v10970_v18, 0.0  ;;  %v15444_v54 = vld [vmem:[#allocation138_spill] sm:$0xff] }
 0x4c2   :  { %5318 = vrsqrt.f32 %v11066_v28  ;;  %v3747_v1 = vsel %vm3745_vm2, %v3746_v44, %v3744_v49  ;;  %v3753_v26 = vand.u32 2147483648, %v10970_v18  ;;  %v3756_v41 = vmul.f32 %v5309_v56, %v10973_v37  ;;  %v3187_v43 = vpop.permute.xlu0 %3186  ;;  %v15445_v56 = vld [vmem:[#allocation101_spill] sm:$0xff] }
 0x4c3   :  { %5320 = vrsqrt.f32 %v11069_v42  ;;  %v3185_v32 = vpop.permute.xlu1 %3184  ;;  %4527 = vst.msk [vmem:[%s13404_s2 + $0x78] sm:$0xff] %vm4511_vm0, %v3747_v1  ;;  %v3751_v46 = vsel %vm3750_vm3, %v10970_v18, %v3749_v52  ;;  %vm3757_vm5 = vcmp.eq.f32.partialorder %v10973_v37, inf  ;;  %vm3759_vm6 = vcmp.eq.f32.partialorder %v10973_v37, 0.0  ;;  %3314 = vrot.lane.b32.xlu0 %v10533_v51, %s5528_s1 }
 0x4c4   :  { %v5311_v22 = vpop.eup %5310  ;;  %v11098_v13 = vadd.f32 %v3185_v32, %v15444_v54  ;;  %v11101_v44 = vadd.f32 %v3187_v43, %v15445_v56  ;;  %3312 = vrot.lane.b32.xlu1 %v10529_v38, %s5528_s1  ;;  %v3754_v49 = vsel %vm3752_vm4, %v3753_v26, %v3751_v46  ;;  %v3760_v52 = vand.u32 2147483648, %v10973_v37 }
 0x4c5   :  { %v5313_v1 = vpop.eup %5312  ;;  %4528 = vst.msk [vmem:[%s13404_s2 + $0x80] sm:$0xff] %vm4511_vm0, %v3754_v49  ;;  %v3758_v32 = vsel %vm3757_vm5, %v10973_v37, %v3756_v41  ;;  %v3763_v43 = vmul.f32 %v5311_v22, %v11002_v60  ;;  %vm3764_vm7 = vcmp.eq.f32.partialorder %v11002_v60, inf  ;;  %vm3766_vm8 = vcmp.eq.f32.partialorder %v11002_v60, 0.0  ;;  %v15446_v22 = vld [vmem:[#allocation23_spill] sm:$0xff] }
 0x4c6   :  { %5322 = vrsqrt.f32 %v11098_v13  ;;  %v3761_v18 = vsel %vm3759_vm6, %v3760_v52, %v3758_v32  ;;  %v3767_v26 = vand.u32 2147483648, %v11002_v60  ;;  %v3770_v46 = vmul.f32 %v5313_v1, %v11005_v39  ;;  %v3191_v56 = vpop.permute.xlu0 %3190  ;;  %v15447_v52 = vld [vmem:[#allocation110_spill] sm:$0xff] }
 0x4c7   :  { %5324 = vrsqrt.f32 %v11101_v44  ;;  %v3189_v54 = vpop.permute.xlu1 %3188  ;;  %4529 = vst.msk [vmem:[%s13404_s2 + $0x88] sm:$0xff] %vm4511_vm0, %v3761_v18  ;;  %v3765_v37 = vsel %vm3764_vm7, %v11002_v60, %v3763_v43  ;;  %vm3771_vm9 = vcmp.eq.f32.partialorder %v11005_v39, inf  ;;  %vm3773_vm10 = vcmp.eq.f32.partialorder %v11005_v39, 0.0  ;;  %3318 = vrot.lane.b32.xlu0 %v10549_v16, %s5528_s1 }
 0x4c8   :  { %v5315_v41 = vpop.eup %5314  ;;  %v11130_v49 = vadd.f32 %v3189_v54, %v15446_v22  ;;  %v11133_v1 = vadd.f32 %v3191_v56, %v15447_v52  ;;  %3316 = vrot.lane.b32.xlu1 %v10545_v57, %s5528_s1  ;;  %v3768_v32 = vsel %vm3766_vm8, %v3767_v26, %v3765_v37  ;;  %v3774_v43 = vand.u32 2147483648, %v11005_v39 }
 0x4c9   :  { %v5317_v18 = vpop.eup %5316  ;;  %4530 = vst.msk [vmem:[%s13404_s2 + $0x90] sm:$0xff] %vm4511_vm0, %v3768_v32  ;;  %v3772_v54 = vsel %vm3771_vm9, %v11005_v39, %v3770_v46  ;;  %v3777_v56 = vmul.f32 %v5315_v41, %v11034_v58  ;;  %vm3778_vm11 = vcmp.eq.f32.partialorder %v11034_v58, inf  ;;  %vm3780_vm12 = vcmp.eq.f32.partialorder %v11034_v58, 0.0  ;;  %v15448_v41 = vld [vmem:[#allocation141_spill] sm:$0xff] }
 0x4ca   :  { %5326 = vrsqrt.f32 %v11130_v49  ;;  %v3775_v60 = vsel %vm3773_vm10, %v3774_v43, %v3772_v54  ;;  %v3781_v26 = vand.u32 2147483648, %v11034_v58  ;;  %v3784_v37 = vmul.f32 %v5317_v18, %v11037_v29  ;;  %v3195_v52 = vpop.permute.xlu0 %3194  ;;  %v15449_v43 = vld [vmem:[#allocation28_spill] sm:$0xff]  ;;  %v15450_v54 = vld [vmem:[#allocation211_spill] sm:$0xff] }
 0x4cb   :  { %5328 = vrsqrt.f32 %v11133_v1  ;;  %v3193_v22 = vpop.permute.xlu1 %3192  ;;  %4531 = vst.msk [vmem:[%s13404_s2 + $0x98] sm:$0xff] %vm4511_vm0, %v3775_v60  ;;  %v3779_v39 = vsel %vm3778_vm11, %v11034_v58, %v3777_v56  ;;  %vm3785_vm13 = vcmp.eq.f32.partialorder %v11037_v29, inf  ;;  %vm3787_vm14 = vcmp.eq.f32.partialorder %v11037_v29, 0.0  ;;  %3322 = vrot.lane.b32.xlu0 %v10561_v27, %s5528_s1  ;;  %v15454_v27 = vld [vmem:[#allocation214_spill] sm:$0xff] }
 0x4cc   :  { %v5319_v46 = vpop.eup %5318  ;;  %v11162_v32 = vadd.f32 %v3193_v22, %v15448_v41  ;;  %v11165_v18 = vadd.f32 %v3195_v52, %v15449_v43  ;;  %3320 = vrot.lane.b32.xlu1 %v15450_v54, %s5528_s1  ;;  %v3782_v56 = vsel %vm3780_vm12, %v3781_v26, %v3779_v39  ;;  %v3788_v60 = vand.u32 2147483648, %v11037_v29 }
 0x4cd   :  { %v5321_v16 = vpop.eup %5320  ;;  %4532 = vst.msk [vmem:[%s13404_s2 + $0xa0] sm:$0xff] %vm4511_vm0, %v3782_v56  ;;  %v3786_v22 = vsel %vm3785_vm13, %v11037_v29, %v3784_v37  ;;  %v3791_v52 = vmul.f32 %v5319_v46, %v11066_v28  ;;  %vm3792_vm15 = vcmp.eq.f32.partialorder %v11066_v28, inf  ;;  %vm3794_vm1 = vcmp.eq.f32.partialorder %v11066_v28, 0.0  ;;  %v15451_v46 = vld [vmem:[#allocation143_spill] sm:$0xff] }
 0x4ce   :  { %5330 = vrsqrt.f32 %v11162_v32  ;;  %v3789_v58 = vsel %vm3787_vm14, %v3788_v60, %v3786_v22  ;;  %v3795_v26 = vand.u32 2147483648, %v11066_v28  ;;  %v3798_v39 = vmul.f32 %v5321_v16, %v11069_v42  ;;  %v3199_v43 = vpop.permute.xlu0 %3198  ;;  %v15452_v16 = vld [vmem:[#allocation113_spill] sm:$0xff] }
 0x4cf   :  { %5332 = vrsqrt.f32 %v11165_v18  ;;  %v3197_v41 = vpop.permute.xlu1 %3196  ;;  %4533 = vst.msk [vmem:[%s13404_s2 + $0xa8] sm:$0xff] %vm4511_vm0, %v3789_v58  ;;  %v3793_v29 = vsel %vm3792_vm15, %v11066_v28, %v3791_v52  ;;  %vm3799_vm2 = vcmp.eq.f32.partialorder %v11069_v42, inf  ;;  %vm3801_vm3 = vcmp.eq.f32.partialorder %v11069_v42, 0.0  ;;  %v15453_v22 = vld [vmem:[#allocation57_spill] sm:$0xff]  ;;  %3326 = vrot.lane.b32.xlu0 %v15454_v27, %s5528_s1  ;;  %v15458_v27 = vld [vmem:[#allocation64_spill] sm:$0xff] }
 0x4d0   :  { %v5323_v37 = vpop.eup %5322  ;;  %v11194_v56 = vadd.f32 %v3197_v41, %v15451_v46  ;;  %v11197_v60 = vadd.f32 %v3199_v43, %v15452_v16  ;;  %3324 = vrot.lane.b32.xlu1 %v15453_v22, %s5528_s1  ;;  %v3796_v52 = vsel %vm3794_vm1, %v3795_v26, %v3793_v29  ;;  %v3802_v58 = vand.u32 2147483648, %v11069_v42 }
 0x4d1   :  { %v5325_v54 = vpop.eup %5324  ;;  %4534 = vst.msk [vmem:[%s13404_s2 + $0xb0] sm:$0xff] %vm4511_vm0, %v3796_v52  ;;  %v3800_v41 = vsel %vm3799_vm2, %v11069_v42, %v3798_v39  ;;  %v3805_v43 = vmul.f32 %v5323_v37, %v11098_v13  ;;  %vm3806_vm4 = vcmp.eq.f32.partialorder %v11098_v13, inf  ;;  %vm3808_vm5 = vcmp.eq.f32.partialorder %v11098_v13, 0.0  ;;  %v15455_v37 = vld [vmem:[#allocation145_spill] sm:$0xff] }
 0x4d2   :  { %5334 = vrsqrt.f32 %v11194_v56  ;;  %v3803_v28 = vsel %vm3801_vm3, %v3802_v58, %v3800_v41  ;;  %v3809_v26 = vand.u32 2147483648, %v11098_v13  ;;  %v3812_v29 = vmul.f32 %v5325_v54, %v11101_v44  ;;  %v3203_v16 = vpop.permute.xlu0 %3202  ;;  %v15456_v54 = vld [vmem:[#allocation117_spill] sm:$0xff] }
 0x4d3   :  { %5336 = vrsqrt.f32 %v11197_v60  ;;  %v3201_v46 = vpop.permute.xlu1 %3200  ;;  %4535 = vst.msk [vmem:[%s13404_s2 + $0xb8] sm:$0xff] %vm4511_vm0, %v3803_v28  ;;  %v3807_v42 = vsel %vm3806_vm4, %v11098_v13, %v3805_v43  ;;  %vm3813_vm6 = vcmp.eq.f32.partialorder %v11101_v44, inf  ;;  %vm3815_vm7 = vcmp.eq.f32.partialorder %v11101_v44, 0.0  ;;  %v15457_v41 = vld [vmem:[#allocation213_spill] sm:$0xff]  ;;  %3330 = vrot.lane.b32.xlu0 %v15458_v27, %s5528_s1  ;;  %v15462_v27 = vld [vmem:[#allocation251_spill] sm:$0xff] }
 0x4d4   :  { %v5327_v39 = vpop.eup %5326  ;;  %v11226_v52 = vadd.f32 %v3201_v46, %v15455_v37  ;;  %v11229_v58 = vadd.f32 %v3203_v16, %v15456_v54  ;;  %3328 = vrot.lane.b32.xlu1 %v15457_v41, %s5528_s1  ;;  %v3810_v43 = vsel %vm3808_vm5, %v3809_v26, %v3807_v42  ;;  %v3816_v28 = vand.u32 2147483648, %v11101_v44 }
 0x4d5   :  { %v5329_v22 = vpop.eup %5328  ;;  %4536 = vst.msk [vmem:[%s13404_s2 + $0xc0] sm:$0xff] %vm4511_vm0, %v3810_v43  ;;  %v3814_v46 = vsel %vm3813_vm6, %v11101_v44, %v3812_v29  ;;  %v3819_v16 = vmul.f32 %v5327_v39, %v11130_v49  ;;  %vm3820_vm8 = vcmp.eq.f32.partialorder %v11130_v49, inf  ;;  %vm3822_vm9 = vcmp.eq.f32.partialorder %v11130_v49, 0.0  ;;  %v15459_v39 = vld [vmem:[#allocation147_spill] sm:$0xff] }
 0x4d6   :  { %5338 = vrsqrt.f32 %v11226_v52  ;;  %v3817_v13 = vsel %vm3815_vm7, %v3816_v28, %v3814_v46  ;;  %v3823_v26 = vand.u32 2147483648, %v11130_v49  ;;  %v3826_v42 = vmul.f32 %v5329_v22, %v11133_v1  ;;  %v3207_v54 = vpop.permute.xlu0 %3206  ;;  %v15460_v22 = vld [vmem:[#allocation121_spill] sm:$0xff]  ;;  %v15461_v46 = vld [vmem:[#allocation216_spill] sm:$0xff] }
 0x4d7   :  { %5340 = vrsqrt.f32 %v11229_v58  ;;  %v3205_v37 = vpop.permute.xlu1 %3204  ;;  %4537 = vst.msk [vmem:[%s13404_s2 + $0xc8] sm:$0xff] %vm4511_vm0, %v3817_v13  ;;  %v3821_v44 = vsel %vm3820_vm8, %v11130_v49, %v3819_v16  ;;  %vm3827_vm10 = vcmp.eq.f32.partialorder %v11133_v1, inf  ;;  %vm3829_vm11 = vcmp.eq.f32.partialorder %v11133_v1, 0.0  ;;  %3334 = vrot.lane.b32.xlu0 %v15462_v27, %s5528_s1  ;;  %v15466_v27 = vld [vmem:[#allocation72_spill] sm:$0xff] }
 0x4d8   :  { %v5331_v29 = vpop.eup %5330  ;;  %v11258_v43 = vadd.f32 %v3205_v37, %v15459_v39  ;;  %v11261_v28 = vadd.f32 %v3207_v54, %v15460_v22  ;;  %3332 = vrot.lane.b32.xlu1 %v15461_v46, %s5528_s1  ;;  %v3824_v16 = vsel %vm3822_vm9, %v3823_v26, %v3821_v44  ;;  %v3830_v13 = vand.u32 2147483648, %v11133_v1 }
 0x4d9   :  { %v5333_v41 = vpop.eup %5332  ;;  %4538 = vst.msk [vmem:[%s13404_s2 + $0xd0] sm:$0xff] %vm4511_vm0, %v3824_v16  ;;  %v3828_v37 = vsel %vm3827_vm10, %v11133_v1, %v3826_v42  ;;  %v3833_v54 = vmul.f32 %v5331_v29, %v11162_v32  ;;  %vm3834_vm12 = vcmp.eq.f32.partialorder %v11162_v32, inf  ;;  %vm3836_vm13 = vcmp.eq.f32.partialorder %v11162_v32, 0.0  ;;  %v15463_v29 = vld [vmem:[#allocation149_spill] sm:$0xff] }
 0x4da   :  { %5342 = vrsqrt.f32 %v11258_v43  ;;  %v3831_v49 = vsel %vm3829_vm11, %v3830_v13, %v3828_v37  ;;  %v3837_v26 = vand.u32 2147483648, %v11162_v32  ;;  %v3840_v44 = vmul.f32 %v5333_v41, %v11165_v18  ;;  %v3211_v22 = vpop.permute.xlu0 %3210  ;;  %v15464_v41 = vld [vmem:[#allocation125_spill] sm:$0xff]  ;;  %v15465_v37 = vld [vmem:[#allocation252_spill] sm:$0xff] }
 0x4db   :  { %5344 = vrsqrt.f32 %v11261_v28  ;;  %v3209_v39 = vpop.permute.xlu1 %3208  ;;  %4539 = vst.msk [vmem:[%s13404_s2 + $0xd8] sm:$0xff] %vm4511_vm0, %v3831_v49  ;;  %v3835_v1 = vsel %vm3834_vm12, %v11162_v32, %v3833_v54  ;;  %vm3841_vm14 = vcmp.eq.f32.partialorder %v11165_v18, inf  ;;  %vm3843_vm15 = vcmp.eq.f32.partialorder %v11165_v18, 0.0  ;;  %3338 = vrot.lane.b32.xlu0 %v15466_v27, %s5528_s1 }
 0x4dc   :  { %v5335_v42 = vpop.eup %5334  ;;  %v11290_v16 = vadd.f32 %v3209_v39, %v15463_v29  ;;  %v11293_v13 = vadd.f32 %v3211_v22, %v15464_v41  ;;  %3336 = vrot.lane.b32.xlu1 %v15465_v37, %s5528_s1  ;;  %v3838_v54 = vsel %vm3836_vm13, %v3837_v26, %v3835_v1  ;;  %v3844_v49 = vand.u32 2147483648, %v11165_v18 }
 0x4dd   :  { %v5337_v46 = vpop.eup %5336  ;;  %4540 = vst.msk [vmem:[%s13404_s2 + $0xe0] sm:$0xff] %vm4511_vm0, %v3838_v54  ;;  %v3842_v39 = vsel %vm3841_vm14, %v11165_v18, %v3840_v44  ;;  %v3847_v22 = vmul.f32 %v5335_v42, %v11194_v56  ;;  %vm3848_vm1 = vcmp.eq.f32.partialorder %v11194_v56, inf  ;;  %vm3850_vm2 = vcmp.eq.f32.partialorder %v11194_v56, 0.0  ;;  %v15467_v42 = vld [vmem:[#allocation150_spill] sm:$0xff] }
 0x4de   :  { %5346 = vrsqrt.f32 %v11290_v16  ;;  %v3845_v32 = vsel %vm3843_vm15, %v3844_v49, %v3842_v39  ;;  %v3851_v26 = vand.u32 2147483648, %v11194_v56  ;;  %v3854_v1 = vmul.f32 %v5337_v46, %v11197_v60  ;;  %v3215_v41 = vpop.permute.xlu0 %3214  ;;  %v15468_v46 = vld [vmem:[#allocation38_spill] sm:$0xff]  ;;  %v15469_v39 = vld [vmem:[#allocation80_spill] sm:$0xff] }
 0x4df   :  { %5348 = vrsqrt.f32 %v11293_v13  ;;  %v3213_v29 = vpop.permute.xlu1 %3212  ;;  %4541 = vst.msk [vmem:[%s13404_s2 + $0xe8] sm:$0xff] %vm4511_vm0, %v3845_v32  ;;  %v3849_v18 = vsel %vm3848_vm1, %v11194_v56, %v3847_v22  ;;  %vm3855_vm3 = vcmp.eq.f32.partialorder %v11197_v60, inf  ;;  %vm3857_vm4 = vcmp.eq.f32.partialorder %v11197_v60, 0.0  ;;  %3342 = vrot.lane.b32.xlu0 %v10659_v48, %s5528_s1 }
 0x4e0   :  { %v5339_v44 = vpop.eup %5338  ;;  %v11322_v54 = vadd.f32 %v3213_v29, %v15467_v42  ;;  %v11325_v49 = vadd.f32 %v3215_v41, %v15468_v46  ;;  %3340 = vrot.lane.b32.xlu1 %v15469_v39, %s5528_s1  ;;  %v3852_v22 = vsel %vm3850_vm2, %v3851_v26, %v3849_v18  ;;  %v3858_v32 = vand.u32 2147483648, %v11197_v60 }
 0x4e1   :  { %v5341_v27 = vpop.eup %5340  ;;  %4542 = vst.msk [vmem:[%s13404_s2 + $0xf0] sm:$0xff] %vm4511_vm0, %v3852_v22  ;;  %v3856_v29 = vsel %vm3855_vm3, %v11197_v60, %v3854_v1  ;;  %v3861_v41 = vmul.f32 %v5339_v44, %v11226_v52  ;;  %vm3862_vm5 = vcmp.eq.f32.partialorder %v11226_v52, inf  ;;  %vm3864_vm6 = vcmp.eq.f32.partialorder %v11226_v52, 0.0  ;;  %v15470_v44 = vld [vmem:[#allocation155_spill] sm:$0xff] }
 0x4e2   :  { %5350 = vrsqrt.f32 %v11322_v54  ;;  %v3859_v56 = vsel %vm3857_vm4, %v3858_v32, %v3856_v29  ;;  %v3865_v26 = vand.u32 2147483648, %v11226_v52  ;;  %v3868_v18 = vmul.f32 %v5341_v27, %v11229_v58  ;;  %v3219_v46 = vpop.permute.xlu0 %3218  ;;  %v15471_v27 = vld [vmem:[#allocation44_spill] sm:$0xff] }
 0x4e3   :  { %5352 = vrsqrt.f32 %v11325_v49  ;;  %v3217_v42 = vpop.permute.xlu1 %3216  ;;  %4543 = vst.msk [vmem:[%s13404_s2 + $0xf8] sm:$0xff] %vm4511_vm0, %v3859_v56  ;;  %v3863_v60 = vsel %vm3862_vm5, %v11226_v52, %v3861_v41  ;;  %vm3869_vm7 = vcmp.eq.f32.partialorder %v11229_v58, inf  ;;  %vm3871_vm8 = vcmp.eq.f32.partialorder %v11229_v58, 0.0  ;;  %3346 = vrot.lane.b32.xlu0 %v10675_v15, %s5528_s1 }
 0x4e4   :  { %v5343_v1 = vpop.eup %5342  ;;  %v11354_v22 = vadd.f32 %v3217_v42, %v15470_v44  ;;  %v11357_v32 = vadd.f32 %v3219_v46, %v15471_v27  ;;  %3344 = vrot.lane.b32.xlu1 %v10663_v35, %s5528_s1  ;;  %v3866_v29 = vsel %vm3864_vm6, %v3865_v26, %v3863_v60  ;;  %v3872_v41 = vand.u32 2147483648, %v11229_v58 }
 0x4e5   :  { %v5345_v56 = vpop.eup %5344  ;;  %4544 = vst.msk [vmem:[%s13404_s2 + $0x100] sm:$0xff] %vm4511_vm0, %v3866_v29  ;;  %v3870_v42 = vsel %vm3869_vm7, %v11229_v58, %v3868_v18  ;;  %v3875_v46 = vmul.f32 %v5343_v1, %v11258_v43  ;;  %vm3876_vm9 = vcmp.eq.f32.partialorder %v11258_v43, inf  ;;  %vm3878_vm10 = vcmp.eq.f32.partialorder %v11258_v43, 0.0  ;;  %v15472_v1 = vld [vmem:[#allocation52_spill] sm:$0xff] }
 0x4e6   :  { %5354 = vrsqrt.f32 %v11354_v22  ;;  %v3873_v52 = vsel %vm3871_vm8, %v3872_v41, %v3870_v42  ;;  %v3879_v26 = vand.u32 2147483648, %v11258_v43  ;;  %v3882_v60 = vmul.f32 %v5345_v56, %v11261_v28  ;;  %v3223_v27 = vpop.permute.xlu0 %3222  ;;  %v15473_v41 = vld [vmem:[#allocation158_spill] sm:$0xff] }
 0x4e7   :  { %5356 = vrsqrt.f32 %v11357_v32  ;;  %v3221_v44 = vpop.permute.xlu1 %3220  ;;  %4545 = vst.msk [vmem:[%s13404_s2 + $0x108] sm:$0xff] %vm4511_vm0, %v3873_v52  ;;  %v3877_v58 = vsel %vm3876_vm9, %v11258_v43, %v3875_v46  ;;  %vm3883_vm11 = vcmp.eq.f32.partialorder %v11261_v28, inf  ;;  %vm3885_vm12 = vcmp.eq.f32.partialorder %v11261_v28, 0.0  ;;  %3350 = vrot.lane.b32.xlu0 %v10683_v6, %s5528_s1 }
 0x4e8   :  { %v5347_v18 = vpop.eup %5346  ;;  %v11386_v29 = vadd.f32 %v3221_v44, %v15472_v1  ;;  %v11389_v56 = vadd.f32 %v3223_v27, %v15473_v41  ;;  %3348 = vrot.lane.b32.xlu1 %v10679_v34, %s5528_s1  ;;  %v3880_v42 = vsel %vm3878_vm10, %v3879_v26, %v3877_v58  ;;  %v3886_v46 = vand.u32 2147483648, %v11261_v28 }
 0x4e9   :  { %v5349_v52 = vpop.eup %5348  ;;  %4546 = vst.msk [vmem:[%s13404_s2 + $0x110] sm:$0xff] %vm4511_vm0, %v3880_v42  ;;  %v3884_v44 = vsel %vm3883_vm11, %v11261_v28, %v3882_v60  ;;  %v3889_v27 = vmul.f32 %v5347_v18, %v11290_v16  ;;  %vm3890_vm13 = vcmp.eq.f32.partialorder %v11290_v16, inf  ;;  %vm3892_vm14 = vcmp.eq.f32.partialorder %v11290_v16, 0.0  ;;  %v15474_v18 = vld [vmem:[#allocation5_spill] sm:$0xff] }
 0x4ea   :  { %5358 = vrsqrt.f32 %v11386_v29  ;;  %v3887_v43 = vsel %vm3885_vm12, %v3886_v46, %v3884_v44  ;;  %v3893_v26 = vand.u32 2147483648, %v11290_v16  ;;  %v3896_v58 = vmul.f32 %v5349_v52, %v11293_v13  ;;  %v3227_v41 = vpop.permute.xlu0 %3226  ;;  %v15475_v46 = vld [vmem:[#allocation166_spill] sm:$0xff] }
 0x4eb   :  { %5360 = vrsqrt.f32 %v11389_v56  ;;  %v3225_v1 = vpop.permute.xlu1 %3224  ;;  %4547 = vst.msk [vmem:[%s13404_s2 + $0x118] sm:$0xff] %vm4511_vm0, %v3887_v43  ;;  %v3891_v28 = vsel %vm3890_vm13, %v11290_v16, %v3889_v27  ;;  %vm3897_vm15 = vcmp.eq.f32.partialorder %v11293_v13, inf  ;;  %vm3899_vm1 = vcmp.eq.f32.partialorder %v11293_v13, 0.0  ;;  %3354 = vrot.lane.b32.xlu0 %v10692_v17, %s5528_s1 }
 0x4ec   :  { %v5351_v60 = vpop.eup %5350  ;;  %v11418_v42 = vadd.f32 %v3225_v1, %v15474_v18  ;;  %v11421_v52 = vadd.f32 %v3227_v41, %v15475_v46  ;;  %3352 = vrot.lane.b32.xlu1 %v10688_v0, %s5528_s1  ;;  %v3894_v44 = vsel %vm3892_vm14, %v3893_v26, %v3891_v28  ;;  %v3900_v27 = vand.u32 2147483648, %v11293_v13 }
 0x4ed   :  { %v5353_v43 = vpop.eup %5352  ;;  %4548 = vst.msk [vmem:[%s13404_s2 + $0x120] sm:$0xff] %vm4511_vm0, %v3894_v44  ;;  %v3898_v1 = vsel %vm3897_vm15, %v11293_v13, %v3896_v58  ;;  %v3903_v41 = vmul.f32 %v5351_v60, %v11322_v54  ;;  %vm3904_vm2 = vcmp.eq.f32.partialorder %v11322_v54, inf  ;;  %vm3906_vm3 = vcmp.eq.f32.partialorder %v11322_v54, 0.0  ;;  %v15476_v60 = vld [vmem:[#allocation96_spill] sm:$0xff] }
 0x4ee   :  { %5362 = vrsqrt.f32 %v11418_v42  ;;  %v3901_v16 = vsel %vm3899_vm1, %v3900_v27, %v3898_v1  ;;  %v3907_v26 = vand.u32 2147483648, %v11322_v54  ;;  %v3910_v28 = vmul.f32 %v5353_v43, %v11325_v49  ;;  %v3231_v46 = vpop.permute.xlu0 %3230  ;;  %v15477_v27 = vld [vmem:[#allocation77_spill] sm:$0xff] }
 0x4ef   :  { %5364 = vrsqrt.f32 %v11421_v52  ;;  %v3229_v18 = vpop.permute.xlu1 %3228  ;;  %4549 = vst.msk [vmem:[%s13404_s2 + $0x128] sm:$0xff] %vm4511_vm0, %v3901_v16  ;;  %v3905_v13 = vsel %vm3904_vm2, %v11322_v54, %v3903_v41  ;;  %vm3911_vm4 = vcmp.eq.f32.partialorder %v11325_v49, inf  ;;  %vm3913_vm5 = vcmp.eq.f32.partialorder %v11325_v49, 0.0  ;;  %3358 = vrot.lane.b32.xlu0 %v10701_v4, %s5528_s1 }
 0x4f0   :  { %v5355_v58 = vpop.eup %5354  ;;  %v11450_v44 = vadd.f32 %v3229_v18, %v15476_v60  ;;  %v11453_v43 = vadd.f32 %v3231_v46, %v15477_v27  ;;  %3356 = vrot.lane.b32.xlu1 %v10696_v11, %s5528_s1  ;;  %v3908_v1 = vsel %vm3906_vm3, %v3907_v26, %v3905_v13  ;;  %v3914_v41 = vand.u32 2147483648, %v11325_v49 }
 0x4f1   :  { %v5357_v16 = vpop.eup %5356  ;;  %4550 = vst.msk [vmem:[%s13404_s2 + $0x130] sm:$0xff] %vm4511_vm0, %v3908_v1  ;;  %v3912_v18 = vsel %vm3911_vm4, %v11325_v49, %v3910_v28  ;;  %v3917_v46 = vmul.f32 %v5355_v58, %v11354_v22  ;;  %vm3918_vm6 = vcmp.eq.f32.partialorder %v11354_v22, inf  ;;  %vm3920_vm7 = vcmp.eq.f32.partialorder %v11354_v22, 0.0  ;;  %v15478_v58 = vld [vmem:[#allocation15_spill] sm:$0xff] }
 0x4f2   :  { %5366 = vrsqrt.f32 %v11450_v44  ;;  %v3915_v54 = vsel %vm3913_vm5, %v3914_v41, %v3912_v18  ;;  %v3921_v26 = vand.u32 2147483648, %v11354_v22  ;;  %v3924_v13 = vmul.f32 %v5357_v16, %v11357_v32  ;;  %v3235_v27 = vpop.permute.xlu0 %3234  ;;  %v15479_v41 = vld [vmem:[#allocation172_spill] sm:$0xff] }
 0x4f3   :  { %5368 = vrsqrt.f32 %v11453_v43  ;;  %v3233_v60 = vpop.permute.xlu1 %3232  ;;  %4551 = vst.msk [vmem:[%s13404_s2 + $0x138] sm:$0xff] %vm4511_vm0, %v3915_v54  ;;  %v3919_v49 = vsel %vm3918_vm6, %v11354_v22, %v3917_v46  ;;  %vm3925_vm8 = vcmp.eq.f32.partialorder %v11357_v32, inf  ;;  %vm3927_vm9 = vcmp.eq.f32.partialorder %v11357_v32, 0.0  ;;  %3362 = vrot.lane.b32.xlu0 %v10719_v63, %s5528_s1 }
 0x4f4   :  { %v5359_v28 = vpop.eup %5358  ;;  %v11482_v1 = vadd.f32 %v3233_v60, %v15478_v58  ;;  %v11485_v16 = vadd.f32 %v3235_v27, %v15479_v41  ;;  %3360 = vrot.lane.b32.xlu1 %v10715_v7, %s5528_s1  ;;  %v3922_v18 = vsel %vm3920_vm7, %v3921_v26, %v3919_v49  ;;  %v3928_v46 = vand.u32 2147483648, %v11357_v32 }
 0x4f5   :  { %v5361_v54 = vpop.eup %5360  ;;  %4552 = vst.msk [vmem:[%s13404_s2 + $0x140] sm:$0xff] %vm4511_vm0, %v3922_v18  ;;  %v3926_v60 = vsel %vm3925_vm8, %v11357_v32, %v3924_v13  ;;  %v3931_v27 = vmul.f32 %v5359_v28, %v11386_v29  ;;  %vm3932_vm10 = vcmp.eq.f32.partialorder %v11386_v29, inf  ;;  %vm3934_vm11 = vcmp.eq.f32.partialorder %v11386_v29, 0.0  ;;  %v15480_v28 = vld [vmem:[#allocation179_spill] sm:$0xff] }
 0x4f6   :  { %5370 = vrsqrt.f32 %v11482_v1  ;;  %v3929_v22 = vsel %vm3927_vm9, %v3928_v46, %v3926_v60  ;;  %v3935_v26 = vand.u32 2147483648, %v11386_v29  ;;  %v3938_v49 = vmul.f32 %v5361_v54, %v11389_v56  ;;  %v3239_v41 = vpop.permute.xlu0 %3238  ;;  %v15481_v46 = vld [vmem:[#allocation76_spill] sm:$0xff] }
 0x4f7   :  { %5372 = vrsqrt.f32 %v11485_v16  ;;  %v3237_v58 = vpop.permute.xlu1 %3236  ;;  %4553 = vst.msk [vmem:[%s13404_s2 + $0x148] sm:$0xff] %vm4511_vm0, %v3929_v22  ;;  %v3933_v32 = vsel %vm3932_vm10, %v11386_v29, %v3931_v27  ;;  %vm3939_vm12 = vcmp.eq.f32.partialorder %v11389_v56, inf  ;;  %vm3941_vm13 = vcmp.eq.f32.partialorder %v11389_v56, 0.0  ;;  %3366 = vrot.lane.b32.xlu0 %v10775_v23, %s5528_s1 }
 0x4f8   :  { %v5363_v13 = vpop.eup %5362  ;;  %v11514_v18 = vadd.f32 %v3237_v58, %v15480_v28  ;;  %v11517_v54 = vadd.f32 %v3239_v41, %v15481_v46  ;;  %3364 = vrot.lane.b32.xlu1 %v10771_v9, %s5528_s1  ;;  %v3936_v60 = vsel %vm3934_vm11, %v3935_v26, %v3933_v32  ;;  %v3942_v27 = vand.u32 2147483648, %v11389_v56 }
 0x4f9   :  { %v5365_v22 = vpop.eup %5364  ;;  %4554 = vst.msk [vmem:[%s13404_s2 + $0x150] sm:$0xff] %vm4511_vm0, %v3936_v60  ;;  %v3940_v58 = vsel %vm3939_vm12, %v11389_v56, %v3938_v49  ;;  %v3945_v41 = vmul.f32 %v5363_v13, %v11418_v42  ;;  %vm3946_vm14 = vcmp.eq.f32.partialorder %v11418_v42, inf  ;;  %vm3948_vm15 = vcmp.eq.f32.partialorder %v11418_v42, 0.0  ;;  %v15482_v13 = vld [vmem:[#allocation181_spill] sm:$0xff] }
 0x4fa   :  { %5374 = vrsqrt.f32 %v11514_v18  ;;  %v3943_v29 = vsel %vm3941_vm13, %v3942_v27, %v3940_v58  ;;  %v3949_v26 = vand.u32 2147483648, %v11418_v42  ;;  %v3952_v32 = vmul.f32 %v5365_v22, %v11421_v52  ;;  %v3243_v46 = vpop.permute.xlu0 %3242  ;;  %v15483_v27 = vld [vmem:[#allocation83_spill] sm:$0xff] }
 0x4fb   :  { %5376 = vrsqrt.f32 %v11517_v54  ;;  %v3241_v28 = vpop.permute.xlu1 %3240  ;;  %4555 = vst.msk [vmem:[%s13404_s2 + $0x158] sm:$0xff] %vm4511_vm0, %v3943_v29  ;;  %v3947_v56 = vsel %vm3946_vm14, %v11418_v42, %v3945_v41  ;;  %vm3953_vm1 = vcmp.eq.f32.partialorder %v11421_v52, inf  ;;  %vm3955_vm2 = vcmp.eq.f32.partialorder %v11421_v52, 0.0  ;;  %3370 = vrot.lane.b32.xlu0 %v10791_v20, %s5528_s1 }
 0x4fc   :  { %v5367_v49 = vpop.eup %5366  ;;  %v11546_v60 = vadd.f32 %v3241_v28, %v15482_v13  ;;  %v11549_v22 = vadd.f32 %v3243_v46, %v15483_v27  ;;  %3368 = vrot.lane.b32.xlu1 %v10787_v55, %s5528_s1  ;;  %v3950_v58 = vsel %vm3948_vm15, %v3949_v26, %v3947_v56  ;;  %v3956_v41 = vand.u32 2147483648, %v11421_v52 }
 0x4fd   :  { %v5369_v29 = vpop.eup %5368  ;;  %4556 = vst.msk [vmem:[%s13404_s2 + $0x160] sm:$0xff] %vm4511_vm0, %v3950_v58  ;;  %v3954_v28 = vsel %vm3953_vm1, %v11421_v52, %v3952_v32  ;;  %v3959_v46 = vmul.f32 %v5367_v49, %v11450_v44  ;;  %vm3960_vm3 = vcmp.eq.f32.partialorder %v11450_v44, inf  ;;  %vm3962_vm4 = vcmp.eq.f32.partialorder %v11450_v44, 0.0  ;;  %v15484_v49 = vld [vmem:[#allocation182_spill] sm:$0xff] }
 0x4fe   :  { %5378 = vrsqrt.f32 %v11546_v60  ;;  %v3957_v42 = vsel %vm3955_vm2, %v3956_v41, %v3954_v28  ;;  %v3963_v26 = vand.u32 2147483648, %v11450_v44  ;;  %v3966_v56 = vmul.f32 %v5369_v29, %v11453_v43  ;;  %v3247_v27 = vpop.permute.xlu0 %3246  ;;  %v15485_v41 = vld [vmem:[#allocation245_spill] sm:$0xff] }
 0x4ff   :  { %5380 = vrsqrt.f32 %v11549_v22  ;;  %v3245_v13 = vpop.permute.xlu1 %3244  ;;  %4557 = vst.msk [vmem:[%s13404_s2 + $0x168] sm:$0xff] %vm4511_vm0, %v3957_v42  ;;  %v3961_v52 = vsel %vm3960_vm3, %v11450_v44, %v3959_v46  ;;  %vm3967_vm5 = vcmp.eq.f32.partialorder %v11453_v43, inf  ;;  %vm3969_vm6 = vcmp.eq.f32.partialorder %v11453_v43, 0.0  ;;  %3374 = vrot.lane.b32.xlu0 %v10800_v40, %s5528_s1 }
 0x500   :  { %v5371_v32 = vpop.eup %5370  ;;  %v11578_v58 = vadd.f32 %v3245_v13, %v15484_v49  ;;  %v11581_v29 = vadd.f32 %v3247_v27, %v15485_v41  ;;  %3372 = vrot.lane.b32.xlu1 %v10795_v61, %s5528_s1  ;;  %v3964_v28 = vsel %vm3962_vm4, %v3963_v26, %v3961_v52  ;;  %v3970_v46 = vand.u32 2147483648, %v11453_v43 }
 0x501   :  { %v5373_v42 = vpop.eup %5372  ;;  %4558 = vst.msk [vmem:[%s13404_s2 + $0x170] sm:$0xff] %vm4511_vm0, %v3964_v28  ;;  %v3968_v13 = vsel %vm3967_vm5, %v11453_v43, %v3966_v56  ;;  %v3973_v27 = vmul.f32 %v5371_v32, %v11482_v1  ;;  %vm3974_vm7 = vcmp.eq.f32.partialorder %v11482_v1, inf  ;;  %vm3976_vm8 = vcmp.eq.f32.partialorder %v11482_v1, 0.0  ;;  %v15486_v32 = vld [vmem:[#allocation183_spill] sm:$0xff] }
 0x502   :  { %5382 = vrsqrt.f32 %v11578_v58  ;;  %v3971_v44 = vsel %vm3969_vm6, %v3970_v46, %v3968_v13  ;;  %v3977_v26 = vand.u32 2147483648, %v11482_v1  ;;  %v3980_v52 = vmul.f32 %v5373_v42, %v11485_v16  ;;  %v3251_v41 = vpop.permute.xlu0 %3250  ;;  %v15487_v46 = vld [vmem:[#allocation185_spill] sm:$0xff] }
 0x503   :  { %5384 = vrsqrt.f32 %v11581_v29  ;;  %v3249_v49 = vpop.permute.xlu1 %3248  ;;  %4559 = vst.msk [vmem:[%s13404_s2 + $0x178] sm:$0xff] %vm4511_vm0, %v3971_v44  ;;  %v3975_v43 = vsel %vm3974_vm7, %v11482_v1, %v3973_v27  ;;  %vm3981_vm9 = vcmp.eq.f32.partialorder %v11485_v16, inf  ;;  %vm3983_vm10 = vcmp.eq.f32.partialorder %v11485_v16, 0.0  ;;  %3378 = vrot.lane.b32.xlu0 %v10808_v59, %s5528_s1 }
 0x504   :  { %v5375_v56 = vpop.eup %5374  ;;  %v11610_v28 = vadd.f32 %v3249_v49, %v15486_v32  ;;  %v11613_v42 = vadd.f32 %v3251_v41, %v15487_v46  ;;  %3376 = vrot.lane.b32.xlu1 %v10804_v24, %s5528_s1  ;;  %v3978_v13 = vsel %vm3976_vm8, %v3977_v26, %v3975_v43  ;;  %v3984_v27 = vand.u32 2147483648, %v11485_v16 }
 0x505   :  { %v5377_v44 = vpop.eup %5376  ;;  %4560 = vst.msk [vmem:[%s13404_s2 + $0x180] sm:$0xff] %vm4511_vm0, %v3978_v13  ;;  %v3982_v49 = vsel %vm3981_vm9, %v11485_v16, %v3980_v52  ;;  %v3987_v41 = vmul.f32 %v5375_v56, %v11514_v18  ;;  %vm3988_vm11 = vcmp.eq.f32.partialorder %v11514_v18, inf  ;;  %vm3990_vm12 = vcmp.eq.f32.partialorder %v11514_v18, 0.0  ;;  %v15488_v56 = vld [vmem:[#allocation100_spill] sm:$0xff] }
 0x506   :  { %5386 = vrsqrt.f32 %v11610_v28  ;;  %v3985_v1 = vsel %vm3983_vm10, %v3984_v27, %v3982_v49  ;;  %v3991_v26 = vand.u32 2147483648, %v11514_v18  ;;  %v3994_v43 = vmul.f32 %v5377_v44, %v11517_v54  ;;  %v3255_v46 = vpop.permute.xlu0 %3254  ;;  %v15489_v27 = vld [vmem:[#allocation189_spill] sm:$0xff] }
 0x507   :  { %5388 = vrsqrt.f32 %v11613_v42  ;;  %v3253_v32 = vpop.permute.xlu1 %3252  ;;  %4561 = vst.msk [vmem:[%s13404_s2 + $0x188] sm:$0xff] %vm4511_vm0, %v3985_v1  ;;  %v3989_v16 = vsel %vm3988_vm11, %v11514_v18, %v3987_v41  ;;  %vm3995_vm13 = vcmp.eq.f32.partialorder %v11517_v54, inf  ;;  %vm3997_vm14 = vcmp.eq.f32.partialorder %v11517_v54, 0.0  ;;  %3382 = vrot.lane.b32.xlu0 %v10827_v31, %s5528_s1 }
 0x508   :  { %v5379_v52 = vpop.eup %5378  ;;  %v11642_v13 = vadd.f32 %v3253_v32, %v15488_v56  ;;  %v11645_v44 = vadd.f32 %v3255_v46, %v15489_v27  ;;  %3380 = vrot.lane.b32.xlu1 %v10813_v5, %s5528_s1  ;;  %v3992_v49 = vsel %vm3990_vm12, %v3991_v26, %v3989_v16  ;;  %v3998_v41 = vand.u32 2147483648, %v11517_v54 }
 0x509   :  { %v5381_v1 = vpop.eup %5380  ;;  %4562 = vst.msk [vmem:[%s13404_s2 + $0x190] sm:$0xff] %vm4511_vm0, %v3992_v49  ;;  %v3996_v32 = vsel %vm3995_vm13, %v11517_v54, %v3994_v43  ;;  %v4001_v46 = vmul.f32 %v5379_v52, %v11546_v60  ;;  %vm4002_vm15 = vcmp.eq.f32.partialorder %v11546_v60, inf  ;;  %vm4004_vm1 = vcmp.eq.f32.partialorder %v11546_v60, 0.0  ;;  %v15490_v52 = vld [vmem:[#allocation109_spill] sm:$0xff] }
 0x50a   :  { %5390 = vrsqrt.f32 %v11642_v13  ;;  %v3999_v18 = vsel %vm3997_vm14, %v3998_v41, %v3996_v32  ;;  %v4005_v26 = vand.u32 2147483648, %v11546_v60  ;;  %v4008_v16 = vmul.f32 %v5381_v1, %v11549_v22  ;;  %v3259_v27 = vpop.permute.xlu0 %3258  ;;  %v15491_v41 = vld [vmem:[#allocation191_spill] sm:$0xff] }
 0x50b   :  { %5392 = vrsqrt.f32 %v11645_v44  ;;  %v3257_v56 = vpop.permute.xlu1 %3256  ;;  %4563 = vst.msk [vmem:[%s13404_s2 + $0x198] sm:$0xff] %vm4511_vm0, %v3999_v18  ;;  %v4003_v54 = vsel %vm4002_vm15, %v11546_v60, %v4001_v46  ;;  %vm4009_vm2 = vcmp.eq.f32.partialorder %v11549_v22, inf  ;;  %vm4011_vm3 = vcmp.eq.f32.partialorder %v11549_v22, 0.0  ;;  %v15492_v32 = vld [vmem:[#allocation107_spill] sm:$0xff] }
 0x50c   :  { %v5383_v43 = vpop.eup %5382  ;;  %v11674_v49 = vadd.f32 %v3257_v56, %v15490_v52  ;;  %v11677_v1 = vadd.f32 %v3259_v27, %v15491_v41  ;;  %3384 = vrot.lane.b32.xlu1 %v10831_v25, %s5528_s1  ;;  %4762 = vrot.lane.b32.xlu0 %v15492_v32, %s5528_s1  ;;  %v4006_v46 = vsel %vm4004_vm1, %v4005_v26, %v4003_v54  ;;  %v4012_v18 = vand.u32 2147483648, %v11549_v22 }
 0x50d   :  { %v5385_v31 = vpop.eup %5384  ;;  %4564 = vst.msk [vmem:[%s13404_s2 + $0x1a0] sm:$0xff] %vm4511_vm0, %v4006_v46  ;;  %v4010_v56 = vsel %vm4009_vm2, %v11549_v22, %v4008_v16  ;;  %v4015_v27 = vmul.f32 %v5383_v43, %v11578_v58  ;;  %vm4016_vm4 = vcmp.eq.f32.partialorder %v11578_v58, inf  ;;  %vm4018_vm5 = vcmp.eq.f32.partialorder %v11578_v58, 0.0  ;;  %v15493_v43 = vld [vmem:[#allocation103_spill] sm:$0xff] }
 0x50e   :  { %5394 = vrsqrt.f32 %v11674_v49  ;;  %v4013_v60 = vsel %vm4011_vm3, %v4012_v18, %v4010_v56  ;;  %v4019_v26 = vand.u32 2147483648, %v11578_v58  ;;  %v4022_v54 = vmul.f32 %v5385_v31, %v11581_v29  ;;  %v3263_v41 = vpop.permute.xlu0 %3262  ;;  %v15494_v31 = vld [vmem:[#allocation27_spill] sm:$0xff]  ;;  %v15495_v18 = vld [vmem:[#allocation73_spill] sm:$0xff]  ;;  %v15496_v56 = vld [vmem:[#allocation116_spill] sm:$0xff] }
 0x50f   :  { %5396 = vrsqrt.f32 %v11677_v1  ;;  %v3261_v52 = vpop.permute.xlu1 %3260  ;;  %4565 = vst.msk [vmem:[%s13404_s2 + $0x1a8] sm:$0xff] %vm4511_vm0, %v4013_v60  ;;  %v4017_v22 = vsel %vm4016_vm4, %v11578_v58, %v4015_v27  ;;  %vm4023_vm6 = vcmp.eq.f32.partialorder %v11581_v29, inf  ;;  %vm4025_vm7 = vcmp.eq.f32.partialorder %v11581_v29, 0.0 }
 0x510   :  { %v5387_v16 = vpop.eup %5386  ;;  %v11706_v32 = vadd.f32 %v3261_v52, %v15493_v43  ;;  %v11709_v46 = vadd.f32 %v3263_v41, %v15494_v31  ;;  %4764 = vrot.lane.b32.xlu1 %v15495_v18, %s5528_s1  ;;  %4766 = vrot.lane.b32.xlu0 %v15496_v56, %s5528_s1  ;;  %v4020_v27 = vsel %vm4018_vm5, %v4019_v26, %v4017_v22  ;;  %v4026_v60 = vand.u32 2147483648, %v11581_v29  ;;  %v15497_v18 = vld [vmem:[#allocation9_spill] sm:$0xff]  ;;  %v15498_v56 = vld [vmem:[#allocation82_spill] sm:$0xff] }
 0x511   :  { %v5389_v25 = vpop.eup %5388  ;;  %4566 = vst.msk [vmem:[%s13404_s2 + $0x1b0] sm:$0xff] %vm4511_vm0, %v4020_v27  ;;  %v4024_v52 = vsel %vm4023_vm6, %v11581_v29, %v4022_v54  ;;  %v4029_v41 = vmul.f32 %v5387_v16, %v11610_v28  ;;  %vm4030_vm8 = vcmp.eq.f32.partialorder %v11610_v28, inf  ;;  %vm4032_vm9 = vcmp.eq.f32.partialorder %v11610_v28, 0.0 }
 0x512   :  { %5398 = vrsqrt.f32 %v11706_v32  ;;  %v4027_v58 = vsel %vm4025_vm7, %v4026_v60, %v4024_v52  ;;  %v4033_v26 = vand.u32 2147483648, %v11610_v28  ;;  %v4036_v22 = vmul.f32 %v5389_v25, %v11613_v42  ;;  %v3267_v31 = vpop.permute.xlu0 %3266 }
 0x513   :  { %5400 = vrsqrt.f32 %v11709_v46  ;;  %v3265_v43 = vpop.permute.xlu1 %3264  ;;  %4567 = vst.msk [vmem:[%s13404_s2 + $0x1b8] sm:$0xff] %vm4511_vm0, %v4027_v58  ;;  %v4031_v29 = vsel %vm4030_vm8, %v11610_v28, %v4029_v41  ;;  %vm4037_vm10 = vcmp.eq.f32.partialorder %v11613_v42, inf  ;;  %vm4039_vm11 = vcmp.eq.f32.partialorder %v11613_v42, 0.0 }
 0x514   :  { %v5391_v54 = vpop.eup %5390  ;;  %v11738_v16 = vadd.f32 %v3265_v43, %v10293_v8  ;;  %v11741_v25 = vadd.f32 %v3267_v31, %v10297_v62  ;;  %4768 = vrot.lane.b32.xlu1 %v15497_v18, %s5528_s1  ;;  %4770 = vrot.lane.b32.xlu0 %v15498_v56, %s5528_s1  ;;  %v4034_v27 = vsel %vm4032_vm9, %v4033_v26, %v4031_v29  ;;  %v4040_v60 = vand.u32 2147483648, %v11613_v42  ;;  %v15500_v18 = vld [vmem:[#allocation86_spill] sm:$0xff] }
 0x515   :  { %v5393_v52 = vpop.eup %5392  ;;  %4568 = vst.msk [vmem:[%s13404_s2 + $0x1c0] sm:$0xff] %vm4511_vm0, %v4034_v27  ;;  %v4038_v8 = vsel %vm4037_vm10, %v11613_v42, %v4036_v22  ;;  %v4043_v62 = vmul.f32 %v5391_v54, %v11642_v13  ;;  %vm4044_vm12 = vcmp.eq.f32.partialorder %v11642_v13, inf  ;;  %vm4046_vm13 = vcmp.eq.f32.partialorder %v11642_v13, 0.0  ;;  %v15499_v54 = vld [vmem:[#allocation260_spill] sm:$0xff] }
 0x516   :  { %5402 = vrsqrt.f32 %v11738_v16  ;;  %v4041_v28 = vsel %vm4039_vm11, %v4040_v60, %v4038_v8  ;;  %v4047_v41 = vand.u32 2147483648, %v11642_v13  ;;  %v4050_v58 = vmul.f32 %v5393_v52, %v11645_v44  ;;  %v3271_v43 = vpop.permute.xlu0 %3270 }
 0x517   :  { %5404 = vrsqrt.f32 %v11741_v25  ;;  %v3269_v26 = vpop.permute.xlu1 %3268  ;;  %4569 = vst.msk [vmem:[%s13404_s2 + $0x1c8] sm:$0xff] %vm4511_vm0, %v4041_v28  ;;  %v4045_v42 = vsel %vm4044_vm12, %v11642_v13, %v4043_v62  ;;  %vm4051_vm14 = vcmp.eq.f32.partialorder %v11645_v44, inf  ;;  %vm4053_vm15 = vcmp.eq.f32.partialorder %v11645_v44, 0.0 }
 0x518   :  { %v5395_v22 = vpop.eup %5394  ;;  %v11770_v31 = vadd.f32 %v3269_v26, %v10309_v50  ;;  %v11773_v29 = vadd.f32 %v3271_v43, %v10313_v3  ;;  %4772 = vrot.lane.b32.xlu1 %v15499_v54, %s5528_s1  ;;  %4774 = vrot.lane.b32.xlu0 %v15500_v18, %s5528_s1  ;;  %v4048_v56 = vsel %vm4046_vm13, %v4047_v41, %v4045_v42  ;;  %v4054_v27 = vand.u32 2147483648, %v11645_v44  ;;  %v15501_v43 = vld [vmem:[#allocation261_spill] sm:$0xff]  ;;  %v15502_v42 = vld [vmem:[#allocation262_spill] sm:$0xff] }
 0x519   :  { %v5397_v60 = vpop.eup %5396  ;;  %4570 = vst.msk [vmem:[%s13404_s2 + $0x1d0] sm:$0xff] %vm4511_vm0, %v4048_v56  ;;  %v4052_v50 = vsel %vm4051_vm14, %v11645_v44, %v4050_v58  ;;  %v4057_v3 = vmul.f32 %v5395_v22, %v11674_v49  ;;  %vm4058_vm1 = vcmp.eq.f32.partialorder %v11674_v49, inf  ;;  %vm4060_vm2 = vcmp.eq.f32.partialorder %v11674_v49, 0.0 }
 0x51a   :  { %5406 = vrsqrt.f32 %v11770_v31  ;;  %v4055_v13 = vsel %vm4053_vm15, %v4054_v27, %v4052_v50  ;;  %v4061_v52 = vand.u32 2147483648, %v11674_v49  ;;  %v4064_v8 = vmul.f32 %v5397_v60, %v11677_v1  ;;  %v3275_v28 = vpop.permute.xlu0 %3274 }
 0x51b   :  { %5408 = vrsqrt.f32 %v11773_v29  ;;  %v3273_v62 = vpop.permute.xlu1 %3272  ;;  %4571 = vst.msk [vmem:[%s13404_s2 + $0x1d8] sm:$0xff] %vm4511_vm0, %v4055_v13  ;;  %v4059_v44 = vsel %vm4058_vm1, %v11674_v49, %v4057_v3  ;;  %vm4065_vm3 = vcmp.eq.f32.partialorder %v11677_v1, inf  ;;  %vm4067_vm4 = vcmp.eq.f32.partialorder %v11677_v1, 0.0  ;;  %v15503_v13 = vld [vmem:[#allocation247_spill] sm:$0xff] }
 0x51c   :  { %v5399_v41 = vpop.eup %5398  ;;  %v11802_v58 = vadd.f32 %v3273_v62, %v10317_v30  ;;  %v11805_v26 = vadd.f32 %v3275_v28, %v10325_v2  ;;  %4776 = vrot.lane.b32.xlu1 %v15501_v43, %s5528_s1  ;;  %4778 = vrot.lane.b32.xlu0 %v15502_v42, %s5528_s1  ;;  %v4062_v22 = vsel %vm4060_vm2, %v4061_v52, %v4059_v44  ;;  %v4068_v54 = vand.u32 2147483648, %v11677_v1  ;;  %v15505_v28 = vld [vmem:[#allocation263_spill] sm:$0xff]  ;;  %v15506_v44 = vld [vmem:[#allocation264_spill] sm:$0xff] }
 0x51d   :  { %v5401_v18 = vpop.eup %5400  ;;  %4572 = vst.msk [vmem:[%s13404_s2 + $0x1e0] sm:$0xff] %vm4511_vm0, %v4062_v22  ;;  %v4066_v30 = vsel %vm4065_vm3, %v11677_v1, %v4064_v8  ;;  %v4071_v2 = vmul.f32 %v5399_v41, %v11706_v32  ;;  %vm4072_vm5 = vcmp.eq.f32.partialorder %v11706_v32, inf  ;;  %vm4074_vm6 = vcmp.eq.f32.partialorder %v11706_v32, 0.0  ;;  %v15504_v8 = vld [vmem:[#allocation194_spill] sm:$0xff] }
 0x51e   :  { %5410 = vrsqrt.f32 %v11802_v58  ;;  %v4069_v49 = vsel %vm4067_vm4, %v4068_v54, %v4066_v30  ;;  %v4075_v56 = vand.u32 2147483648, %v11706_v32  ;;  %v4078_v27 = vmul.f32 %v5401_v18, %v11709_v46  ;;  %v3279_v50 = vpop.permute.xlu0 %3278 }
 0x51f   :  { %5412 = vrsqrt.f32 %v11805_v26  ;;  %v3277_v60 = vpop.permute.xlu1 %3276  ;;  %4573 = vst.msk [vmem:[%s13404_s2 + $0x1e8] sm:$0xff] %vm4511_vm0, %v4069_v49  ;;  %v4073_v1 = vsel %vm4072_vm5, %v11706_v32, %v4071_v2  ;;  %vm4079_vm7 = vcmp.eq.f32.partialorder %v11709_v46, inf  ;;  %vm4081_vm8 = vcmp.eq.f32.partialorder %v11709_v46, 0.0 }
 0x520   :  { %v5403_v3 = vpop.eup %5402  ;;  %v11834_v52 = vadd.f32 %v3277_v60, %v15503_v13  ;;  %v11837_v62 = vadd.f32 %v3279_v50, %v15504_v8  ;;  %4780 = vrot.lane.b32.xlu1 %v15505_v28, %s5528_s1  ;;  %4782 = vrot.lane.b32.xlu0 %v15506_v44, %s5528_s1  ;;  %v4076_v41 = vsel %vm4074_vm6, %v4075_v56, %v4073_v1  ;;  %v4082_v43 = vand.u32 2147483648, %v11709_v46  ;;  %v15507_v60 = vld [vmem:[#allocation199_spill] sm:$0xff]  ;;  %v15508_v1 = vld [vmem:[#allocation265_spill] sm:$0xff] }
 0x521   :  { %v5405_v42 = vpop.eup %5404  ;;  %4574 = vst.msk [vmem:[%s13404_s2 + $0x1f0] sm:$0xff] %vm4511_vm0, %v4076_v41  ;;  %v4080_v22 = vsel %vm4079_vm7, %v11709_v46, %v4078_v27  ;;  %v4085_v54 = vmul.f32 %v5403_v3, %v11738_v16  ;;  %vm4086_vm9 = vcmp.eq.f32.partialorder %v11738_v16, inf  ;;  %vm4088_vm10 = vcmp.eq.f32.partialorder %v11738_v16, 0.0  ;;  %v15509_v3 = vld [vmem:[#allocation266_spill] sm:$0xff] }
 0x522   :  { %5414 = vrsqrt.f32 %v11834_v52  ;;  %v4083_v32 = vsel %vm4081_vm8, %v4082_v43, %v4080_v22  ;;  %v4089_v18 = vand.u32 2147483648, %v11738_v16  ;;  %v4092_v30 = vmul.f32 %v5405_v42, %v11741_v25  ;;  %v3283_v49 = vpop.permute.xlu0 %3282 }
 0x523   :  { %5416 = vrsqrt.f32 %v11837_v62  ;;  %v3281_v2 = vpop.permute.xlu1 %3280  ;;  %4575 = vst.msk [vmem:[%s13404_s2 + $0x1f8] sm:$0xff] %vm4511_vm0, %v4083_v32  ;;  %v4087_v46 = vsel %vm4086_vm9, %v11738_v16, %v4085_v54  ;;  %vm4093_vm11 = vcmp.eq.f32.partialorder %v11741_v25, inf  ;;  %vm4095_vm12 = vcmp.eq.f32.partialorder %v11741_v25, 0.0 }
 0x524   :  { %v5407_v56 = vpop.eup %5406  ;;  %v11866_v27 = vadd.f32 %v3281_v2, %v10357_v10  ;;  %v11869_v50 = vadd.f32 %v3283_v49, %v15507_v60  ;;  %4784 = vrot.lane.b32.xlu1 %v15508_v1, %s5528_s1  ;;  %4786 = vrot.lane.b32.xlu0 %v15509_v3, %s5528_s1  ;;  %v4090_v13 = vsel %vm4088_vm10, %v4089_v18, %v4087_v46  ;;  %v4096_v8 = vand.u32 2147483648, %v11741_v25  ;;  %v15511_v2 = vld [vmem:[#allocation268_spill] sm:$0xff] }
 0x525   :  { %v5409_v28 = vpop.eup %5408  ;;  %4576 = vst.msk [vmem:[%s13404_s2 + $0x200] sm:$0xff] %vm4511_vm0, %v4090_v13  ;;  %v4094_v10 = vsel %vm4093_vm11, %v11741_v25, %v4092_v30  ;;  %v4099_v44 = vmul.f32 %v5407_v56, %v11770_v31  ;;  %vm4100_vm13 = vcmp.eq.f32.partialorder %v11770_v31, inf  ;;  %vm4102_vm14 = vcmp.eq.f32.partialorder %v11770_v31, 0.0  ;;  %v15510_v30 = vld [vmem:[#allocation267_spill] sm:$0xff] }
 0x526   :  { %5418 = vrsqrt.f32 %v11866_v27  ;;  %v4097_v16 = vsel %vm4095_vm12, %v4096_v8, %v4094_v10  ;;  %v4103_v41 = vand.u32 2147483648, %v11770_v31  ;;  %v4106_v43 = vmul.f32 %v5409_v28, %v11773_v29  ;;  %v3287_v22 = vpop.permute.xlu0 %3286 }
 0x527   :  { %5420 = vrsqrt.f32 %v11869_v50  ;;  %v3285_v42 = vpop.permute.xlu1 %3284  ;;  %4577 = vst.msk [vmem:[%s13404_s2 + $0x208] sm:$0xff] %vm4511_vm0, %v4097_v16  ;;  %v4101_v25 = vsel %vm4100_vm13, %v11770_v31, %v4099_v44  ;;  %vm4107_vm15 = vcmp.eq.f32.partialorder %v11773_v29, inf  ;;  %vm4109_vm1 = vcmp.eq.f32.partialorder %v11773_v29, 0.0  ;;  %v15512_v44 = vld [vmem:[#allocation269_spill] sm:$0xff]  ;;  %v15513_v16 = vld [vmem:[#allocation271_spill] sm:$0xff] }
 0x528   :  { %v5411_v54 = vpop.eup %5410  ;;  %v11898_v32 = vadd.f32 %v3285_v42, %v10397_v36  ;;  %v11901_v18 = vadd.f32 %v3287_v22, %v10409_v45  ;;  %4788 = vrot.lane.b32.xlu1 %v15510_v30, %s5528_s1  ;;  %4790 = vrot.lane.b32.xlu0 %v15511_v2, %s5528_s1  ;;  %v4104_v49 = vsel %vm4102_vm14, %v4103_v41, %v4101_v25  ;;  %v4110_v46 = vand.u32 2147483648, %v11773_v29 }
 0x529   :  { %v5413_v56 = vpop.eup %5412  ;;  %4578 = vst.msk [vmem:[%s13404_s2 + $0x210] sm:$0xff] %vm4511_vm0, %v4104_v49  ;;  %v4108_v36 = vsel %vm4107_vm15, %v11773_v29, %v4106_v43  ;;  %v4113_v45 = vmul.f32 %v5411_v54, %v11802_v58  ;;  %vm4114_vm2 = vcmp.eq.f32.partialorder %v11802_v58, inf  ;;  %vm4116_vm3 = vcmp.eq.f32.partialorder %v11802_v58, 0.0 }
 0x52a   :  { %5422 = vrsqrt.f32 %v11898_v32  ;;  %v4111_v31 = vsel %vm4109_vm1, %v4110_v46, %v4108_v36  ;;  %v4117_v60 = vand.u32 2147483648, %v11802_v58  ;;  %v4120_v1 = vmul.f32 %v5413_v56, %v11805_v26  ;;  %v3291_v13 = vpop.permute.xlu0 %3290  ;;  %v15514_v56 = vld [vmem:[#allocation272_spill] sm:$0xff]  ;;  %v15515_v36 = vld [vmem:[#allocation275_spill] sm:$0xff] }
 0x52b   :  { %5424 = vrsqrt.f32 %v11901_v18  ;;  %v3289_v3 = vpop.permute.xlu1 %3288  ;;  %4579 = vst.msk [vmem:[%s13404_s2 + $0x218] sm:$0xff] %vm4511_vm0, %v4111_v31  ;;  %v4115_v29 = vsel %vm4114_vm2, %v11802_v58, %v4113_v45  ;;  %vm4121_vm4 = vcmp.eq.f32.partialorder %v11805_v26, inf  ;;  %vm4123_vm5 = vcmp.eq.f32.partialorder %v11805_v26, 0.0 }
 0x52c   :  { %v5415_v8 = vpop.eup %5414  ;;  %v11930_v28 = vadd.f32 %v3289_v3, %v10413_v19  ;;  %v11933_v10 = vadd.f32 %v3291_v13, %v10417_v47  ;;  %4792 = vrot.lane.b32.xlu1 %v15512_v44, %s5528_s1  ;;  %4794 = vrot.lane.b32.xlu0 %v15513_v16, %s5528_s1  ;;  %v4118_v41 = vsel %vm4116_vm3, %v4117_v60, %v4115_v29  ;;  %v4124_v43 = vand.u32 2147483648, %v11805_v26  ;;  %v15516_v16 = vld [vmem:[#allocation130_spill] sm:$0xff] }
 0x52d   :  { %v5417_v42 = vpop.eup %5416  ;;  %4580 = vst.msk [vmem:[%s13404_s2 + $0x220] sm:$0xff] %vm4511_vm0, %v4118_v41  ;;  %v4122_v47 = vsel %vm4121_vm4, %v11805_v26, %v4120_v1  ;;  %v4127_v19 = vmul.f32 %v5415_v8, %v11834_v52  ;;  %vm4128_vm6 = vcmp.eq.f32.partialorder %v11834_v52, inf  ;;  %vm4130_vm7 = vcmp.eq.f32.partialorder %v11834_v52, 0.0 }
 0x52e   :  { %5426 = vrsqrt.f32 %v11930_v28  ;;  %v4125_v58 = vsel %vm4123_vm5, %v4124_v43, %v4122_v47  ;;  %v4131_v22 = vand.u32 2147483648, %v11834_v52  ;;  %v4134_v25 = vmul.f32 %v5417_v42, %v11837_v62  ;;  %v3295_v30 = vpop.permute.xlu0 %3294  ;;  %v15517_v43 = vld [vmem:[#allocation276_spill] sm:$0xff]  ;;  %v15518_v42 = vld [vmem:[#allocation279_spill] sm:$0xff] }
 0x52f   :  { %5428 = vrsqrt.f32 %v11933_v10  ;;  %v3293_v54 = vpop.permute.xlu1 %3292  ;;  %4581 = vst.msk [vmem:[%s13404_s2 + $0x228] sm:$0xff] %vm4511_vm0, %v4125_v58  ;;  %v4129_v26 = vsel %vm4128_vm6, %v11834_v52, %v4127_v19  ;;  %vm4135_vm8 = vcmp.eq.f32.partialorder %v11837_v62, inf  ;;  %vm4137_vm9 = vcmp.eq.f32.partialorder %v11837_v62, 0.0 }
 0x530   :  { %v5419_v2 = vpop.eup %5418  ;;  %v11962_v49 = vadd.f32 %v3293_v54, %v10425_v14  ;;  %v11965_v46 = vadd.f32 %v3295_v30, %v10429_v33  ;;  %4796 = vrot.lane.b32.xlu1 %v15514_v56, %s5528_s1  ;;  %4798 = vrot.lane.b32.xlu0 %v15515_v36, %s5528_s1  ;;  %v4132_v45 = vsel %vm4130_vm7, %v4131_v22, %v4129_v26  ;;  %v4138_v31 = vand.u32 2147483648, %v11837_v62  ;;  %v15519_v56 = vld [vmem:[#allocation202_spill] sm:$0xff] }
 0x531   :  { %v5421_v60 = vpop.eup %5420  ;;  %4582 = vst.msk [vmem:[%s13404_s2 + $0x230] sm:$0xff] %vm4511_vm0, %v4132_v45  ;;  %v4136_v14 = vsel %vm4135_vm8, %v11837_v62, %v4134_v25  ;;  %v4141_v33 = vmul.f32 %v5419_v2, %v11866_v27  ;;  %vm4142_vm10 = vcmp.eq.f32.partialorder %v11866_v27, inf  ;;  %vm4144_vm11 = vcmp.eq.f32.partialorder %v11866_v27, 0.0  ;;  %v15520_v45 = vld [vmem:[#allocation133_spill] sm:$0xff] }
 0x532   :  { %5430 = vrsqrt.f32 %v11962_v49  ;;  %v4139_v52 = vsel %vm4137_vm9, %v4138_v31, %v4136_v14  ;;  %v4145_v1 = vand.u32 2147483648, %v11866_v27  ;;  %v4148_v3 = vmul.f32 %v5421_v60, %v11869_v50  ;;  %v3299_v29 = vpop.permute.xlu0 %3298  ;;  %v15521_v60 = vld [vmem:[#allocation280_spill] sm:$0xff]  ;;  %v15522_v14 = vld [vmem:[#allocation283_spill] sm:$0xff] }
 0x533   :  { %5432 = vrsqrt.f32 %v11965_v46  ;;  %v3297_v13 = vpop.permute.xlu1 %3296  ;;  %4583 = vst.msk [vmem:[%s13404_s2 + $0x238] sm:$0xff] %vm4511_vm0, %v4139_v52  ;;  %v4143_v62 = vsel %vm4142_vm10, %v11866_v27, %v4141_v33  ;;  %vm4149_vm12 = vcmp.eq.f32.partialorder %v11869_v50, inf  ;;  %vm4151_vm13 = vcmp.eq.f32.partialorder %v11869_v50, 0.0 }
 0x534   :  { %v5423_v8 = vpop.eup %5422  ;;  %v11994_v44 = vadd.f32 %v3297_v13, %v10433_v12  ;;  %v11997_v41 = vadd.f32 %v3299_v29, %v15516_v16  ;;  %4800 = vrot.lane.b32.xlu1 %v15517_v43, %s5528_s1  ;;  %4802 = vrot.lane.b32.xlu0 %v15518_v42, %s5528_s1  ;;  %v4146_v47 = vsel %vm4144_vm11, %v4145_v1, %v4143_v62  ;;  %v4152_v19 = vand.u32 2147483648, %v11869_v50  ;;  %v15523_v42 = vld [vmem:[#allocation203_spill] sm:$0xff] }
 0x535   :  { %v5425_v58 = vpop.eup %5424  ;;  %4584 = vst.msk [vmem:[%s13404_s2 + $0x240] sm:$0xff] %vm4511_vm0, %v4146_v47  ;;  %v4150_v12 = vsel %vm4149_vm12, %v11869_v50, %v4148_v3  ;;  %v4155_v22 = vmul.f32 %v5423_v8, %v11898_v32  ;;  %vm4156_vm14 = vcmp.eq.f32.partialorder %v11898_v32, inf  ;;  %vm4158_vm15 = vcmp.eq.f32.partialorder %v11898_v32, 0.0 }
 0x536   :  { %5434 = vrsqrt.f32 %v11994_v44  ;;  %v4153_v27 = vsel %vm4151_vm13, %v4152_v19, %v4150_v12  ;;  %v4159_v25 = vand.u32 2147483648, %v11898_v32  ;;  %v4162_v54 = vmul.f32 %v5425_v58, %v11901_v18  ;;  %v3303_v26 = vpop.permute.xlu0 %3302  ;;  %v15524_v19 = vld [vmem:[#allocation37_spill] sm:$0xff]  ;;  %v15525_v12 = vld [vmem:[#allocation284_spill] sm:$0xff] }
 0x537   :  { %5436 = vrsqrt.f32 %v11997_v41  ;;  %v3301_v30 = vpop.permute.xlu1 %3300  ;;  %4585 = vst.msk [vmem:[%s13404_s2 + $0x248] sm:$0xff] %vm4511_vm0, %v4153_v27  ;;  %v4157_v50 = vsel %vm4156_vm14, %v11898_v32, %v4155_v22  ;;  %vm4163_vm1 = vcmp.eq.f32.partialorder %v11901_v18, inf  ;;  %vm4165_vm2 = vcmp.eq.f32.partialorder %v11901_v18, 0.0  ;;  %v15526_v22 = vld [vmem:[#allocation287_spill] sm:$0xff] }
 0x538   :  { %v5427_v2 = vpop.eup %5426  ;;  %v12026_v36 = vadd.f32 %v3301_v30, %v15519_v56  ;;  %v12029_v31 = vadd.f32 %v3303_v26, %v15520_v45  ;;  %4804 = vrot.lane.b32.xlu1 %v15521_v60, %s5528_s1  ;;  %4806 = vrot.lane.b32.xlu0 %v15522_v14, %s5528_s1  ;;  %v4160_v33 = vsel %vm4158_vm15, %v4159_v25, %v4157_v50  ;;  %v4166_v52 = vand.u32 2147483648, %v11901_v18 }
 0x539   :  { %v5429_v1 = vpop.eup %5428  ;;  %4586 = vst.msk [vmem:[%s13404_s2 + $0x250] sm:$0xff] %vm4511_vm0, %v4160_v33  ;;  %v4164_v3 = vsel %vm4163_vm1, %v11901_v18, %v4162_v54  ;;  %v4169_v13 = vmul.f32 %v5427_v2, %v11930_v28  ;;  %vm4170_vm3 = vcmp.eq.f32.partialorder %v11930_v28, inf  ;;  %vm4172_vm4 = vcmp.eq.f32.partialorder %v11930_v28, 0.0 }
 0x53a   :  { %5438 = vrsqrt.f32 %v12026_v36  ;;  %v4167_v32 = vsel %vm4165_vm2, %v4166_v52, %v4164_v3  ;;  %v4173_v29 = vand.u32 2147483648, %v11930_v28  ;;  %v4176_v62 = vmul.f32 %v5429_v1, %v11933_v10  ;;  %v3307_v16 = vpop.permute.xlu0 %3306  ;;  %v15527_v52 = vld [vmem:[#allocation288_spill] sm:$0xff]  ;;  %v15528_v1 = vld [vmem:[#allocation291_spill] sm:$0xff] }
 0x53b   :  { %5440 = vrsqrt.f32 %v12029_v31  ;;  %v3305_v8 = vpop.permute.xlu1 %3304  ;;  %4587 = vst.msk [vmem:[%s13404_s2 + $0x258] sm:$0xff] %vm4511_vm0, %v4167_v32  ;;  %v4171_v18 = vsel %vm4170_vm3, %v11930_v28, %v4169_v13  ;;  %vm4177_vm5 = vcmp.eq.f32.partialorder %v11933_v10, inf  ;;  %vm4179_vm6 = vcmp.eq.f32.partialorder %v11933_v10, 0.0 }
 0x53c   :  { %v5431_v43 = vpop.eup %5430  ;;  %v12058_v47 = vadd.f32 %v3305_v8, %v15523_v42  ;;  %v12061_v58 = vadd.f32 %v3307_v16, %v15524_v19  ;;  %4808 = vrot.lane.b32.xlu1 %v15525_v12, %s5528_s1  ;;  %4810 = vrot.lane.b32.xlu0 %v15526_v22, %s5528_s1  ;;  %v4174_v27 = vsel %vm4172_vm4, %v4173_v29, %v4171_v18  ;;  %v4180_v25 = vand.u32 2147483648, %v11933_v10  ;;  %v15529_v19 = vld [vmem:[#allocation228_spill] sm:$0xff]  ;;  %v15530_v12 = vld [vmem:[#allocation139_spill] sm:$0xff] }
 0x53d   :  { %v5433_v54 = vpop.eup %5432  ;;  %4588 = vst.msk [vmem:[%s13404_s2 + $0x260] sm:$0xff] %vm4511_vm0, %v4174_v27  ;;  %v4178_v30 = vsel %vm4177_vm5, %v11933_v10, %v4176_v62  ;;  %v4183_v26 = vmul.f32 %v5431_v43, %v11962_v49  ;;  %vm4184_vm7 = vcmp.eq.f32.partialorder %v11962_v49, inf  ;;  %vm4186_vm8 = vcmp.eq.f32.partialorder %v11962_v49, 0.0 }
 0x53e   :  { %5442 = vrsqrt.f32 %v12058_v47  ;;  %v4181_v28 = vsel %vm4179_vm6, %v4180_v25, %v4178_v30  ;;  %v4187_v50 = vand.u32 2147483648, %v11962_v49  ;;  %v4190_v2 = vmul.f32 %v5433_v54, %v11965_v46  ;;  %v3311_v45 = vpop.permute.xlu0 %3310 }
 0x53f   :  { %5444 = vrsqrt.f32 %v12061_v58  ;;  %v3309_v56 = vpop.permute.xlu1 %3308  ;;  %4589 = vst.msk [vmem:[%s13404_s2 + $0x268] sm:$0xff] %vm4511_vm0, %v4181_v28  ;;  %v4185_v10 = vsel %vm4184_vm7, %v11962_v49, %v4183_v26  ;;  %vm4191_vm9 = vcmp.eq.f32.partialorder %v11965_v46, inf  ;;  %vm4193_vm10 = vcmp.eq.f32.partialorder %v11965_v46, 0.0 }
 0x540   :  { %v5435_v60 = vpop.eup %5434  ;;  %v12090_v14 = vadd.f32 %v3309_v56, %v15442_v21  ;;  %v12093_v33 = vadd.f32 %v3311_v45, %v15443_v53  ;;  %4812 = vrot.lane.b32.xlu1 %v15527_v52, %s5528_s1  ;;  %4814 = vrot.lane.b32.xlu0 %v15528_v1, %s5528_s1  ;;  %v4188_v3 = vsel %vm4186_vm8, %v4187_v50, %v4185_v10  ;;  %v4194_v13 = vand.u32 2147483648, %v11965_v46  ;;  %v15531_v56 = vld [vmem:[#allocation53_spill] sm:$0xff] }
 0x541   :  { %v5437_v32 = vpop.eup %5436  ;;  %4590 = vst.msk [vmem:[%s13404_s2 + $0x270] sm:$0xff] %vm4511_vm0, %v4188_v3  ;;  %v4192_v53 = vsel %vm4191_vm9, %v11965_v46, %v4190_v2  ;;  %v4197_v21 = vmul.f32 %v5435_v60, %v11994_v44  ;;  %vm4198_vm11 = vcmp.eq.f32.partialorder %v11994_v44, inf  ;;  %vm4200_vm12 = vcmp.eq.f32.partialorder %v11994_v44, 0.0  ;;  %v15532_v10 = vld [vmem:[#allocation25_spill] sm:$0xff]  ;;  %v15533_v60 = vld [vmem:[#allocation140_spill] sm:$0xff] }
 0x542   :  { %5446 = vrsqrt.f32 %v12090_v14  ;;  %v4195_v49 = vsel %vm4193_vm10, %v4194_v13, %v4192_v53  ;;  %v4201_v29 = vand.u32 2147483648, %v11994_v44  ;;  %v4204_v62 = vmul.f32 %v5437_v32, %v11997_v41  ;;  %v3315_v16 = vpop.permute.xlu0 %3314 }
 0x543   :  { %5448 = vrsqrt.f32 %v12093_v33  ;;  %v3313_v8 = vpop.permute.xlu1 %3312  ;;  %4591 = vst.msk [vmem:[%s13404_s2 + $0x278] sm:$0xff] %vm4511_vm0, %v4195_v49  ;;  %v4199_v46 = vsel %vm4198_vm11, %v11994_v44, %v4197_v21  ;;  %vm4205_vm13 = vcmp.eq.f32.partialorder %v11997_v41, inf  ;;  %vm4207_vm14 = vcmp.eq.f32.partialorder %v11997_v41, 0.0 }
 0x544   :  { %v5439_v18 = vpop.eup %5438  ;;  %v12122_v43 = vadd.f32 %v3313_v8, %v10529_v38  ;;  %v12125_v42 = vadd.f32 %v3315_v16, %v10533_v51  ;;  %4816 = vrot.lane.b32.xlu1 %v15529_v19, %s5528_s1  ;;  %4818 = vrot.lane.b32.xlu0 %v15530_v12, %s5528_s1  ;;  %v4202_v22 = vsel %vm4200_vm12, %v4201_v29, %v4199_v46  ;;  %v4208_v27 = vand.u32 2147483648, %v11997_v41  ;;  %v15535_v16 = vld [vmem:[#allocation212_spill] sm:$0xff]  ;;  %v15537_v19 = vld [vmem:[#allocation142_spill] sm:$0xff] }
 0x545   :  { %v5441_v25 = vpop.eup %5440  ;;  %4592 = vst.msk [vmem:[%s13404_s2 + $0x280] sm:$0xff] %vm4511_vm0, %v4202_v22  ;;  %v4206_v38 = vsel %vm4205_vm13, %v11997_v41, %v4204_v62  ;;  %v4211_v51 = vmul.f32 %v5439_v18, %v12026_v36  ;;  %vm4212_vm15 = vcmp.eq.f32.partialorder %v12026_v36, inf  ;;  %vm4214_vm1 = vcmp.eq.f32.partialorder %v12026_v36, 0.0  ;;  %v15534_v62 = vld [vmem:[#allocation211_spill] sm:$0xff]  ;;  %v15536_v18 = vld [vmem:[#allocation112_spill] sm:$0xff] }
 0x546   :  { %5450 = vrsqrt.f32 %v12122_v43  ;;  %v4209_v44 = vsel %vm4207_vm14, %v4208_v27, %v4206_v38  ;;  %v4215_v54 = vand.u32 2147483648, %v12026_v36  ;;  %v4218_v30 = vmul.f32 %v5441_v25, %v12029_v31  ;;  %v3319_v28 = vpop.permute.xlu0 %3318 }
 0x547   :  { %5452 = vrsqrt.f32 %v12125_v42  ;;  %v3317_v26 = vpop.permute.xlu1 %3316  ;;  %4593 = vst.msk [vmem:[%s13404_s2 + $0x288] sm:$0xff] %vm4511_vm0, %v4209_v44  ;;  %v4213_v41 = vsel %vm4212_vm15, %v12026_v36, %v4211_v51  ;;  %vm4219_vm2 = vcmp.eq.f32.partialorder %v12029_v31, inf  ;;  %vm4221_vm3 = vcmp.eq.f32.partialorder %v12029_v31, 0.0 }
 0x548   :  { %v5443_v50 = vpop.eup %5442  ;;  %v12154_v2 = vadd.f32 %v3317_v26, %v10545_v57  ;;  %v12157_v45 = vadd.f32 %v3319_v28, %v15531_v56  ;;  %4820 = vrot.lane.b32.xlu1 %v15532_v10, %s5528_s1  ;;  %4822 = vrot.lane.b32.xlu0 %v15533_v60, %s5528_s1  ;;  %v4216_v52 = vsel %vm4214_vm1, %v4215_v54, %v4213_v41  ;;  %v4222_v1 = vand.u32 2147483648, %v12029_v31  ;;  %v15538_v28 = vld [vmem:[#allocation57_spill] sm:$0xff]  ;;  %v15540_v10 = vld [vmem:[#allocation30_spill] sm:$0xff]  ;;  %v15541_v60 = vld [vmem:[#allocation144_spill] sm:$0xff] }
 0x549   :  { %v5445_v3 = vpop.eup %5444  ;;  %4594 = vst.msk [vmem:[%s13404_s2 + $0x290] sm:$0xff] %vm4511_vm0, %v4216_v52  ;;  %v4220_v57 = vsel %vm4219_vm2, %v12029_v31, %v4218_v30  ;;  %v4225_v13 = vmul.f32 %v5443_v50, %v12058_v47  ;;  %vm4226_vm4 = vcmp.eq.f32.partialorder %v12058_v47, inf  ;;  %vm4228_vm5 = vcmp.eq.f32.partialorder %v12058_v47, 0.0  ;;  %v15539_v50 = vld [vmem:[#allocation214_spill] sm:$0xff] }
 0x54a   :  { %5454 = vrsqrt.f32 %v12154_v2  ;;  %v4223_v36 = vsel %vm4221_vm3, %v4222_v1, %v4220_v57  ;;  %v4229_v32 = vand.u32 2147483648, %v12058_v47  ;;  %v4232_v53 = vmul.f32 %v5445_v3, %v12061_v58  ;;  %v3323_v49 = vpop.permute.xlu0 %3322 }
 0x54b   :  { %5456 = vrsqrt.f32 %v12157_v45  ;;  %v3321_v21 = vpop.permute.xlu1 %3320  ;;  %4595 = vst.msk [vmem:[%s13404_s2 + $0x298] sm:$0xff] %vm4511_vm0, %v4223_v36  ;;  %v4227_v31 = vsel %vm4226_vm4, %v12058_v47, %v4225_v13  ;;  %vm4233_vm6 = vcmp.eq.f32.partialorder %v12061_v58, inf  ;;  %vm4235_vm7 = vcmp.eq.f32.partialorder %v12061_v58, 0.0 }
 0x54c   :  { %v5447_v29 = vpop.eup %5446  ;;  %v12186_v8 = vadd.f32 %v3321_v21, %v15534_v62  ;;  %v12189_v46 = vadd.f32 %v3323_v49, %v15535_v16  ;;  %4824 = vrot.lane.b32.xlu1 %v15536_v18, %s5528_s1  ;;  %4826 = vrot.lane.b32.xlu0 %v15537_v19, %s5528_s1  ;;  %v4230_v12 = vsel %vm4228_vm5, %v4229_v32, %v4227_v31  ;;  %v4236_v22 = vand.u32 2147483648, %v12061_v58  ;;  %v15542_v31 = vld [vmem:[#allocation213_spill] sm:$0xff]  ;;  %v15543_v62 = vld [vmem:[#allocation64_spill] sm:$0xff]  ;;  %v15545_v19 = vld [vmem:[#allocation146_spill] sm:$0xff] }
 0x54d   :  { %v5449_v27 = vpop.eup %5448  ;;  %4596 = vst.msk [vmem:[%s13404_s2 + $0x2a0] sm:$0xff] %vm4511_vm0, %v4230_v12  ;;  %v4234_v25 = vsel %vm4233_vm6, %v12061_v58, %v4232_v53  ;;  %v4239_v38 = vmul.f32 %v5447_v29, %v12090_v14  ;;  %vm4240_vm8 = vcmp.eq.f32.partialorder %v12090_v14, inf  ;;  %vm4242_vm9 = vcmp.eq.f32.partialorder %v12090_v14, 0.0  ;;  %v15544_v18 = vld [vmem:[#allocation32_spill] sm:$0xff] }
 0x54e   :  { %5458 = vrsqrt.f32 %v12186_v8  ;;  %v4237_v47 = vsel %vm4235_vm7, %v4236_v22, %v4234_v25  ;;  %v4243_v51 = vand.u32 2147483648, %v12090_v14  ;;  %v4246_v44 = vmul.f32 %v5449_v27, %v12093_v33  ;;  %v3327_v30 = vpop.permute.xlu0 %3326 }
 0x54f   :  { %5460 = vrsqrt.f32 %v12189_v46  ;;  %v3325_v54 = vpop.permute.xlu1 %3324  ;;  %4597 = vst.msk [vmem:[%s13404_s2 + $0x2a8] sm:$0xff] %vm4511_vm0, %v4237_v47  ;;  %v4241_v58 = vsel %vm4240_vm8, %v12090_v14, %v4239_v38  ;;  %vm4247_vm10 = vcmp.eq.f32.partialorder %v12093_v33, inf  ;;  %vm4249_vm11 = vcmp.eq.f32.partialorder %v12093_v33, 0.0 }
 0x550   :  { %v5451_v26 = vpop.eup %5450  ;;  %v12218_v41 = vadd.f32 %v3325_v54, %v15538_v28  ;;  %v12221_v56 = vadd.f32 %v3327_v30, %v15539_v50  ;;  %4828 = vrot.lane.b32.xlu1 %v15540_v10, %s5528_s1  ;;  %4830 = vrot.lane.b32.xlu0 %v15541_v60, %s5528_s1  ;;  %v4244_v52 = vsel %vm4242_vm9, %v4243_v51, %v4241_v58  ;;  %v4250_v1 = vand.u32 2147483648, %v12093_v33  ;;  %v15546_v58 = vld [vmem:[#allocation216_spill] sm:$0xff]  ;;  %v15547_v28 = vld [vmem:[#allocation251_spill] sm:$0xff]  ;;  %v15548_v10 = vld [vmem:[#allocation34_spill] sm:$0xff] }
 0x551   :  { %v5453_v3 = vpop.eup %5452  ;;  %4598 = vst.msk [vmem:[%s13404_s2 + $0x2b0] sm:$0xff] %vm4511_vm0, %v4244_v52  ;;  %v4248_v57 = vsel %vm4247_vm10, %v12093_v33, %v4246_v44  ;;  %v4253_v13 = vmul.f32 %v5451_v26, %v12122_v43  ;;  %vm4254_vm12 = vcmp.eq.f32.partialorder %v12122_v43, inf  ;;  %vm4256_vm13 = vcmp.eq.f32.partialorder %v12122_v43, 0.0  ;;  %v15549_v60 = vld [vmem:[#allocation148_spill] sm:$0xff] }
 0x552   :  { %5462 = vrsqrt.f32 %v12218_v41  ;;  %v4251_v14 = vsel %vm4249_vm11, %v4250_v1, %v4248_v57  ;;  %v4257_v36 = vand.u32 2147483648, %v12122_v43  ;;  %v4260_v32 = vmul.f32 %v5453_v3, %v12125_v42  ;;  %v3331_v21 = vpop.permute.xlu0 %3330 }
 0x553   :  { %5464 = vrsqrt.f32 %v12221_v56  ;;  %v3329_v53 = vpop.permute.xlu1 %3328  ;;  %4599 = vst.msk [vmem:[%s13404_s2 + $0x2b8] sm:$0xff] %vm4511_vm0, %v4251_v14  ;;  %v4255_v33 = vsel %vm4254_vm12, %v12122_v43, %v4253_v13  ;;  %vm4261_vm14 = vcmp.eq.f32.partialorder %v12125_v42, inf  ;;  %vm4263_vm15 = vcmp.eq.f32.partialorder %v12125_v42, 0.0 }
 0x554   :  { %v5455_v49 = vpop.eup %5454  ;;  %v12250_v29 = vadd.f32 %v3329_v53, %v15542_v31  ;;  %v12253_v16 = vadd.f32 %v3331_v21, %v15543_v62  ;;  %4832 = vrot.lane.b32.xlu1 %v15544_v18, %s5528_s1  ;;  %4834 = vrot.lane.b32.xlu0 %v15545_v19, %s5528_s1  ;;  %v4258_v12 = vsel %vm4256_vm13, %v4257_v36, %v4255_v33  ;;  %v4264_v22 = vand.u32 2147483648, %v12125_v42  ;;  %v15551_v62 = vld [vmem:[#allocation36_spill] sm:$0xff]  ;;  %v15552_v18 = vld [vmem:[#allocation153_spill] sm:$0xff] }
 0x555   :  { %v5457_v27 = vpop.eup %5456  ;;  %4600 = vst.msk [vmem:[%s13404_s2 + $0x2c0] sm:$0xff] %vm4511_vm0, %v4258_v12  ;;  %v4262_v25 = vsel %vm4261_vm14, %v12125_v42, %v4260_v32  ;;  %v4267_v38 = vmul.f32 %v5455_v49, %v12154_v2  ;;  %vm4268_vm1 = vcmp.eq.f32.partialorder %v12154_v2, inf  ;;  %vm4270_vm2 = vcmp.eq.f32.partialorder %v12154_v2, 0.0  ;;  %v15550_v49 = vld [vmem:[#allocation72_spill] sm:$0xff] }
 0x556   :  { %5466 = vrsqrt.f32 %v12250_v29  ;;  %v4265_v43 = vsel %vm4263_vm15, %v4264_v22, %v4262_v25  ;;  %v4271_v47 = vand.u32 2147483648, %v12154_v2  ;;  %v4274_v51 = vmul.f32 %v5457_v27, %v12157_v45  ;;  %v3335_v54 = vpop.permute.xlu0 %3334 }
 0x557   :  { %5468 = vrsqrt.f32 %v12253_v16  ;;  %v3333_v44 = vpop.permute.xlu1 %3332  ;;  %4601 = vst.msk [vmem:[%s13404_s2 + $0x2c8] sm:$0xff] %vm4511_vm0, %v4265_v43  ;;  %v4269_v42 = vsel %vm4268_vm1, %v12154_v2, %v4267_v38  ;;  %vm4275_vm3 = vcmp.eq.f32.partialorder %v12157_v45, inf  ;;  %vm4277_vm4 = vcmp.eq.f32.partialorder %v12157_v45, 0.0 }
 0x558   :  { %v5459_v30 = vpop.eup %5458  ;;  %v12282_v26 = vadd.f32 %v3333_v44, %v15546_v58  ;;  %v12285_v50 = vadd.f32 %v3335_v54, %v15547_v28  ;;  %4836 = vrot.lane.b32.xlu1 %v15548_v10, %s5528_s1  ;;  %4838 = vrot.lane.b32.xlu0 %v15549_v60, %s5528_s1  ;;  %v4272_v52 = vsel %vm4270_vm2, %v4271_v47, %v4269_v42  ;;  %v4278_v1 = vand.u32 2147483648, %v12157_v45  ;;  %v15553_v42 = vld [vmem:[#allocation40_spill] sm:$0xff] }
 0x559   :  { %v5461_v3 = vpop.eup %5460  ;;  %4602 = vst.msk [vmem:[%s13404_s2 + $0x2d0] sm:$0xff] %vm4511_vm0, %v4272_v52  ;;  %v4276_v57 = vsel %vm4275_vm3, %v12157_v45, %v4274_v51  ;;  %v4281_v13 = vmul.f32 %v5459_v30, %v12186_v8  ;;  %vm4282_vm5 = vcmp.eq.f32.partialorder %v12186_v8, inf  ;;  %vm4284_vm6 = vcmp.eq.f32.partialorder %v12186_v8, 0.0  ;;  %v15554_v30 = vld [vmem:[#allocation154_spill] sm:$0xff] }
 0x55a   :  { %5470 = vrsqrt.f32 %v12282_v26  ;;  %v4279_v2 = vsel %vm4277_vm4, %v4278_v1, %v4276_v57  ;;  %v4285_v14 = vand.u32 2147483648, %v12186_v8  ;;  %v4288_v36 = vmul.f32 %v5461_v3, %v12189_v46  ;;  %v3339_v53 = vpop.permute.xlu0 %3338 }
 0x55b   :  { %5472 = vrsqrt.f32 %v12285_v50  ;;  %v3337_v32 = vpop.permute.xlu1 %3336  ;;  %4603 = vst.msk [vmem:[%s13404_s2 + $0x2d8] sm:$0xff] %vm4511_vm0, %v4279_v2  ;;  %v4283_v45 = vsel %vm4282_vm5, %v12186_v8, %v4281_v13  ;;  %vm4289_vm7 = vcmp.eq.f32.partialorder %v12189_v46, inf  ;;  %vm4291_vm8 = vcmp.eq.f32.partialorder %v12189_v46, 0.0 }
 0x55c   :  { %v5463_v21 = vpop.eup %5462  ;;  %v12314_v33 = vadd.f32 %v3337_v32, %v15465_v37  ;;  %v12317_v31 = vadd.f32 %v3339_v53, %v15550_v49  ;;  %4840 = vrot.lane.b32.xlu1 %v15551_v62, %s5528_s1  ;;  %4842 = vrot.lane.b32.xlu0 %v15552_v18, %s5528_s1  ;;  %v4286_v19 = vsel %vm4284_vm6, %v4285_v14, %v4283_v45  ;;  %v4292_v12 = vand.u32 2147483648, %v12189_v46  ;;  %v15555_v14 = vld [vmem:[#allocation43_spill] sm:$0xff] }
 0x55d   :  { %v5465_v22 = vpop.eup %5464  ;;  %4604 = vst.msk [vmem:[%s13404_s2 + $0x2e0] sm:$0xff] %vm4511_vm0, %v4286_v19  ;;  %v4290_v37 = vsel %vm4289_vm7, %v12189_v46, %v4288_v36  ;;  %v4295_v27 = vmul.f32 %v5463_v21, %v12218_v41  ;;  %vm4296_vm9 = vcmp.eq.f32.partialorder %v12218_v41, inf  ;;  %vm4298_vm10 = vcmp.eq.f32.partialorder %v12218_v41, 0.0  ;;  %v15556_v36 = vld [vmem:[#allocation51_spill] sm:$0xff] }
 0x55e   :  { %5474 = vrsqrt.f32 %v12314_v33  ;;  %v4293_v8 = vsel %vm4291_vm8, %v4292_v12, %v4290_v37  ;;  %v4299_v25 = vand.u32 2147483648, %v12218_v41  ;;  %v4302_v38 = vmul.f32 %v5465_v22, %v12221_v56  ;;  %v3343_v47 = vpop.permute.xlu0 %3342  ;;  %v15557_v37 = vld [vmem:[#allocation161_spill] sm:$0xff] }
 0x55f   :  { %5476 = vrsqrt.f32 %v12317_v31  ;;  %v3341_v43 = vpop.permute.xlu1 %3340  ;;  %4605 = vst.msk [vmem:[%s13404_s2 + $0x2e8] sm:$0xff] %vm4511_vm0, %v4293_v8  ;;  %v4297_v46 = vsel %vm4296_vm9, %v12218_v41, %v4295_v27  ;;  %vm4303_vm11 = vcmp.eq.f32.partialorder %v12221_v56, inf  ;;  %vm4305_vm12 = vcmp.eq.f32.partialorder %v12221_v56, 0.0  ;;  %v15558_v27 = vld [vmem:[#allocation70_spill] sm:$0xff] }
 0x560   :  { %v5467_v51 = vpop.eup %5466  ;;  %v12346_v44 = vadd.f32 %v3341_v43, %v15469_v39  ;;  %v12349_v54 = vadd.f32 %v3343_v47, %v10659_v48  ;;  %4844 = vrot.lane.b32.xlu1 %v15553_v42, %s5528_s1  ;;  %4846 = vrot.lane.b32.xlu0 %v15554_v30, %s5528_s1  ;;  %v4300_v58 = vsel %vm4298_vm10, %v4299_v25, %v4297_v46  ;;  %v4306_v28 = vand.u32 2147483648, %v12221_v56 }
 0x561   :  { %v5469_v10 = vpop.eup %5468  ;;  %4606 = vst.msk [vmem:[%s13404_s2 + $0x2f0] sm:$0xff] %vm4511_vm0, %v4300_v58  ;;  %v4304_v48 = vsel %vm4303_vm11, %v12221_v56, %v4302_v38  ;;  %v4309_v39 = vmul.f32 %v5467_v51, %v12250_v29  ;;  %vm4310_vm13 = vcmp.eq.f32.partialorder %v12250_v29, inf  ;;  %vm4312_vm14 = vcmp.eq.f32.partialorder %v12250_v29, 0.0 }
 0x562   :  { %5478 = vrsqrt.f32 %v12346_v44  ;;  %v4307_v41 = vsel %vm4305_vm12, %v4306_v28, %v4304_v48  ;;  %v4313_v60 = vand.u32 2147483648, %v12250_v29  ;;  %v4316_v52 = vmul.f32 %v5469_v10, %v12253_v16  ;;  %v3347_v3 = vpop.permute.xlu0 %3346  ;;  %v15559_v28 = vld [vmem:[#allocation167_spill] sm:$0xff]  ;;  %v15560_v10 = vld [vmem:[#allocation6_spill] sm:$0xff] }
 0x563   :  { %5480 = vrsqrt.f32 %v12349_v54  ;;  %v3345_v1 = vpop.permute.xlu1 %3344  ;;  %4607 = vst.msk [vmem:[%s13404_s2 + $0x2f8] sm:$0xff] %vm4511_vm0, %v4307_v41  ;;  %v4311_v56 = vsel %vm4310_vm13, %v12250_v29, %v4309_v39  ;;  %vm4317_vm15 = vcmp.eq.f32.partialorder %v12253_v16, inf  ;;  %vm4319_vm1 = vcmp.eq.f32.partialorder %v12253_v16, 0.0 }
 0x564   :  { %v5471_v57 = vpop.eup %5470  ;;  %v12378_v13 = vadd.f32 %v3345_v1, %v10663_v35  ;;  %v12381_v2 = vadd.f32 %v3347_v3, %v10675_v15  ;;  %4848 = vrot.lane.b32.xlu1 %v15555_v14, %s5528_s1  ;;  %4850 = vrot.lane.b32.xlu0 %v15556_v36, %s5528_s1  ;;  %v4314_v32 = vsel %vm4312_vm14, %v4313_v60, %v4311_v56  ;;  %v4320_v53 = vand.u32 2147483648, %v12253_v16  ;;  %v15561_v36 = vld [vmem:[#allocation81_spill] sm:$0xff] }
 0x565   :  { %v5473_v45 = vpop.eup %5472  ;;  %4608 = vst.msk [vmem:[%s13404_s2 + $0x300] sm:$0xff] %vm4511_vm0, %v4314_v32  ;;  %v4318_v35 = vsel %vm4317_vm15, %v12253_v16, %v4316_v52  ;;  %v4323_v15 = vmul.f32 %v5471_v57, %v12282_v26  ;;  %vm4324_vm2 = vcmp.eq.f32.partialorder %v12282_v26, inf  ;;  %vm4326_vm3 = vcmp.eq.f32.partialorder %v12282_v26, 0.0  ;;  %v15562_v32 = vld [vmem:[#allocation17_spill] sm:$0xff] }
 0x566   :  { %5482 = vrsqrt.f32 %v12378_v13  ;;  %v4321_v29 = vsel %vm4319_vm1, %v4320_v53, %v4318_v35  ;;  %v4327_v21 = vand.u32 2147483648, %v12282_v26  ;;  %v4330_v49 = vmul.f32 %v5473_v45, %v12285_v50  ;;  %v3351_v18 = vpop.permute.xlu0 %3350 }
 0x567   :  { %5484 = vrsqrt.f32 %v12381_v2  ;;  %v3349_v62 = vpop.permute.xlu1 %3348  ;;  %4609 = vst.msk [vmem:[%s13404_s2 + $0x308] sm:$0xff] %vm4511_vm0, %v4321_v29  ;;  %v4325_v16 = vsel %vm4324_vm2, %v12282_v26, %v4323_v15  ;;  %vm4331_vm4 = vcmp.eq.f32.partialorder %v12285_v50, inf  ;;  %vm4333_vm5 = vcmp.eq.f32.partialorder %v12285_v50, 0.0 }
 0x568   :  { %v5475_v19 = vpop.eup %5474  ;;  %v12410_v12 = vadd.f32 %v3349_v62, %v10679_v34  ;;  %v12413_v22 = vadd.f32 %v3351_v18, %v10683_v6  ;;  %4852 = vrot.lane.b32.xlu1 %v15557_v37, %s5528_s1  ;;  %4854 = vrot.lane.b32.xlu0 %v15558_v27, %s5528_s1  ;;  %v4328_v8 = vsel %vm4326_vm3, %v4327_v21, %v4325_v16  ;;  %v4334_v25 = vand.u32 2147483648, %v12285_v50  ;;  %v15564_v37 = vld [vmem:[#allocation68_spill] sm:$0xff] }
 0x569   :  { %v5477_v38 = vpop.eup %5476  ;;  %4610 = vst.msk [vmem:[%s13404_s2 + $0x310] sm:$0xff] %vm4511_vm0, %v4328_v8  ;;  %v4332_v34 = vsel %vm4331_vm4, %v12285_v50, %v4330_v49  ;;  %v4337_v6 = vmul.f32 %v5475_v19, %v12314_v33  ;;  %vm4338_vm6 = vcmp.eq.f32.partialorder %v12314_v33, inf  ;;  %vm4340_vm7 = vcmp.eq.f32.partialorder %v12314_v33, 0.0  ;;  %v15563_v19 = vld [vmem:[#allocation173_spill] sm:$0xff] }
 0x56a   :  { %5486 = vrsqrt.f32 %v12410_v12  ;;  %v4335_v26 = vsel %vm4333_vm5, %v4334_v25, %v4332_v34  ;;  %v4341_v43 = vand.u32 2147483648, %v12314_v33  ;;  %v4344_v47 = vmul.f32 %v5477_v38, %v12317_v31  ;;  %v3355_v51 = vpop.permute.xlu0 %3354 }
 0x56b   :  { %5488 = vrsqrt.f32 %v12413_v22  ;;  %v3353_v46 = vpop.permute.xlu1 %3352  ;;  %4611 = vst.msk [vmem:[%s13404_s2 + $0x318] sm:$0xff] %vm4511_vm0, %v4335_v26  ;;  %v4339_v50 = vsel %vm4338_vm6, %v12314_v33, %v4337_v6  ;;  %vm4345_vm8 = vcmp.eq.f32.partialorder %v12317_v31, inf  ;;  %vm4347_vm9 = vcmp.eq.f32.partialorder %v12317_v31, 0.0 }
 0x56c   :  { %v5479_v42 = vpop.eup %5478  ;;  %v12442_v30 = vadd.f32 %v3353_v46, %v10688_v0  ;;  %v12445_v58 = vadd.f32 %v3355_v51, %v10692_v17  ;;  %4856 = vrot.lane.b32.xlu1 %v15559_v28, %s5528_s1  ;;  %4858 = vrot.lane.b32.xlu0 %v15560_v10, %s5528_s1  ;;  %v4342_v48 = vsel %vm4340_vm7, %v4341_v43, %v4339_v50  ;;  %v4348_v39 = vand.u32 2147483648, %v12317_v31  ;;  %v15565_v51 = vld [vmem:[#allocation176_spill] sm:$0xff]  ;;  %v15566_v50 = vld [vmem:[#allocation75_spill] sm:$0xff] }
 0x56d   :  { %v5481_v41 = vpop.eup %5480  ;;  %4612 = vst.msk [vmem:[%s13404_s2 + $0x320] sm:$0xff] %vm4511_vm0, %v4342_v48  ;;  %v4346_v0 = vsel %vm4345_vm8, %v12317_v31, %v4344_v47  ;;  %v4351_v17 = vmul.f32 %v5479_v42, %v12346_v44  ;;  %vm4352_vm10 = vcmp.eq.f32.partialorder %v12346_v44, inf  ;;  %vm4354_vm11 = vcmp.eq.f32.partialorder %v12346_v44, 0.0 }
 0x56e   :  { %5490 = vrsqrt.f32 %v12442_v30  ;;  %v4349_v33 = vsel %vm4347_vm9, %v4348_v39, %v4346_v0  ;;  %v4355_v60 = vand.u32 2147483648, %v12346_v44  ;;  %v4358_v52 = vmul.f32 %v5481_v41, %v12349_v54  ;;  %v3359_v3 = vpop.permute.xlu0 %3358 }
 0x56f   :  { %5492 = vrsqrt.f32 %v12445_v58  ;;  %v3357_v1 = vpop.permute.xlu1 %3356  ;;  %4613 = vst.msk [vmem:[%s13404_s2 + $0x328] sm:$0xff] %vm4511_vm0, %v4349_v33  ;;  %v4353_v31 = vsel %vm4352_vm10, %v12346_v44, %v4351_v17  ;;  %vm4359_vm12 = vcmp.eq.f32.partialorder %v12349_v54, inf  ;;  %vm4361_vm13 = vcmp.eq.f32.partialorder %v12349_v54, 0.0 }
 0x570   :  { %v5483_v56 = vpop.eup %5482  ;;  %v12474_v57 = vadd.f32 %v3357_v1, %v10696_v11  ;;  %v12477_v14 = vadd.f32 %v3359_v3, %v10701_v4  ;;  %4860 = vrot.lane.b32.xlu1 %v15561_v36, %s5528_s1  ;;  %4862 = vrot.lane.b32.xlu0 %v15562_v32, %s5528_s1  ;;  %v4356_v53 = vsel %vm4354_vm11, %v4355_v60, %v4353_v31  ;;  %v4362_v45 = vand.u32 2147483648, %v12349_v54  ;;  %v15568_v1 = vld [vmem:[#allocation180_spill] sm:$0xff] }
 0x571   :  { %v5485_v35 = vpop.eup %5484  ;;  %4614 = vst.msk [vmem:[%s13404_s2 + $0x330] sm:$0xff] %vm4511_vm0, %v4356_v53  ;;  %v4360_v11 = vsel %vm4359_vm12, %v12349_v54, %v4358_v52  ;;  %v4365_v4 = vmul.f32 %v5483_v56, %v12378_v13  ;;  %vm4366_vm14 = vcmp.eq.f32.partialorder %v12378_v13, inf  ;;  %vm4368_vm15 = vcmp.eq.f32.partialorder %v12378_v13, 0.0  ;;  %v15567_v52 = vld [vmem:[#allocation178_spill] sm:$0xff] }
 0x572   :  { %5494 = vrsqrt.f32 %v12474_v57  ;;  %v4363_v44 = vsel %vm4361_vm13, %v4362_v45, %v4360_v11  ;;  %v4369_v15 = vand.u32 2147483648, %v12378_v13  ;;  %v4372_v29 = vmul.f32 %v5485_v35, %v12381_v2  ;;  %v3363_v49 = vpop.permute.xlu0 %3362 }
 0x573   :  { %5496 = vrsqrt.f32 %v12477_v14  ;;  %v3361_v21 = vpop.permute.xlu1 %3360  ;;  %4615 = vst.msk [vmem:[%s13404_s2 + $0x338] sm:$0xff] %vm4511_vm0, %v4363_v44  ;;  %v4367_v54 = vsel %vm4366_vm14, %v12378_v13, %v4365_v4  ;;  %vm4373_vm1 = vcmp.eq.f32.partialorder %v12381_v2, inf  ;;  %vm4375_vm2 = vcmp.eq.f32.partialorder %v12381_v2, 0.0  ;;  %v15569_v44 = vld [vmem:[#allocation21_spill] sm:$0xff] }
 0x574   :  { %v5487_v62 = vpop.eup %5486  ;;  %v12506_v18 = vadd.f32 %v3361_v21, %v10715_v7  ;;  %v12509_v16 = vadd.f32 %v3363_v49, %v10719_v63  ;;  %4864 = vrot.lane.b32.xlu1 %v15563_v19, %s5528_s1  ;;  %4866 = vrot.lane.b32.xlu0 %v15564_v37, %s5528_s1  ;;  %v4370_v27 = vsel %vm4368_vm15, %v4369_v15, %v4367_v54  ;;  %v4376_v8 = vand.u32 2147483648, %v12381_v2  ;;  %v15570_v15 = vld [vmem:[#allocation246_spill] sm:$0xff] }
 0x575   :  { %v5489_v25 = vpop.eup %5488  ;;  %4616 = vst.msk [vmem:[%s13404_s2 + $0x340] sm:$0xff] %vm4511_vm0, %v4370_v27  ;;  %v4374_v7 = vsel %vm4373_vm1, %v12381_v2, %v4372_v29  ;;  %v4379_v63 = vmul.f32 %v5487_v62, %v12410_v12  ;;  %vm4380_vm3 = vcmp.eq.f32.partialorder %v12410_v12, inf  ;;  %vm4382_vm4 = vcmp.eq.f32.partialorder %v12410_v12, 0.0 }
 0x576   :  { %5498 = vrsqrt.f32 %v12506_v18  ;;  %v4377_v13 = vsel %vm4375_vm2, %v4376_v8, %v4374_v7  ;;  %v4383_v38 = vand.u32 2147483648, %v12410_v12  ;;  %v4386_v34 = vmul.f32 %v5489_v25, %v12413_v22  ;;  %v3367_v26 = vpop.permute.xlu0 %3366  ;;  %v15571_v7 = vld [vmem:[#allocation24_spill] sm:$0xff] }
 0x577   :  { %5500 = vrsqrt.f32 %v12509_v16  ;;  %v3365_v6 = vpop.permute.xlu1 %3364  ;;  %4617 = vst.msk [vmem:[%s13404_s2 + $0x348] sm:$0xff] %vm4511_vm0, %v4377_v13  ;;  %v4381_v2 = vsel %vm4380_vm3, %v12410_v12, %v4379_v63  ;;  %vm4387_vm5 = vcmp.eq.f32.partialorder %v12413_v22, inf  ;;  %vm4389_vm6 = vcmp.eq.f32.partialorder %v12413_v22, 0.0  ;;  %v15572_v63 = vld [vmem:[#allocation84_spill] sm:$0xff] }
 0x578   :  { %v5491_v43 = vpop.eup %5490  ;;  %v12538_v47 = vadd.f32 %v3365_v6, %v10771_v9  ;;  %v12541_v46 = vadd.f32 %v3367_v26, %v10775_v23  ;;  %4868 = vrot.lane.b32.xlu1 %v15565_v51, %s5528_s1  ;;  %4870 = vrot.lane.b32.xlu0 %v15566_v50, %s5528_s1  ;;  %v4384_v42 = vsel %vm4382_vm4, %v4383_v38, %v4381_v2  ;;  %v4390_v28 = vand.u32 2147483648, %v12413_v22 }
 0x579   :  { %v5493_v10 = vpop.eup %5492  ;;  %4618 = vst.msk [vmem:[%s13404_s2 + $0x350] sm:$0xff] %vm4511_vm0, %v4384_v42  ;;  %v4388_v9 = vsel %vm4387_vm5, %v12413_v22, %v4386_v34  ;;  %v4393_v23 = vmul.f32 %v5491_v43, %v12442_v30  ;;  %vm4394_vm7 = vcmp.eq.f32.partialorder %v12442_v30, inf  ;;  %vm4396_vm8 = vcmp.eq.f32.partialorder %v12442_v30, 0.0  ;;  %v15573_v42 = vld [vmem:[#allocation226_spill] sm:$0xff] }
 0x57a   :  { %5502 = vrsqrt.f32 %v12538_v47  ;;  %v4391_v12 = vsel %vm4389_vm6, %v4390_v28, %v4388_v9  ;;  %v4397_v48 = vand.u32 2147483648, %v12442_v30  ;;  %v4400_v39 = vmul.f32 %v5493_v10, %v12445_v58  ;;  %v3371_v0 = vpop.permute.xlu0 %3370  ;;  %v15574_v10 = vld [vmem:[#allocation184_spill] sm:$0xff]  ;;  %v15575_v9 = vld [vmem:[#allocation106_spill] sm:$0xff] }
 0x57b   :  { %5504 = vrsqrt.f32 %v12541_v46  ;;  %v3369_v41 = vpop.permute.xlu1 %3368  ;;  %4619 = vst.msk [vmem:[%s13404_s2 + $0x358] sm:$0xff] %vm4511_vm0, %v4391_v12  ;;  %v4395_v22 = vsel %vm4394_vm7, %v12442_v30, %v4393_v23  ;;  %vm4401_vm9 = vcmp.eq.f32.partialorder %v12445_v58, inf  ;;  %vm4403_vm10 = vcmp.eq.f32.partialorder %v12445_v58, 0.0 }
 0x57c   :  { %v5495_v17 = vpop.eup %5494  ;;  %v12570_v33 = vadd.f32 %v3369_v41, %v10787_v55  ;;  %v12573_v60 = vadd.f32 %v3371_v0, %v10791_v20  ;;  %4872 = vrot.lane.b32.xlu1 %v15567_v52, %s5528_s1  ;;  %4874 = vrot.lane.b32.xlu0 %v15568_v1, %s5528_s1  ;;  %v4398_v3 = vsel %vm4396_vm8, %v4397_v48, %v4395_v22  ;;  %v4404_v31 = vand.u32 2147483648, %v12445_v58 }
 0x57d   :  { %v5497_v56 = vpop.eup %5496  ;;  %4620 = vst.msk [vmem:[%s13404_s2 + $0x360] sm:$0xff] %vm4511_vm0, %v4398_v3  ;;  %v4402_v55 = vsel %vm4401_vm9, %v12445_v58, %v4400_v39  ;;  %v4407_v20 = vmul.f32 %v5495_v17, %v12474_v57  ;;  %vm4408_vm11 = vcmp.eq.f32.partialorder %v12474_v57, inf  ;;  %vm4410_vm12 = vcmp.eq.f32.partialorder %v12474_v57, 0.0  ;;  %v15576_v3 = vld [vmem:[#allocation95_spill] sm:$0xff] }
 0x57e   :  { %5506 = vrsqrt.f32 %v12570_v33  ;;  %v4405_v30 = vsel %vm4403_vm10, %v4404_v31, %v4402_v55  ;;  %v4411_v36 = vand.u32 2147483648, %v12474_v57  ;;  %v4414_v32 = vmul.f32 %v5497_v56, %v12477_v14  ;;  %v3375_v45 = vpop.permute.xlu0 %3374  ;;  %v15577_v56 = vld [vmem:[#allocation91_spill] sm:$0xff]  ;;  %v15578_v55 = vld [vmem:[#allocation186_spill] sm:$0xff] }
 0x57f   :  { %5508 = vrsqrt.f32 %v12573_v60  ;;  %v3373_v53 = vpop.permute.xlu1 %3372  ;;  %4621 = vst.msk [vmem:[%s13404_s2 + $0x368] sm:$0xff] %vm4511_vm0, %v4405_v30  ;;  %v4409_v58 = vsel %vm4408_vm11, %v12474_v57, %v4407_v20  ;;  %vm4415_vm13 = vcmp.eq.f32.partialorder %v12477_v14, inf  ;;  %vm4417_vm14 = vcmp.eq.f32.partialorder %v12477_v14, 0.0 }
 0x580   :  { %v5499_v35 = vpop.eup %5498  ;;  %v12602_v11 = vadd.f32 %v3373_v53, %v10795_v61  ;;  %v12605_v4 = vadd.f32 %v3375_v45, %v10800_v40  ;;  %4876 = vrot.lane.b32.xlu1 %v15569_v44, %s5528_s1  ;;  %4878 = vrot.lane.b32.xlu0 %v15570_v15, %s5528_s1  ;;  %v4412_v29 = vsel %vm4410_vm12, %v4411_v36, %v4409_v58  ;;  %v4418_v21 = vand.u32 2147483648, %v12477_v14 }
 0x581   :  { %v5501_v49 = vpop.eup %5500  ;;  %vm5137_vm15 = vcmask 23560   ;;  %4622 = vst.msk [vmem:[%s13404_s2 + $0x370] sm:$0xff] %vm4511_vm0, %v4412_v29  ;;  %v4416_v61 = vsel %vm4415_vm13, %v12477_v14, %v4414_v32  ;;  %v4421_v40 = vmul.f32 %v5499_v35, %v12506_v18  ;;  %vm4422_vm1 = vcmp.eq.f32.partialorder %v12506_v18, inf  ;;  %v15579_v29 = vld [vmem:[#allocation105_spill] sm:$0xff] }
 0x582   :  { %vm4424_vm2 = vcmp.eq.f32.partialorder %v12506_v18, 0.0  ;;  %5510 = vrsqrt.f32 %v12602_v11  ;;  %v4419_v57 = vsel %vm4417_vm14, %v4418_v21, %v4416_v61  ;;  %v4425_v54 = vand.u32 2147483648, %v12506_v18  ;;  %v3379_v37 = vpop.permute.xlu0 %3378 }
 0x583   :  { %v4428_v62 = vmul.f32 %v5501_v49, %v12509_v16  ;;  %5512 = vrsqrt.f32 %v12605_v4  ;;  %v3377_v19 = vpop.permute.xlu1 %3376  ;;  %4623 = vst.msk [vmem:[%s13404_s2 + $0x378] sm:$0xff] %vm4511_vm0, %v4419_v57  ;;  %v4423_v27 = vsel %vm4422_vm1, %v12506_v18, %v4421_v40  ;;  %vm4429_vm3 = vcmp.eq.f32.partialorder %v12509_v16, inf }
 0x584   :  { %vm4431_vm4 = vcmp.eq.f32.partialorder %v12509_v16, 0.0  ;;  %v5503_v14 = vpop.eup %5502  ;;  %v12636_v8 = vadd.f32 %v3377_v19, %v10804_v24  ;;  %v12639_v25 = vadd.f32 %v3379_v37, %v10808_v59  ;;  %4880 = vrot.lane.b32.xlu1 %v15571_v7, %s5528_s1  ;;  %4882 = vrot.lane.b32.xlu0 %v15572_v63, %s5528_s1  ;;  %v4426_v13 = vsel %vm4424_vm2, %v4425_v54, %v4423_v27  ;;  %v15581_v7 = vld [vmem:[#allocation92_spill] sm:$0xff] }
 0x585   :  { %v4432_v38 = vand.u32 2147483648, %v12509_v16  ;;  %v5505_v34 = vpop.eup %5504  ;;  %4624 = vst.msk [vmem:[%s13404_s2 + $0x380] sm:$0xff] %vm4511_vm0, %v4426_v13  ;;  %v4430_v24 = vsel %vm4429_vm3, %v12509_v16, %v4428_v62  ;;  %v4435_v59 = vmul.f32 %v5503_v14, %v12538_v47  ;;  %vm4436_vm5 = vcmp.eq.f32.partialorder %v12538_v47, inf }
 0x586   :  { %vm4438_vm6 = vcmp.eq.f32.partialorder %v12538_v47, 0.0  ;;  %5514 = vrsqrt.f32 %v12636_v8  ;;  %v4439_v6 = vand.u32 2147483648, %v12538_v47  ;;  %v4442_v26 = vmul.f32 %v5505_v34, %v12541_v46  ;;  %v3383_v43 = vpop.permute.xlu0 %3382 }
 0x587   :  { %v4433_v18 = vsel %vm4431_vm4, %v4432_v38, %v4430_v24  ;;  %5516 = vrsqrt.f32 %v12639_v25  ;;  %v3381_v2 = vpop.permute.xlu1 %3380  ;;  %v4437_v16 = vsel %vm4436_vm5, %v12538_v47, %v4435_v59  ;;  %vm4443_vm7 = vcmp.eq.f32.partialorder %v12541_v46, inf }
 0x588   :  { %4625 = vst.msk [vmem:[%s13404_s2 + $0x388] sm:$0xff] %vm4511_vm0, %v4433_v18  ;;  %vm4445_vm8 = vcmp.eq.f32.partialorder %v12541_v46, 0.0  ;;  %v5507_v51 = vpop.eup %5506  ;;  %v12668_v50 = vadd.f32 %v3381_v2, %v10813_v5  ;;  %v12671_v28 = vadd.f32 %v3383_v43, %v15573_v42  ;;  %4884 = vrot.lane.b32.xlu1 %v15574_v10, %s5528_s1  ;;  %4886 = vrot.lane.b32.xlu0 %v15575_v9, %s5528_s1  ;;  %v4446_v12 = vand.u32 2147483648, %v12541_v46 }
 0x589   :  { %v4440_v23 = vsel %vm4438_vm6, %v4439_v6, %v4437_v16  ;;  %v5509_v48 = vpop.eup %5508  ;;  %v4444_v5 = vsel %vm4443_vm7, %v12541_v46, %v4442_v26  ;;  %v4449_v39 = vmul.f32 %v5507_v51, %v12570_v33  ;;  %vm4450_vm9 = vcmp.eq.f32.partialorder %v12570_v33, inf  ;;  %v15583_v16 = vld [vmem:[#allocation26_spill] sm:$0xff] }
 0x58a   :  { %4626 = vst.msk [vmem:[%s13404_s2 + $0x390] sm:$0xff] %vm4511_vm0, %v4440_v23  ;;  %vm4452_vm10 = vcmp.eq.f32.partialorder %v12570_v33, 0.0  ;;  %5518 = vrsqrt.f32 %v12668_v50  ;;  %v4447_v47 = vsel %vm4445_vm8, %v4446_v12, %v4444_v5  ;;  %v4453_v41 = vand.u32 2147483648, %v12570_v33  ;;  %v4763_v17 = vpop.permute.xlu0 %4762  ;;  %v15584_v51 = vld [vmem:[#allocation190_spill] sm:$0xff]  ;;  %v15585_v5 = vld [vmem:[#allocation192_spill] sm:$0xff] }
 0x58b   :  { %v4456_v0 = vmul.f32 %v5509_v48, %v12573_v60  ;;  %5520 = vrsqrt.f32 %v12671_v28  ;;  %v3385_v22 = vpop.permute.xlu1 %3384  ;;  %4627 = vst.msk [vmem:[%s13404_s2 + $0x398] sm:$0xff] %vm4511_vm0, %v4447_v47  ;;  %v4451_v46 = vsel %vm4450_vm9, %v12570_v33, %v4449_v39  ;;  %vm4457_vm11 = vcmp.eq.f32.partialorder %v12573_v60, inf  ;;  %v15586_v39 = vld [vmem:[#allocation193_spill] sm:$0xff] }
 0x58c   :  { %v4460_v52 = vand.u32 2147483648, %v12573_v60  ;;  %v5511_v1 = vpop.eup %5510  ;;  %v12700_v31 = vadd.f32 %v3385_v22, %v15576_v3  ;;  %5138 = vst.msk [vmem:[%s13404_s2] sm:$0xff] %vm5137_vm15, %v4763_v17  ;;  %4888 = vrot.lane.b32.xlu1 %v15577_v56, %s5528_s1  ;;  %4890 = vrot.lane.b32.xlu0 %v15578_v55, %s5528_s1  ;;  %v4454_v20 = vsel %vm4452_vm10, %v4453_v41, %v4451_v46  ;;  %vm4459_vm12 = vcmp.eq.f32.partialorder %v12573_v60, 0.0  ;;  %v15587_v22 = vld [vmem:[#allocation248_spill] sm:$0xff]  ;;  %v15588_v17 = vld [vmem:[#allocation114_spill] sm:$0xff]  ;;  %v15590_v3 = vld [vmem:[#allocation195_spill] sm:$0xff] }
 0x58d   :  { %v4458_v30 = vsel %vm4457_vm11, %v12573_v60, %v4456_v0  ;;  %v5513_v36 = vpop.eup %5512  ;;  %4628 = vst.msk [vmem:[%s13404_s2 + $0x3a0] sm:$0xff] %vm4511_vm0, %v4454_v20  ;;  %v4463_v53 = vmul.f32 %v5511_v1, %v12602_v11  ;;  %vm4464_vm13 = vcmp.eq.f32.partialorder %v12602_v11, inf  ;;  %v4467_v33 = vand.u32 2147483648, %v12602_v11  ;;  %v15589_v1 = vld [vmem:[#allocation29_spill] sm:$0xff]  ;;  %v15591_v55 = vld [vmem:[#allocation118_spill] sm:$0xff]  ;;  %v15592_v20 = vld [vmem:[#allocation196_spill] sm:$0xff] }
 0x58e   :  { %v4461_v32 = vsel %vm4459_vm12, %v4460_v52, %v4458_v30  ;;  %5522 = vrsqrt.f32 %v12700_v31  ;;  %v4470_v60 = vmul.f32 %v5513_v36, %v12605_v4  ;;  %v4767_v58 = vpop.permute.xlu0 %4766  ;;  %vm4466_vm14 = vcmp.eq.f32.partialorder %v12602_v11, 0.0 }
 0x58f   :  { %4629 = vst.msk [vmem:[%s13404_s2 + $0x3a8] sm:$0xff] %vm4511_vm0, %v4461_v32  ;;  %v4765_v45 = vpop.permute.xlu1 %4764  ;;  %v4465_v35 = vsel %vm4464_vm13, %v12602_v11, %v4463_v53  ;;  %vm4471_vm1 = vcmp.eq.f32.partialorder %v12605_v4, inf  ;;  %v4474_v44 = vand.u32 2147483648, %v12605_v4  ;;  %v15580_v11 = vld [vmem:[#allocation187_spill] sm:$0xff]  ;;  %vm4473_vm2 = vcmp.eq.f32.partialorder %v12605_v4, 0.0  ;;  %v15594_v53 = vld [vmem:[#allocation197_spill] sm:$0xff] }
 0x590   :  { %v5515_v15 = vpop.eup %5514  ;;  %5139 = vst.msk [vmem:[%s13404_s2 + $0x8] sm:$0xff] %vm5137_vm15, %v4765_v45  ;;  %5140 = vst.msk [vmem:[%s13404_s2 + $0x10] sm:$0xff] %vm5137_vm15, %v4767_v58  ;;  %4892 = vrot.lane.b32.xlu1 %v15579_v29, %s5528_s1  ;;  %4894 = vrot.lane.b32.xlu0 %v15580_v11, %s5528_s1  ;;  %v4468_v21 = vsel %vm4466_vm14, %v4467_v33, %v4465_v35  ;;  %v4472_v49 = vsel %vm4471_vm1, %v12605_v4, %v4470_v60  ;;  %vm4478_vm3 = vcmp.eq.f32.partialorder %v12636_v8, inf  ;;  %v15593_v32 = vld [vmem:[#allocation31_spill] sm:$0xff]  ;;  %v15595_v45 = vld [vmem:[#allocation122_spill] sm:$0xff] }
 0x591   :  { %v5517_v61 = vpop.eup %5516  ;;  %4630 = vst.msk [vmem:[%s13404_s2 + $0x3b0] sm:$0xff] %vm4511_vm0, %v4468_v21  ;;  %v4475_v40 = vsel %vm4473_vm2, %v4474_v44, %v4472_v49  ;;  %v4477_v57 = vmul.f32 %v5515_v15, %v12636_v8  ;;  %v4481_v54 = vand.u32 2147483648, %v12636_v8  ;;  %vm4480_vm4 = vcmp.eq.f32.partialorder %v12636_v8, 0.0  ;;  %v15596_v58 = vld [vmem:[#allocation198_spill] sm:$0xff]  ;;  %v15597_v15 = vld [vmem:[#allocation33_spill] sm:$0xff]  ;;  %v15599_v49 = vld [vmem:[#allocation200_spill] sm:$0xff] }
 0x592   :  { %4631 = vst.msk [vmem:[%s13404_s2 + $0x3b8] sm:$0xff] %vm4511_vm0, %v4475_v40  ;;  %v4484_v4 = vmul.f32 %v5517_v61, %v12639_v25  ;;  %v4771_v19 = vpop.permute.xlu0 %4770  ;;  %vm4485_vm5 = vcmp.eq.f32.partialorder %v12639_v25, inf  ;;  %v4488_v27 = vand.u32 2147483648, %v12639_v25  ;;  %vm4487_vm6 = vcmp.eq.f32.partialorder %v12639_v25, 0.0  ;;  %v15598_v29 = vld [vmem:[#allocation126_spill] sm:$0xff]  ;;  %v15600_v61 = vld [vmem:[#allocation35_spill] sm:$0xff] }
 0x593   :  { %v4769_v62 = vpop.permute.xlu1 %4768  ;;  %v4479_v37 = vsel %vm4478_vm3, %v12636_v8, %v4477_v57  ;;  %5142 = vst.msk [vmem:[%s13404_s2 + $0x20] sm:$0xff] %vm5137_vm15, %v4771_v19  ;;  %v15582_v8 = vld [vmem:[#allocation188_spill] sm:$0xff]  ;;  %vm4492_vm7 = vcmp.eq.f32.partialorder %v12668_v50, inf  ;;  %v4495_v59 = vand.u32 2147483648, %v12668_v50  ;;  %vm4494_vm8 = vcmp.eq.f32.partialorder %v12668_v50, 0.0 }
 0x594   :  { %v5519_v14 = vpop.eup %5518  ;;  %5141 = vst.msk [vmem:[%s13404_s2 + $0x18] sm:$0xff] %vm5137_vm15, %v4769_v62  ;;  %4896 = vrot.lane.b32.xlu1 %v15581_v7, %s5528_s1  ;;  %4898 = vrot.lane.b32.xlu0 %v15582_v8, %s5528_s1  ;;  %v4482_v63 = vsel %vm4480_vm4, %v4481_v54, %v4479_v37  ;;  %v4486_v13 = vsel %vm4485_vm5, %v12639_v25, %v4484_v4  ;;  %vm4499_vm9 = vcmp.eq.f32.partialorder %v12671_v28, inf  ;;  %v4502_v2 = vand.u32 2147483648, %v12671_v28  ;;  %v15601_v54 = vld [vmem:[#allocation201_spill] sm:$0xff]  ;;  %v15602_v4 = vld [vmem:[#allocation204_spill] sm:$0xff] }
 0x595   :  { %v5521_v38 = vpop.eup %5520  ;;  %4632 = vst.msk [vmem:[%s13404_s2 + $0x3c0] sm:$0xff] %vm4511_vm0, %v4482_v63  ;;  %v4489_v34 = vsel %vm4487_vm6, %v4488_v27, %v4486_v13  ;;  %v4491_v24 = vmul.f32 %v5519_v14, %v12668_v50  ;;  %vm4501_vm10 = vcmp.eq.f32.partialorder %v12671_v28, 0.0  ;;  %vm4506_vm11 = vcmp.eq.f32.partialorder %v12700_v31, inf  ;;  %v15603_v37 = vld [vmem:[#allocation249_spill] sm:$0xff]  ;;  %v15606_v63 = vld [vmem:[#allocation42_spill] sm:$0xff] }
 0x596   :  { %4633 = vst.msk [vmem:[%s13404_s2 + $0x3c8] sm:$0xff] %vm4511_vm0, %v4489_v34  ;;  %v4498_v25 = vmul.f32 %v5521_v38, %v12671_v28  ;;  %v4775_v6 = vpop.permute.xlu0 %4774  ;;  %v4509_v23 = vand.u32 2147483648, %v12700_v31  ;;  %vm4508_vm12 = vcmp.eq.f32.partialorder %v12700_v31, 0.0  ;;  %v15604_v27 = vld [vmem:[#allocation41_spill] sm:$0xff] }
 0x597   :  { %v4773_v18 = vpop.permute.xlu1 %4772  ;;  %v4493_v26 = vsel %vm4492_vm7, %v12668_v50, %v4491_v24  ;;  %5144 = vst.msk [vmem:[%s13404_s2 + $0x30] sm:$0xff] %vm5137_vm15, %v4775_v6  ;;  %v15605_v8 = vld [vmem:[#allocation205_spill] sm:$0xff]  ;;  %v15608_v24 = vld [vmem:[#allocation207_spill] sm:$0xff]  ;;  %v15610_v6 = vld [vmem:[#allocation208_spill] sm:$0xff] }
 0x598   :  { %v5523_v43 = vpop.eup %5522  ;;  %5143 = vst.msk [vmem:[%s13404_s2 + $0x28] sm:$0xff] %vm5137_vm15, %v4773_v18  ;;  %4900 = vrot.lane.b32.xlu1 %v15583_v16, %s5528_s1  ;;  %4902 = vrot.lane.b32.xlu0 %v15584_v51, %s5528_s1  ;;  %v4496_v50 = vsel %vm4494_vm8, %v4495_v59, %v4493_v26  ;;  %v4500_v42 = vsel %vm4499_vm9, %v12671_v28, %v4498_v25  ;;  %v15607_v34 = vld [vmem:[#allocation45_spill] sm:$0xff]  ;;  %v15609_v18 = vld [vmem:[#allocation46_spill] sm:$0xff] }
 0x599   :  { %4634 = vst.msk [vmem:[%s13404_s2 + $0x3d0] sm:$0xff] %vm4511_vm0, %v4496_v50  ;;  %v4503_v10 = vsel %vm4501_vm10, %v4502_v2, %v4500_v42  ;;  %v4505_v9 = vmul.f32 %v5523_v43, %v12700_v31  ;;  %v15611_v43 = vld [vmem:[#allocation49_spill] sm:$0xff]  ;;  %v15613_v42 = vld [vmem:[#allocation50_spill] sm:$0xff] }
 0x59a   :  { %4635 = vst.msk [vmem:[%s13404_s2 + $0x3d8] sm:$0xff] %vm4511_vm0, %v4503_v10  ;;  %v4779_v48 = vpop.permute.xlu0 %4778  ;;  %v15612_v16 = vld [vmem:[#allocation209_spill] sm:$0xff]  ;;  %v15614_v10 = vld [vmem:[#allocation210_spill] sm:$0xff] }
 0x59b   :  { %v4777_v12 = vpop.permute.xlu1 %4776  ;;  %v4507_v28 = vsel %vm4506_vm11, %v12700_v31, %v4505_v9  ;;  %5146 = vst.msk [vmem:[%s13404_s2 + $0x40] sm:$0xff] %vm5137_vm15, %v4779_v48  ;;  %v15616_v48 = vld [vmem:[#allocation58_spill] sm:$0xff] }
 0x59c   :  { %5145 = vst.msk [vmem:[%s13404_s2 + $0x38] sm:$0xff] %vm5137_vm15, %v4777_v12  ;;  %4904 = vrot.lane.b32.xlu1 %v15585_v5, %s5528_s1  ;;  %4906 = vrot.lane.b32.xlu0 %v15586_v39, %s5528_s1  ;;  %v4510_v47 = vsel %vm4508_vm12, %v4509_v23, %v4507_v28  ;;  %v15615_v12 = vld [vmem:[#allocation54_spill] sm:$0xff]  ;;  %v15617_v39 = vld [vmem:[#allocation59_spill] sm:$0xff] }
 0x59d   :  { %4636 = vst.msk [vmem:[%s13404_s2 + $0x3e0] sm:$0xff] %vm4511_vm0, %v4510_v47  ;;  %v15618_v47 = vld [vmem:[#allocation215_spill] sm:$0xff] }
 0x59e   :  { %v4783_v0 = vpop.permute.xlu0 %4782 }
 0x59f   :  { %v4781_v41 = vpop.permute.xlu1 %4780  ;;  %5148 = vst.msk [vmem:[%s13404_s2 + $0x50] sm:$0xff] %vm5137_vm15, %v4783_v0 }
 0x5a0   :  { %5147 = vst.msk [vmem:[%s13404_s2 + $0x48] sm:$0xff] %vm5137_vm15, %v4781_v41  ;;  %4908 = vrot.lane.b32.xlu1 %v15587_v22, %s5528_s1  ;;  %4910 = vrot.lane.b32.xlu0 %v15588_v17, %s5528_s1  ;;  %v15619_v22 = vld [vmem:[#allocation218_spill] sm:$0xff]  ;;  %v15620_v17 = vld [vmem:[#allocation63_spill] sm:$0xff] }
 0x5a2   :  { %v4787_v52 = vpop.permute.xlu0 %4786 }
 0x5a3   :  { %v4785_v46 = vpop.permute.xlu1 %4784  ;;  %5150 = vst.msk [vmem:[%s13404_s2 + $0x60] sm:$0xff] %vm5137_vm15, %v4787_v52 }
 0x5a4   :  { %5149 = vst.msk [vmem:[%s13404_s2 + $0x58] sm:$0xff] %vm5137_vm15, %v4785_v46  ;;  %4912 = vrot.lane.b32.xlu1 %v15589_v1, %s5528_s1  ;;  %4914 = vrot.lane.b32.xlu0 %v15590_v3, %s5528_s1  ;;  %v15621_v1 = vld [vmem:[#allocation217_spill] sm:$0xff]  ;;  %v15622_v3 = vld [vmem:[#allocation220_spill] sm:$0xff] }
 0x5a6   :  { %v4791_v56 = vpop.permute.xlu0 %4790 }
 0x5a7   :  { %v4789_v31 = vpop.permute.xlu1 %4788  ;;  %5152 = vst.msk [vmem:[%s13404_s2 + $0x70] sm:$0xff] %vm5137_vm15, %v4791_v56 }
 0x5a8   :  { %5151 = vst.msk [vmem:[%s13404_s2 + $0x68] sm:$0xff] %vm5137_vm15, %v4789_v31  ;;  %4916 = vrot.lane.b32.xlu1 %v15591_v55, %s5528_s1  ;;  %4918 = vrot.lane.b32.xlu0 %v15592_v20, %s5528_s1  ;;  %v15623_v55 = vld [vmem:[#allocation71_spill] sm:$0xff] }
 0x5a9   :  { %v15624_v20 = vld [vmem:[#allocation219_spill] sm:$0xff] }
 0x5aa   :  { %v4795_v36 = vpop.permute.xlu0 %4794 }
 0x5ab   :  { %v4793_v30 = vpop.permute.xlu1 %4792  ;;  %5154 = vst.msk [vmem:[%s13404_s2 + $0x80] sm:$0xff] %vm5137_vm15, %v4795_v36 }
 0x5ac   :  { %5153 = vst.msk [vmem:[%s13404_s2 + $0x78] sm:$0xff] %vm5137_vm15, %v4793_v30  ;;  %4920 = vrot.lane.b32.xlu1 %v15593_v32, %s5528_s1  ;;  %4922 = vrot.lane.b32.xlu0 %v15594_v53, %s5528_s1  ;;  %v15625_v32 = vld [vmem:[#allocation253_spill] sm:$0xff]  ;;  %v15626_v53 = vld [vmem:[#allocation254_spill] sm:$0xff] }
 0x5ae   :  { %v4799_v60 = vpop.permute.xlu0 %4798 }
 0x5af   :  { %v4797_v33 = vpop.permute.xlu1 %4796  ;;  %5156 = vst.msk [vmem:[%s13404_s2 + $0x90] sm:$0xff] %vm5137_vm15, %v4799_v60 }
 0x5b0   :  { %5155 = vst.msk [vmem:[%s13404_s2 + $0x88] sm:$0xff] %vm5137_vm15, %v4797_v33  ;;  %4924 = vrot.lane.b32.xlu1 %v15595_v45, %s5528_s1  ;;  %4926 = vrot.lane.b32.xlu0 %v15596_v58, %s5528_s1  ;;  %v15627_v45 = vld [vmem:[#allocation162_spill] sm:$0xff] }
 0x5b1   :  { %v15628_v58 = vld [vmem:[#allocation222_spill] sm:$0xff] }
 0x5b2   :  { %v4803_v44 = vpop.permute.xlu0 %4802 }
 0x5b3   :  { %v4801_v35 = vpop.permute.xlu1 %4800  ;;  %5158 = vst.msk [vmem:[%s13404_s2 + $0xa0] sm:$0xff] %vm5137_vm15, %v4803_v44 }
 0x5b4   :  { %5157 = vst.msk [vmem:[%s13404_s2 + $0x98] sm:$0xff] %vm5137_vm15, %v4801_v35  ;;  %4928 = vrot.lane.b32.xlu1 %v15597_v15, %s5528_s1  ;;  %4930 = vrot.lane.b32.xlu0 %v15598_v29, %s5528_s1  ;;  %v15629_v15 = vld [vmem:[#allocation79_spill] sm:$0xff]  ;;  %v15630_v29 = vld [vmem:[#allocation221_spill] sm:$0xff] }
 0x5b6   :  { %v4807_v21 = vpop.permute.xlu0 %4806 }
 0x5b7   :  { %v4805_v11 = vpop.permute.xlu1 %4804  ;;  %5160 = vst.msk [vmem:[%s13404_s2 + $0xb0] sm:$0xff] %vm5137_vm15, %v4807_v21 }
 0x5b8   :  { %5159 = vst.msk [vmem:[%s13404_s2 + $0xa8] sm:$0xff] %vm5137_vm15, %v4805_v11  ;;  %4932 = vrot.lane.b32.xlu1 %v15599_v49, %s5528_s1  ;;  %4934 = vrot.lane.b32.xlu0 %v15600_v61, %s5528_s1  ;;  %v15631_v49 = vld [vmem:[#allocation255_spill] sm:$0xff]  ;;  %v15632_v61 = vld [vmem:[#allocation256_spill] sm:$0xff] }
 0x5ba   :  { %v4811_v57 = vpop.permute.xlu0 %4810 }
 0x5bb   :  { %v4809_v40 = vpop.permute.xlu1 %4808  ;;  %5162 = vst.msk [vmem:[%s13404_s2 + $0xc0] sm:$0xff] %vm5137_vm15, %v4811_v57 }
 0x5bc   :  { %5161 = vst.msk [vmem:[%s13404_s2 + $0xb8] sm:$0xff] %vm5137_vm15, %v4809_v40  ;;  %4936 = vrot.lane.b32.xlu1 %v15601_v54, %s5528_s1  ;;  %4938 = vrot.lane.b32.xlu0 %v15602_v4, %s5528_s1  ;;  %v15633_v54 = vld [vmem:[#allocation61_spill] sm:$0xff]  ;;  %v15634_v4 = vld [vmem:[#allocation224_spill] sm:$0xff] }
 0x5be   :  { %v4815_v19 = vpop.permute.xlu0 %4814 }
 0x5bf   :  { %v4813_v62 = vpop.permute.xlu1 %4812  ;;  %5164 = vst.msk [vmem:[%s13404_s2 + $0xd0] sm:$0xff] %vm5137_vm15, %v4815_v19 }
 0x5c0   :  { %5163 = vst.msk [vmem:[%s13404_s2 + $0xc8] sm:$0xff] %vm5137_vm15, %v4813_v62  ;;  %4940 = vrot.lane.b32.xlu1 %v15603_v37, %s5528_s1  ;;  %4942 = vrot.lane.b32.xlu0 %v15604_v27, %s5528_s1  ;;  %v15635_v37 = vld [vmem:[#allocation257_spill] sm:$0xff]  ;;  %v15636_v27 = vld [vmem:[#allocation87_spill] sm:$0xff] }
 0x5c2   :  { %v4819_v7 = vpop.permute.xlu0 %4818 }
 0x5c3   :  { %v4817_v14 = vpop.permute.xlu1 %4816  ;;  %5166 = vst.msk [vmem:[%s13404_s2 + $0xe0] sm:$0xff] %vm5137_vm15, %v4819_v7 }
 0x5c4   :  { %5165 = vst.msk [vmem:[%s13404_s2 + $0xd8] sm:$0xff] %vm5137_vm15, %v4817_v14  ;;  %4944 = vrot.lane.b32.xlu1 %v15605_v8, %s5528_s1  ;;  %4946 = vrot.lane.b32.xlu0 %v15606_v63, %s5528_s1  ;;  %v15637_v8 = vld [vmem:[#allocation223_spill] sm:$0xff]  ;;  %v15638_v63 = vld [vmem:[#allocation65_spill] sm:$0xff] }
 0x5c6   :  { %v4823_v38 = vpop.permute.xlu0 %4822 }
 0x5c7   :  { %v4821_v13 = vpop.permute.xlu1 %4820  ;;  %5168 = vst.msk [vmem:[%s13404_s2 + $0xf0] sm:$0xff] %vm5137_vm15, %v4823_v38 }
 0x5c8   :  { %5167 = vst.msk [vmem:[%s13404_s2 + $0xe8] sm:$0xff] %vm5137_vm15, %v4821_v13  ;;  %4948 = vrot.lane.b32.xlu1 %v15607_v34, %s5528_s1  ;;  %4950 = vrot.lane.b32.xlu0 %v15608_v24, %s5528_s1 }
 0x5ca   :  { %v4827_v25 = vpop.permute.xlu0 %4826 }
 0x5cb   :  { %v4825_v59 = vpop.permute.xlu1 %4824  ;;  %5170 = vst.msk [vmem:[%s13404_s2 + $0x100] sm:$0xff] %vm5137_vm15, %v4827_v25 }
 0x5cc   :  { %5169 = vst.msk [vmem:[%s13404_s2 + $0xf8] sm:$0xff] %vm5137_vm15, %v4825_v59  ;;  %4952 = vrot.lane.b32.xlu1 %v15609_v18, %s5528_s1  ;;  %4954 = vrot.lane.b32.xlu0 %v15610_v6, %s5528_s1 }
 0x5ce   :  { %v4831_v2 = vpop.permute.xlu0 %4830 }
 0x5cf   :  { %v4829_v26 = vpop.permute.xlu1 %4828  ;;  %5172 = vst.msk [vmem:[%s13404_s2 + $0x110] sm:$0xff] %vm5137_vm15, %v4831_v2 }
 0x5d0   :  { %5171 = vst.msk [vmem:[%s13404_s2 + $0x108] sm:$0xff] %vm5137_vm15, %v4829_v26  ;;  %4956 = vrot.lane.b32.xlu1 %v15611_v43, %s5528_s1  ;;  %4958 = vrot.lane.b32.xlu0 %v15612_v16, %s5528_s1 }
 0x5d2   :  { %v4835_v50 = vpop.permute.xlu0 %4834 }
 0x5d3   :  { %v4833_v51 = vpop.permute.xlu1 %4832  ;;  %5174 = vst.msk [vmem:[%s13404_s2 + $0x120] sm:$0xff] %vm5137_vm15, %v4835_v50 }
 0x5d4   :  { %5173 = vst.msk [vmem:[%s13404_s2 + $0x118] sm:$0xff] %vm5137_vm15, %v4833_v51  ;;  %4960 = vrot.lane.b32.xlu1 %v15613_v42, %s5528_s1  ;;  %4962 = vrot.lane.b32.xlu0 %v15614_v10, %s5528_s1 }
 0x5d6   :  { %v4839_v23 = vpop.permute.xlu0 %4838 }
 0x5d7   :  { %v4837_v9 = vpop.permute.xlu1 %4836  ;;  %5176 = vst.msk [vmem:[%s13404_s2 + $0x130] sm:$0xff] %vm5137_vm15, %v4839_v23 }
 0x5d8   :  { %5175 = vst.msk [vmem:[%s13404_s2 + $0x128] sm:$0xff] %vm5137_vm15, %v4837_v9  ;;  %4964 = vrot.lane.b32.xlu1 %v15615_v12, %s5528_s1  ;;  %4966 = vrot.lane.b32.xlu0 %v15616_v48, %s5528_s1 }
 0x5da   :  { %v4843_v5 = vpop.permute.xlu0 %4842 }
 0x5db   :  { %v4841_v28 = vpop.permute.xlu1 %4840  ;;  %5178 = vst.msk [vmem:[%s13404_s2 + $0x140] sm:$0xff] %vm5137_vm15, %v4843_v5 }
 0x5dc   :  { %5177 = vst.msk [vmem:[%s13404_s2 + $0x138] sm:$0xff] %vm5137_vm15, %v4841_v28  ;;  %4968 = vrot.lane.b32.xlu1 %v15617_v39, %s5528_s1  ;;  %4970 = vrot.lane.b32.xlu0 %v15618_v47, %s5528_s1 }
 0x5de   :  { %v4847_v0 = vpop.permute.xlu0 %4846 }
 0x5df   :  { %v4845_v41 = vpop.permute.xlu1 %4844  ;;  %5180 = vst.msk [vmem:[%s13404_s2 + $0x150] sm:$0xff] %vm5137_vm15, %v4847_v0 }
 0x5e0   :  { %5179 = vst.msk [vmem:[%s13404_s2 + $0x148] sm:$0xff] %vm5137_vm15, %v4845_v41  ;;  %4972 = vrot.lane.b32.xlu1 %v15619_v22, %s5528_s1  ;;  %4974 = vrot.lane.b32.xlu0 %v15620_v17, %s5528_s1 }
 0x5e2   :  { %v4851_v52 = vpop.permute.xlu0 %4850 }
 0x5e3   :  { %v4849_v46 = vpop.permute.xlu1 %4848  ;;  %5182 = vst.msk [vmem:[%s13404_s2 + $0x160] sm:$0xff] %vm5137_vm15, %v4851_v52 }
 0x5e4   :  { %5181 = vst.msk [vmem:[%s13404_s2 + $0x158] sm:$0xff] %vm5137_vm15, %v4849_v46  ;;  %4976 = vrot.lane.b32.xlu1 %v15621_v1, %s5528_s1  ;;  %4978 = vrot.lane.b32.xlu0 %v15622_v3, %s5528_s1 }
 0x5e6   :  { %v4855_v56 = vpop.permute.xlu0 %4854 }
 0x5e7   :  { %v4853_v31 = vpop.permute.xlu1 %4852  ;;  %5184 = vst.msk [vmem:[%s13404_s2 + $0x170] sm:$0xff] %vm5137_vm15, %v4855_v56 }
 0x5e8   :  { %5183 = vst.msk [vmem:[%s13404_s2 + $0x168] sm:$0xff] %vm5137_vm15, %v4853_v31  ;;  %4980 = vrot.lane.b32.xlu1 %v15623_v55, %s5528_s1  ;;  %4982 = vrot.lane.b32.xlu0 %v15624_v20, %s5528_s1 }
 0x5ea   :  { %v4859_v36 = vpop.permute.xlu0 %4858 }
 0x5eb   :  { %v4857_v30 = vpop.permute.xlu1 %4856  ;;  %5186 = vst.msk [vmem:[%s13404_s2 + $0x180] sm:$0xff] %vm5137_vm15, %v4859_v36 }
 0x5ec   :  { %5185 = vst.msk [vmem:[%s13404_s2 + $0x178] sm:$0xff] %vm5137_vm15, %v4857_v30  ;;  %4984 = vrot.lane.b32.xlu1 %v15625_v32, %s5528_s1  ;;  %4986 = vrot.lane.b32.xlu0 %v15626_v53, %s5528_s1 }
 0x5ee   :  { %v4863_v60 = vpop.permute.xlu0 %4862 }
 0x5ef   :  { %v4861_v33 = vpop.permute.xlu1 %4860  ;;  %5188 = vst.msk [vmem:[%s13404_s2 + $0x190] sm:$0xff] %vm5137_vm15, %v4863_v60 }
 0x5f0   :  { %5187 = vst.msk [vmem:[%s13404_s2 + $0x188] sm:$0xff] %vm5137_vm15, %v4861_v33  ;;  %4988 = vrot.lane.b32.xlu1 %v15627_v45, %s5528_s1  ;;  %4990 = vrot.lane.b32.xlu0 %v15628_v58, %s5528_s1 }
 0x5f2   :  { %v4867_v44 = vpop.permute.xlu0 %4866 }
 0x5f3   :  { %v4865_v35 = vpop.permute.xlu1 %4864  ;;  %5190 = vst.msk [vmem:[%s13404_s2 + $0x1a0] sm:$0xff] %vm5137_vm15, %v4867_v44 }
 0x5f4   :  { %5189 = vst.msk [vmem:[%s13404_s2 + $0x198] sm:$0xff] %vm5137_vm15, %v4865_v35  ;;  %4992 = vrot.lane.b32.xlu1 %v15629_v15, %s5528_s1  ;;  %4994 = vrot.lane.b32.xlu0 %v15630_v29, %s5528_s1 }
 0x5f6   :  { %v4871_v21 = vpop.permute.xlu0 %4870 }
 0x5f7   :  { %v4869_v11 = vpop.permute.xlu1 %4868  ;;  %5192 = vst.msk [vmem:[%s13404_s2 + $0x1b0] sm:$0xff] %vm5137_vm15, %v4871_v21 }
 0x5f8   :  { %5191 = vst.msk [vmem:[%s13404_s2 + $0x1a8] sm:$0xff] %vm5137_vm15, %v4869_v11  ;;  %4996 = vrot.lane.b32.xlu1 %v15631_v49, %s5528_s1  ;;  %4998 = vrot.lane.b32.xlu0 %v15632_v61, %s5528_s1 }
 0x5fa   :  { %v4875_v57 = vpop.permute.xlu0 %4874 }
 0x5fb   :  { %v4873_v40 = vpop.permute.xlu1 %4872  ;;  %5194 = vst.msk [vmem:[%s13404_s2 + $0x1c0] sm:$0xff] %vm5137_vm15, %v4875_v57 }
 0x5fc   :  { %5193 = vst.msk [vmem:[%s13404_s2 + $0x1b8] sm:$0xff] %vm5137_vm15, %v4873_v40  ;;  %5000 = vrot.lane.b32.xlu1 %v15633_v54, %s5528_s1  ;;  %5002 = vrot.lane.b32.xlu0 %v15634_v4, %s5528_s1 }
 0x5fe   :  { %v4879_v19 = vpop.permute.xlu0 %4878 }
 0x5ff   :  { %v4877_v62 = vpop.permute.xlu1 %4876  ;;  %5196 = vst.msk [vmem:[%s13404_s2 + $0x1d0] sm:$0xff] %vm5137_vm15, %v4879_v19 }
 0x600   :  { %5195 = vst.msk [vmem:[%s13404_s2 + $0x1c8] sm:$0xff] %vm5137_vm15, %v4877_v62  ;;  %5004 = vrot.lane.b32.xlu1 %v15635_v37, %s5528_s1  ;;  %5006 = vrot.lane.b32.xlu0 %v15636_v27, %s5528_s1 }
 0x602   :  { %v4883_v7 = vpop.permute.xlu0 %4882 }
 0x603   :  { %v4881_v14 = vpop.permute.xlu1 %4880  ;;  %5198 = vst.msk [vmem:[%s13404_s2 + $0x1e0] sm:$0xff] %vm5137_vm15, %v4883_v7 }
 0x604   :  { %5197 = vst.msk [vmem:[%s13404_s2 + $0x1d8] sm:$0xff] %vm5137_vm15, %v4881_v14  ;;  %5008 = vrot.lane.b32.xlu1 %v15637_v8, %s5528_s1  ;;  %5010 = vrot.lane.b32.xlu0 %v15638_v63, %s5528_s1 }
 0x606   :  { %v4887_v38 = vpop.permute.xlu0 %4886 }
 0x607   :  { %v4885_v13 = vpop.permute.xlu1 %4884  ;;  %5200 = vst.msk [vmem:[%s13404_s2 + $0x1f0] sm:$0xff] %vm5137_vm15, %v4887_v38 }
 0x608   :  { %5199 = vst.msk [vmem:[%s13404_s2 + $0x1e8] sm:$0xff] %vm5137_vm15, %v4885_v13 }
 0x60a   :  { %v4891_v24 = vpop.permute.xlu0 %4890 }
 0x60b   :  { %v4889_v34 = vpop.permute.xlu1 %4888  ;;  %5202 = vst.msk [vmem:[%s13404_s2 + $0x200] sm:$0xff] %vm5137_vm15, %v4891_v24 }
 0x60c   :  { %5201 = vst.msk [vmem:[%s13404_s2 + $0x1f8] sm:$0xff] %vm5137_vm15, %v4889_v34 }
 0x60e   :  { %v4895_v25 = vpop.permute.xlu0 %4894 }
 0x60f   :  { %v4893_v59 = vpop.permute.xlu1 %4892  ;;  %5204 = vst.msk [vmem:[%s13404_s2 + $0x210] sm:$0xff] %vm5137_vm15, %v4895_v25 }
 0x610   :  { %5203 = vst.msk [vmem:[%s13404_s2 + $0x208] sm:$0xff] %vm5137_vm15, %v4893_v59 }
 0x612   :  { %v4899_v6 = vpop.permute.xlu0 %4898 }
 0x613   :  { %v4897_v18 = vpop.permute.xlu1 %4896  ;;  %5206 = vst.msk [vmem:[%s13404_s2 + $0x220] sm:$0xff] %vm5137_vm15, %v4899_v6 }
 0x614   :  { %5205 = vst.msk [vmem:[%s13404_s2 + $0x218] sm:$0xff] %vm5137_vm15, %v4897_v18 }
 0x616   :  { %v4903_v2 = vpop.permute.xlu0 %4902 }
 0x617   :  { %v4901_v26 = vpop.permute.xlu1 %4900  ;;  %5208 = vst.msk [vmem:[%s13404_s2 + $0x230] sm:$0xff] %vm5137_vm15, %v4903_v2 }
 0x618   :  { %5207 = vst.msk [vmem:[%s13404_s2 + $0x228] sm:$0xff] %vm5137_vm15, %v4901_v26 }
 0x61a   :  { %v4907_v16 = vpop.permute.xlu0 %4906 }
 0x61b   :  { %v4905_v43 = vpop.permute.xlu1 %4904  ;;  %5210 = vst.msk [vmem:[%s13404_s2 + $0x240] sm:$0xff] %vm5137_vm15, %v4907_v16 }
 0x61c   :  { %5209 = vst.msk [vmem:[%s13404_s2 + $0x238] sm:$0xff] %vm5137_vm15, %v4905_v43 }
 0x61e   :  { %v4911_v50 = vpop.permute.xlu0 %4910 }
 0x61f   :  { %v4909_v51 = vpop.permute.xlu1 %4908  ;;  %5212 = vst.msk [vmem:[%s13404_s2 + $0x250] sm:$0xff] %vm5137_vm15, %v4911_v50 }
 0x620   :  { %5211 = vst.msk [vmem:[%s13404_s2 + $0x248] sm:$0xff] %vm5137_vm15, %v4909_v51 }
 0x622   :  { %v4915_v10 = vpop.permute.xlu0 %4914 }
 0x623   :  { %v4913_v42 = vpop.permute.xlu1 %4912  ;;  %5214 = vst.msk [vmem:[%s13404_s2 + $0x260] sm:$0xff] %vm5137_vm15, %v4915_v10 }
 0x624   :  { %5213 = vst.msk [vmem:[%s13404_s2 + $0x258] sm:$0xff] %vm5137_vm15, %v4913_v42 }
 0x626   :  { %v4919_v23 = vpop.permute.xlu0 %4918 }
 0x627   :  { %v4917_v9 = vpop.permute.xlu1 %4916  ;;  %5216 = vst.msk [vmem:[%s13404_s2 + $0x270] sm:$0xff] %vm5137_vm15, %v4919_v23 }
 0x628   :  { %5215 = vst.msk [vmem:[%s13404_s2 + $0x268] sm:$0xff] %vm5137_vm15, %v4917_v9 }
 0x62a   :  { %v4923_v48 = vpop.permute.xlu0 %4922 }
 0x62b   :  { %v4921_v12 = vpop.permute.xlu1 %4920  ;;  %5218 = vst.msk [vmem:[%s13404_s2 + $0x280] sm:$0xff] %vm5137_vm15, %v4923_v48 }
 0x62c   :  { %5217 = vst.msk [vmem:[%s13404_s2 + $0x278] sm:$0xff] %vm5137_vm15, %v4921_v12 }
 0x62e   :  { %v4927_v5 = vpop.permute.xlu0 %4926 }
 0x62f   :  { %v4925_v28 = vpop.permute.xlu1 %4924  ;;  %5220 = vst.msk [vmem:[%s13404_s2 + $0x290] sm:$0xff] %vm5137_vm15, %v4927_v5 }
 0x630   :  { %5219 = vst.msk [vmem:[%s13404_s2 + $0x288] sm:$0xff] %vm5137_vm15, %v4925_v28 }
 0x632   :  { %v4931_v47 = vpop.permute.xlu0 %4930 }
 0x633   :  { %v4929_v39 = vpop.permute.xlu1 %4928  ;;  %5222 = vst.msk [vmem:[%s13404_s2 + $0x2a0] sm:$0xff] %vm5137_vm15, %v4931_v47 }
 0x634   :  { %5221 = vst.msk [vmem:[%s13404_s2 + $0x298] sm:$0xff] %vm5137_vm15, %v4929_v39 }
 0x636   :  { %v4935_v0 = vpop.permute.xlu0 %4934 }
 0x637   :  { %v4933_v41 = vpop.permute.xlu1 %4932  ;;  %5224 = vst.msk [vmem:[%s13404_s2 + $0x2b0] sm:$0xff] %vm5137_vm15, %v4935_v0 }
 0x638   :  { %5223 = vst.msk [vmem:[%s13404_s2 + $0x2a8] sm:$0xff] %vm5137_vm15, %v4933_v41 }
 0x63a   :  { %v4939_v17 = vpop.permute.xlu0 %4938 }
 0x63b   :  { %v4937_v22 = vpop.permute.xlu1 %4936  ;;  %5226 = vst.msk [vmem:[%s13404_s2 + $0x2c0] sm:$0xff] %vm5137_vm15, %v4939_v17 }
 0x63c   :  { %5225 = vst.msk [vmem:[%s13404_s2 + $0x2b8] sm:$0xff] %vm5137_vm15, %v4937_v22 }
 0x63e   :  { %v4943_v52 = vpop.permute.xlu0 %4942 }
 0x63f   :  { %v4941_v46 = vpop.permute.xlu1 %4940  ;;  %5228 = vst.msk [vmem:[%s13404_s2 + $0x2d0] sm:$0xff] %vm5137_vm15, %v4943_v52 }
 0x640   :  { %5227 = vst.msk [vmem:[%s13404_s2 + $0x2c8] sm:$0xff] %vm5137_vm15, %v4941_v46 }
 0x642   :  { %v4947_v3 = vpop.permute.xlu0 %4946 }
 0x643   :  { %v4945_v1 = vpop.permute.xlu1 %4944  ;;  %5230 = vst.msk [vmem:[%s13404_s2 + $0x2e0] sm:$0xff] %vm5137_vm15, %v4947_v3 }
 0x644   :  { %5229 = vst.msk [vmem:[%s13404_s2 + $0x2d8] sm:$0xff] %vm5137_vm15, %v4945_v1 }
 0x646   :  { %v4951_v56 = vpop.permute.xlu0 %4950 }
 0x647   :  { %v4949_v31 = vpop.permute.xlu1 %4948  ;;  %5232 = vst.msk [vmem:[%s13404_s2 + $0x2f0] sm:$0xff] %vm5137_vm15, %v4951_v56 }
 0x648   :  { %5231 = vst.msk [vmem:[%s13404_s2 + $0x2e8] sm:$0xff] %vm5137_vm15, %v4949_v31 }
 0x64a   :  { %v4955_v20 = vpop.permute.xlu0 %4954 }
 0x64b   :  { %v4953_v55 = vpop.permute.xlu1 %4952  ;;  %5234 = vst.msk [vmem:[%s13404_s2 + $0x300] sm:$0xff] %vm5137_vm15, %v4955_v20 }
 0x64c   :  { %5233 = vst.msk [vmem:[%s13404_s2 + $0x2f8] sm:$0xff] %vm5137_vm15, %v4953_v55 }
 0x64e   :  { %v4959_v36 = vpop.permute.xlu0 %4958 }
 0x64f   :  { %v4957_v30 = vpop.permute.xlu1 %4956  ;;  %5236 = vst.msk [vmem:[%s13404_s2 + $0x310] sm:$0xff] %vm5137_vm15, %v4959_v36 }
 0x650   :  { %5235 = vst.msk [vmem:[%s13404_s2 + $0x308] sm:$0xff] %vm5137_vm15, %v4957_v30 }
 0x652   :  { %v4963_v53 = vpop.permute.xlu0 %4962 }
 0x653   :  { %v4961_v32 = vpop.permute.xlu1 %4960  ;;  %5238 = vst.msk [vmem:[%s13404_s2 + $0x320] sm:$0xff] %vm5137_vm15, %v4963_v53 }
 0x654   :  { %5237 = vst.msk [vmem:[%s13404_s2 + $0x318] sm:$0xff] %vm5137_vm15, %v4961_v32 }
 0x656   :  { %v4967_v60 = vpop.permute.xlu0 %4966 }
 0x657   :  { %v4965_v33 = vpop.permute.xlu1 %4964  ;;  %5240 = vst.msk [vmem:[%s13404_s2 + $0x330] sm:$0xff] %vm5137_vm15, %v4967_v60 }
 0x658   :  { %5239 = vst.msk [vmem:[%s13404_s2 + $0x328] sm:$0xff] %vm5137_vm15, %v4965_v33 }
 0x65a   :  { %v4971_v58 = vpop.permute.xlu0 %4970 }
 0x65b   :  { %v4969_v45 = vpop.permute.xlu1 %4968  ;;  %5242 = vst.msk [vmem:[%s13404_s2 + $0x340] sm:$0xff] %vm5137_vm15, %v4971_v58 }
 0x65c   :  { %5241 = vst.msk [vmem:[%s13404_s2 + $0x338] sm:$0xff] %vm5137_vm15, %v4969_v45 }
 0x65e   :  { %v4975_v44 = vpop.permute.xlu0 %4974 }
 0x65f   :  { %v4973_v35 = vpop.permute.xlu1 %4972  ;;  %5244 = vst.msk [vmem:[%s13404_s2 + $0x350] sm:$0xff] %vm5137_vm15, %v4975_v44 }
 0x660   :  { %5243 = vst.msk [vmem:[%s13404_s2 + $0x348] sm:$0xff] %vm5137_vm15, %v4973_v35 }
 0x662   :  { %v4979_v29 = vpop.permute.xlu0 %4978 }
 0x663   :  { %v4977_v15 = vpop.permute.xlu1 %4976  ;;  %5246 = vst.msk [vmem:[%s13404_s2 + $0x360] sm:$0xff] %vm5137_vm15, %v4979_v29 }
 0x664   :  { %5245 = vst.msk [vmem:[%s13404_s2 + $0x358] sm:$0xff] %vm5137_vm15, %v4977_v15 }
 0x666   :  { %v4983_v21 = vpop.permute.xlu0 %4982 }
 0x667   :  { %v4981_v11 = vpop.permute.xlu1 %4980  ;;  %5248 = vst.msk [vmem:[%s13404_s2 + $0x370] sm:$0xff] %vm5137_vm15, %v4983_v21 }
 0x668   :  { %5247 = vst.msk [vmem:[%s13404_s2 + $0x368] sm:$0xff] %vm5137_vm15, %v4981_v11 }
 0x66a   :  { %v4987_v61 = vpop.permute.xlu0 %4986 }
 0x66b   :  { %v4985_v49 = vpop.permute.xlu1 %4984  ;;  %5250 = vst.msk [vmem:[%s13404_s2 + $0x380] sm:$0xff] %vm5137_vm15, %v4987_v61 }
 0x66c   :  { %5249 = vst.msk [vmem:[%s13404_s2 + $0x378] sm:$0xff] %vm5137_vm15, %v4985_v49 }
 0x66e   :  { %v4991_v57 = vpop.permute.xlu0 %4990 }
 0x66f   :  { %v4989_v40 = vpop.permute.xlu1 %4988  ;;  %5252 = vst.msk [vmem:[%s13404_s2 + $0x390] sm:$0xff] %vm5137_vm15, %v4991_v57 }
 0x670   :  { %5251 = vst.msk [vmem:[%s13404_s2 + $0x388] sm:$0xff] %vm5137_vm15, %v4989_v40 }
 0x672   :  { %v4995_v4 = vpop.permute.xlu0 %4994 }
 0x673   :  { %v4993_v54 = vpop.permute.xlu1 %4992  ;;  %5254 = vst.msk [vmem:[%s13404_s2 + $0x3a0] sm:$0xff] %vm5137_vm15, %v4995_v4 }
 0x674   :  { %5253 = vst.msk [vmem:[%s13404_s2 + $0x398] sm:$0xff] %vm5137_vm15, %v4993_v54 }
 0x676   :  { %v4999_v19 = vpop.permute.xlu0 %4998 }
 0x677   :  { %v4997_v62 = vpop.permute.xlu1 %4996  ;;  %5256 = vst.msk [vmem:[%s13404_s2 + $0x3b0] sm:$0xff] %vm5137_vm15, %v4999_v19 }
 0x678   :  { %5255 = vst.msk [vmem:[%s13404_s2 + $0x3a8] sm:$0xff] %vm5137_vm15, %v4997_v62 }
 0x67a   :  { %v5003_v27 = vpop.permute.xlu0 %5002 }
 0x67b   :  { %v5001_v37 = vpop.permute.xlu1 %5000  ;;  %5258 = vst.msk [vmem:[%s13404_s2 + $0x3c0] sm:$0xff] %vm5137_vm15, %v5003_v27 }
 0x67c   :  { %5257 = vst.msk [vmem:[%s13404_s2 + $0x3b8] sm:$0xff] %vm5137_vm15, %v5001_v37 }
 0x67e   :  { %v5007_v7 = vpop.permute.xlu0 %5006 }
 0x67f   :  { %v5005_v14 = vpop.permute.xlu1 %5004  ;;  %5260 = vst.msk [vmem:[%s13404_s2 + $0x3d0] sm:$0xff] %vm5137_vm15, %v5007_v7 }
 0x680   :  { %5259 = vst.msk [vmem:[%s13404_s2 + $0x3c8] sm:$0xff] %vm5137_vm15, %v5005_v14 }
 0x682   :  { %v5011_v63 = vpop.permute.xlu0 %5010 }
 0x683   :  { %v5009_v8 = vpop.permute.xlu1 %5008  ;;  %5262 = vst.msk [vmem:[%s13404_s2 + $0x3e0] sm:$0xff] %vm5137_vm15, %v5011_v63 }
 0x684   :  { %5261 = vst.msk [vmem:[%s13404_s2 + $0x3d8] sm:$0xff] %vm5137_vm15, %v5009_v8 }

</bundles_post_ra>
